<compile_context>
chip_gen: v5e
topology: v5e:2x2
jax: 0.10.0
libtpu: 0.0.40
codegen_flags: <defaults>
</compile_context>

<pallas_src>
import jax
import jax.numpy as jnp
from jax.experimental import pallas as pl
from jax.experimental.pallas import tpu as pltpu

# Model hyper-parameters (match the PyTorch defaults)
TOKEN_NUM = 16
DIM = 64
NUM_HEADS = 8
ATTN_RATIO = 4
KQ_DIM = DIM // ATTN_RATIO          # 16
V_DIM = DIM                         # 64
NH_KQ = KQ_DIM * NUM_HEADS          # 128
NH_V = V_DIM * NUM_HEADS            # 512
QKV_OUT = 2 * NH_KQ + NH_V          # 768
HEAD_STRIDE = 2 * KQ_DIM + V_DIM    # 96 (per-head chunk in the ORIGINAL layout)
SCALE = KQ_DIM ** (-0.5)


def _attention_kernel(x_ref, wqkv_ref, qkv_bias_ref, pos_ref,
                      wproj_ref, proj_bias_ref, o_ref, hid_ref):
    """One grid step processes BB batch elements end-to-end.

    x_ref    : (BB, N, C)        bf16
    wqkv_ref : (C, QKV_OUT)      bf16, pre-transposed, columns regrouped
                                 [Q | K | V] head-major, BN+attn scale folded
    qkv_bias_ref : (1, QKV_OUT)  f32, same column order / folding
    pos_ref  : (H, N, N)         f32
    wproj_ref: (NH_V, C)         bf16, pre-transposed, BN scale folded
    proj_bias_ref : (1, C)       f32
    o_ref    : (BB, N, C)        f32 output
    hid_ref  : (BB*N, NH_V)      bf16 scratch (concatenated head outputs)
    """
    BB, N, C = x_ref.shape
    BBN = BB * N

    # --- qkv = Linear_BN(x): scale folded into the weight, only bias here ---
    xf = x_ref[...].reshape(BBN, C)                          # leading-dim collapse
    qkv = jnp.dot(xf, wqkv_ref[...],
                  preferred_element_type=jnp.float32)        # (BBN, 768)
    qkv = qkv + qkv_bias_ref[...]
    qkv3 = qkv.reshape(BB, N, QKV_OUT)

    # --- per-head attention; heads processed in pairs so the hid stores are
    #     128-lane aligned (unmasked vst) ---
    for hp in range(NUM_HEADS // 2):
        pair = []
        for h in (2 * hp, 2 * hp + 1):
            # Regrouped layout: Q columns [0,128), K [128,256), V [256,768),
            # head-major inside each group -> slices never cross a lane tile.
            q_h = qkv3[:, :, h * KQ_DIM:(h + 1) * KQ_DIM].astype(jnp.bfloat16)
            k_h = qkv3[:, :, NH_KQ + h * KQ_DIM:
                        NH_KQ + (h + 1) * KQ_DIM].astype(jnp.bfloat16)
            v_h = qkv3[:, :, 2 * NH_KQ + h * V_DIM:
                        2 * NH_KQ + (h + 1) * V_DIM].astype(jnp.bfloat16)

            s = jnp.einsum('bqd,bkd->bqk', q_h, k_h,
                           preferred_element_type=jnp.float32)  # (BB, N, N)
            s = s + pos_ref[h]                                  # broadcast over BB

            # numerically stable softmax; reciprocal goes to the EUP slot
            s = s - jnp.max(s, axis=-1, keepdims=True)
            p = jnp.exp(s)
            p = p * pl.reciprocal(jnp.sum(p, axis=-1, keepdims=True), approx=True)

            o_h = jnp.einsum('bqk,bkd->bqd', p.astype(jnp.bfloat16), v_h,
                             preferred_element_type=jnp.float32)  # (BB, N, V)

            # Hardtanh is elementwise -> clipping per head == clipping the concat.
            pair.append(jnp.clip(o_h, -1.0, 1.0))

        blk = jnp.concatenate(pair, axis=-1)                    # (BB, N, 128)
        hid_ref[:, hp * 2 * V_DIM:(hp + 1) * 2 * V_DIM] = (
            blk.reshape(BBN, 2 * V_DIM).astype(jnp.bfloat16))

    # --- proj = Linear_BN(NH_V, DIM): one big K=512 matmul fed from scratch ---
    y = jnp.dot(hid_ref[...], wproj_ref[...],
                preferred_element_type=jnp.float32)             # (BBN, C)
    y = y + proj_bias_ref[...]
    o_ref[...] = y.reshape(BB, N, C).astype(o_ref.dtype)


def _is_multi_tensorcore():
    """True on chips with >1 TensorCore per chip (v7x); False on v5e/v6e."""
    try:
        kind = jax.devices()[0].device_kind.lower()
        return "v7" in kind
    except Exception:
        return True   # conservative default: keep the grid splittable


def _pick_block_batch(B):
    """BB batch elements per grid step.

    Single-TC chips (v5e/v6e): one big block (BB up to 64, grid may be 1) to
    amortize the ~0.35us/step overhead and keep matmul M = BB*16 large.
    v7x (2 TCs): keep grid >= 2 so the 'parallel' axis shards across cores.
    """
    bb = min(64, B)
    if _is_multi_tensorcore() and B > 1:
        if (B + bb - 1) // bb < 2:
            bb = max(1, B // 2)
    return bb


def _full_spec(shape):
    n = len(shape)
    return pl.BlockSpec(shape, lambda i: (0,) * n)


def _qkv_column_perm():
    """new_column -> original_column map for the [Q|K|V] head-major regrouping."""
    h = jnp.arange(NUM_HEADS)
    j16 = jnp.arange(KQ_DIM)
    j64 = jnp.arange(V_DIM)
    q_cols = (h[:, None] * HEAD_STRIDE + j16[None, :]).reshape(-1)            # 128
    k_cols = (h[:, None] * HEAD_STRIDE + KQ_DIM + j16[None, :]).reshape(-1)   # 128
    v_cols = (h[:, None] * HEAD_STRIDE + 2 * KQ_DIM + j64[None, :]).reshape(-1)  # 512
    return jnp.concatenate([q_cols, k_cols, v_cols])


@jax.jit
def attention_module_pallas(x, wqkv, qkv_scale, qkv_bias,
                            pos_bias, wproj, proj_scale, proj_bias):
    B, N, C = x.shape
    assert N == TOKEN_NUM and C == DIM

    BB = _pick_block_batch(B)
    B_pad = ((B + BB - 1) // BB) * BB
    grid = B_pad // BB

    # --- one-time weight plumbing (would happen at weight-load in a model) ---
    perm = _qkv_column_perm()
    # Fold BN scale, transpose, regroup columns head-major [Q|K|V].
    wqkv_t = (wqkv * qkv_scale.reshape(QKV_OUT, 1)).T            # (C, QKV_OUT)
    wqkv_t = wqkv_t[:, perm]
    qkv_bias_t = qkv_bias[:, perm]
    # Fold the attention 1/sqrt(d) scale into the q columns (first NH_KQ).
    qmul = jnp.where(jnp.arange(QKV_OUT) < NH_KQ, SCALE, 1.0).astype(jnp.float32)
    wqkv_f = (wqkv_t * qmul[None, :]).astype(jnp.bfloat16)       # bf16 MXU operand
    qkv_bias_f = (qkv_bias_t * qmul[None, :]).astype(jnp.float32)
    wproj_f = ((wproj * proj_scale.reshape(DIM, 1)).T).astype(jnp.bfloat16)  # (NH_V, C)
    proj_bias_f = proj_bias.astype(jnp.float32)

    x_p = x.astype(jnp.bfloat16)
    if B_pad != B:
        x_p = jnp.pad(x_p, ((0, B_pad - B), (0, 0), (0, 0)))

    out = pl.pallas_call(
        _attention_kernel,
        out_shape=jax.ShapeDtypeStruct((B_pad, N, C), x.dtype),
        grid_spec=pltpu.PrefetchScalarGridSpec(
            num_scalar_prefetch=0,
            grid=(grid,),
            in_specs=[
                pl.BlockSpec((BB, N, C), lambda i: (i, 0, 0)),   # x (bf16)
                _full_spec((DIM, QKV_OUT)),                      # Wqkv (folded, regrouped, bf16)
                _full_spec((1, QKV_OUT)),                        # qkv bias (folded, regrouped)
                _full_spec((NUM_HEADS, TOKEN_NUM, TOKEN_NUM)),   # pos_bias
                _full_spec((NH_V, DIM)),                         # Wproj (folded, bf16)
                _full_spec((1, DIM)),                            # proj bias
            ],
            out_specs=pl.BlockSpec((BB, N, C), lambda i: (i, 0, 0)),
            scratch_shapes=[pltpu.VMEM((BB * TOKEN_NUM, NH_V), jnp.bfloat16)],
        ),
        compiler_params=pltpu.CompilerParams(
            dimension_semantics=("parallel",)),
    )(x_p, wqkv_f, qkv_bias_f, pos_bias, wproj_f, proj_bias_f)

    return out[:B]


def _reference(x, wqkv, qkv_scale, qkv_bias, pos_bias, wproj,
               proj_scale, proj_bias):
    """Pure-JAX f32 reference mirroring the PyTorch forward (BN folded)."""
    B, N, C = x.shape
    qkv = jnp.einsum('bnc,oc->bno', x, wqkv) * qkv_scale + qkv_bias
    qkv = qkv.reshape(B, N, NUM_HEADS, HEAD_STRIDE)
    q = qkv[..., :KQ_DIM].transpose(0, 2, 1, 3)              # (B,H,N,KQ)
    k = qkv[..., KQ_DIM:2 * KQ_DIM].transpose(0, 2, 1, 3)
    v = qkv[..., 2 * KQ_DIM:].transpose(0, 2, 1, 3)          # (B,H,N,V)
    attn = jnp.einsum('bhnd,bhmd->bhnm', q, k) * SCALE + pos_bias
    attn = jax.nn.softmax(attn, axis=-1)
    out = jnp.einsum('bhnm,bhmd->bhnd', attn, v)
    out = out.transpose(0, 2, 1, 3).reshape(B, N, NH_V)
    out = jnp.clip(out, -1.0, 1.0)
    y = jnp.einsum('bnv,dv->bnd', out, wproj) * proj_scale + proj_bias
    return y


def _init_params(key):
    ks = jax.random.split(key, 10)
    eps = 1e-5

    def bn_fold(kw, kb, km, kv, n):
        gamma = jax.random.uniform(kw, (n,), minval=0.5, maxval=1.5)
        beta = 0.1 * jax.random.normal(kb, (n,))
        mean = 0.1 * jax.random.normal(km, (n,))
        var = jax.random.uniform(kv, (n,), minval=0.5, maxval=1.5)
        scale = gamma / jnp.sqrt(var + eps)
        bias = beta - mean * scale
        return scale.reshape(1, n).astype(jnp.float32), \
               bias.reshape(1, n).astype(jnp.float32)

    wqkv = (0.05 * jax.random.normal(ks[0], (QKV_OUT, DIM))).astype(jnp.float32)
    qkv_scale, qkv_bias = bn_fold(ks[1], ks[2], ks[3], ks[4], QKV_OUT)
    pos_bias = jax.random.normal(ks[5], (NUM_HEADS, TOKEN_NUM, TOKEN_NUM)
                                 ).astype(jnp.float32)
    wproj = (0.05 * jax.random.normal(ks[6], (DIM, NH_V))).astype(jnp.float32)
    # NOTE: PyTorch init sets proj BN weight to 0 (bn_weight_init=0), which would
    # zero the output; we use nonzero synthetic BN stats for a non-degenerate test.
    proj_scale, proj_bias = bn_fold(ks[7], ks[8], ks[9], ks[4], DIM)
    return wqkv, qkv_scale, qkv_bias, pos_bias, wproj, proj_scale, proj_bias


if __name__ == "__main__":
    key = jax.random.PRNGKey(0)
    k_x, k_p = jax.random.split(key)

    B = 8
    x = jax.random.normal(k_x, (B, TOKEN_NUM, DIM), dtype=jnp.float32)
    params = _init_params(k_p)

    out = attention_module_pallas(x, *params)
    out = jax.block_until_ready(out)

    ref = _reference(x, *params)
    assert out.shape == (B, TOKEN_NUM, DIM)
    assert bool(jnp.all(jnp.isfinite(out)))
    # Tolerance reflects bf16 MXU operands (f32 accumulation) through three
    # chained matmuls plus the approx (EUP) reciprocal in the softmax; the f32
    # reference differs from the kernel by O(1e-2) on O(1)-magnitude outputs.
    max_err = float(jnp.max(jnp.abs(out - ref)))
    assert jnp.allclose(out, ref, rtol=5e-2, atol=5e-2), max_err

    print("KERNEL_OK")
</pallas_src>

<mosaic_0001>
module attributes {stable_mosaic.version = 11 : i64} {
  func.func @_attention_kernel(%arg0: i32, %arg1: memref<8x16x64xbf16, #tpu.memory_space<vmem>>, %arg2: memref<64x768xbf16, #tpu.memory_space<vmem>>, %arg3: memref<1x768xf32, #tpu.memory_space<vmem>>, %arg4: memref<8x16x16xf32, #tpu.memory_space<vmem>>, %arg5: memref<512x64xbf16, #tpu.memory_space<vmem>>, %arg6: memref<1x64xf32, #tpu.memory_space<vmem>>, %arg7: memref<8x16x64xf32, #tpu.memory_space<vmem>>, %arg8: memref<128x512xbf16, #tpu.memory_space<vmem>>) attributes {dimension_semantics = [#tpu.dimension_semantics<parallel>], iteration_bounds = array<i64: 1>, scalar_prefetch = 0 : i64, scratch_operands = 1 : i64, tpu.core_type = #tpu.core_type<tc>, window_params = [{transform_indices = @transform_0, window_bounds = array<i64: 8, 16, 64>}, {pipeline_mode = #tpu.pipeline_mode<synchronous>, transform_indices = @transform_1, window_bounds = array<i64: 64, 768>}, {pipeline_mode = #tpu.pipeline_mode<synchronous>, transform_indices = @transform_2, window_bounds = array<i64: 1, 768>}, {pipeline_mode = #tpu.pipeline_mode<synchronous>, transform_indices = @transform_3, window_bounds = array<i64: 8, 16, 16>}, {pipeline_mode = #tpu.pipeline_mode<synchronous>, transform_indices = @transform_4, window_bounds = array<i64: 512, 64>}, {pipeline_mode = #tpu.pipeline_mode<synchronous>, transform_indices = @transform_5, window_bounds = array<i64: 1, 64>}, {transform_indices = @transform_6, window_bounds = array<i64: 8, 16, 64>}]} {
    %c0 = arith.constant 0 : index
    %c0_0 = arith.constant 0 : index
    %c0_1 = arith.constant 0 : index
    %0 = vector.load %arg1[%c0, %c0_0, %c0_1] : memref<8x16x64xbf16, #tpu.memory_space<vmem>>, vector<8x16x64xbf16>
    %1 = vector.shape_cast %0 : vector<8x16x64xbf16> to vector<128x64xbf16>
    %c0_2 = arith.constant 0 : index
    %c0_3 = arith.constant 0 : index
    %2 = vector.load %arg2[%c0_2, %c0_3] : memref<64x768xbf16, #tpu.memory_space<vmem>>, vector<64x768xbf16>
    %cst = arith.constant dense<0.000000e+00> : vector<128x768xf32>
    %3 = tpu.matmul %1, %2, %cst {dimension_numbers = #tpu.dot_dimension_numbers<[1], [0], [0], [1], [0, 0, 1, 1], [], []>} : vector<128x64xbf16>, vector<64x768xbf16>, vector<128x768xf32> -> vector<128x768xf32>
    %c0_4 = arith.constant 0 : index
    %c0_5 = arith.constant 0 : index
    %4 = vector.load %arg3[%c0_4, %c0_5] : memref<1x768xf32, #tpu.memory_space<vmem>>, vector<1x768xf32>
    %5 = vector.broadcast %4 : vector<1x768xf32> to vector<128x768xf32>
    %6 = arith.addf %3, %5 : vector<128x768xf32>
    %7 = vector.shape_cast %6 : vector<128x768xf32> to vector<8x16x768xf32>
    %8 = vector.extract_strided_slice %7 {offsets = [0, 0, 0], sizes = [8, 16, 16], strides = [1, 1, 1]} : vector<8x16x768xf32> to vector<8x16x16xf32>
    %9 = arith.truncf %8 : vector<8x16x16xf32> to vector<8x16x16xbf16>
    %10 = vector.extract_strided_slice %7 {offsets = [0, 0, 128], sizes = [8, 16, 16], strides = [1, 1, 1]} : vector<8x16x768xf32> to vector<8x16x16xf32>
    %11 = arith.truncf %10 : vector<8x16x16xf32> to vector<8x16x16xbf16>
    %12 = vector.extract_strided_slice %7 {offsets = [0, 0, 256], sizes = [8, 16, 64], strides = [1, 1, 1]} : vector<8x16x768xf32> to vector<8x16x64xf32>
    %13 = arith.truncf %12 : vector<8x16x64xf32> to vector<8x16x64xbf16>
    "tpu.trace_start"() <{level = 10 : i32, message = "bqd,bkd->bqk"}> : () -> ()
    %cst_6 = arith.constant dense<0.000000e+00> : vector<8x16x16xf32>
    %14 = tpu.matmul %9, %11, %cst_6 {dimension_numbers = #tpu.dot_dimension_numbers<[2], [2], [1], [1], [0, 0, 0, 1, 1, 1], [0], [0]>} : vector<8x16x16xbf16>, vector<8x16x16xbf16>, vector<8x16x16xf32> -> vector<8x16x16xf32>
    "tpu.trace_stop"() : () -> ()
    %c0_7 = arith.constant 0 : index
    %c0_8 = arith.constant 0 : index
    %c0_9 = arith.constant 0 : index
    %15 = vector.load %arg4[%c0_7, %c0_8, %c0_9] : memref<8x16x16xf32, #tpu.memory_space<vmem>>, vector<1x16x16xf32>
    %16 = vector.shape_cast %15 : vector<1x16x16xf32> to vector<16x16xf32>
    %17 = vector.shape_cast %16 : vector<16x16xf32> to vector<1x16x16xf32>
    %18 = vector.broadcast %17 : vector<1x16x16xf32> to vector<8x16x16xf32>
    %19 = arith.addf %14, %18 : vector<8x16x16xf32>
    %cst_10 = arith.constant dense<0xFF800000> : vector<8x16xf32>
    %20 = vector.multi_reduction <maximumf>, %19, %cst_10 [2] : vector<8x16x16xf32> to vector<8x16xf32>
    %21 = vector.shape_cast %20 : vector<8x16xf32> to vector<8x16x1xf32>
    %22 = vector.broadcast %21 : vector<8x16x1xf32> to vector<8x16x16xf32>
    %23 = arith.subf %19, %22 : vector<8x16x16xf32>
    %24 = math.exp %23 : vector<8x16x16xf32>
    %cst_11 = arith.constant dense<0.000000e+00> : vector<8x16xf32>
    %25 = vector.multi_reduction <add>, %24, %cst_11 [2] : vector<8x16x16xf32> to vector<8x16xf32>
    %26 = vector.shape_cast %25 : vector<8x16xf32> to vector<8x16x1xf32>
    %27 = tpu.reciprocal %26 {approx = true} : vector<8x16x1xf32> -> vector<8x16x1xf32>
    %28 = vector.broadcast %27 : vector<8x16x1xf32> to vector<8x16x16xf32>
    %29 = arith.mulf %24, %28 : vector<8x16x16xf32>
    %30 = arith.truncf %29 : vector<8x16x16xf32> to vector<8x16x16xbf16>
    "tpu.trace_start"() <{level = 10 : i32, message = "bqk,bkd->bqd"}> : () -> ()
    %cst_12 = arith.constant dense<0.000000e+00> : vector<8x16x64xf32>
    %31 = tpu.matmul %30, %13, %cst_12 {dimension_numbers = #tpu.dot_dimension_numbers<[2], [1], [1], [2], [0, 0, 0, 1, 1, 2], [0], [0]>} : vector<8x16x16xbf16>, vector<8x16x64xbf16>, vector<8x16x64xf32> -> vector<8x16x64xf32>
    %cst_13 = arith.constant -1.000000e+00 : f32
    %cst_14 = arith.constant 1.000000e+00 : f32
    "tpu.trace_stop"() : () -> ()
    %32 = vector.broadcast %cst_13 : f32 to vector<8x16x64xf32>
    %33 = arith.maximumf %32, %31 : vector<8x16x64xf32>
    %34 = vector.broadcast %cst_14 : f32 to vector<8x16x64xf32>
    %35 = arith.minimumf %34, %33 : vector<8x16x64xf32>
    %36 = vector.extract_strided_slice %7 {offsets = [0, 0, 16], sizes = [8, 16, 16], strides = [1, 1, 1]} : vector<8x16x768xf32> to vector<8x16x16xf32>
    %37 = arith.truncf %36 : vector<8x16x16xf32> to vector<8x16x16xbf16>
    %38 = vector.extract_strided_slice %7 {offsets = [0, 0, 144], sizes = [8, 16, 16], strides = [1, 1, 1]} : vector<8x16x768xf32> to vector<8x16x16xf32>
    %39 = arith.truncf %38 : vector<8x16x16xf32> to vector<8x16x16xbf16>
    %40 = vector.extract_strided_slice %7 {offsets = [0, 0, 320], sizes = [8, 16, 64], strides = [1, 1, 1]} : vector<8x16x768xf32> to vector<8x16x64xf32>
    %41 = arith.truncf %40 : vector<8x16x64xf32> to vector<8x16x64xbf16>
    "tpu.trace_start"() <{level = 10 : i32, message = "bqd,bkd->bqk"}> : () -> ()
    %cst_15 = arith.constant dense<0.000000e+00> : vector<8x16x16xf32>
    %42 = tpu.matmul %37, %39, %cst_15 {dimension_numbers = #tpu.dot_dimension_numbers<[2], [2], [1], [1], [0, 0, 0, 1, 1, 1], [0], [0]>} : vector<8x16x16xbf16>, vector<8x16x16xbf16>, vector<8x16x16xf32> -> vector<8x16x16xf32>
    "tpu.trace_stop"() : () -> ()
    %c1 = arith.constant 1 : index
    %c0_16 = arith.constant 0 : index
    %c0_17 = arith.constant 0 : index
    %43 = vector.load %arg4[%c1, %c0_16, %c0_17] : memref<8x16x16xf32, #tpu.memory_space<vmem>>, vector<1x16x16xf32>
    %44 = vector.shape_cast %43 : vector<1x16x16xf32> to vector<16x16xf32>
    %45 = vector.shape_cast %44 : vector<16x16xf32> to vector<1x16x16xf32>
    %46 = vector.broadcast %45 : vector<1x16x16xf32> to vector<8x16x16xf32>
    %47 = arith.addf %42, %46 : vector<8x16x16xf32>
    %cst_18 = arith.constant dense<0xFF800000> : vector<8x16xf32>
    %48 = vector.multi_reduction <maximumf>, %47, %cst_18 [2] : vector<8x16x16xf32> to vector<8x16xf32>
    %49 = vector.shape_cast %48 : vector<8x16xf32> to vector<8x16x1xf32>
    %50 = vector.broadcast %49 : vector<8x16x1xf32> to vector<8x16x16xf32>
    %51 = arith.subf %47, %50 : vector<8x16x16xf32>
    %52 = math.exp %51 : vector<8x16x16xf32>
    %cst_19 = arith.constant dense<0.000000e+00> : vector<8x16xf32>
    %53 = vector.multi_reduction <add>, %52, %cst_19 [2] : vector<8x16x16xf32> to vector<8x16xf32>
    %54 = vector.shape_cast %53 : vector<8x16xf32> to vector<8x16x1xf32>
    %55 = tpu.reciprocal %54 {approx = true} : vector<8x16x1xf32> -> vector<8x16x1xf32>
    %56 = vector.broadcast %55 : vector<8x16x1xf32> to vector<8x16x16xf32>
    %57 = arith.mulf %52, %56 : vector<8x16x16xf32>
    %58 = arith.truncf %57 : vector<8x16x16xf32> to vector<8x16x16xbf16>
    "tpu.trace_start"() <{level = 10 : i32, message = "bqk,bkd->bqd"}> : () -> ()
    %cst_20 = arith.constant dense<0.000000e+00> : vector<8x16x64xf32>
    %59 = tpu.matmul %58, %41, %cst_20 {dimension_numbers = #tpu.dot_dimension_numbers<[2], [1], [1], [2], [0, 0, 0, 1, 1, 2], [0], [0]>} : vector<8x16x16xbf16>, vector<8x16x64xbf16>, vector<8x16x64xf32> -> vector<8x16x64xf32>
    %cst_21 = arith.constant -1.000000e+00 : f32
    %cst_22 = arith.constant 1.000000e+00 : f32
    "tpu.trace_stop"() : () -> ()
    %60 = vector.broadcast %cst_21 : f32 to vector<8x16x64xf32>
    %61 = arith.maximumf %60, %59 : vector<8x16x64xf32>
    %62 = vector.broadcast %cst_22 : f32 to vector<8x16x64xf32>
    %63 = arith.minimumf %62, %61 : vector<8x16x64xf32>
    %64 = tpu.concatenate %35, %63 in 2 : vector<8x16x64xf32>, vector<8x16x64xf32> -> vector<8x16x128xf32>
    %65 = vector.shape_cast %64 : vector<8x16x128xf32> to vector<128x128xf32>
    %66 = arith.truncf %65 : vector<128x128xf32> to vector<128x128xbf16>
    %c0_23 = arith.constant 0 : index
    %c0_24 = arith.constant 0 : index
    %67 = vector.load %arg8[%c0_23, %c0_24] : memref<128x512xbf16, #tpu.memory_space<vmem>>, vector<128x128xbf16>
    tpu.vector_store %arg8[%c0_23, %c0_24], %66 {strides = array<i32>} : memref<128x512xbf16, #tpu.memory_space<vmem>>, vector<128x128xbf16>,
    %68 = vector.extract_strided_slice %7 {offsets = [0, 0, 32], sizes = [8, 16, 16], strides = [1, 1, 1]} : vector<8x16x768xf32> to vector<8x16x16xf32>
    %69 = arith.truncf %68 : vector<8x16x16xf32> to vector<8x16x16xbf16>
    %70 = vector.extract_strided_slice %7 {offsets = [0, 0, 160], sizes = [8, 16, 16], strides = [1, 1, 1]} : vector<8x16x768xf32> to vector<8x16x16xf32>
    %71 = arith.truncf %70 : vector<8x16x16xf32> to vector<8x16x16xbf16>
    %72 = vector.extract_strided_slice %7 {offsets = [0, 0, 384], sizes = [8, 16, 64], strides = [1, 1, 1]} : vector<8x16x768xf32> to vector<8x16x64xf32>
    %73 = arith.truncf %72 : vector<8x16x64xf32> to vector<8x16x64xbf16>
    "tpu.trace_start"() <{level = 10 : i32, message = "bqd,bkd->bqk"}> : () -> ()
    %cst_25 = arith.constant dense<0.000000e+00> : vector<8x16x16xf32>
    %74 = tpu.matmul %69, %71, %cst_25 {dimension_numbers = #tpu.dot_dimension_numbers<[2], [2], [1], [1], [0, 0, 0, 1, 1, 1], [0], [0]>} : vector<8x16x16xbf16>, vector<8x16x16xbf16>, vector<8x16x16xf32> -> vector<8x16x16xf32>
    "tpu.trace_stop"() : () -> ()
    %c2 = arith.constant 2 : index
    %c0_26 = arith.constant 0 : index
    %c0_27 = arith.constant 0 : index
    %75 = vector.load %arg4[%c2, %c0_26, %c0_27] : memref<8x16x16xf32, #tpu.memory_space<vmem>>, vector<1x16x16xf32>
    %76 = vector.shape_cast %75 : vector<1x16x16xf32> to vector<16x16xf32>
    %77 = vector.shape_cast %76 : vector<16x16xf32> to vector<1x16x16xf32>
    %78 = vector.broadcast %77 : vector<1x16x16xf32> to vector<8x16x16xf32>
    %79 = arith.addf %74, %78 : vector<8x16x16xf32>
    %cst_28 = arith.constant dense<0xFF800000> : vector<8x16xf32>
    %80 = vector.multi_reduction <maximumf>, %79, %cst_28 [2] : vector<8x16x16xf32> to vector<8x16xf32>
    %81 = vector.shape_cast %80 : vector<8x16xf32> to vector<8x16x1xf32>
    %82 = vector.broadcast %81 : vector<8x16x1xf32> to vector<8x16x16xf32>
    %83 = arith.subf %79, %82 : vector<8x16x16xf32>
    %84 = math.exp %83 : vector<8x16x16xf32>
    %cst_29 = arith.constant dense<0.000000e+00> : vector<8x16xf32>
    %85 = vector.multi_reduction <add>, %84, %cst_29 [2] : vector<8x16x16xf32> to vector<8x16xf32>
    %86 = vector.shape_cast %85 : vector<8x16xf32> to vector<8x16x1xf32>
    %87 = tpu.reciprocal %86 {approx = true} : vector<8x16x1xf32> -> vector<8x16x1xf32>
    %88 = vector.broadcast %87 : vector<8x16x1xf32> to vector<8x16x16xf32>
    %89 = arith.mulf %84, %88 : vector<8x16x16xf32>
    %90 = arith.truncf %89 : vector<8x16x16xf32> to vector<8x16x16xbf16>
    "tpu.trace_start"() <{level = 10 : i32, message = "bqk,bkd->bqd"}> : () -> ()
    %cst_30 = arith.constant dense<0.000000e+00> : vector<8x16x64xf32>
    %91 = tpu.matmul %90, %73, %cst_30 {dimension_numbers = #tpu.dot_dimension_numbers<[2], [1], [1], [2], [0, 0, 0, 1, 1, 2], [0], [0]>} : vector<8x16x16xbf16>, vector<8x16x64xbf16>, vector<8x16x64xf32> -> vector<8x16x64xf32>
    %cst_31 = arith.constant -1.000000e+00 : f32
    %cst_32 = arith.constant 1.000000e+00 : f32
    "tpu.trace_stop"() : () -> ()
    %92 = vector.broadcast %cst_31 : f32 to vector<8x16x64xf32>
    %93 = arith.maximumf %92, %91 : vector<8x16x64xf32>
    %94 = vector.broadcast %cst_32 : f32 to vector<8x16x64xf32>
    %95 = arith.minimumf %94, %93 : vector<8x16x64xf32>
    %96 = vector.extract_strided_slice %7 {offsets = [0, 0, 48], sizes = [8, 16, 16], strides = [1, 1, 1]} : vector<8x16x768xf32> to vector<8x16x16xf32>
    %97 = arith.truncf %96 : vector<8x16x16xf32> to vector<8x16x16xbf16>
    %98 = vector.extract_strided_slice %7 {offsets = [0, 0, 176], sizes = [8, 16, 16], strides = [1, 1, 1]} : vector<8x16x768xf32> to vector<8x16x16xf32>
    %99 = arith.truncf %98 : vector<8x16x16xf32> to vector<8x16x16xbf16>
    %100 = vector.extract_strided_slice %7 {offsets = [0, 0, 448], sizes = [8, 16, 64], strides = [1, 1, 1]} : vector<8x16x768xf32> to vector<8x16x64xf32>
    %101 = arith.truncf %100 : vector<8x16x64xf32> to vector<8x16x64xbf16>
    "tpu.trace_start"() <{level = 10 : i32, message = "bqd,bkd->bqk"}> : () -> ()
    %cst_33 = arith.constant dense<0.000000e+00> : vector<8x16x16xf32>
    %102 = tpu.matmul %97, %99, %cst_33 {dimension_numbers = #tpu.dot_dimension_numbers<[2], [2], [1], [1], [0, 0, 0, 1, 1, 1], [0], [0]>} : vector<8x16x16xbf16>, vector<8x16x16xbf16>, vector<8x16x16xf32> -> vector<8x16x16xf32>
    "tpu.trace_stop"() : () -> ()
    %c3 = arith.constant 3 : index
    %c0_34 = arith.constant 0 : index
    %c0_35 = arith.constant 0 : index
    %103 = vector.load %arg4[%c3, %c0_34, %c0_35] : memref<8x16x16xf32, #tpu.memory_space<vmem>>, vector<1x16x16xf32>
    %104 = vector.shape_cast %103 : vector<1x16x16xf32> to vector<16x16xf32>
    %105 = vector.shape_cast %104 : vector<16x16xf32> to vector<1x16x16xf32>
    %106 = vector.broadcast %105 : vector<1x16x16xf32> to vector<8x16x16xf32>
    %107 = arith.addf %102, %106 : vector<8x16x16xf32>
    %cst_36 = arith.constant dense<0xFF800000> : vector<8x16xf32>
    %108 = vector.multi_reduction <maximumf>, %107, %cst_36 [2] : vector<8x16x16xf32> to vector<8x16xf32>
    %109 = vector.shape_cast %108 : vector<8x16xf32> to vector<8x16x1xf32>
    %110 = vector.broadcast %109 : vector<8x16x1xf32> to vector<8x16x16xf32>
    %111 = arith.subf %107, %110 : vector<8x16x16xf32>
    %112 = math.exp %111 : vector<8x16x16xf32>
    %cst_37 = arith.constant dense<0.000000e+00> : vector<8x16xf32>
    %113 = vector.multi_reduction <add>, %112, %cst_37 [2] : vector<8x16x16xf32> to vector<8x16xf32>
    %114 = vector.shape_cast %113 : vector<8x16xf32> to vector<8x16x1xf32>
    %115 = tpu.reciprocal %114 {approx = true} : vector<8x16x1xf32> -> vector<8x16x1xf32>
    %116 = vector.broadcast %115 : vector<8x16x1xf32> to vector<8x16x16xf32>
    %117 = arith.mulf %112, %116 : vector<8x16x16xf32>
    %118 = arith.truncf %117 : vector<8x16x16xf32> to vector<8x16x16xbf16>
    "tpu.trace_start"() <{level = 10 : i32, message = "bqk,bkd->bqd"}> : () -> ()
    %cst_38 = arith.constant dense<0.000000e+00> : vector<8x16x64xf32>
    %119 = tpu.matmul %118, %101, %cst_38 {dimension_numbers = #tpu.dot_dimension_numbers<[2], [1], [1], [2], [0, 0, 0, 1, 1, 2], [0], [0]>} : vector<8x16x16xbf16>, vector<8x16x64xbf16>, vector<8x16x64xf32> -> vector<8x16x64xf32>
    %cst_39 = arith.constant -1.000000e+00 : f32
    %cst_40 = arith.constant 1.000000e+00 : f32
    "tpu.trace_stop"() : () -> ()
    %120 = vector.broadcast %cst_39 : f32 to vector<8x16x64xf32>
    %121 = arith.maximumf %120, %119 : vector<8x16x64xf32>
    %122 = vector.broadcast %cst_40 : f32 to vector<8x16x64xf32>
    %123 = arith.minimumf %122, %121 : vector<8x16x64xf32>
    %124 = tpu.concatenate %95, %123 in 2 : vector<8x16x64xf32>, vector<8x16x64xf32> -> vector<8x16x128xf32>
    %125 = vector.shape_cast %124 : vector<8x16x128xf32> to vector<128x128xf32>
    %126 = arith.truncf %125 : vector<128x128xf32> to vector<128x128xbf16>
    %c0_41 = arith.constant 0 : index
    %c128 = arith.constant 128 : index
    %127 = vector.load %arg8[%c0_41, %c128] : memref<128x512xbf16, #tpu.memory_space<vmem>>, vector<128x128xbf16>
    tpu.vector_store %arg8[%c0_41, %c128], %126 {strides = array<i32>} : memref<128x512xbf16, #tpu.memory_space<vmem>>, vector<128x128xbf16>,
    %128 = vector.extract_strided_slice %7 {offsets = [0, 0, 64], sizes = [8, 16, 16], strides = [1, 1, 1]} : vector<8x16x768xf32> to vector<8x16x16xf32>
    %129 = arith.truncf %128 : vector<8x16x16xf32> to vector<8x16x16xbf16>
    %130 = vector.extract_strided_slice %7 {offsets = [0, 0, 192], sizes = [8, 16, 16], strides = [1, 1, 1]} : vector<8x16x768xf32> to vector<8x16x16xf32>
    %131 = arith.truncf %130 : vector<8x16x16xf32> to vector<8x16x16xbf16>
    %132 = vector.extract_strided_slice %7 {offsets = [0, 0, 512], sizes = [8, 16, 64], strides = [1, 1, 1]} : vector<8x16x768xf32> to vector<8x16x64xf32>
    %133 = arith.truncf %132 : vector<8x16x64xf32> to vector<8x16x64xbf16>
    "tpu.trace_start"() <{level = 10 : i32, message = "bqd,bkd->bqk"}> : () -> ()
    %cst_42 = arith.constant dense<0.000000e+00> : vector<8x16x16xf32>
    %134 = tpu.matmul %129, %131, %cst_42 {dimension_numbers = #tpu.dot_dimension_numbers<[2], [2], [1], [1], [0, 0, 0, 1, 1, 1], [0], [0]>} : vector<8x16x16xbf16>, vector<8x16x16xbf16>, vector<8x16x16xf32> -> vector<8x16x16xf32>
    "tpu.trace_stop"() : () -> ()
    %c4 = arith.constant 4 : index
    %c0_43 = arith.constant 0 : index
    %c0_44 = arith.constant 0 : index
    %135 = vector.load %arg4[%c4, %c0_43, %c0_44] : memref<8x16x16xf32, #tpu.memory_space<vmem>>, vector<1x16x16xf32>
    %136 = vector.shape_cast %135 : vector<1x16x16xf32> to vector<16x16xf32>
    %137 = vector.shape_cast %136 : vector<16x16xf32> to vector<1x16x16xf32>
    %138 = vector.broadcast %137 : vector<1x16x16xf32> to vector<8x16x16xf32>
    %139 = arith.addf %134, %138 : vector<8x16x16xf32>
    %cst_45 = arith.constant dense<0xFF800000> : vector<8x16xf32>
    %140 = vector.multi_reduction <maximumf>, %139, %cst_45 [2] : vector<8x16x16xf32> to vector<8x16xf32>
    %141 = vector.shape_cast %140 : vector<8x16xf32> to vector<8x16x1xf32>
    %142 = vector.broadcast %141 : vector<8x16x1xf32> to vector<8x16x16xf32>
    %143 = arith.subf %139, %142 : vector<8x16x16xf32>
    %144 = math.exp %143 : vector<8x16x16xf32>
    %cst_46 = arith.constant dense<0.000000e+00> : vector<8x16xf32>
    %145 = vector.multi_reduction <add>, %144, %cst_46 [2] : vector<8x16x16xf32> to vector<8x16xf32>
    %146 = vector.shape_cast %145 : vector<8x16xf32> to vector<8x16x1xf32>
    %147 = tpu.reciprocal %146 {approx = true} : vector<8x16x1xf32> -> vector<8x16x1xf32>
    %148 = vector.broadcast %147 : vector<8x16x1xf32> to vector<8x16x16xf32>
    %149 = arith.mulf %144, %148 : vector<8x16x16xf32>
    %150 = arith.truncf %149 : vector<8x16x16xf32> to vector<8x16x16xbf16>
    "tpu.trace_start"() <{level = 10 : i32, message = "bqk,bkd->bqd"}> : () -> ()
    %cst_47 = arith.constant dense<0.000000e+00> : vector<8x16x64xf32>
    %151 = tpu.matmul %150, %133, %cst_47 {dimension_numbers = #tpu.dot_dimension_numbers<[2], [1], [1], [2], [0, 0, 0, 1, 1, 2], [0], [0]>} : vector<8x16x16xbf16>, vector<8x16x64xbf16>, vector<8x16x64xf32> -> vector<8x16x64xf32>
    %cst_48 = arith.constant -1.000000e+00 : f32
    %cst_49 = arith.constant 1.000000e+00 : f32
    "tpu.trace_stop"() : () -> ()
    %152 = vector.broadcast %cst_48 : f32 to vector<8x16x64xf32>
    %153 = arith.maximumf %152, %151 : vector<8x16x64xf32>
    %154 = vector.broadcast %cst_49 : f32 to vector<8x16x64xf32>
    %155 = arith.minimumf %154, %153 : vector<8x16x64xf32>
    %156 = vector.extract_strided_slice %7 {offsets = [0, 0, 80], sizes = [8, 16, 16], strides = [1, 1, 1]} : vector<8x16x768xf32> to vector<8x16x16xf32>
    %157 = arith.truncf %156 : vector<8x16x16xf32> to vector<8x16x16xbf16>
    %158 = vector.extract_strided_slice %7 {offsets = [0, 0, 208], sizes = [8, 16, 16], strides = [1, 1, 1]} : vector<8x16x768xf32> to vector<8x16x16xf32>
    %159 = arith.truncf %158 : vector<8x16x16xf32> to vector<8x16x16xbf16>
    %160 = vector.extract_strided_slice %7 {offsets = [0, 0, 576], sizes = [8, 16, 64], strides = [1, 1, 1]} : vector<8x16x768xf32> to vector<8x16x64xf32>
    %161 = arith.truncf %160 : vector<8x16x64xf32> to vector<8x16x64xbf16>
    "tpu.trace_start"() <{level = 10 : i32, message = "bqd,bkd->bqk"}> : () -> ()
    %cst_50 = arith.constant dense<0.000000e+00> : vector<8x16x16xf32>
    %162 = tpu.matmul %157, %159, %cst_50 {dimension_numbers = #tpu.dot_dimension_numbers<[2], [2], [1], [1], [0, 0, 0, 1, 1, 1], [0], [0]>} : vector<8x16x16xbf16>, vector<8x16x16xbf16>, vector<8x16x16xf32> -> vector<8x16x16xf32>
    "tpu.trace_stop"() : () -> ()
    %c5 = arith.constant 5 : index
    %c0_51 = arith.constant 0 : index
    %c0_52 = arith.constant 0 : index
    %163 = vector.load %arg4[%c5, %c0_51, %c0_52] : memref<8x16x16xf32, #tpu.memory_space<vmem>>, vector<1x16x16xf32>
    %164 = vector.shape_cast %163 : vector<1x16x16xf32> to vector<16x16xf32>
    %165 = vector.shape_cast %164 : vector<16x16xf32> to vector<1x16x16xf32>
    %166 = vector.broadcast %165 : vector<1x16x16xf32> to vector<8x16x16xf32>
    %167 = arith.addf %162, %166 : vector<8x16x16xf32>
    %cst_53 = arith.constant dense<0xFF800000> : vector<8x16xf32>
    %168 = vector.multi_reduction <maximumf>, %167, %cst_53 [2] : vector<8x16x16xf32> to vector<8x16xf32>
    %169 = vector.shape_cast %168 : vector<8x16xf32> to vector<8x16x1xf32>
    %170 = vector.broadcast %169 : vector<8x16x1xf32> to vector<8x16x16xf32>
    %171 = arith.subf %167, %170 : vector<8x16x16xf32>
    %172 = math.exp %171 : vector<8x16x16xf32>
    %cst_54 = arith.constant dense<0.000000e+00> : vector<8x16xf32>
    %173 = vector.multi_reduction <add>, %172, %cst_54 [2] : vector<8x16x16xf32> to vector<8x16xf32>
    %174 = vector.shape_cast %173 : vector<8x16xf32> to vector<8x16x1xf32>
    %175 = tpu.reciprocal %174 {approx = true} : vector<8x16x1xf32> -> vector<8x16x1xf32>
    %176 = vector.broadcast %175 : vector<8x16x1xf32> to vector<8x16x16xf32>
    %177 = arith.mulf %172, %176 : vector<8x16x16xf32>
    %178 = arith.truncf %177 : vector<8x16x16xf32> to vector<8x16x16xbf16>
    "tpu.trace_start"() <{level = 10 : i32, message = "bqk,bkd->bqd"}> : () -> ()
    %cst_55 = arith.constant dense<0.000000e+00> : vector<8x16x64xf32>
    %179 = tpu.matmul %178, %161, %cst_55 {dimension_numbers = #tpu.dot_dimension_numbers<[2], [1], [1], [2], [0, 0, 0, 1, 1, 2], [0], [0]>} : vector<8x16x16xbf16>, vector<8x16x64xbf16>, vector<8x16x64xf32> -> vector<8x16x64xf32>
    %cst_56 = arith.constant -1.000000e+00 : f32
    %cst_57 = arith.constant 1.000000e+00 : f32
    "tpu.trace_stop"() : () -> ()
    %180 = vector.broadcast %cst_56 : f32 to vector<8x16x64xf32>
    %181 = arith.maximumf %180, %179 : vector<8x16x64xf32>
    %182 = vector.broadcast %cst_57 : f32 to vector<8x16x64xf32>
    %183 = arith.minimumf %182, %181 : vector<8x16x64xf32>
    %184 = tpu.concatenate %155, %183 in 2 : vector<8x16x64xf32>, vector<8x16x64xf32> -> vector<8x16x128xf32>
    %185 = vector.shape_cast %184 : vector<8x16x128xf32> to vector<128x128xf32>
    %186 = arith.truncf %185 : vector<128x128xf32> to vector<128x128xbf16>
    %c0_58 = arith.constant 0 : index
    %c256 = arith.constant 256 : index
    %187 = vector.load %arg8[%c0_58, %c256] : memref<128x512xbf16, #tpu.memory_space<vmem>>, vector<128x128xbf16>
    tpu.vector_store %arg8[%c0_58, %c256], %186 {strides = array<i32>} : memref<128x512xbf16, #tpu.memory_space<vmem>>, vector<128x128xbf16>,
    %188 = vector.extract_strided_slice %7 {offsets = [0, 0, 96], sizes = [8, 16, 16], strides = [1, 1, 1]} : vector<8x16x768xf32> to vector<8x16x16xf32>
    %189 = arith.truncf %188 : vector<8x16x16xf32> to vector<8x16x16xbf16>
    %190 = vector.extract_strided_slice %7 {offsets = [0, 0, 224], sizes = [8, 16, 16], strides = [1, 1, 1]} : vector<8x16x768xf32> to vector<8x16x16xf32>
    %191 = arith.truncf %190 : vector<8x16x16xf32> to vector<8x16x16xbf16>
    %192 = vector.extract_strided_slice %7 {offsets = [0, 0, 640], sizes = [8, 16, 64], strides = [1, 1, 1]} : vector<8x16x768xf32> to vector<8x16x64xf32>
    %193 = arith.truncf %192 : vector<8x16x64xf32> to vector<8x16x64xbf16>
    "tpu.trace_start"() <{level = 10 : i32, message = "bqd,bkd->bqk"}> : () -> ()
    %cst_59 = arith.constant dense<0.000000e+00> : vector<8x16x16xf32>
    %194 = tpu.matmul %189, %191, %cst_59 {dimension_numbers = #tpu.dot_dimension_numbers<[2], [2], [1], [1], [0, 0, 0, 1, 1, 1], [0], [0]>} : vector<8x16x16xbf16>, vector<8x16x16xbf16>, vector<8x16x16xf32> -> vector<8x16x16xf32>
    "tpu.trace_stop"() : () -> ()
    %c6 = arith.constant 6 : index
    %c0_60 = arith.constant 0 : index
    %c0_61 = arith.constant 0 : index
    %195 = vector.load %arg4[%c6, %c0_60, %c0_61] : memref<8x16x16xf32, #tpu.memory_space<vmem>>, vector<1x16x16xf32>
    %196 = vector.shape_cast %195 : vector<1x16x16xf32> to vector<16x16xf32>
    %197 = vector.shape_cast %196 : vector<16x16xf32> to vector<1x16x16xf32>
    %198 = vector.broadcast %197 : vector<1x16x16xf32> to vector<8x16x16xf32>
    %199 = arith.addf %194, %198 : vector<8x16x16xf32>
    %cst_62 = arith.constant dense<0xFF800000> : vector<8x16xf32>
    %200 = vector.multi_reduction <maximumf>, %199, %cst_62 [2] : vector<8x16x16xf32> to vector<8x16xf32>
    %201 = vector.shape_cast %200 : vector<8x16xf32> to vector<8x16x1xf32>
    %202 = vector.broadcast %201 : vector<8x16x1xf32> to vector<8x16x16xf32>
    %203 = arith.subf %199, %202 : vector<8x16x16xf32>
    %204 = math.exp %203 : vector<8x16x16xf32>
    %cst_63 = arith.constant dense<0.000000e+00> : vector<8x16xf32>
    %205 = vector.multi_reduction <add>, %204, %cst_63 [2] : vector<8x16x16xf32> to vector<8x16xf32>
    %206 = vector.shape_cast %205 : vector<8x16xf32> to vector<8x16x1xf32>
    %207 = tpu.reciprocal %206 {approx = true} : vector<8x16x1xf32> -> vector<8x16x1xf32>
    %208 = vector.broadcast %207 : vector<8x16x1xf32> to vector<8x16x16xf32>
    %209 = arith.mulf %204, %208 : vector<8x16x16xf32>
    %210 = arith.truncf %209 : vector<8x16x16xf32> to vector<8x16x16xbf16>
    "tpu.trace_start"() <{level = 10 : i32, message = "bqk,bkd->bqd"}> : () -> ()
    %cst_64 = arith.constant dense<0.000000e+00> : vector<8x16x64xf32>
    %211 = tpu.matmul %210, %193, %cst_64 {dimension_numbers = #tpu.dot_dimension_numbers<[2], [1], [1], [2], [0, 0, 0, 1, 1, 2], [0], [0]>} : vector<8x16x16xbf16>, vector<8x16x64xbf16>, vector<8x16x64xf32> -> vector<8x16x64xf32>
    %cst_65 = arith.constant -1.000000e+00 : f32
    %cst_66 = arith.constant 1.000000e+00 : f32
    "tpu.trace_stop"() : () -> ()
    %212 = vector.broadcast %cst_65 : f32 to vector<8x16x64xf32>
    %213 = arith.maximumf %212, %211 : vector<8x16x64xf32>
    %214 = vector.broadcast %cst_66 : f32 to vector<8x16x64xf32>
    %215 = arith.minimumf %214, %213 : vector<8x16x64xf32>
    %216 = vector.extract_strided_slice %7 {offsets = [0, 0, 112], sizes = [8, 16, 16], strides = [1, 1, 1]} : vector<8x16x768xf32> to vector<8x16x16xf32>
    %217 = arith.truncf %216 : vector<8x16x16xf32> to vector<8x16x16xbf16>
    %218 = vector.extract_strided_slice %7 {offsets = [0, 0, 240], sizes = [8, 16, 16], strides = [1, 1, 1]} : vector<8x16x768xf32> to vector<8x16x16xf32>
    %219 = arith.truncf %218 : vector<8x16x16xf32> to vector<8x16x16xbf16>
    %220 = vector.extract_strided_slice %7 {offsets = [0, 0, 704], sizes = [8, 16, 64], strides = [1, 1, 1]} : vector<8x16x768xf32> to vector<8x16x64xf32>
    %221 = arith.truncf %220 : vector<8x16x64xf32> to vector<8x16x64xbf16>
    "tpu.trace_start"() <{level = 10 : i32, message = "bqd,bkd->bqk"}> : () -> ()
    %cst_67 = arith.constant dense<0.000000e+00> : vector<8x16x16xf32>
    %222 = tpu.matmul %217, %219, %cst_67 {dimension_numbers = #tpu.dot_dimension_numbers<[2], [2], [1], [1], [0, 0, 0, 1, 1, 1], [0], [0]>} : vector<8x16x16xbf16>, vector<8x16x16xbf16>, vector<8x16x16xf32> -> vector<8x16x16xf32>
    "tpu.trace_stop"() : () -> ()
    %c7 = arith.constant 7 : index
    %c0_68 = arith.constant 0 : index
    %c0_69 = arith.constant 0 : index
    %223 = vector.load %arg4[%c7, %c0_68, %c0_69] : memref<8x16x16xf32, #tpu.memory_space<vmem>>, vector<1x16x16xf32>
    %224 = vector.shape_cast %223 : vector<1x16x16xf32> to vector<16x16xf32>
    %225 = vector.shape_cast %224 : vector<16x16xf32> to vector<1x16x16xf32>
    %226 = vector.broadcast %225 : vector<1x16x16xf32> to vector<8x16x16xf32>
    %227 = arith.addf %222, %226 : vector<8x16x16xf32>
    %cst_70 = arith.constant dense<0xFF800000> : vector<8x16xf32>
    %228 = vector.multi_reduction <maximumf>, %227, %cst_70 [2] : vector<8x16x16xf32> to vector<8x16xf32>
    %229 = vector.shape_cast %228 : vector<8x16xf32> to vector<8x16x1xf32>
    %230 = vector.broadcast %229 : vector<8x16x1xf32> to vector<8x16x16xf32>
    %231 = arith.subf %227, %230 : vector<8x16x16xf32>
    %232 = math.exp %231 : vector<8x16x16xf32>
    %cst_71 = arith.constant dense<0.000000e+00> : vector<8x16xf32>
    %233 = vector.multi_reduction <add>, %232, %cst_71 [2] : vector<8x16x16xf32> to vector<8x16xf32>
    %234 = vector.shape_cast %233 : vector<8x16xf32> to vector<8x16x1xf32>
    %235 = tpu.reciprocal %234 {approx = true} : vector<8x16x1xf32> -> vector<8x16x1xf32>
    %236 = vector.broadcast %235 : vector<8x16x1xf32> to vector<8x16x16xf32>
    %237 = arith.mulf %232, %236 : vector<8x16x16xf32>
    %238 = arith.truncf %237 : vector<8x16x16xf32> to vector<8x16x16xbf16>
    "tpu.trace_start"() <{level = 10 : i32, message = "bqk,bkd->bqd"}> : () -> ()
    %cst_72 = arith.constant dense<0.000000e+00> : vector<8x16x64xf32>
    %239 = tpu.matmul %238, %221, %cst_72 {dimension_numbers = #tpu.dot_dimension_numbers<[2], [1], [1], [2], [0, 0, 0, 1, 1, 2], [0], [0]>} : vector<8x16x16xbf16>, vector<8x16x64xbf16>, vector<8x16x64xf32> -> vector<8x16x64xf32>
    %cst_73 = arith.constant -1.000000e+00 : f32
    %cst_74 = arith.constant 1.000000e+00 : f32
    "tpu.trace_stop"() : () -> ()
    %240 = vector.broadcast %cst_73 : f32 to vector<8x16x64xf32>
    %241 = arith.maximumf %240, %239 : vector<8x16x64xf32>
    %242 = vector.broadcast %cst_74 : f32 to vector<8x16x64xf32>
    %243 = arith.minimumf %242, %241 : vector<8x16x64xf32>
    %244 = tpu.concatenate %215, %243 in 2 : vector<8x16x64xf32>, vector<8x16x64xf32> -> vector<8x16x128xf32>
    %245 = vector.shape_cast %244 : vector<8x16x128xf32> to vector<128x128xf32>
    %246 = arith.truncf %245 : vector<128x128xf32> to vector<128x128xbf16>
    %c0_75 = arith.constant 0 : index
    %c384 = arith.constant 384 : index
    %247 = vector.load %arg8[%c0_75, %c384] : memref<128x512xbf16, #tpu.memory_space<vmem>>, vector<128x128xbf16>
    tpu.vector_store %arg8[%c0_75, %c384], %246 {strides = array<i32>} : memref<128x512xbf16, #tpu.memory_space<vmem>>, vector<128x128xbf16>,
    %c0_76 = arith.constant 0 : index
    %c0_77 = arith.constant 0 : index
    %248 = vector.load %arg8[%c0_76, %c0_77] : memref<128x512xbf16, #tpu.memory_space<vmem>>, vector<128x512xbf16>
    %c0_78 = arith.constant 0 : index
    %c0_79 = arith.constant 0 : index
    %249 = vector.load %arg5[%c0_78, %c0_79] : memref<512x64xbf16, #tpu.memory_space<vmem>>, vector<512x64xbf16>
    %cst_80 = arith.constant dense<0.000000e+00> : vector<128x64xf32>
    %250 = tpu.matmul %248, %249, %cst_80 {dimension_numbers = #tpu.dot_dimension_numbers<[1], [0], [0], [1], [0, 0, 1, 1], [], []>} : vector<128x512xbf16>, vector<512x64xbf16>, vector<128x64xf32> -> vector<128x64xf32>
    %c0_81 = arith.constant 0 : index
    %c0_82 = arith.constant 0 : index
    %251 = vector.load %arg6[%c0_81, %c0_82] : memref<1x64xf32, #tpu.memory_space<vmem>>, vector<1x64xf32>
    %252 = vector.broadcast %251 : vector<1x64xf32> to vector<128x64xf32>
    %253 = arith.addf %250, %252 : vector<128x64xf32>
    %254 = vector.shape_cast %253 : vector<128x64xf32> to vector<8x16x64xf32>
    %c0_83 = arith.constant 0 : index
    %c0_84 = arith.constant 0 : index
    %c0_85 = arith.constant 0 : index
    %255 = vector.load %arg7[%c0_83, %c0_84, %c0_85] : memref<8x16x64xf32, #tpu.memory_space<vmem>>, vector<8x16x64xf32>
    tpu.vector_store %arg7[%c0_83, %c0_84, %c0_85], %254 {strides = array<i32>} : memref<8x16x64xf32, #tpu.memory_space<vmem>>, vector<8x16x64xf32>,
    return
  }
  func.func @transform_0(%arg0: i32) -> (i32, i32, i32) {
    %c0_i32 = arith.constant 0 : i32
    %c0_i32_0 = arith.constant 0 : i32
    %c0_i32_1 = arith.constant 0 : i32
    return %arg0, %c0_i32, %c0_i32_0 : i32, i32, i32
  }
  func.func @transform_1(%arg0: i32) -> (i32, i32) {
    %c0_i32 = arith.constant 0 : i32
    %c0_i32_0 = arith.constant 0 : i32
    %c0_i32_1 = arith.constant 0 : i32
    return %c0_i32, %c0_i32_0 : i32, i32
  }
  func.func @transform_2(%arg0: i32) -> (i32, i32) {
    %c0_i32 = arith.constant 0 : i32
    %c0_i32_0 = arith.constant 0 : i32
    %c0_i32_1 = arith.constant 0 : i32
    return %c0_i32, %c0_i32_0 : i32, i32
  }
  func.func @transform_3(%arg0: i32) -> (i32, i32, i32) {
    %c0_i32 = arith.constant 0 : i32
    %c0_i32_0 = arith.constant 0 : i32
    %c0_i32_1 = arith.constant 0 : i32
    %c0_i32_2 = arith.constant 0 : i32
    return %c0_i32, %c0_i32_0, %c0_i32_1 : i32, i32, i32
  }
  func.func @transform_4(%arg0: i32) -> (i32, i32) {
    %c0_i32 = arith.constant 0 : i32
    %c0_i32_0 = arith.constant 0 : i32
    %c0_i32_1 = arith.constant 0 : i32
    return %c0_i32, %c0_i32_0 : i32, i32
  }
  func.func @transform_5(%arg0: i32) -> (i32, i32) {
    %c0_i32 = arith.constant 0 : i32
    %c0_i32_0 = arith.constant 0 : i32
    %c0_i32_1 = arith.constant 0 : i32
    return %c0_i32, %c0_i32_0 : i32, i32
  }
  func.func @transform_6(%arg0: i32) -> (i32, i32, i32) {
    %c0_i32 = arith.constant 0 : i32
    %c0_i32_0 = arith.constant 0 : i32
    %c0_i32_1 = arith.constant 0 : i32
    return %arg0, %c0_i32, %c0_i32_0 : i32, i32, i32
  }
}

</mosaic_0001>

<bundles_post_ra>
// kernel: attention_module_pallas.1
= control target key start
LH: loop header
LB: loop body
LE: loop exit
PB: predicated region body
PF: predicated region fallthrough
CT: control target
= control target key end

     0   :  { %s11792_s0 = inlined_call_operand.vmem [shape: bf16[8,16,64], index: 0, kind: input, shape index: {}]   ;;  %s11793_s1 = inlined_call_operand.vmem [shape: bf16[64,768], index: 1, kind: input, shape index: {}]   ;;  %s11794_s2 = inlined_call_operand.vmem [shape: f32[1,768], index: 2, kind: input, shape index: {}]   ;;  %s11795_s3 = inlined_call_operand.vmem [shape: f32[8,16,16], index: 3, kind: input, shape index: {}]   ;;  %s11796_s4 = inlined_call_operand.vmem [shape: bf16[512,64], index: 4, kind: input, shape index: {}]   ;;  %s11797_s5 = inlined_call_operand.vmem [shape: f32[1,64], index: 5, kind: input, shape index: {}]   ;;  %s11798_s6 = inlined_call_operand.hbm [shape: f32[8,16,64], index: 6, kind: output, shape index: {}]  }
   0x1   :  { %v7608_v0 = vld [vmem:[%s11793_s1 + $0x94] sm:$0xf]  ;;  %v6988_v1 = vld [vmem:[%s11793_s1 + $0xa8] sm:$0xf0]  ;;  %v7602_v2 = vld [vmem:[%s11793_s1 + $0x64] sm:$0xf] }
   0x2   :  { %v6991_v3 = vor.u32 %v7608_v0, %v6988_v1  ;;  %v6964_v4 = vld [vmem:[%s11793_s1 + $0x78] sm:$0xf0]  ;;  %v6986_v5 = vld [vmem:[%s11793_s1 + $0x90] sm:$0xf]  ;;  %v7611_v6 = vld [vmem:[%s11793_s1 + $0xa4] sm:$0xf0] }
   0x3   :  { %v6987_v7 = vor.u32 %v7611_v6, %v6986_v5  ;;  %v6962_v8 = vld [vmem:[%s11793_s1 + $0x60] sm:$0xf]  ;;  %v6967_v9 = vor.u32 %v7602_v2, %v6964_v4  ;;  %v7605_v10 = vld [vmem:[%s11793_s1 + $0x74] sm:$0xf0]  ;;  %v7596_v11 = vld [vmem:[%s11793_s1 + $0x34] sm:$0xf] }
   0x4   :  { %317 = vmatpush.bf16.msra.mxu1 %v6991_v3  ;;  %v6940_v12 = vld [vmem:[%s11793_s1 + $0x48] sm:$0xf0]  ;;  %v6963_v13 = vor.u32 %v7605_v10, %v6962_v8  ;;  %v6938_v14 = vld [vmem:[%s11793_s1 + $0x30] sm:$0xf]  ;;  %v7599_v15 = vld [vmem:[%s11793_s1 + $0x44] sm:$0xf0] }
   0x5   :  { %268 = vmatpush.bf16.msra.mxu0 %v6987_v7  ;;  %v6994_v16 = vld [vmem:[%s11793_s1 + $0x98] sm:$0xf]  ;;  %v7612_v17 = vld [vmem:[%s11793_s1 + $0xac] sm:$0xf0]  ;;  %v6970_v18 = vld [vmem:[%s11793_s1 + $0x68] sm:$0xf]  ;;  %v6943_v20 = vor.u32 %v7596_v11, %v6940_v12  ;;  %v6939_v24 = vor.u32 %v7599_v15, %v6938_v14 }
   0x6   :  { %v7606_v19 = vld [vmem:[%s11793_s1 + $0x7c] sm:$0xf0]  ;;  %v7590_v21 = vld [vmem:[%s11793_s1 + $0x4] sm:$0xf]  ;;  %v6916_v22 = vld [vmem:[%s11793_s1 + $0x18] sm:$0xf0]  ;;  %v6995_v23 = vor.u32 %v7612_v17, %v6994_v16 }
   0x7   :  { %v6914_v25 = vld [vmem:[%s11793_s1] sm:$0xf]  ;;  %v7593_v26 = vld [vmem:[%s11793_s1 + $0x14] sm:$0xf0]  ;;  %v7609_v27 = vld [vmem:[%s11793_s1 + $0x9c] sm:$0xf]  ;;  %v6971_v28 = vor.u32 %v7606_v19, %v6970_v18  ;;  %v6919_v35 = vor.u32 %v7590_v21, %v6916_v22 }
   0x8   :  { %318 = vmatpush.bf16.msra.mxu1 %v6967_v9  ;;  %366 = vmatpush.bf16.msra.mxu2 %v6995_v23  ;;  %v6996_v29 = vld [vmem:[%s11793_s1 + $0xb0] sm:$0xf0]  ;;  %v7603_v30 = vld [vmem:[%s11793_s1 + $0x6c] sm:$0xf]  ;;  %v6972_v31 = vld [vmem:[%s11793_s1 + $0x80] sm:$0xf0] }
   0x9   :  { %269 = vmatpush.bf16.msra.mxu0 %v6963_v13  ;;  %v6946_v32 = vld [vmem:[%s11793_s1 + $0x38] sm:$0xf]  ;;  %v7600_v33 = vld [vmem:[%s11793_s1 + $0x4c] sm:$0xf0]  ;;  %v6999_v34 = vor.u32 %v7609_v27, %v6996_v29 }
   0xc   :  { %319 = vmatpush.bf16.msra.mxu1 %v6943_v20 }
   0xd   :  { %11 = vsyncpa [#allocation4], 0  ;;  %270 = vmatpush.bf16.msra.mxu0 %v6939_v24  ;;  %v6915_v36 = vor.u32 %v7593_v26, %v6914_v25  ;;  %415 = vmatpush.bf16.msra.mxu3 %v6999_v34  ;;  %v6975_v37 = vor.u32 %v7603_v30, %v6972_v31  ;;  %v6947_v38 = vor.u32 %v7600_v33, %v6946_v32  ;;  %v7597_v39 = vld [vmem:[%s11793_s1 + $0x3c] sm:$0xf]  ;;  %v6948_v40 = vld [vmem:[%s11793_s1 + $0x50] sm:$0xf0] }
   0xe   :  { %367 = vmatpush.bf16.msra.mxu2 %v6971_v28  ;;  %v8527_v41 = vld [vmem:[%s11792_s0] sm:$0xff]  ;;  %v6922_v42 = vld [vmem:[%s11793_s1 + $0x8] sm:$0xf]  ;;  %vm239_vm0 = vcmask 523264   ;;  %v6951_v44 = vor.u32 %v7597_v39, %v6948_v40  ;;  %v7591_v46 = vld [vmem:[%s11793_s1 + $0xc] sm:$0xf] }
   0xf   :  { %v7594_v43 = vld [vmem:[%s11793_s1 + $0x1c] sm:$0xf0]  ;;  %v6924_v47 = vld [vmem:[%s11793_s1 + $0x20] sm:$0xf0]  ;;  %v8552_v49 = vld [vmem:[%s11792_s0 + $0x8] sm:$0xff]  ;;  %vm618_vm1 = vcmask 130048  }
  0x10   :  { %320 = vmatpush.bf16.msra.mxu1 %v6919_v35  ;;  %v6923_v45 = vor.u32 %v7594_v43, %v6922_v42  ;;  %v6927_v48 = vor.u32 %v7591_v46, %v6924_v47  ;;  %v8565_v50 = vld [vmem:[%s11792_s0 + $0x10] sm:$0xff]  ;;  %v8578_v51 = vld [vmem:[%s11792_s0 + $0x18] sm:$0xff]  ;;  %v8591_v52 = vld [vmem:[%s11792_s0 + $0x20] sm:$0xff]  ;;  %s8395_s7 = smov 112   ;;  %s8396_s9 = smov 64  }
  0x11   :  { %271 = vmatpush.bf16.msra.mxu0 %v6915_v36  ;;  %416 = vmatpush.bf16.msra.mxu3 %v6975_v37  ;;  %v8604_v53 = vld [vmem:[%s11792_s0 + $0x28] sm:$0xff]  ;;  %v8617_v54 = vld [vmem:[%s11792_s0 + $0x30] sm:$0xff]  ;;  %v8630_v55 = vld [vmem:[%s11792_s0 + $0x38] sm:$0xff]  ;;  %s8397_s10 = smov 96   ;;  %s8398_s17 = smov 80  }
  0x12   :  { %368 = vmatpush.bf16.msra.mxu2 %v6947_v38  ;;  %v8643_v56 = vld [vmem:[%s11794_s2] sm:$0x3f]  ;;  %s8399_s27 = smov 48   ;;  %s8400_s30 = smov 32  }
  0x13   :  { %7016 = vmatmul.msk.bf16.vlgmr.msra.gmra.mxu1 %vm239_vm0, %v8527_v41  ;;  %v8646_v58 = vperm.slane %v8643_v56, 1  ;;  %v8650_v61 = vperm.slane %v8643_v56, 0  ;;  %s8401_s14 = smov 16  }
  0x14   :  { %7008 = vmatmul.msk.bf16.vlgmr.msra.gmra.mxu0 %vm239_vm0, %v8527_v41 }
  0x15   :  { %417 = vmatpush.bf16.msra.mxu3 %v6951_v44 }
  0x16   :  { %369 = vmatpush.bf16.msra.mxu2 %v6923_v45 }
  0x19   :  { %7024 = vmatmul.msk.bf16.vlgmr.msra.gmra.mxu2 %vm239_vm0, %v8527_v41  ;;  %418 = vmatpush.bf16.msra.mxu3 %v6927_v48 }
  0x1c   :  { %7032 = vmatmul.msk.bf16.vlgmr.msra.gmra.mxu3 %vm239_vm0, %v8527_v41 }
  0x23   :  { %7017 = vmatmul.msk.bf16.gmra.mxu1 %vm239_vm0, %v8552_v49 }
  0x24   :  { %7009 = vmatmul.msk.bf16.gmra.mxu0 %vm239_vm0, %v8552_v49 }
  0x29   :  { %7025 = vmatmul.msk.bf16.gmra.mxu2 %vm239_vm0, %v8552_v49 }
  0x2c   :  { %7033 = vmatmul.msk.bf16.gmra.mxu3 %vm239_vm0, %v8552_v49 }
  0x33   :  { %7018 = vmatmul.msk.bf16.gmra.mxu1 %vm239_vm0, %v8565_v50 }
  0x34   :  { %7010 = vmatmul.msk.bf16.gmra.mxu0 %vm239_vm0, %v8565_v50 }
  0x39   :  { %7026 = vmatmul.msk.bf16.gmra.mxu2 %vm239_vm0, %v8565_v50 }
  0x3c   :  { %7034 = vmatmul.msk.bf16.gmra.mxu3 %vm239_vm0, %v8565_v50 }
  0x43   :  { %7019 = vmatmul.msk.bf16.gmra.mxu1 %vm239_vm0, %v8578_v51 }
  0x44   :  { %7011 = vmatmul.msk.bf16.gmra.mxu0 %vm239_vm0, %v8578_v51 }
  0x49   :  { %7027 = vmatmul.msk.bf16.gmra.mxu2 %vm239_vm0, %v8578_v51 }
  0x4c   :  { %7035 = vmatmul.msk.bf16.gmra.mxu3 %vm239_vm0, %v8578_v51 }
  0x53   :  { %7020 = vmatmul.msk.bf16.gmra.mxu1 %vm239_vm0, %v8591_v52 }
  0x54   :  { %7012 = vmatmul.msk.bf16.gmra.mxu0 %vm239_vm0, %v8591_v52 }
  0x59   :  { %7028 = vmatmul.msk.bf16.gmra.mxu2 %vm239_vm0, %v8591_v52 }
  0x5c   :  { %7036 = vmatmul.msk.bf16.gmra.mxu3 %vm239_vm0, %v8591_v52 }
  0x63   :  { %7021 = vmatmul.msk.bf16.gmra.mxu1 %vm239_vm0, %v8604_v53 }
  0x64   :  { %7013 = vmatmul.msk.bf16.gmra.mxu0 %vm239_vm0, %v8604_v53 }
  0x69   :  { %7029 = vmatmul.msk.bf16.gmra.mxu2 %vm239_vm0, %v8604_v53 }
  0x6c   :  { %7037 = vmatmul.msk.bf16.gmra.mxu3 %vm239_vm0, %v8604_v53 }
  0x73   :  { %7022 = vmatmul.msk.bf16.gmra.mxu1 %vm239_vm0, %v8617_v54 }
  0x74   :  { %7014 = vmatmul.msk.bf16.gmra.mxu0 %vm239_vm0, %v8617_v54 }
  0x79   :  { %7030 = vmatmul.msk.bf16.gmra.mxu2 %vm239_vm0, %v8617_v54 }
  0x7c   :  { %7038 = vmatmul.msk.bf16.gmra.mxu3 %vm239_vm0, %v8617_v54 }
  0x83   :  { %7023 = vmatmul.msk.bf16.gmra.mxu1 %vm239_vm0, %v8630_v55 }
  0x84   :  { %7015 = vmatmul.msk.bf16.gmra.mxu0 %vm239_vm0, %v8630_v55 }
  0x89   :  { %7031 = vmatmul.msk.bf16.gmra.mxu2 %vm239_vm0, %v8630_v55 }
  0x8c   :  { %7039 = vmatmul.msk.bf16.gmra.mxu3 %vm239_vm0, %v8630_v55 }
  0x90   :  { %v322_v57 = vpop.f32.mrf.mxu1 }
  0x91   :  { %v273_v59 = vpop.f32.mrf.mxu0  ;;  %v323_v60 = vadd.f32 %v322_v57, %v8646_v58 }
  0x92   :  { %v274_v2 = vadd.f32 %v273_v59, %v8650_v61 }
  0x93   :  { %v574_v63 = vpack.c.bf16 %v323_v60, %v323_v60 }
  0x94   :  { %v558_v8 = vpack.c.bf16 %v274_v2, %v274_v2 }
  0x95   :  { %v615_v6 = vunpack.c.l.b16 %v574_v63 }
  0x96   :  { %v610_v15 = vunpack.c.l.b16 %v558_v8 }
  0x98   :  { %v324_v62 = vpop.f32.mrf.mxu1 }
  0x99   :  { %v325_v0 = vadd.f32 %v324_v62, %v8646_v58  ;;  %v275_v1 = vpop.f32.mrf.mxu0 }
  0x9a   :  { %v276_v4 = vadd.f32 %v275_v1, %v8650_v61 }
  0x9b   :  { %v575_v3 = vpack.c.bf16 %v325_v0, %v325_v0 }
  0x9c   :  { %v8655_v5 = vpop.f32.mrf.mxu2  ;;  %v559_v10 = vpack.c.bf16 %v276_v4, %v276_v4 }
  0x9d   :  { %v616_v7 = vunpack.c.l.b16 %v575_v3 }
  0x9e   :  { %v611_v16 = vunpack.c.l.b16 %v559_v10 }
  0x9f   :  { %v8657_v9 = vpack.c.b16 %v616_v7, %v615_v6  ;;  %v8659_v11 = vpop.f32.mrf.mxu3 }
  0xa0   :  { %v327_v12 = vpop.f32.mrf.mxu1  ;;  %v8668_v19 = vpack.c.b16 %v611_v16, %v610_v15 }
  0xa1   :  { %1302 = vrot.lane.b32.xlu1 %v8657_v9, %s8395_s7  ;;  %v623_v13 = vsel %vm618_vm1, %v8657_v9, 0  ;;  %v278_v14 = vpop.f32.mrf.mxu0  ;;  %v328_v18 = vadd.f32 %v327_v12, %v8646_v58 }
  0xa2   :  { %632 = vmatpush.bf16.xpose.msrb.mxu2 %v623_v13  ;;  %v279_v25 = vadd.f32 %v278_v14, %v8650_v61 }
  0xa3   :  { %v576_v22 = vpack.c.bf16 %v328_v18, %v328_v18 }
  0xa4   :  { %v8665_v17 = vpop.f32.mrf.mxu2  ;;  %v560_v31 = vpack.c.bf16 %v279_v25, %v279_v25 }
  0xa5   :  { %v646_v29 = vunpack.c.l.b16 %v576_v22 }
  0xa6   :  { %v641_v38 = vunpack.c.l.b16 %v560_v31 }
  0xa7   :  { %v8670_v20 = vpop.f32.mrf.mxu3 }
  0xa8   :  { %11801 = vst [vmem:[#allocation6_spill] sm:$0xff] %v8670_v20  ;;  %v329_v21 = vpop.f32.mrf.mxu1 }
  0xa9   :  { %v330_v23 = vadd.f32 %v329_v21, %v8646_v58  ;;  %7056 = vmatmul.msk.bf16.vlgmr.msrb.gmra.mxu2 %vm618_vm1, %v8668_v19  ;;  %v280_v24 = vpop.f32.mrf.mxu0 }
  0xaa   :  { %v281_v27 = vadd.f32 %v280_v24, %v8650_v61 }
  0xab   :  { %v577_v26 = vpack.c.bf16 %v330_v23, %v330_v23 }
  0xac   :  { %v8677_v28 = vpop.f32.mrf.mxu2  ;;  %v561_v33 = vpack.c.bf16 %v281_v27, %v281_v27 }
  0xad   :  { %v647_v30 = vunpack.c.l.b16 %v577_v26 }
  0xae   :  { %v642_v39 = vunpack.c.l.b16 %v561_v33 }
  0xaf   :  { %v8679_v32 = vpack.c.b16 %v647_v30, %v646_v29  ;;  %v8681_v35 = vpop.f32.mrf.mxu3 }
  0xb0   :  { %v332_v34 = vpop.f32.mrf.mxu1  ;;  %11802 = vst [vmem:[#allocation7_spill] sm:$0xff] %v8681_v35  ;;  %v8689_v44 = vpack.c.b16 %v642_v39, %v641_v38 }
  0xb1   :  { %v653_v36 = vsel %vm618_vm1, %v8679_v32, 0  ;;  %v283_v37 = vpop.f32.mrf.mxu0  ;;  %v333_v43 = vadd.f32 %v332_v34, %v8646_v58 }
  0xb2   :  { %662 = vmatpush.bf16.xpose.msrb.mxu3 %v653_v36  ;;  %v284_v40 = vadd.f32 %v283_v37, %v8650_v61 }
  0xb3   :  { %v578_v47 = vpack.c.bf16 %v333_v43, %v333_v43 }
  0xb4   :  { %v8686_v42 = vpop.f32.mrf.mxu2  ;;  %v562_v45 = vpack.c.bf16 %v284_v40, %v284_v40 }
  0xb5   :  { %v676_v2 = vunpack.c.l.b16 %v578_v47 }
  0xb6   :  { %v671_v63 = vunpack.c.l.b16 %v562_v45 }
  0xb7   :  { %v8695_v60 = vpop.f32.mrf.mxu3 }
  0xb8   :  { %v334_v46 = vpop.f32.mrf.mxu1  ;;  %11803 = vst [vmem:[#allocation8_spill] sm:$0xff] %v8695_v60 }
  0xb9   :  { %v335_v48 = vadd.f32 %v334_v46, %v8646_v58  ;;  %7057 = vmatmul.msk.bf16.vlgmr.msrb.gmra.mxu3 %vm618_vm1, %v8689_v44  ;;  %v285_v57 = vpop.f32.mrf.mxu0 }
  0xba   :  { %v286_v59 = vadd.f32 %v285_v57, %v8650_v61 }
  0xbb   :  { %v579_v62 = vpack.c.bf16 %v335_v48, %v335_v48 }
  0xbc   :  { %v563_v0 = vpack.c.bf16 %v286_v59, %v286_v59  ;;  %v8697_v1 = vpop.f32.mrf.mxu2 }
  0xbd   :  { %v677_v3 = vunpack.c.l.b16 %v579_v62 }
  0xbe   :  { %v672_v4 = vunpack.c.l.b16 %v563_v0 }
  0xbf   :  { %v8699_v6 = vpack.c.b16 %v677_v3, %v676_v2  ;;  %v8712_v15 = vpop.f32.mrf.mxu3 }
  0xc0   :  { %v8701_v7 = vpack.c.b16 %v672_v4, %v671_v63  ;;  %v337_v8 = vpop.f32.mrf.mxu1  ;;  %11804 = vst [vmem:[#allocation9_spill] sm:$0xff] %v8712_v15 }
  0xc1   :  { %v683_v10 = vsel %vm618_vm1, %v8699_v6, 0  ;;  %v288_v12 = vpop.f32.mrf.mxu0  ;;  %1350 = vrot.lane.b32.xlu2 %v8699_v6, %s8395_s7  ;;  %v338_v13 = vadd.f32 %v337_v8, %v8646_v58 }
  0xc2   :  { %692 = vmatpush.bf16.xpose.msra.mxu2 %v683_v10  ;;  %1348 = vrot.lane.b32.xlu0 %v8701_v7, %s8395_s7  ;;  %v289_v21 = vadd.f32 %v288_v12, %v8650_v61 }
  0xc3   :  { %v580_v16 = vpack.c.bf16 %v338_v13, %v338_v13 }
  0xc4   :  { %v8710_v14 = vpop.f32.mrf.mxu2  ;;  %v564_v29 = vpack.c.bf16 %v289_v21, %v289_v21 }
  0xc5   :  { %v706_v25 = vunpack.c.l.b16 %v580_v16 }
  0xc6   :  { %v701_v37 = vunpack.c.l.b16 %v564_v29 }
  0xc7   :  { %v8721_v33 = vpop.f32.mrf.mxu3 }
  0xc8   :  { %v339_v18 = vpop.f32.mrf.mxu1  ;;  %11805 = vst [vmem:[#allocation10_spill] sm:$0xff] %v8721_v33 }
  0xc9   :  { %v340_v22 = vadd.f32 %v339_v18, %v8646_v58  ;;  %7058 = vmatmul.msk.bf16.vlgmr.msra.gmra.mxu2 %vm618_vm1, %v8701_v7  ;;  %v290_v23 = vpop.f32.mrf.mxu0 }
  0xca   :  { %v291_v24 = vadd.f32 %v290_v23, %v8650_v61 }
  0xcb   :  { %v581_v26 = vpack.c.bf16 %v340_v22, %v340_v22 }
  0xcc   :  { %v8719_v27 = vpop.f32.mrf.mxu2  ;;  %v565_v31 = vpack.c.bf16 %v291_v24, %v291_v24 }
  0xcd   :  { %v707_v30 = vunpack.c.l.b16 %v581_v26 }
  0xce   :  { %v702_v38 = vunpack.c.l.b16 %v565_v31  ;;  %v7613_v31 = vld [vmem:[%s11793_s1 + $0xb4] sm:$0xf0] }
  0xcf   :  { %v8723_v34 = vpack.c.b16 %v707_v30, %v706_v25  ;;  %v8732_v57 = vpop.f32.mrf.mxu3  ;;  %v7002_v30 = vld [vmem:[%s11793_s1 + $0xa0] sm:$0xf] }
  0xd0   :  { %v342_v36 = vpop.f32.mrf.mxu1  ;;  %v8730_v46 = vpack.c.b16 %v702_v38, %v701_v37  ;;  %11806 = vst [vmem:[#allocation11_spill] sm:$0xff] %v8732_v57  ;;  %v7003_v37 = vor.u32 %v7613_v31, %v7002_v30 }
  0xd1   :  { %v713_v39 = vsel %vm618_vm1, %v8723_v34, 0  ;;  %v293_v40 = vpop.f32.mrf.mxu0  ;;  %v343_v43 = vadd.f32 %v342_v36, %v8646_v58 }
  0xd2   :  { %722 = vmatpush.bf16.xpose.msra.mxu3 %v713_v39  ;;  %v294_v59 = vadd.f32 %v293_v40, %v8650_v61  ;;  %464 = vmatpush.bf16.msrb.mxu0 %v7003_v37 }
  0xd3   :  { %v582_v47 = vpack.c.bf16 %v343_v43, %v343_v43 }
  0xd4   :  { %v8728_v45 = vpop.f32.mrf.mxu2  ;;  %v566_v8 = vpack.c.bf16 %v294_v59, %v294_v59  ;;  %v7607_v59 = vld [vmem:[%s11793_s1 + $0x84] sm:$0xf0] }
  0xd5   :  { %v736_v2 = vunpack.c.l.b16 %v582_v47 }
  0xd6   :  { %v731_v18 = vunpack.c.l.b16 %v566_v8 }
  0xd7   :  { %v8745_v24 = vpop.f32.mrf.mxu3 }
  0xd8   :  { %v344_v48 = vpop.f32.mrf.mxu1  ;;  %11807 = vst [vmem:[#allocation12_spill] sm:$0xff] %v8745_v24 }
  0xd9   :  { %v345_v62 = vadd.f32 %v344_v48, %v8646_v58  ;;  %7059 = vmatmul.msk.bf16.vlgmr.msra.gmra.mxu3 %vm618_vm1, %v8730_v46  ;;  %v295_v63 = vpop.f32.mrf.mxu0  ;;  %v6978_v48 = vld [vmem:[%s11793_s1 + $0x70] sm:$0xf] }
  0xda   :  { %v296_v0 = vadd.f32 %v295_v63, %v8650_v61 }
  0xdb   :  { %v583_v3 = vpack.c.bf16 %v345_v62, %v345_v62 }
  0xdc   :  { %v8739_v4 = vpop.f32.mrf.mxu2  ;;  %v567_v12 = vpack.c.bf16 %v296_v0, %v296_v0  ;;  %v6979_v0 = vor.u32 %v7607_v59, %v6978_v48 }
  0xdd   :  { %v737_v10 = vunpack.c.l.b16 %v583_v3 }
  0xde   :  { %v732_v21 = vunpack.c.l.b16 %v567_v12  ;;  %465 = vmatpush.bf16.msrb.mxu0 %v6979_v0  ;;  %v6954_v12 = vld [vmem:[%s11793_s1 + $0x40] sm:$0xf] }
  0xdf   :  { %v8741_v13 = vpack.c.b16 %v737_v10, %v736_v2  ;;  %v8769_v2 = vpop.f32.mrf.mxu3 }
  0xe0   :  { %v347_v16 = vpop.f32.mrf.mxu1  ;;  %v8748_v26 = vpack.c.b16 %v732_v21, %v731_v18  ;;  %11809 = vst [vmem:[#allocation14_spill] sm:$0xff] %v8769_v2 }
  0xe1   :  { %v743_v22 = vsel %vm618_vm1, %v8741_v13, 0  ;;  %v298_v23 = vpop.f32.mrf.mxu0  ;;  %v348_v25 = vadd.f32 %v347_v16, %v8646_v58  ;;  %v7601_v16 = vld [vmem:[%s11793_s1 + $0x54] sm:$0xf0] }
  0xe2   :  { %752 = vmatpush.bf16.xpose.msrb.mxu2 %v743_v22  ;;  %11808 = vst [vmem:[#allocation13_spill] sm:$0xff] %v8748_v26  ;;  %v299_v39 = vadd.f32 %v298_v23, %v8650_v61  ;;  %v6955_v21 = vor.u32 %v7601_v16, %v6954_v12  ;;  %v8780_v22 = vperm.slane %v8643_v56, 2  ;;  %v7595_v56 = vld [vmem:[%s11793_s1 + $0x24] sm:$0xf0] }
  0xe3   :  { %v584_v36 = vpack.c.bf16 %v348_v25, %v348_v25 }
  0xe4   :  { %v8750_v29 = vpop.f32.mrf.mxu2  ;;  %v568_v3 = vpack.c.bf16 %v299_v39, %v299_v39  ;;  %466 = vmatpush.bf16.msrb.mxu0 %v6955_v21 }
  0xe5   :  { %v766_v62 = vunpack.c.l.b16 %v584_v36 }
  0xe6   :  { %v761_v30 = vunpack.c.l.b16 %v568_v3 }
  0xe7   :  { %v8799_v59 = vpop.f32.mrf.mxu3 }
  0xe8   :  { %v349_v38 = vpop.f32.mrf.mxu1  ;;  %11810 = vst [vmem:[#allocation15_spill] sm:$0xff] %v8799_v59 }
  0xe9   :  { %v350_v40 = vadd.f32 %v349_v38, %v8646_v58  ;;  %7060 = vmatmul.msk.bf16.vlgmr.msrb.gmra.mxu2 %vm618_vm1, %v8748_v26  ;;  %v300_v43 = vpop.f32.mrf.mxu0  ;;  %v6930_v38 = vld [vmem:[%s11793_s1 + $0x10] sm:$0xf] }
  0xea   :  { %v301_v47 = vadd.f32 %v300_v43, %v8650_v61  ;;  %v372_v43 = vadd.f32 %v8655_v5, %v8780_v22 }
  0xeb   :  { %v585_v63 = vpack.c.bf16 %v350_v40, %v350_v40  ;;  %v6931_v40 = vor.u32 %v7595_v56, %v6930_v38 }
  0xec   :  { %v569_v10 = vpack.c.bf16 %v301_v47, %v301_v47  ;;  %v8782_v25 = vpop.f32.mrf.mxu2  ;;  %v374_v47 = vadd.f32 %v8665_v17, %v8780_v22 }
  0xed   :  { %v767_v8 = vunpack.c.l.b16 %v585_v63  ;;  %467 = vmatpush.bf16.msrb.mxu0 %v6931_v40  ;;  %v590_v63 = vpack.c.bf16 %v372_v43, %v372_v43 }
  0xee   :  { %v762_v31 = vunpack.c.l.b16 %v569_v10  ;;  %v591_v3 = vpack.c.bf16 %v374_v47, %v374_v47 }
  0xef   :  { %v8777_v18 = vpack.c.b16 %v767_v8, %v766_v62 }
  0xf0   :  { %v352_v23 = vpop.f32.mrf.mxu1  ;;  %v8797_v48 = vpack.c.b16 %v762_v31, %v761_v30  ;;  %7040 = vmatmul.msk.bf16.vlgmr.msrb.gmra.mxu0 %vm239_vm0, %v8527_v41  ;;  %v382_v30 = vadd.f32 %v8697_v1, %v8780_v22  ;;  %v384_v31 = vadd.f32 %v8710_v14, %v8780_v22 }
  0xf1   :  { %v773_v36 = vsel %vm618_vm1, %v8777_v18, 0  ;;  %v303_v37 = vpop.f32.mrf.mxu0  ;;  %v353_v39 = vadd.f32 %v352_v23, %v8646_v58  ;;  %v1048_v23 = vunpack.c.l.b16 %v590_v63 }
  0xf2   :  { %782 = vmatpush.bf16.xpose.msrb.mxu3 %v773_v36  ;;  %v304_v8 = vadd.f32 %v303_v37, %v8650_v61  ;;  %v1049_v36 = vunpack.c.l.b16 %v591_v3  ;;  %v594_v40 = vpack.c.bf16 %v382_v30, %v382_v30  ;;  %v595_v43 = vpack.c.bf16 %v384_v31, %v384_v31 }
  0xf3   :  { %v586_v62 = vpack.c.bf16 %v353_v39, %v353_v39  ;;  %v377_v3 = vadd.f32 %v8677_v28, %v8780_v22 }
  0xf4   :  { %v8808_v12 = vpop.f32.mrf.mxu2  ;;  %v570_v37 = vpack.c.bf16 %v304_v8, %v304_v8  ;;  %v1104_v8 = vunpack.c.l.b16 %v594_v40 }
  0xf5   :  { %v796_v16 = vunpack.c.l.b16 %v586_v62  ;;  %v8818_v62 = vpack.c.b16 %v1049_v36, %v1048_v23  ;;  %v592_v31 = vpack.c.bf16 %v377_v3, %v377_v3 }
  0xf6   :  { %v791_v63 = vunpack.c.l.b16 %v570_v37 }
  0xf8   :  { %v354_v0 = vpop.f32.mrf.mxu1 }
  0xf9   :  { %v355_v10 = vadd.f32 %v354_v0, %v8646_v58  ;;  %7061 = vmatmul.msk.bf16.vlgmr.msrb.gmra.mxu3 %vm618_vm1, %v8797_v48  ;;  %v305_v5 = vpop.f32.mrf.mxu0  ;;  %v8816_v0 = vpop.f32.mrf.mxu3 }
  0xfa   :  { %v306_v17 = vadd.f32 %v305_v5, %v8650_v61  ;;  %11811 = vst [vmem:[#allocation16_spill] sm:$0xff] %v8816_v0 }
  0xfb   :  { %v587_v21 = vpack.c.bf16 %v355_v10, %v355_v10 }
  0xfc   :  { %v571_v56 = vpack.c.bf16 %v306_v17, %v306_v17  ;;  %v1105_v17 = vunpack.c.l.b16 %v595_v43 }
  0xfd   :  { %v797_v38 = vunpack.c.l.b16 %v587_v21  ;;  %v379_v21 = vadd.f32 %v8686_v42, %v8780_v22 }
  0xfe   :  { %v792_v10 = vunpack.c.l.b16 %v571_v56  ;;  %v8832_v36 = vpack.c.b16 %v1105_v17, %v1104_v8 }
  0xff   :  { %v8814_v39 = vpack.c.b16 %v797_v38, %v796_v16  ;;  %v8826_v16 = vpop.f32.mrf.mxu2  ;;  %v593_v38 = vpack.c.bf16 %v379_v21, %v379_v21 }
 0x100   :  { %v357_v47 = vpop.f32.mrf.mxu1  ;;  %v8830_v23 = vpack.c.b16 %v792_v10, %v791_v63  ;;  %7041 = vmatmul.msk.bf16.gmra.mxu0 %vm239_vm0, %v8552_v49  ;;  %v1076_v10 = vunpack.c.l.b16 %v592_v31 }
 0x101   :  { %v803_v1 = vsel %vm618_vm1, %v8814_v39, 0  ;;  %v308_v5 = vpop.f32.mrf.mxu0  ;;  %v358_v14 = vadd.f32 %v357_v47, %v8646_v58  ;;  %v8841_v43 = vpop.f32.mrf.mxu3 }
 0x102   :  { %812 = vmatpush.bf16.xpose.msra.mxu2 %v803_v1  ;;  %v309_v28 = vadd.f32 %v308_v5, %v8650_v61  ;;  %11812 = vst [vmem:[#allocation17_spill] sm:$0xff] %v8841_v43  ;;  %v387_v1 = vadd.f32 %v8719_v27, %v8780_v22  ;;  %v389_v5 = vadd.f32 %v8728_v45, %v8780_v22 }
 0x103   :  { %v588_v30 = vpack.c.bf16 %v358_v14, %v358_v14 }
 0x104   :  { %v572_v14 = vpack.c.bf16 %v309_v28, %v309_v28  ;;  %v596_v21 = vpack.c.bf16 %v387_v1, %v387_v1 }
 0x105   :  { %v826_v47 = vunpack.c.l.b16 %v588_v30 }
 0x106   :  { %v821_v30 = vunpack.c.l.b16 %v572_v14  ;;  %v1132_v45 = vunpack.c.l.b16 %v596_v21  ;;  %v8882_v14 = vld [vmem:[%s11795_s3] sm:$0xff] }
 0x107   :  { %v8848_v17 = vpop.f32.mrf.mxu2 }
 0x108   :  { %v359_v37 = vpop.f32.mrf.mxu1 }
 0x109   :  { %v360_v56 = vadd.f32 %v359_v37, %v8646_v58  ;;  %7062 = vmatmul.msk.bf16.vlgmr.msra.gmra.mxu2 %vm618_vm1, %v8830_v23  ;;  %v310_v40 = vpop.f32.mrf.mxu0  ;;  %v1077_v58 = vunpack.c.l.b16 %v593_v38  ;;  %v597_v37 = vpack.c.bf16 %v389_v5, %v389_v5 }
 0x10a   :  { %1062 = vmatpush.bf16.msrb.mxu2 %v8818_v62  ;;  %v311_v42 = vadd.f32 %v310_v40, %v8650_v61 }
 0x10b   :  { %v589_v63 = vpack.c.bf16 %v360_v56, %v360_v56  ;;  %v8852_v40 = vpack.c.b16 %v1077_v58, %v1076_v10  ;;  %v1133_v38 = vunpack.c.l.b16 %v597_v37 }
 0x10c   :  { %v573_v8 = vpack.c.bf16 %v311_v42, %v311_v42  ;;  %v8858_v42 = vpop.f32.mrf.mxu3 }
 0x10d   :  { %v827_v3 = vunpack.c.l.b16 %v589_v63  ;;  %11813 = vst [vmem:[#allocation18_spill] sm:$0xff] %v8858_v42  ;;  %v8862_v63 = vpack.c.b16 %v1133_v38, %v1132_v45 }
 0x10e   :  { %1118 = vmatpush.bf16.msra.mxu2 %v8832_v36  ;;  %v822_v31 = vunpack.c.l.b16 %v573_v8 }
 0x10f   :  { %v8850_v61 = vpack.c.b16 %v827_v3, %v826_v47  ;;  %v8864_v10 = vpop.f32.mrf.mxu2 }
 0x110   :  { %v8860_v47 = vpack.c.b16 %v822_v31, %v821_v30  ;;  %7042 = vmatmul.msk.bf16.gmra.mxu0 %vm239_vm0, %v8565_v50  ;;  %v8894_v30 = vld [vmem:[%s11795_s3 + $0x8] sm:$0xff] }
 0x111   :  { %v833_v27 = vsel %vm618_vm1, %v8850_v61, 0 }
 0x112   :  { %842 = vmatpush.bf16.xpose.msra.mxu3 %v833_v27 }
 0x113   :  { %v1303_v56 = vpop.permute.xlu1 %1302 }
 0x114   :  { %v1308_v28 = vsel %vm618_vm1, %v1303_v56, 0  ;;  %v8871_v1 = vpop.f32.mrf.mxu3 }
 0x115   :  { %1317 = vmatpush.bf16.xpose.msra.mxu0 %v1308_v28  ;;  %11814 = vst [vmem:[#allocation19_spill] sm:$0xff] %v8871_v1 }
 0x117   :  { %v8873_v5 = vpop.f32.mrf.mxu2 }
 0x119   :  { %7063 = vmatmul.msk.bf16.vlgmr.msra.gmra.mxu3 %vm618_vm1, %v8860_v47 }
 0x11a   :  { %1090 = vmatpush.bf16.msrb.mxu3 %v8852_v40 }
 0x11c   :  { %v8875_v58 = vpop.f32.mrf.mxu3 }
 0x11d   :  { %11815 = vst [vmem:[#allocation20_spill] sm:$0xff] %v8875_v58 }
 0x11e   :  { %1146 = vmatpush.bf16.msra.mxu3 %v8862_v63 }
 0x120   :  { %7043 = vmatmul.msk.bf16.gmra.mxu0 %vm239_vm0, %v8578_v51 }
 0x124   :  { %v8889_v37 = vpop.f32.mrf.mxu3 }
 0x125   :  { %11816 = vst [vmem:[#allocation21_spill] sm:$0xff] %v8889_v37 }
 0x12c   :  { %v634_v3 = vpop.f32.mrf.mxu2 }
 0x12d   :  { %v8885_v8 = vadd.f32 %v634_v3, %v8882_v14 }
 0x12f   :  { %v849_v21 = vsel %vm618_vm1, %v8885_v8, -inf }
 0x130   :  { %850 = vmax.xlane.f32.xlu0 %v849_v21  ;;  %7044 = vmatmul.msk.bf16.gmra.mxu0 %vm239_vm0, %v8591_v52 }
 0x134   :  { %v636_v51 = vpop.f32.mrf.mxu2 }
 0x135   :  { %v8897_v31 = vadd.f32 %v636_v51, %v8894_v30 }
 0x137   :  { %v852_v27 = vsel %vm618_vm1, %v8897_v31, -inf }
 0x138   :  { %853 = vmax.xlane.f32.xlu0 %v852_v27 }
 0x13c   :  { %v664_v56 = vpop.f32.mrf.mxu3 }
 0x13d   :  { %v8904_v45 = vadd.f32 %v664_v56, %v8882_v14 }
 0x13f   :  { %v855_v38 = vsel %vm618_vm1, %v8904_v45, -inf }
 0x140   :  { %856 = vmax.xlane.f32.xlu1 %v855_v38  ;;  %7045 = vmatmul.msk.bf16.gmra.mxu0 %vm239_vm0, %v8604_v53 }
 0x144   :  { %v666_v28 = vpop.f32.mrf.mxu3 }
 0x145   :  { %v8909_v3 = vadd.f32 %v666_v28, %v8894_v30 }
 0x147   :  { %v858_v21 = vsel %vm618_vm1, %v8909_v3, -inf }
 0x148   :  { %859 = vmax.xlane.f32.xlu1 %v858_v21 }
 0x14c   :  { %v694_v52 = vpop.f32.mrf.mxu2 }
 0x14d   :  { %v8916_v51 = vadd.f32 %v694_v52, %v8882_v14 }
 0x14f   :  { %v861_v27 = vsel %vm618_vm1, %v8916_v51, -inf }
 0x150   :  { %862 = vmax.xlane.f32.xlu2 %v861_v27  ;;  %7046 = vmatmul.msk.bf16.gmra.mxu0 %vm239_vm0, %v8617_v54 }
 0x154   :  { %v696_v56 = vpop.f32.mrf.mxu2 }
 0x155   :  { %v8921_v38 = vadd.f32 %v696_v56, %v8894_v30 }
 0x157   :  { %v864_v28 = vsel %vm618_vm1, %v8921_v38, -inf }
 0x158   :  { %865 = vmax.xlane.f32.xlu2 %v864_v28 }
 0x15c   :  { %v724_v53 = vpop.f32.mrf.mxu3 }
 0x15d   :  { %v8928_v21 = vadd.f32 %v724_v53, %v8882_v14 }
 0x15f   :  { %v867_v52 = vsel %vm618_vm1, %v8928_v21, -inf }
 0x160   :  { %868 = vmax.xlane.f32.xlu0 %v867_v52  ;;  %7047 = vmatmul.msk.bf16.gmra.mxu0 %vm239_vm0, %v8630_v55 }
 0x164   :  { %v726_v27 = vpop.f32.mrf.mxu3 }
 0x165   :  { %v8933_v37 = vadd.f32 %v726_v27, %v8894_v30 }
 0x167   :  { %v870_v56 = vsel %vm618_vm1, %v8933_v37, -inf }
 0x168   :  { %871 = vmax.xlane.f32.xlu1 %v870_v56 }
 0x16c   :  { %v754_v54 = vpop.f32.mrf.mxu2 }
 0x16d   :  { %v8940_v28 = vadd.f32 %v754_v54, %v8882_v14 }
 0x16f   :  { %v873_v53 = vsel %vm618_vm1, %v8940_v28, -inf }
 0x170   :  { %874 = vmax.xlane.f32.xlu2 %v873_v53 }
 0x174   :  { %v756_v52 = vpop.f32.mrf.mxu2 }
 0x175   :  { %v8945_v58 = vadd.f32 %v756_v52, %v8894_v30 }
 0x177   :  { %v876_v27 = vsel %vm618_vm1, %v8945_v58, -inf }
 0x178   :  { %877 = vmax.xlane.f32.xlu0 %v876_v27 }
 0x17c   :  { %v784_v56 = vpop.f32.mrf.mxu3 }
 0x17d   :  { %v8950_v24 = vadd.f32 %v784_v56, %v8882_v14 }
 0x17f   :  { %v879_v55 = vsel %vm618_vm1, %v8950_v24, -inf }
 0x180   :  { %880 = vmax.xlane.f32.xlu1 %v879_v55 }
 0x184   :  { %v786_v54 = vpop.f32.mrf.mxu3 }
 0x185   :  { %v8955_v57 = vadd.f32 %v786_v54, %v8894_v30  ;;  %v8969_v54 = vpop.permute.xlu0 %1348 }
 0x187   :  { %v882_v53 = vsel %vm618_vm1, %v8955_v57, -inf }
 0x188   :  { %883 = vmax.xlane.f32.xlu2 %v882_v53 }
 0x18c   :  { %v814_v52 = vpop.f32.mrf.mxu2 }
 0x18d   :  { %v8960_v43 = vadd.f32 %v814_v52, %v8882_v14 }
 0x18f   :  { %v885_v27 = vsel %vm618_vm1, %v8960_v43, -inf }
 0x190   :  { %886 = vmax.xlane.f32.xlu0 %v885_v27 }
 0x194   :  { %v816_v56 = vpop.f32.mrf.mxu2 }
 0x195   :  { %v8965_v0 = vadd.f32 %v816_v56, %v8894_v30 }
 0x197   :  { %v888_v55 = vsel %vm618_vm1, %v8965_v0, -inf }
 0x198   :  { %889 = vmax.xlane.f32.xlu1 %v888_v55 }
 0x19c   :  { %v844_v1 = vpop.f32.mrf.mxu3 }
 0x19d   :  { %v8972_v53 = vadd.f32 %v844_v1, %v8882_v14 }
 0x19f   :  { %v891_v52 = vsel %vm618_vm1, %v8972_v53, -inf }
 0x1a0   :  { %892 = vmax.xlane.f32.xlu1 %v891_v52 }
 0x1a3   :  { %v851_v42 = vpop.xlane.xlu0 %850 }
 0x1a4   :  { %v897_v27 = vsub.f32 %v8885_v8, %v851_v42  ;;  %v846_v60 = vpop.f32.mrf.mxu3 }
 0x1a5   :  { %v8978_v56 = vadd.f32 %v846_v60, %v8894_v30 }
 0x1a6   :  { %v913_v35 = vmul.f32 1.442695, %v897_v27 }
 0x1a7   :  { %v894_v55 = vsel %vm618_vm1, %v8978_v56, -inf }
 0x1a8   :  { %7849 = vpow2.f32 %v913_v35  ;;  %895 = vmax.xlane.f32.xlu2 %v894_v55 }
 0x1ab   :  { %v854_v33 = vpop.xlane.xlu0 %853 }
 0x1ac   :  { %v898_v1 = vsub.f32 %v8897_v31, %v854_v33  ;;  %v8992_v33 = vpop.permute.xlu2 %1350 }
 0x1ae   :  { %v8983_v14 = vpop.eup %7849  ;;  %v915_v15 = vmul.f32 1.442695, %v898_v1 }
 0x1af   :  { %v945_v52 = vsel %vm618_vm1, %v8983_v14, 0.0 }
 0x1b0   :  { %7851 = vpow2.f32 %v915_v15  ;;  %946 = vadd.xlane.f32.xlu2 %v945_v52 }
 0x1b3   :  { %v857_v42 = vpop.xlane.xlu1 %856 }
 0x1b4   :  { %v899_v60 = vsub.f32 %v8904_v45, %v857_v42 }
 0x1b6   :  { %v8988_v8 = vpop.eup %7851  ;;  %v917_v30 = vmul.f32 1.442695, %v899_v60 }
 0x1b7   :  { %v948_v35 = vsel %vm618_vm1, %v8988_v8, 0.0 }
 0x1b8   :  { %7853 = vpow2.f32 %v917_v30  ;;  %949 = vadd.xlane.f32.xlu0 %v948_v35 }
 0x1bb   :  { %v860_v31 = vpop.xlane.xlu1 %859 }
 0x1bc   :  { %v900_v27 = vsub.f32 %v8909_v3, %v860_v31 }
 0x1be   :  { %v8995_v55 = vpop.eup %7853  ;;  %v919_v15 = vmul.f32 1.442695, %v900_v27 }
 0x1bf   :  { %v951_v1 = vsel %vm618_vm1, %v8995_v55, 0.0 }
 0x1c0   :  { %7855 = vpow2.f32 %v919_v15  ;;  %952 = vadd.xlane.f32.xlu0 %v951_v1 }
 0x1c3   :  { %v863_v45 = vpop.xlane.xlu2 %862 }
 0x1c4   :  { %v901_v52 = vsub.f32 %v8916_v51, %v863_v45 }
 0x1c6   :  { %v9000_v42 = vpop.eup %7855  ;;  %v921_v60 = vmul.f32 1.442695, %v901_v52 }
 0x1c7   :  { %v954_v30 = vsel %vm618_vm1, %v9000_v42, 0.0 }
 0x1c8   :  { %7857 = vpow2.f32 %v921_v60  ;;  %955 = vadd.xlane.f32.xlu1 %v954_v30 }
 0x1cb   :  { %v866_v45 = vpop.xlane.xlu2 %865 }
 0x1cc   :  { %v902_v60 = vsub.f32 %v8921_v38, %v866_v45  ;;  %v7610_v45 = vld [vmem:[%s11793_s1 + $0xa4] sm:$0xf] }
 0x1ce   :  { %v9004_v3 = vpop.eup %7857 }
 0x1cf   :  { %v957_v35 = vsel %vm618_vm1, %v9004_v3, 0.0 }
 0x1d0   :  { %958 = vadd.xlane.f32.xlu2 %v957_v35  ;;  %v923_v35 = vmul.f32 1.442695, %v902_v60 }
 0x1d3   :  { %v869_v31 = vpop.xlane.xlu0 %868 }
 0x1d4   :  { %v903_v27 = vsub.f32 %v8928_v21, %v869_v31  ;;  %1446 = vrot.lane.b32.xlu0 %v8814_v39, %s8395_s7 }
 0x1d6   :  { %v925_v51 = vmul.f32 1.442695, %v903_v27 }
 0x1d8   :  { %7859 = vpow2.f32 %v925_v51 }
 0x1db   :  { %v872_v38 = vpop.xlane.xlu1 %871 }
 0x1de   :  { %v9011_v15 = vpop.eup %7859 }
 0x1df   :  { %v963_v1 = vsel %vm618_vm1, %v9011_v15, 0.0 }
 0x1e0   :  { %964 = vadd.xlane.f32.xlu1 %v963_v1 }
 0x1e3   :  { %v875_v31 = vpop.xlane.xlu2 %874 }
 0x1e4   :  { %v905_v27 = vsub.f32 %v8940_v28, %v875_v31  ;;  %v7004_v28 = vld [vmem:[%s11793_s1 + $0xb8] sm:$0xf0] }
 0x1e5   :  { %v7007_v60 = vor.u32 %v7610_v45, %v7004_v28 }
 0x1e6   :  { %v929_v59 = vmul.f32 1.442695, %v905_v27 }
 0x1e7   :  { %513 = vmatpush.bf16.msrb.mxu1 %v7007_v60 }
 0x1e8   :  { %1374 = vrot.lane.b32.xlu2 %v8723_v34, %s8395_s7 }
 0x1eb   :  { %v878_v52 = vpop.xlane.xlu0 %877 }
 0x1ec   :  { %v906_v21 = vsub.f32 %v8945_v58, %v878_v52 }
 0x1ee   :  { %v931_v30 = vmul.f32 1.442695, %v906_v21  ;;  %v904_v21 = vsub.f32 %v8933_v37, %v872_v38  ;;  %v7598_v38 = vld [vmem:[%s11793_s1 + $0x44] sm:$0xf] }
 0x1f0   :  { %7861 = vpow2.f32 %v931_v30  ;;  %v927_v31 = vmul.f32 1.442695, %v904_v21  ;;  %v6932_v21 = vld [vmem:[%s11793_s1 + $0x28] sm:$0xf0] }
 0x1f1   :  { %7863 = vpow2.f32 %v923_v35 }
 0x1f2   :  { %7865 = vpow2.f32 %v929_v59 }
 0x1f6   :  { %v9020_v51 = vpop.eup %7861 }
 0x1f7   :  { %v972_v1 = vsel %vm618_vm1, %v9020_v51, 0.0  ;;  %v9024_v2 = vpop.eup %7863 }
 0x1f8   :  { %973 = vadd.xlane.f32.xlu1 %v972_v1  ;;  %v960_v52 = vsel %vm618_vm1, %v9024_v2, 0.0  ;;  %v9042_v35 = vpop.eup %7865  ;;  %v881_v1 = vpop.xlane.xlu1 %880 }
 0x1f9   :  { %v969_v45 = vsel %vm618_vm1, %v9042_v35, 0.0  ;;  %v907_v60 = vsub.f32 %v8950_v24, %v881_v1 }
 0x1fb   :  { %v884_v20 = vpop.xlane.xlu2 %883 }
 0x1fc   :  { %v908_v58 = vsub.f32 %v8955_v57, %v884_v20  ;;  %v7604_v20 = vld [vmem:[%s11793_s1 + $0x74] sm:$0xf]  ;;  %v6980_v57 = vld [vmem:[%s11793_s1 + $0x88] sm:$0xf0] }
 0x1fd   :  { %v6983_v59 = vor.u32 %v7604_v20, %v6980_v57  ;;  %v933_v57 = vmul.f32 1.442695, %v907_v60 }
 0x1fe   :  { %961 = vadd.xlane.f32.xlu0 %v960_v52  ;;  %v935_v30 = vmul.f32 1.442695, %v908_v58  ;;  %v6956_v58 = vld [vmem:[%s11793_s1 + $0x58] sm:$0xf0] }
 0x1ff   :  { %514 = vmatpush.bf16.msrb.mxu1 %v6983_v59  ;;  %v6959_v28 = vor.u32 %v7598_v38, %v6956_v58 }
 0x200   :  { %7867 = vpow2.f32 %v935_v30 }
 0x201   :  { %7869 = vpow2.f32 %v927_v31 }
 0x203   :  { %v887_v27 = vpop.xlane.xlu0 %886  ;;  %515 = vmatpush.bf16.msrb.mxu1 %v6959_v28 }
 0x204   :  { %v909_v37 = vsub.f32 %v8960_v43, %v887_v27  ;;  %v7592_v43 = vld [vmem:[%s11793_s1 + $0x14] sm:$0xf] }
 0x205   :  { %v6935_v30 = vor.u32 %v7592_v43, %v6932_v21 }
 0x206   :  { %v937_v52 = vmul.f32 1.442695, %v909_v37  ;;  %970 = vadd.xlane.f32.xlu0 %v969_v45  ;;  %v9060_v20 = vpop.eup %7867 }
 0x207   :  { %516 = vmatpush.bf16.msrb.mxu1 %v6935_v30  ;;  %v9062_v27 = vpop.eup %7869  ;;  %v978_v24 = vsel %vm618_vm1, %v9060_v20, 0.0  ;;  %v394_v30 = vadd.f32 %v8750_v29, %v8780_v22 }
 0x208   :  { %7871 = vpow2.f32 %v937_v52  ;;  %v966_v38 = vsel %vm618_vm1, %v9062_v27, 0.0 }
 0x209   :  { %7873 = vpow2.f32 %v933_v57 }
 0x20a   :  { %7048 = vmatmul.msk.bf16.vlgmr.msrb.gmra.mxu1 %vm239_vm0, %v8527_v41 }
 0x20b   :  { %v890_v59 = vpop.xlane.xlu1 %889 }
 0x20c   :  { %v910_v1 = vsub.f32 %v8965_v0, %v890_v59 }
 0x20e   :  { %v9066_v31 = vpop.eup %7871  ;;  %979 = vadd.xlane.f32.xlu0 %v978_v24  ;;  %v939_v58 = vmul.f32 1.442695, %v910_v1  ;;  %v599_v1 = vpack.c.bf16 %v394_v30, %v394_v30  ;;  %v399_v30 = vadd.f32 %v8808_v12, %v8780_v22 }
 0x20f   :  { %v981_v37 = vsel %vm618_vm1, %v9066_v31, 0.0  ;;  %v9075_v45 = vpop.eup %7873 }
 0x210   :  { %982 = vadd.xlane.f32.xlu1 %v981_v37  ;;  %7875 = vpow2.f32 %v939_v58  ;;  %v975_v28 = vsel %vm618_vm1, %v9075_v45, 0.0 }
 0x211   :  { %967 = vadd.xlane.f32.xlu2 %v966_v38 }
 0x213   :  { %v893_v37 = vpop.xlane.xlu1 %892 }
 0x216   :  { %v9081_v52 = vpop.eup %7875 }
 0x217   :  { %v984_v0 = vsel %vm618_vm1, %v9081_v52, 0.0 }
 0x219   :  { %976 = vadd.xlane.f32.xlu2 %v975_v28 }
 0x21a   :  { %7049 = vmatmul.msk.bf16.gmra.mxu1 %vm239_vm0, %v8552_v49  ;;  %v392_v49 = vadd.f32 %v8739_v4, %v8780_v22 }
 0x21b   :  { %v9079_v41 = vpop.xlane.xlu2 %895 }
 0x21c   :  { %v598_v24 = vpack.c.bf16 %v392_v49, %v392_v49  ;;  %v397_v49 = vadd.f32 %v8782_v25, %v8780_v22 }
 0x221   :  { %985 = vadd.xlane.f32.xlu2 %v984_v0  ;;  %v1160_v0 = vunpack.c.l.b16 %v598_v24 }
 0x222   :  { %1444 = vrot.lane.b32.xlu0 %v8830_v23, %s8395_s7 }
 0x223   :  { %v947_v60 = vpop.xlane.xlu2 %946 }
 0x224   :  { %7877 = vrcp.f32 %v947_v60  ;;  %v1161_v60 = vunpack.c.l.b16 %v599_v1  ;;  %v600_v1 = vpack.c.bf16 %v397_v49, %v397_v49  ;;  %v8363_v49 = vld [vmem:[%s11792_s0 + $0x28] sm:$0xff] }
 0x229   :  { %1372 = vrot.lane.b32.xlu1 %v8730_v46, %s8395_s7 }
 0x22a   :  { %1470 = vrot.lane.b32.xlu0 %v8850_v61, %s8395_s7  ;;  %v7878_v21 = vpop.eup %7877  ;;  %7050 = vmatmul.msk.bf16.gmra.mxu1 %vm239_vm0, %v8565_v50 }
 0x22b   :  { %v950_v43 = vpop.xlane.xlu0 %949  ;;  %v1009_v57 = vmul.f32 %v7878_v21, %v8983_v14  ;;  %v9107_v14 = vpack.c.b16 %v1161_v60, %v1160_v0 }
 0x22c   :  { %7879 = vrcp.f32 %v950_v43 }
 0x22d   :  { %v1025_v38 = vpack.c.bf16 %v1009_v57, %v1009_v57  ;;  %v8361_v57 = vld [vmem:[%s11792_s0 + $0x18] sm:$0xff] }
 0x22f   :  { %v1043_v29 = vunpack.c.l.b16 %v1025_v38  ;;  %v601_v38 = vpack.c.bf16 %v399_v30, %v399_v30 }
 0x231   :  { %1398 = vrot.lane.b32.xlu1 %v8741_v13, %s8395_s7  ;;  %v1189_v0 = vunpack.c.l.b16 %v601_v38 }
 0x232   :  { %v7880_v59 = vpop.eup %7879 }
 0x233   :  { %v1010_v58 = vmul.f32 %v7880_v59, %v8988_v8  ;;  %v953_v28 = vpop.xlane.xlu0 %952 }
 0x234   :  { %7881 = vrcp.f32 %v953_v28 }
 0x235   :  { %v1026_v4 = vpack.c.bf16 %v1010_v58, %v1010_v58  ;;  %v911_v58 = vsub.f32 %v8972_v53, %v893_v37  ;;  %v8362_v53 = vld [vmem:[%s11792_s0 + $0x20] sm:$0xff]  ;;  %v912_v37 = vsub.f32 %v8978_v56, %v9079_v41 }
 0x237   :  { %v1044_v43 = vunpack.c.l.b16 %v1026_v4  ;;  %v1188_v4 = vunpack.c.l.b16 %v600_v1  ;;  %v941_v60 = vmul.f32 1.442695, %v911_v58  ;;  %v402_v58 = vadd.f32 %v8826_v16, %v8780_v22  ;;  %v9168_v16 = vpop.f32.mrf.mxu0 }
 0x239   :  { %v1045_v50 = vpack.c.b16 %v1044_v43, %v1043_v29  ;;  %1300 = vrot.lane.b32.xlu2 %v8668_v19, %s8395_s7  ;;  %1396 = vrot.lane.b32.xlu1 %v8748_v26, %s8395_s7 }
 0x23a   :  { %v7882_v8 = vpop.eup %7881  ;;  %7051 = vmatmul.msk.bf16.gmra.mxu1 %vm239_vm0, %v8361_v57 }
 0x23b   :  { %v956_v21 = vpop.xlane.xlu1 %955  ;;  %7064 = vmatmul.msk.bf16.vlgmr.msrb.gmra.mxu2 %vm618_vm1, %v1045_v50  ;;  %v1011_v59 = vmul.f32 %v7882_v8, %v8995_v55  ;;  %v9126_v55 = vpack.c.b16 %v1189_v0, %v1188_v4  ;;  %v943_v8 = vmul.f32 1.442695, %v912_v37  ;;  %v602_v4 = vpack.c.bf16 %v402_v58, %v402_v58 }
 0x23c   :  { %7883 = vrcp.f32 %v956_v21  ;;  %1174 = vmatpush.bf16.msrb.mxu2 %v9107_v14 }
 0x23d   :  { %v1027_v25 = vpack.c.bf16 %v1011_v59, %v1011_v59  ;;  %7885 = vpow2.f32 %v941_v60  ;;  %v8364_v59 = vld [vmem:[%s11792_s0 + $0x30] sm:$0xff]  ;;  %v1216_v37 = vunpack.c.l.b16 %v602_v4 }
 0x23e   :  { %7887 = vpow2.f32 %v943_v8 }
 0x23f   :  { %v1071_v29 = vunpack.c.l.b16 %v1027_v25  ;;  %v404_v25 = vadd.f32 %v8848_v17, %v8780_v22 }
 0x241   :  { %1326 = vrot.lane.b32.xlu2 %v8679_v32, %s8395_s7  ;;  %v603_v0 = vpack.c.bf16 %v404_v25, %v404_v25 }
 0x242   :  { %v7884_v24 = vpop.eup %7883 }
 0x243   :  { %v1012_v28 = vmul.f32 %v7884_v24, %v9000_v42  ;;  %v9134_v42 = vpop.eup %7885  ;;  %v959_v41 = vpop.xlane.xlu2 %958 }
 0x244   :  { %v987_v21 = vsel %vm618_vm1, %v9134_v42, 0.0  ;;  %v9146_v30 = vpop.eup %7887  ;;  %7889 = vrcp.f32 %v959_v41 }
 0x245   :  { %v1028_v12 = vpack.c.bf16 %v1012_v28, %v1012_v28  ;;  %v990_v56 = vsel %vm618_vm1, %v9146_v30, 0.0 }
 0x246   :  { %v9152_v57 = vpop.permute.xlu0 %1446 }
 0x247   :  { %v1072_v43 = vunpack.c.l.b16 %v1028_v12 }
 0x249   :  { %v1073_v50 = vpack.c.b16 %v1072_v43, %v1071_v29  ;;  %1324 = vrot.lane.b32.xlu2 %v8689_v44, %s8395_s7 }
 0x24a   :  { %7052 = vmatmul.msk.bf16.gmra.mxu1 %vm239_vm0, %v8362_v53  ;;  %v7890_v38 = vpop.eup %7889 }
 0x24b   :  { %7065 = vmatmul.msk.bf16.vlgmr.msrb.gmra.mxu3 %vm618_vm1, %v1073_v50  ;;  %v1013_v28 = vmul.f32 %v7890_v38, %v9004_v3  ;;  %v9164_v8 = vpop.permute.xlu2 %1374 }
 0x24c   :  { %1202 = vmatpush.bf16.msrb.mxu3 %v9126_v55 }
 0x24d   :  { %v1029_v60 = vpack.c.bf16 %v1013_v28, %v1013_v28  ;;  %v9180_v28 = vpop.f32.mrf.mxu0 }
 0x24e   :  { %11817 = vst [vmem:[#allocation22_spill] sm:$0xff] %v9180_v28 }
 0x24f   :  { %v1099_v17 = vunpack.c.l.b16 %v1029_v60 }
 0x251   :  { %1422 = vrot.lane.b32.xlu2 %v8777_v18, %s8395_s7 }
 0x253   :  { %v965_v24 = vpop.xlane.xlu1 %964 }
 0x254   :  { %988 = vadd.xlane.f32.xlu0 %v987_v21  ;;  %v1217_v21 = vunpack.c.l.b16 %v603_v0 }
 0x256   :  { %v9174_v41 = vpack.c.b16 %v1217_v21, %v1216_v37 }
 0x25a   :  { %7053 = vmatmul.msk.bf16.gmra.mxu1 %vm239_vm0, %v8363_v49  ;;  %v8365_v49 = vld [vmem:[%s11792_s0 + $0x38] sm:$0xff]  ;;  %s6868_s0 = sshll.u32 %s11798_s6, 4  ;;  %s6869_s0 = int_to_ptr.hbm [resolvable:$true] %s6868_s0 }
 0x263   :  { %991 = vadd.xlane.f32.xlu1 %v990_v56 }
 0x268   :  { %1468 = vrot.lane.b32.xlu0 %v8860_v47, %s8395_s7 }
 0x26a   :  { %7054 = vmatmul.msk.bf16.gmra.mxu1 %vm239_vm0, %v8364_v59 }
 0x26b   :  { %v974_v29 = vpop.xlane.xlu1 %973 }
 0x271   :  { %v962_v1 = vpop.xlane.xlu0 %961 }
 0x272   :  { %7891 = vrcp.f32 %v962_v1 }
 0x278   :  { %v7892_v12 = vpop.eup %7891 }
 0x279   :  { %v1014_v43 = vmul.f32 %v7892_v12, %v9024_v2  ;;  %v971_v50 = vpop.xlane.xlu0 %970  ;;  %v409_v12 = vadd.f32 %v8873_v5, %v8780_v22 }
 0x27a   :  { %7893 = vrcp.f32 %v971_v50  ;;  %7055 = vmatmul.msk.bf16.gmra.mxu1 %vm239_vm0, %v8365_v49 }
 0x27b   :  { %v1030_v53 = vpack.c.bf16 %v1014_v43, %v1014_v43  ;;  %7895 = vrcp.f32 %v974_v29 }
 0x27c   :  { %1420 = vrot.lane.b32.xlu1 %v8797_v48, %s8395_s7  ;;  %7897 = vrcp.f32 %v965_v24  ;;  %v407_v24 = vadd.f32 %v8864_v10, %v8780_v22  ;;  %s8403_s7 = smov 128  }
 0x27d   :  { %v1100_v3 = vunpack.c.l.b16 %v1030_v53 }
 0x27e   :  { %v604_v43 = vpack.c.bf16 %v407_v24, %v407_v24 }
 0x27f   :  { %v1101_v2 = vpack.c.b16 %v1100_v3, %v1099_v17 }
 0x280   :  { %v7894_v56 = vpop.eup %7893  ;;  %v1244_v5 = vunpack.c.l.b16 %v604_v43 }
 0x281   :  { %7066 = vmatmul.msk.bf16.vlgmr.msra.gmra.mxu2 %vm618_vm1, %v1101_v2  ;;  %v7896_v59 = vpop.eup %7895  ;;  %v1017_v1 = vmul.f32 %v7894_v56, %v9042_v35  ;;  %v605_v35 = vpack.c.bf16 %v409_v12, %v409_v12  ;;  %v980_v53 = vpop.xlane.xlu0 %979 }
 0x282   :  { %1230 = vmatpush.bf16.msra.mxu2 %v9174_v41  ;;  %v7898_v58 = vpop.eup %7897  ;;  %v1018_v25 = vmul.f32 %v7896_v59, %v9020_v51  ;;  %v9190_v59 = vpop.f32.mrf.mxu0 }
 0x283   :  { %v1033_v4 = vpack.c.bf16 %v1017_v1, %v1017_v1  ;;  %v1015_v0 = vmul.f32 %v7898_v58, %v9011_v15  ;;  %v983_v21 = vpop.xlane.xlu1 %982  ;;  %v1245_v49 = vunpack.c.l.b16 %v605_v35  ;;  %11819 = vst [vmem:[#allocation24_spill] sm:$0xff] %v9190_v59  ;;  %v1356_v1 = vsel %vm618_vm1, %v8992_v33, 0 }
 0x284   :  { %v968_v38 = vpop.xlane.xlu2 %967  ;;  %v1034_v60 = vpack.c.bf16 %v1018_v25, %v1018_v25 }
 0x285   :  { %7899 = vrcp.f32 %v968_v38  ;;  %v1155_v50 = vunpack.c.l.b16 %v1033_v4  ;;  %v1031_v51 = vpack.c.bf16 %v1015_v0, %v1015_v0  ;;  %v9195_v58 = vpack.c.b16 %v1245_v49, %v1244_v5 }
 0x286   :  { %v1156_v10 = vunpack.c.l.b16 %v1034_v60 }
 0x287   :  { %v9187_v37 = vpop.f32.mrf.mxu1  ;;  %v1127_v2 = vunpack.c.l.b16 %v1031_v51 }
 0x288   :  { %11818 = vst [vmem:[#allocation23_spill] sm:$0xff] %v9187_v37  ;;  %v1157_v15 = vpack.c.b16 %v1156_v10, %v1155_v50 }
 0x28a   :  { %v9204_v43 = vpop.f32.mrf.mxu0 }
 0x28b   :  { %v7900_v29 = vpop.eup %7899  ;;  %11821 = vst [vmem:[#allocation26_spill] sm:$0xff] %v9204_v43 }
 0x28c   :  { %v1016_v17 = vmul.f32 %v7900_v29, %v9062_v27  ;;  %v977_v3 = vpop.xlane.xlu2 %976 }
 0x28d   :  { %7901 = vrcp.f32 %v977_v3 }
 0x28e   :  { %7903 = vrcp.f32 %v980_v53  ;;  %v1032_v22 = vpack.c.bf16 %v1016_v17, %v1016_v17 }
 0x28f   :  { %7905 = vrcp.f32 %v983_v21  ;;  %v9198_v12 = vpop.f32.mrf.mxu1 }
 0x290   :  { %v1128_v56 = vunpack.c.l.b16 %v1032_v22  ;;  %11820 = vst [vmem:[#allocation25_spill] sm:$0xff] %v9198_v12 }
 0x291   :  { %7068 = vmatmul.msk.bf16.vlgmr.msrb.gmra.mxu2 %vm618_vm1, %v1157_v15 }
 0x292   :  { %v1129_v38 = vpack.c.b16 %v1128_v56, %v1127_v2  ;;  %1365 = vmatpush.bf16.xpose.msrb.mxu2 %v1356_v1  ;;  %v1452_v2 = vsel %vm618_vm1, %v9152_v57, 0  ;;  %v1380_v56 = vsel %vm618_vm1, %v9164_v8, 0 }
 0x293   :  { %v7902_v27 = vpop.eup %7901 }
 0x294   :  { %v7904_v25 = vpop.eup %7903  ;;  %v986_v24 = vpop.xlane.xlu2 %985  ;;  %7067 = vmatmul.msk.bf16.vlgmr.msra.gmra.mxu3 %vm618_vm1, %v1129_v38  ;;  %v1019_v0 = vmul.f32 %v7902_v27, %v9075_v45 }
 0x295   :  { %v7906_v4 = vpop.eup %7905  ;;  %7907 = vrcp.f32 %v986_v24  ;;  %1258 = vmatpush.bf16.msra.mxu3 %v9195_v58  ;;  %v1020_v33 = vmul.f32 %v7904_v25, %v9060_v20  ;;  %v9219_v38 = vpop.f32.mrf.mxu0 }
 0x296   :  { %v1021_v60 = vmul.f32 %v7906_v4, %v9066_v31  ;;  %v1035_v29 = vpack.c.bf16 %v1019_v0, %v1019_v0  ;;  %11823 = vst [vmem:[#allocation28_spill] sm:$0xff] %v9219_v38 }
 0x297   :  { %v1036_v53 = vpack.c.bf16 %v1020_v33, %v1020_v33  ;;  %v9210_v45 = vpop.f32.mrf.mxu1 }
 0x298   :  { %v1037_v51 = vpack.c.bf16 %v1021_v60, %v1021_v60  ;;  %v1183_v3 = vunpack.c.l.b16 %v1035_v29  ;;  %11822 = vst [vmem:[#allocation27_spill] sm:$0xff] %v9210_v45  ;;  %v1445_v29 = vpop.permute.xlu0 %1444 }
 0x299   :  { %v1184_v20 = vunpack.c.l.b16 %v1036_v53 }
 0x29a   :  { %v1211_v22 = vunpack.c.l.b16 %v1037_v51 }
 0x29b   :  { %v7908_v35 = vpop.eup %7907  ;;  %v9206_v50 = vpop.permute.xlu1 %1372  ;;  %v1185_v5 = vpack.c.b16 %v1184_v20, %v1183_v3 }
 0x29c   :  { %v1022_v21 = vmul.f32 %v7908_v35, %v9081_v52  ;;  %v1301_v17 = vpop.permute.xlu2 %1300 }
 0x29d   :  { %7090 = vmatmul.msk.bf16.vlgmr.msra.gmra.mxu0 %vm618_vm1, %v1301_v17  ;;  %v9226_v8 = vpop.f32.mrf.mxu0 }
 0x29e   :  { %v1038_v10 = vpack.c.bf16 %v1022_v21, %v1022_v21  ;;  %11825 = vst [vmem:[#allocation30_spill] sm:$0xff] %v9226_v8 }
 0x29f   :  { %v9222_v25 = vpop.f32.mrf.mxu1 }
 0x2a0   :  { %v1212_v31 = vunpack.c.l.b16 %v1038_v10  ;;  %11824 = vst [vmem:[#allocation29_spill] sm:$0xff] %v9222_v25  ;;  %v1471_v51 = vpop.permute.xlu0 %1470 }
 0x2a2   :  { %v1213_v49 = vpack.c.b16 %v1212_v31, %v1211_v22 }
 0x2a3   :  { %v1399_v15 = vpop.permute.xlu1 %1398 }
 0x2a4   :  { %v1404_v52 = vsel %vm618_vm1, %v1399_v15, 0  ;;  %v1327_v1 = vpop.permute.xlu2 %1326  ;;  %7069 = vmatmul.msk.bf16.vlgmr.msrb.gmra.mxu3 %vm618_vm1, %v1185_v5  ;;  %7070 = vmatmul.msk.bf16.vlgmr.msra.gmra.mxu2 %vm618_vm1, %v1213_v49 }
 0x2a5   :  { %v1332_v27 = vsel %vm618_vm1, %v1327_v1, 0  ;;  %1389 = vmatpush.bf16.xpose.msrb.mxu3 %v1380_v56  ;;  %1461 = vmatpush.bf16.xpose.msra.mxu2 %v1452_v2  ;;  %v9233_v60 = vpop.f32.mrf.mxu0 }
 0x2a6   :  { %1413 = vmatpush.bf16.xpose.msrb.mxu0 %v1404_v52  ;;  %1341 = vmatpush.bf16.xpose.msra.mxu1 %v1332_v27  ;;  %11827 = vst [vmem:[#allocation32_spill] sm:$0xff] %v9233_v60 }
 0x2a7   :  { %v9228_v4 = vpop.f32.mrf.mxu1 }
 0x2a8   :  { %11826 = vst [vmem:[#allocation31_spill] sm:$0xff] %v9228_v4 }
 0x2ab   :  { %v1397_v57 = vpop.permute.xlu1 %1396 }
 0x2ac   :  { %v1325_v24 = vpop.permute.xlu2 %1324 }
 0x2ad   :  { %7091 = vmatmul.msk.bf16.vlgmr.msra.gmra.mxu1 %vm618_vm1, %v1325_v24  ;;  %7094 = vmatmul.msk.bf16.vlgmr.msrb.gmra.mxu0 %vm618_vm1, %v1397_v57  ;;  %v9237_v53 = vpop.f32.mrf.mxu0 }
 0x2ae   :  { %11829 = vst [vmem:[#allocation34_spill] sm:$0xff] %v9237_v53 }
 0x2af   :  { %v9235_v35 = vpop.f32.mrf.mxu1 }
 0x2b0   :  { %11828 = vst [vmem:[#allocation33_spill] sm:$0xff] %v9235_v35 }
 0x2b4   :  { %v1423_v0 = vpop.permute.xlu2 %1422  ;;  %7092 = vmatmul.msk.bf16.vlgmr.msrb.gmra.mxu2 %vm618_vm1, %v8969_v54 }
 0x2b5   :  { %v1428_v33 = vsel %vm618_vm1, %v1423_v0, 0  ;;  %v9242_v17 = vpop.f32.mrf.mxu0  ;;  %v1476_v0 = vsel %vm618_vm1, %v1471_v51, 0 }
 0x2b6   :  { %1437 = vmatpush.bf16.xpose.msrb.mxu1 %v1428_v33  ;;  %11831 = vst [vmem:[#allocation36_spill] sm:$0xff] %v9242_v17 }
 0x2b7   :  { %v9240_v21 = vpop.f32.mrf.mxu1 }
 0x2b8   :  { %11830 = vst [vmem:[#allocation35_spill] sm:$0xff] %v9240_v21 }
 0x2bd   :  { %v9246_v20 = vpop.f32.mrf.mxu0 }
 0x2be   :  { %11833 = vst [vmem:[#allocation38_spill] sm:$0xff] %v9246_v20 }
 0x2bf   :  { %v9244_v10 = vpop.f32.mrf.mxu1 }
 0x2c0   :  { %11832 = vst [vmem:[#allocation37_spill] sm:$0xff] %v9244_v10 }
 0x2c4   :  { %7096 = vmatmul.msk.bf16.vlgmr.msra.gmra.mxu2 %vm618_vm1, %v1445_v29 }
 0x2c5   :  { %v9252_v52 = vpop.f32.mrf.mxu0 }
 0x2c6   :  { %11835 = vst [vmem:[#allocation40_spill] sm:$0xff] %v9252_v52 }
 0x2c7   :  { %v989_v3 = vpop.xlane.xlu0 %988  ;;  %v9249_v5 = vpop.f32.mrf.mxu1 }
 0x2c8   :  { %7909 = vrcp.f32 %v989_v3  ;;  %11834 = vst [vmem:[#allocation39_spill] sm:$0xff] %v9249_v5 }
 0x2ce   :  { %v7910_v22 = vpop.eup %7909 }
 0x2cf   :  { %v1023_v31 = vmul.f32 %v7910_v22, %v9134_v42  ;;  %v9254_v24 = vpop.f32.mrf.mxu1  ;;  %v9258_v42 = vpop.f32.mrf.mxu0 }
 0x2d0   :  { %11836 = vst [vmem:[#allocation41_spill] sm:$0xff] %v9254_v24 }
 0x2d1   :  { %v1039_v15 = vpack.c.bf16 %v1023_v31, %v1023_v31  ;;  %11837 = vst [vmem:[#allocation42_spill] sm:$0xff] %v9258_v42 }
 0x2d3   :  { %v1239_v1 = vunpack.c.l.b16 %v1039_v15 }
 0x2d6   :  { %v992_v54 = vpop.xlane.xlu1 %991 }
 0x2d7   :  { %7911 = vrcp.f32 %v992_v54  ;;  %v9260_v29 = vpop.f32.mrf.mxu1 }
 0x2d8   :  { %11838 = vst [vmem:[#allocation43_spill] sm:$0xff] %v9260_v29  ;;  %v9332_v29 = vpop.f32.mrf.mxu3 }
 0x2d9   :  { %11848 = vst [vmem:[#allocation53_spill] sm:$0xff] %v9332_v29 }
 0x2da   :  { %v1469_v22 = vpop.permute.xlu0 %1468 }
 0x2dd   :  { %v7912_v49 = vpop.eup %7911 }
 0x2de   :  { %v1024_v2 = vmul.f32 %v7912_v49, %v9146_v30  ;;  %v9263_v30 = vpop.f32.mrf.mxu0 }
 0x2df   :  { %11839 = vst [vmem:[#allocation44_spill] sm:$0xff] %v9263_v30  ;;  %v9267_v3 = vpop.f32.mrf.mxu1 }
 0x2e0   :  { %v1040_v56 = vpack.c.bf16 %v1024_v2, %v1024_v2  ;;  %11840 = vst [vmem:[#allocation45_spill] sm:$0xff] %v9267_v3 }
 0x2e2   :  { %v1240_v27 = vunpack.c.l.b16 %v1040_v56 }
 0x2e4   :  { %v1241_v57 = vpack.c.b16 %v1240_v27, %v1239_v1 }
 0x2e6   :  { %7071 = vmatmul.msk.bf16.vlgmr.msra.gmra.mxu3 %vm618_vm1, %v1241_v57  ;;  %v9269_v54 = vpop.f32.mrf.mxu0 }
 0x2e7   :  { %1485 = vmatpush.bf16.xpose.msra.mxu3 %v1476_v0  ;;  %11841 = vst [vmem:[#allocation46_spill] sm:$0xff] %v9269_v54  ;;  %v9271_v51 = vpop.f32.mrf.mxu1  ;;  %v9294_v0 = vld [vmem:[%s11795_s3 + $0x18] sm:$0xff] }
 0x2e8   :  { %11842 = vst [vmem:[#allocation47_spill] sm:$0xff] %v9271_v51 }
 0x2ee   :  { %v1421_v33 = vpop.permute.xlu1 %1420  ;;  %v9274_v31 = vpop.f32.mrf.mxu0 }
 0x2ef   :  { %7095 = vmatmul.msk.bf16.vlgmr.msrb.gmra.mxu1 %vm618_vm1, %v1421_v33  ;;  %11843 = vst [vmem:[#allocation48_spill] sm:$0xff] %v9274_v31  ;;  %v9276_v49 = vpop.f32.mrf.mxu1 }
 0x2f0   :  { %11844 = vst [vmem:[#allocation49_spill] sm:$0xff] %v9276_v49 }
 0x2f6   :  { %7093 = vmatmul.msk.bf16.vlgmr.msrb.gmra.mxu3 %vm618_vm1, %v9206_v50  ;;  %v9278_v15 = vpop.f32.mrf.mxu0  ;;  %v9285_v50 = vld [vmem:[%s11795_s3 + $0x10] sm:$0xff] }
 0x2f7   :  { %11845 = vst [vmem:[#allocation50_spill] sm:$0xff] %v9278_v15  ;;  %v9280_v2 = vpop.f32.mrf.mxu1 }
 0x2f8   :  { %11846 = vst [vmem:[#allocation51_spill] sm:$0xff] %v9280_v2 }
 0x2ff   :  { %v9289_v57 = vpop.f32.mrf.mxu1 }
 0x300   :  { %11847 = vst [vmem:[#allocation52_spill] sm:$0xff] %v9289_v57 }
 0x306   :  { %7097 = vmatmul.msk.bf16.vlgmr.msra.gmra.mxu3 %vm618_vm1, %v1469_v22 }
 0x31a   :  { %v1319_v56 = vpop.f32.mrf.mxu0 }
 0x31b   :  { %v1320_v1 = vadd.f32 %v9285_v50, %v1319_v56 }
 0x31d   :  { %v1492_v27 = vsel %vm618_vm1, %v1320_v1, -inf }
 0x31e   :  { %1493 = vmax.xlane.f32.xlu1 %v1492_v27 }
 0x322   :  { %v1321_v33 = vpop.f32.mrf.mxu0 }
 0x323   :  { %v1322_v22 = vadd.f32 %v9294_v0, %v1321_v33 }
 0x325   :  { %v1495_v2 = vsel %vm618_vm1, %v1322_v22, -inf }
 0x326   :  { %1496 = vmax.xlane.f32.xlu0 %v1495_v2 }
 0x32a   :  { %v1343_v10 = vpop.f32.mrf.mxu1  ;;  %v1415_v21 = vpop.f32.mrf.mxu0 }
 0x32b   :  { %v9299_v56 = vadd.f32 %v9285_v50, %v1343_v10  ;;  %v9302_v27 = vadd.f32 %v9285_v50, %v1415_v21 }
 0x32d   :  { %v1498_v57 = vsel %vm618_vm1, %v9299_v56, -inf  ;;  %v1516_v49 = vsel %vm618_vm1, %v9302_v27, -inf }
 0x32e   :  { %1499 = vmax.xlane.f32.xlu1 %v1498_v57  ;;  %1517 = vmax.xlane.f32.xlu2 %v1516_v49 }
 0x332   :  { %v1345_v33 = vpop.f32.mrf.mxu1  ;;  %v1417_v51 = vpop.f32.mrf.mxu0 }
 0x333   :  { %v9309_v2 = vadd.f32 %v9294_v0, %v1345_v33  ;;  %v9312_v35 = vadd.f32 %v9294_v0, %v1417_v51 }
 0x335   :  { %v1501_v21 = vsel %vm618_vm1, %v9309_v2, -inf  ;;  %v1519_v10 = vsel %vm618_vm1, %v9312_v35, -inf }
 0x336   :  { %1502 = vmax.xlane.f32.xlu0 %v1501_v21  ;;  %1520 = vmax.xlane.f32.xlu1 %v1519_v10 }
 0x36c   :  { %v1439_v4 = vpop.f32.mrf.mxu1 }
 0x36d   :  { %v9319_v57 = vadd.f32 %v9285_v50, %v1439_v4 }
 0x36f   :  { %v1522_v49 = vsel %vm618_vm1, %v9319_v57, -inf }
 0x370   :  { %1523 = vmax.xlane.f32.xlu1 %v1522_v49 }
 0x374   :  { %v1441_v33 = vpop.f32.mrf.mxu1 }
 0x375   :  { %v9324_v51 = vadd.f32 %v9294_v0, %v1441_v33 }
 0x377   :  { %v1525_v3 = vsel %vm618_vm1, %v9324_v51, -inf }
 0x378   :  { %1526 = vmax.xlane.f32.xlu0 %v1525_v3 }
 0x389   :  { %1739 = vrot.lane.b32.xlu1 %v8832_v36, %s8396_s9 }
 0x391   :  { %1789 = vrot.lane.b32.xlu1 %v9107_v14, %s8396_s9  ;;  %v1494_v4 = vpop.xlane.xlu1 %1493  ;;  %v9340_v14 = vpop.f32.mrf.mxu3 }
 0x392   :  { %v1540_v21 = vsub.f32 %v1320_v1, %v1494_v4  ;;  %11849 = vst [vmem:[#allocation54_spill] sm:$0xff] %v9340_v14 }
 0x394   :  { %v1556_v10 = vmul.f32 1.442695, %v1540_v21 }
 0x396   :  { %7913 = vpow2.f32 %v1556_v10 }
 0x399   :  { %2095 = vrot.lane.b32.xlu1 %v8701_v7, %s8397_s10  ;;  %v1497_v49 = vpop.xlane.xlu0 %1496 }
 0x39a   :  { %v1541_v33 = vsub.f32 %v1322_v22, %v1497_v49  ;;  %v9348_v22 = vpop.f32.mrf.mxu3 }
 0x39b   :  { %11850 = vst [vmem:[#allocation55_spill] sm:$0xff] %v9348_v22 }
 0x39c   :  { %v9336_v3 = vpop.eup %7913  ;;  %v1558_v25 = vmul.f32 1.442695, %v1541_v33 }
 0x39d   :  { %v1588_v36 = vsel %vm618_vm1, %v9336_v3, 0.0 }
 0x39e   :  { %7915 = vpow2.f32 %v1558_v25  ;;  %1589 = vadd.xlane.f32.xlu0 %v1588_v36  ;;  %v9358_v25 = vpop.f32.mrf.mxu2 }
 0x39f   :  { %11852 = vst [vmem:[#allocation57_spill] sm:$0xff] %v9358_v25 }
 0x3a1   :  { %2049 = vrot.lane.b32.xlu1 %v8657_v9, %s8397_s10 }
 0x3a2   :  { %v9352_v21 = vpop.f32.mrf.mxu3 }
 0x3a3   :  { %11851 = vst [vmem:[#allocation56_spill] sm:$0xff] %v9352_v21 }
 0x3a4   :  { %v9344_v1 = vpop.eup %7915 }
 0x3a5   :  { %v1591_v4 = vsel %vm618_vm1, %v9344_v1, 0.0 }
 0x3a6   :  { %1592 = vadd.xlane.f32.xlu2 %v1591_v4  ;;  %v9366_v49 = vpop.f32.mrf.mxu2 }
 0x3a7   :  { %11854 = vst [vmem:[#allocation59_spill] sm:$0xff] %v9366_v49 }
 0x3a9   :  { %1814 = vrot.lane.b32.xlu1 %v9126_v55, %s8396_s9 }
 0x3aa   :  { %v9364_v10 = vpop.f32.mrf.mxu3 }
 0x3ab   :  { %11853 = vst [vmem:[#allocation58_spill] sm:$0xff] %v9364_v10 }
 0x3ae   :  { %v9376_v55 = vpop.f32.mrf.mxu2 }
 0x3af   :  { %11856 = vst [vmem:[#allocation61_spill] sm:$0xff] %v9376_v55 }
 0x3b1   :  { %2193 = vrot.lane.b32.xlu1 %v8814_v39, %s8397_s10 }
 0x3b2   :  { %1689 = vrot.lane.b32.xlu0 %v8818_v62, %s8396_s9  ;;  %v9374_v62 = vpop.f32.mrf.mxu3 }
 0x3b3   :  { %11855 = vst [vmem:[#allocation60_spill] sm:$0xff] %v9374_v62  ;;  %v1500_v62 = vpop.xlane.xlu1 %1499 }
 0x3b9   :  { %2191 = vrot.lane.b32.xlu1 %v8830_v23, %s8397_s10 }
 0x3ba   :  { %1764 = vrot.lane.b32.xlu0 %v8862_v63, %s8396_s9  ;;  %v9382_v63 = vpop.f32.mrf.mxu3 }
 0x3bb   :  { %11857 = vst [vmem:[#allocation62_spill] sm:$0xff] %v9382_v63 }
 0x3be   :  { %1839 = vrot.lane.b32.xlu2 %v9174_v41, %s8396_s9  ;;  %v9386_v41 = vpop.f32.mrf.mxu2 }
 0x3bf   :  { %11858 = vst [vmem:[#allocation63_spill] sm:$0xff] %v9386_v41  ;;  %v1518_v41 = vpop.xlane.xlu2 %1517 }
 0x3c0   :  { %v1548_v14 = vsub.f32 %v9302_v27, %v1518_v41 }
 0x3c1   :  { %2145 = vrot.lane.b32.xlu1 %v8741_v13, %s8397_s10 }
 0x3c2   :  { %1864 = vrot.lane.b32.xlu0 %v9195_v58, %s8396_s9  ;;  %v1503_v58 = vpop.xlane.xlu0 %1502  ;;  %v9392_v33 = vpop.f32.mrf.mxu3  ;;  %v1572_v49 = vmul.f32 1.442695, %v1548_v14 }
 0x3c3   :  { %11859 = vst [vmem:[#allocation64_spill] sm:$0xff] %v9392_v33  ;;  %v1521_v33 = vpop.xlane.xlu1 %1520 }
 0x3c6   :  { %1714 = vrot.lane.b32.xlu2 %v8852_v40, %s8396_s9  ;;  %v1543_v40 = vsub.f32 %v9309_v2, %v1503_v58  ;;  %v9395_v36 = vpop.f32.mrf.mxu2 }
 0x3c7   :  { %11860 = vst [vmem:[#allocation65_spill] sm:$0xff] %v9395_v36 }
 0x3c8   :  { %v1562_v4 = vmul.f32 1.442695, %v1543_v40  ;;  %v1542_v40 = vsub.f32 %v9299_v56, %v1500_v62 }
 0x3ca   :  { %2121 = vrot.lane.b32.xlu0 %v8723_v34, %s8397_s10  ;;  %v9399_v63 = vpop.f32.mrf.mxu3  ;;  %7917 = vpow2.f32 %v1562_v4  ;;  %v1560_v4 = vmul.f32 1.442695, %v1542_v40 }
 0x3cc   :  { %7919 = vpow2.f32 %v1560_v4 }
 0x3cd   :  { %7921 = vpow2.f32 %v1572_v49 }
 0x3ce   :  { %2097 = vrot.lane.b32.xlu2 %v8699_v6, %s8397_s10  ;;  %v9403_v10 = vpop.f32.mrf.mxu2 }
 0x3cf   :  { %11861 = vst [vmem:[#allocation66_spill] sm:$0xff] %v9403_v10 }
 0x3d0   :  { %v9405_v21 = vpop.eup %7917 }
 0x3d1   :  { %v1597_v2 = vsel %vm618_vm1, %v9405_v21, 0.0 }
 0x3d2   :  { %2047 = vrot.lane.b32.xlu0 %v8668_v19, %s8397_s10  ;;  %v1393_v58 = vpop.f32.mrf.mxu3  ;;  %v9421_v56 = vpop.eup %7919 }
 0x3d3   :  { %v9413_v36 = vadd.f32 %v9294_v0, %v1393_v58  ;;  %v1549_v58 = vsub.f32 %v9312_v35, %v1521_v33  ;;  %v9426_v4 = vpop.eup %7921 }
 0x3d4   :  { %v1612_v14 = vsel %vm618_vm1, %v9426_v4, 0.0 }
 0x3d5   :  { %v1513_v10 = vsel %vm618_vm1, %v9413_v36, -inf  ;;  %v1574_v41 = vmul.f32 1.442695, %v1549_v58 }
 0x3d6   :  { %2119 = vrot.lane.b32.xlu2 %v8730_v46, %s8397_s10  ;;  %v9409_v22 = vpop.f32.mrf.mxu2 }
 0x3d7   :  { %11862 = vst [vmem:[#allocation67_spill] sm:$0xff] %v9409_v22 }
 0x3da   :  { %2073 = vrot.lane.b32.xlu0 %v8679_v32, %s8397_s10 }
 0x3de   :  { %v9418_v29 = vpop.f32.mrf.mxu2 }
 0x3df   :  { %11863 = vst [vmem:[#allocation68_spill] sm:$0xff] %v9418_v29 }
 0x3e2   :  { %2217 = vrot.lane.b32.xlu0 %v8850_v61, %s8397_s10 }
 0x3e3   :  { %v1524_v55 = vpop.xlane.xlu1 %1523 }
 0x3e6   :  { %v1367_v27 = vpop.f32.mrf.mxu2 }
 0x3eb   :  { %1598 = vadd.xlane.f32.xlu1 %v1597_v2  ;;  %v1527_v2 = vpop.xlane.xlu0 %1526 }
 0x3ec   :  { %v1551_v22 = vsub.f32 %v9324_v51, %v1527_v2  ;;  %v1550_v51 = vsub.f32 %v9319_v57, %v1524_v55  ;;  %v9442_v55 = vadd.f32 %v9285_v50, %v1367_v27 }
 0x3ee   :  { %v1578_v40 = vmul.f32 1.442695, %v1551_v22  ;;  %v1576_v35 = vmul.f32 1.442695, %v1550_v51  ;;  %v1369_v22 = vpop.f32.mrf.mxu2 }
 0x3f0   :  { %7923 = vpow2.f32 %v1578_v40 }
 0x3f1   :  { %7925 = vpow2.f32 %v1574_v41 }
 0x3f2   :  { %7927 = vpow2.f32 %v1576_v35 }
 0x3f3   :  { %1514 = vmax.xlane.f32.xlu1 %v1513_v10  ;;  %v1594_v10 = vsel %vm618_vm1, %v9421_v56, 0.0 }
 0x3f6   :  { %v9431_v49 = vpop.eup %7923  ;;  %v1463_v41 = vpop.f32.mrf.mxu2 }
 0x3f7   :  { %v9433_v33 = vpop.eup %7925  ;;  %v1621_v2 = vsel %vm618_vm1, %v9431_v49, 0.0  ;;  %v9453_v35 = vadd.f32 %v9285_v50, %v1463_v41 }
 0x3f8   :  { %v1615_v57 = vsel %vm618_vm1, %v9433_v33, 0.0  ;;  %v9444_v40 = vpop.eup %7927 }
 0x3f9   :  { %v1528_v29 = vsel %vm618_vm1, %v9453_v35, -inf }
 0x3fb   :  { %v1740_v62 = vpop.permute.xlu1 %1739 }
 0x3fc   :  { %1752 = vmatpush.bf16.msrb.mxu2 %v1740_v62 }
 0x3ff   :  { %1595 = vadd.xlane.f32.xlu2 %v1594_v10  ;;  %v1504_v10 = vsel %vm618_vm1, %v9442_v55, -inf }
 0x403   :  { %v1790_v62 = vpop.permute.xlu1 %1789 }
 0x407   :  { %1613 = vadd.xlane.f32.xlu2 %v1612_v14  ;;  %v1618_v14 = vsel %vm618_vm1, %v9444_v40, 0.0 }
 0x40b   :  { %v9448_v51 = vpop.permute.xlu1 %2095 }
 0x40c   :  { %2071 = vrot.lane.b32.xlu1 %v8689_v44, %s8397_s10  ;;  %1622 = vadd.xlane.f32.xlu0 %v1621_v2 }
 0x40f   :  { %1616 = vadd.xlane.f32.xlu2 %v1615_v57  ;;  %v9456_v57 = vadd.f32 %v9294_v0, %v1369_v22  ;;  %v9466_v22 = vadd.f32 %v9285_v50, %v9399_v63 }
 0x411   :  { %v1590_v58 = vpop.xlane.xlu0 %1589 }
 0x412   :  { %7929 = vrcp.f32 %v1590_v58 }
 0x413   :  { %v2050_v41 = vpop.permute.xlu1 %2049 }
 0x414   :  { %1505 = vmax.xlane.f32.xlu0 %v1504_v10  ;;  %v1507_v10 = vsel %vm618_vm1, %v9456_v57, -inf }
 0x417   :  { %1619 = vadd.xlane.f32.xlu2 %v1618_v14 }
 0x418   :  { %v7930_v2 = vpop.eup %7929 }
 0x419   :  { %v1593_v27 = vpop.xlane.xlu2 %1592  ;;  %v1652_v58 = vmul.f32 %v7930_v2, %v9336_v3  ;;  %v1510_v2 = vsel %vm618_vm1, %v9466_v22, -inf }
 0x41a   :  { %7931 = vrcp.f32 %v1593_v27 }
 0x41b   :  { %v1668_v45 = vpack.c.bf16 %v1652_v58, %v1652_v58  ;;  %v1815_v63 = vpop.permute.xlu1 %1814 }
 0x41c   :  { %1529 = vmax.xlane.f32.xlu0 %v1528_v29  ;;  %v1487_v29 = vpop.f32.mrf.mxu3 }
 0x41d   :  { %v1686_v12 = vunpack.c.l.b16 %v1668_v45 }
 0x41f   :  { %1508 = vmax.xlane.f32.xlu2 %v1507_v10  ;;  %v1465_v10 = vpop.f32.mrf.mxu2 }
 0x420   :  { %v7932_v25 = vpop.eup %7931 }
 0x421   :  { %v1653_v14 = vmul.f32 %v7932_v25, %v9344_v1  ;;  %v1840_v24 = vpop.permute.xlu2 %1839  ;;  %v2055_v1 = vsel %vm618_vm1, %v2050_v41, 0 }
 0x422   :  { %1852 = vmatpush.bf16.msra.mxu2 %v1840_v24  ;;  %v9473_v24 = vadd.f32 %v9294_v0, %v1465_v10 }
 0x423   :  { %v1669_v27 = vpack.c.bf16 %v1653_v14, %v1653_v14 }
 0x424   :  { %v1690_v5 = vpop.permute.xlu0 %1689 }
 0x425   :  { %v1687_v3 = vunpack.c.l.b16 %v1669_v27  ;;  %1702 = vmatpush.bf16.msra.mxu0 %v1690_v5  ;;  %v1531_v5 = vsel %vm618_vm1, %v9473_v24, -inf  ;;  %v9484_v27 = vpop.permute.xlu1 %2193 }
 0x427   :  { %v1688_v58 = vpack.c.b16 %v1687_v3, %v1686_v12  ;;  %1511 = vmax.xlane.f32.xlu2 %v1510_v2  ;;  %v9487_v3 = vadd.f32 %v9285_v50, %v1487_v29 }
 0x429   :  { %1802 = vmatpush.bf16.msrb.mxu0 %v1790_v62  ;;  %v1715_v25 = vpop.permute.xlu2 %1714  ;;  %v1489_v62 = vpop.f32.mrf.mxu3 }
 0x42a   :  { %7098 = vmatmul.msk.bf16.vlgmr.msra.gmra.mxu0 %vm618_vm1, %v1688_v58  ;;  %1727 = vmatpush.bf16.msra.mxu1 %v1715_v25  ;;  %v9480_v12 = vadd.f32 %v9294_v0, %v1489_v62  ;;  %v1534_v58 = vsel %vm618_vm1, %v9487_v3, -inf }
 0x42c   :  { %v1765_v45 = vpop.permute.xlu0 %1764  ;;  %v1537_v14 = vsel %vm618_vm1, %v9480_v12, -inf }
 0x42d   :  { %2064 = vmatpush.bf16.xpose.msra.mxu0 %v2055_v1  ;;  %1777 = vmatpush.bf16.msrb.mxu3 %v1765_v45  ;;  %v9489_v2 = vpop.permute.xlu1 %2191 }
 0x42e   :  { %1827 = vmatpush.bf16.msrb.mxu1 %v1815_v63 }
 0x42f   :  { %1532 = vmax.xlane.f32.xlu2 %v1531_v5 }
 0x430   :  { %2143 = vrot.lane.b32.xlu0 %v8748_v26, %s8397_s10 }
 0x431   :  { %v9495_v0 = vpop.permute.xlu2 %2097 }
 0x434   :  { %v1865_v41 = vpop.permute.xlu0 %1864 }
 0x435   :  { %1877 = vmatpush.bf16.msra.mxu3 %v1865_v41  ;;  %v2146_v1 = vpop.permute.xlu1 %2145 }
 0x437   :  { %1538 = vmax.xlane.f32.xlu2 %v1537_v14 }
 0x439   :  { %v9499_v63 = vpop.permute.xlu2 %2119 }
 0x43c   :  { %v9491_v10 = vpop.permute.xlu0 %2121 }
 0x444   :  { %v9497_v25 = vpop.permute.xlu0 %2047 }
 0x44c   :  { %v2074_v5 = vpop.permute.xlu0 %2073 }
 0x454   :  { %v9502_v41 = vpop.permute.xlu0 %2217 }
 0x45a   :  { %1535 = vmax.xlane.f32.xlu0 %v1534_v58 }
 0x45e   :  { %v1599_v45 = vpop.xlane.xlu1 %1598 }
 0x45f   :  { %7933 = vrcp.f32 %v1599_v45  ;;  %v2079_v45 = vsel %vm618_vm1, %v2074_v5, 0 }
 0x465   :  { %v7934_v29 = vpop.eup %7933 }
 0x466   :  { %v1655_v62 = vmul.f32 %v7934_v29, %v9405_v21  ;;  %v1515_v29 = vpop.xlane.xlu1 %1514 }
 0x468   :  { %v1671_v37 = vpack.c.bf16 %v1655_v62, %v1655_v62 }
 0x46a   :  { %v1712_v53 = vunpack.c.l.b16 %v1671_v37  ;;  %v1547_v37 = vsub.f32 %v9413_v36, %v1515_v29  ;;  %v8366_v36 = vld [vmem:[%s11794_s2] sm:$0x3f] }
 0x472   :  { %v1596_v50 = vpop.xlane.xlu2 %1595 }
 0x473   :  { %7935 = vrcp.f32 %v1596_v50 }
 0x479   :  { %v7936_v14 = vpop.eup %7935 }
 0x47a   :  { %v1654_v58 = vmul.f32 %v7936_v14, %v9421_v56  ;;  %v1614_v15 = vpop.xlane.xlu2 %1613 }
 0x47b   :  { %7937 = vrcp.f32 %v1614_v15 }
 0x47c   :  { %v1670_v31 = vpack.c.bf16 %v1654_v58, %v1654_v58 }
 0x47e   :  { %v1711_v60 = vunpack.c.l.b16 %v1670_v31 }
 0x47f   :  { %v1623_v42 = vpop.xlane.xlu0 %1622 }
 0x480   :  { %v1713_v52 = vpack.c.b16 %v1712_v53, %v1711_v60 }
 0x481   :  { %v7938_v50 = vpop.eup %7937 }
 0x482   :  { %v1617_v43 = vpop.xlane.xlu2 %1616  ;;  %7099 = vmatmul.msk.bf16.vlgmr.msra.gmra.mxu1 %vm618_vm1, %v1713_v52  ;;  %v1660_v21 = vmul.f32 %v7938_v50, %v9426_v4 }
 0x483   :  { %7939 = vrcp.f32 %v1617_v43  ;;  %2088 = vmatpush.bf16.xpose.msra.mxu1 %v2079_v45  ;;  %v1570_v43 = vmul.f32 1.442695, %v1547_v37 }
 0x484   :  { %7941 = vrcp.f32 %v1623_v42  ;;  %v1676_v31 = vpack.c.bf16 %v1660_v21, %v1660_v21  ;;  %v2151_v21 = vsel %vm618_vm1, %v2146_v1, 0  ;;  %v11864_v1 = vld [vmem:[#allocation6_spill] sm:$0xff] }
 0x486   :  { %v1786_v42 = vunpack.c.l.b16 %v1676_v31 }
 0x487   :  { %v1506_v56 = vpop.xlane.xlu0 %1505 }
 0x488   :  { %v1544_v62 = vsub.f32 %v9442_v55, %v1506_v56  ;;  %v9515_v55 = vperm.slane %v8366_v36, 3 }
 0x489   :  { %v7940_v15 = vpop.eup %7939 }
 0x48a   :  { %v1661_v60 = vmul.f32 %v7940_v15, %v9433_v33  ;;  %v1564_v53 = vmul.f32 1.442695, %v1544_v62  ;;  %v1620_v5 = vpop.xlane.xlu2 %1619  ;;  %v7942_v14 = vpop.eup %7941  ;;  %v421_v31 = vadd.f32 %v8659_v11, %v9515_v55 }
 0x48b   :  { %7943 = vrcp.f32 %v1620_v5  ;;  %v1663_v4 = vmul.f32 %v7942_v14, %v9431_v49 }
 0x48c   :  { %v1677_v52 = vpack.c.bf16 %v1661_v60, %v1661_v60  ;;  %7945 = vpow2.f32 %v1564_v53  ;;  %v423_v60 = vadd.f32 %v11864_v1, %v9515_v55  ;;  %v11866_v1 = vld [vmem:[#allocation15_spill] sm:$0xff] }
 0x48d   :  { %7947 = vpow2.f32 %v1570_v43  ;;  %v1679_v29 = vpack.c.bf16 %v1663_v4, %v1663_v4 }
 0x48e   :  { %v1787_v58 = vunpack.c.l.b16 %v1677_v52  ;;  %v2029_v43 = vpack.c.bf16 %v423_v60, %v423_v60  ;;  %v443_v60 = vadd.f32 %v11866_v1, %v9515_v55 }
 0x48f   :  { %v1812_v5 = vunpack.c.l.b16 %v1679_v29 }
 0x490   :  { %v1788_v45 = vpack.c.b16 %v1787_v58, %v1786_v42  ;;  %v1530_v42 = vpop.xlane.xlu0 %1529  ;;  %v2439_v36 = vunpack.c.l.b16 %v2029_v43 }
 0x491   :  { %v7944_v50 = vpop.eup %7943 }
 0x492   :  { %v9517_v33 = vpop.eup %7945  ;;  %v1662_v56 = vmul.f32 %v7944_v50, %v9444_v40  ;;  %v1509_v62 = vpop.xlane.xlu2 %1508  ;;  %7102 = vmatmul.msk.bf16.vlgmr.msrb.gmra.mxu0 %vm618_vm1, %v1788_v45 }
 0x493   :  { %v1545_v49 = vsub.f32 %v9456_v57, %v1509_v62  ;;  %2160 = vmatpush.bf16.xpose.msrb.mxu0 %v2151_v21  ;;  %v1600_v15 = vsel %vm618_vm1, %v9517_v33, 0.0  ;;  %v9529_v14 = vpop.eup %7947  ;;  %v2028_v57 = vpack.c.bf16 %v421_v31, %v421_v31  ;;  %v1552_v21 = vsub.f32 %v9453_v35, %v1530_v42  ;;  %v11865_v35 = vld [vmem:[#allocation14_spill] sm:$0xff] }
 0x494   :  { %v1678_v37 = vpack.c.bf16 %v1662_v56, %v1662_v56  ;;  %1601 = vadd.xlane.f32.xlu2 %v1600_v15  ;;  %v1609_v11 = vsel %vm618_vm1, %v9529_v14, 0.0  ;;  %v441_v31 = vadd.f32 %v11865_v35, %v9515_v55 }
 0x495   :  { %v1566_v53 = vmul.f32 1.442695, %v1545_v49  ;;  %v2438_v50 = vunpack.c.l.b16 %v2028_v57  ;;  %v1580_v49 = vmul.f32 1.442695, %v1552_v21 }
 0x496   :  { %v1811_v40 = vunpack.c.l.b16 %v1678_v37 }
 0x497   :  { %7949 = vpow2.f32 %v1566_v53  ;;  %v9540_v62 = vpack.c.b16 %v2439_v36, %v2438_v50 }
 0x498   :  { %v1813_v52 = vpack.c.b16 %v1812_v5, %v1811_v40  ;;  %v2037_v40 = vpack.c.bf16 %v443_v60, %v443_v60 }
 0x49a   :  { %v1512_v4 = vpop.xlane.xlu2 %1511  ;;  %7103 = vmatmul.msk.bf16.vlgmr.msrb.gmra.mxu1 %vm618_vm1, %v1813_v52 }
 0x49b   :  { %v1546_v58 = vsub.f32 %v9466_v22, %v1512_v4 }
 0x49c   :  { %1610 = vadd.xlane.f32.xlu2 %v1609_v11 }
 0x49d   :  { %v9535_v45 = vpop.eup %7949  ;;  %v1568_v29 = vmul.f32 1.442695, %v1546_v58  ;;  %v2551_v58 = vunpack.c.l.b16 %v2037_v40 }
 0x49e   :  { %v1603_v56 = vsel %vm618_vm1, %v9535_v45, 0.0 }
 0x49f   :  { %7951 = vpow2.f32 %v1568_v29  ;;  %1604 = vadd.xlane.f32.xlu1 %v1603_v56 }
 0x4a0   :  { %7953 = vpow2.f32 %v1580_v49 }
 0x4a2   :  { %v1533_v22 = vpop.xlane.xlu2 %1532  ;;  %7124 = vmatmul.msk.bf16.vlgmr.msra.gmra.mxu0 %vm618_vm1, %v9497_v25  ;;  %v2036_v25 = vpack.c.bf16 %v441_v31, %v441_v31  ;;  %v2144_v29 = vpop.permute.xlu0 %2143 }
 0x4a3   :  { %v1553_v15 = vsub.f32 %v9473_v24, %v1533_v22  ;;  %2452 = vmatpush.bf16.msra.mxu0 %v9540_v62  ;;  %v2072_v24 = vpop.permute.xlu1 %2071 }
 0x4a4   :  { %v2550_v4 = vunpack.c.l.b16 %v2036_v25 }
 0x4a5   :  { %v9546_v37 = vpop.eup %7951  ;;  %v1582_v53 = vmul.f32 1.442695, %v1553_v15 }
 0x4a6   :  { %v1606_v5 = vsel %vm618_vm1, %v9546_v37, 0.0  ;;  %v9555_v57 = vpop.eup %7953  ;;  %v9564_v21 = vpack.c.b16 %v2551_v58, %v2550_v4 }
 0x4a7   :  { %7955 = vpow2.f32 %v1582_v53  ;;  %1607 = vadd.xlane.f32.xlu0 %v1606_v5  ;;  %v1624_v36 = vsel %vm618_vm1, %v9555_v57, 0.0  ;;  %v9583_v1 = vpop.f32.mrf.mxu0 }
 0x4a8   :  { %11867 = vst [vmem:[#allocation6_spill] sm:$0xff] %v9583_v1 }
 0x4aa   :  { %v1539_v52 = vpop.xlane.xlu2 %1538  ;;  %7125 = vmatmul.msk.bf16.vlgmr.msra.gmra.mxu1 %vm618_vm1, %v2072_v24 }
 0x4ab   :  { %v1555_v43 = vsub.f32 %v9480_v12, %v1539_v52 }
 0x4ad   :  { %v9558_v42 = vpop.eup %7955  ;;  %v1586_v11 = vmul.f32 1.442695, %v1555_v43 }
 0x4ae   :  { %v1627_v50 = vsel %vm618_vm1, %v9558_v42, 0.0 }
 0x4af   :  { %7957 = vpow2.f32 %v1586_v11  ;;  %1628 = vadd.xlane.f32.xlu2 %v1627_v50  ;;  %1625 = vadd.xlane.f32.xlu0 %v1624_v36  ;;  %v9587_v53 = vpop.f32.mrf.mxu0 }
 0x4b0   :  { %11869 = vst [vmem:[#allocation15_spill] sm:$0xff] %v9587_v53 }
 0x4b2   :  { %7128 = vmatmul.msk.bf16.vlgmr.msrb.gmra.mxu0 %vm618_vm1, %v2144_v29 }
 0x4b3   :  { %2564 = vmatpush.bf16.msrb.mxu0 %v9564_v21 }
 0x4b5   :  { %v9568_v12 = vpop.eup %7957 }
 0x4b6   :  { %v1633_v56 = vsel %vm618_vm1, %v9568_v12, 0.0 }
 0x4b7   :  { %1634 = vadd.xlane.f32.xlu1 %v1633_v56 }
 0x4c7   :  { %2215 = vrot.lane.b32.xlu2 %v8860_v47, %s8397_s10 }
 0x4cd   :  { %v1536_v49 = vpop.xlane.xlu0 %1535 }
 0x4ce   :  { %v1554_v22 = vsub.f32 %v9487_v3, %v1536_v49 }
 0x4d0   :  { %v1584_v15 = vmul.f32 1.442695, %v1554_v22  ;;  %2169 = vrot.lane.b32.xlu1 %v8777_v18, %s8397_s10  ;;  %v9602_v22 = vld [vmem:[%s11795_s3 + $0x20] sm:$0xff] }
 0x4d2   :  { %7959 = vpow2.f32 %v1584_v15 }
 0x4d8   :  { %v9577_v35 = vpop.eup %7959 }
 0x4d9   :  { %v1630_v31 = vsel %vm618_vm1, %v9577_v35, 0.0 }
 0x4da   :  { %1631 = vadd.xlane.f32.xlu0 %v1630_v31 }
 0x4ee   :  { %2167 = vrot.lane.b32.xlu0 %v8797_v48, %s8397_s10 }
 0x4ff   :  { %v9585_v60 = vpop.f32.mrf.mxu1 }
 0x500   :  { %11868 = vst [vmem:[#allocation14_spill] sm:$0xff] %v9585_v60 }
 0x507   :  { %v1602_v3 = vpop.xlane.xlu2 %1601  ;;  %v9589_v5 = vpop.f32.mrf.mxu1 }
 0x508   :  { %7961 = vrcp.f32 %v1602_v3  ;;  %11870 = vst [vmem:[#allocation69_spill] sm:$0xff] %v9589_v5 }
 0x50e   :  { %v7962_v52 = vpop.eup %7961 }
 0x50f   :  { %v9591_v25 = vpop.f32.mrf.mxu0  ;;  %v1611_v40 = vpop.xlane.xlu2 %1610  ;;  %v1656_v43 = vmul.f32 %v7962_v52, %v9517_v33 }
 0x510   :  { %11871 = vst [vmem:[#allocation70_spill] sm:$0xff] %v9591_v25 }
 0x511   :  { %v1672_v50 = vpack.c.bf16 %v1656_v43, %v1656_v43  ;;  %v2103_v43 = vsel %vm618_vm1, %v9495_v0, 0 }
 0x512   :  { %v1605_v24 = vpop.xlane.xlu1 %1604 }
 0x513   :  { %7963 = vrcp.f32 %v1605_v24  ;;  %v1736_v15 = vunpack.c.l.b16 %v1672_v50 }
 0x514   :  { %7965 = vrcp.f32 %v1611_v40 }
 0x517   :  { %v9594_v4 = vpop.f32.mrf.mxu0  ;;  %v9596_v58 = vpop.f32.mrf.mxu1 }
 0x518   :  { %11872 = vst [vmem:[#allocation71_spill] sm:$0xff] %v9594_v4 }
 0x519   :  { %11873 = vst [vmem:[#allocation72_spill] sm:$0xff] %v9596_v58  ;;  %v7964_v11 = vpop.eup %7963 }
 0x51a   :  { %v1657_v36 = vmul.f32 %v7964_v11, %v9535_v45  ;;  %v1608_v29 = vpop.xlane.xlu0 %1607  ;;  %v7966_v56 = vpop.eup %7965 }
 0x51b   :  { %7967 = vrcp.f32 %v1608_v29  ;;  %v1659_v33 = vmul.f32 %v7966_v56, %v9529_v14 }
 0x51c   :  { %v1673_v49 = vpack.c.bf16 %v1657_v36, %v1657_v36 }
 0x51d   :  { %v1675_v11 = vpack.c.bf16 %v1659_v33, %v1659_v33 }
 0x51e   :  { %v1737_v31 = vunpack.c.l.b16 %v1673_v49  ;;  %v9619_v49 = vld [vmem:[%s11795_s3 + $0x28] sm:$0xff] }
 0x51f   :  { %v9605_v3 = vpop.f32.mrf.mxu1  ;;  %v2066_v40 = vpop.f32.mrf.mxu0  ;;  %v1762_v0 = vunpack.c.l.b16 %v1675_v11 }
 0x520   :  { %11874 = vst [vmem:[#allocation73_spill] sm:$0xff] %v9605_v3  ;;  %v1738_v24 = vpack.c.b16 %v1737_v31, %v1736_v15  ;;  %v9608_v52 = vadd.f32 %v9602_v22, %v2066_v40 }
 0x521   :  { %v7968_v45 = vpop.eup %7967 }
 0x522   :  { %v1658_v36 = vmul.f32 %v7968_v45, %v9546_v37  ;;  %7100 = vmatmul.msk.bf16.vlgmr.msrb.gmra.mxu2 %vm618_vm1, %v1738_v24  ;;  %v1629_v50 = vpop.xlane.xlu2 %1628  ;;  %v1626_v29 = vpop.xlane.xlu0 %1625  ;;  %v2239_v14 = vsel %vm618_vm1, %v9608_v52, -inf }
 0x523   :  { %2112 = vmatpush.bf16.xpose.msrb.mxu2 %v2103_v43  ;;  %7969 = vrcp.f32 %v1629_v50  ;;  %2240 = vmax.xlane.f32.xlu0 %v2239_v14 }
 0x524   :  { %v1674_v56 = vpack.c.bf16 %v1658_v36, %v1658_v36  ;;  %7971 = vrcp.f32 %v1626_v29  ;;  %v2127_v36 = vsel %vm618_vm1, %v9491_v10, 0 }
 0x526   :  { %v1761_v15 = vunpack.c.l.b16 %v1674_v56 }
 0x527   :  { %v2068_v37 = vpop.f32.mrf.mxu0  ;;  %v2090_v33 = vpop.f32.mrf.mxu1 }
 0x528   :  { %v1763_v31 = vpack.c.b16 %v1762_v0, %v1761_v15  ;;  %v9622_v40 = vadd.f32 %v9619_v49, %v2068_v37  ;;  %v9625_v24 = vadd.f32 %v9602_v22, %v2090_v33 }
 0x529   :  { %v7970_v45 = vpop.eup %7969 }
 0x52a   :  { %v7972_v43 = vpop.eup %7971  ;;  %v1665_v50 = vmul.f32 %v7970_v45, %v9558_v42  ;;  %7101 = vmatmul.msk.bf16.vlgmr.msrb.gmra.mxu3 %vm618_vm1, %v1763_v31  ;;  %v2242_v11 = vsel %vm618_vm1, %v9622_v40, -inf  ;;  %v2245_v29 = vsel %vm618_vm1, %v9625_v24, -inf }
 0x52b   :  { %v1664_v14 = vmul.f32 %v7972_v43, %v9555_v57  ;;  %2136 = vmatpush.bf16.xpose.msrb.mxu3 %v2127_v36  ;;  %2243 = vmax.xlane.f32.xlu2 %v2242_v11  ;;  %v2199_v43 = vsel %vm618_vm1, %v9484_v27, 0  ;;  %v11875_v36 = vld [vmem:[#allocation9_spill] sm:$0xff]  ;;  %v11876_v11 = vld [vmem:[#allocation10_spill] sm:$0xff] }
 0x52c   :  { %v1681_v56 = vpack.c.bf16 %v1665_v50, %v1665_v50  ;;  %2246 = vmax.xlane.f32.xlu0 %v2245_v29  ;;  %v431_v50 = vadd.f32 %v11875_v36, %v9515_v55  ;;  %v433_v29 = vadd.f32 %v11876_v11, %v9515_v55 }
 0x52d   :  { %v1680_v0 = vpack.c.bf16 %v1664_v14, %v1664_v14  ;;  %v11877_v14 = vld [vmem:[#allocation7_spill] sm:$0xff] }
 0x52e   :  { %v1837_v15 = vunpack.c.l.b16 %v1681_v56  ;;  %v426_v56 = vadd.f32 %v11877_v14, %v9515_v55 }
 0x52f   :  { %v1836_v37 = vunpack.c.l.b16 %v1680_v0  ;;  %v2092_v10 = vpop.f32.mrf.mxu1  ;;  %v2162_v33 = vpop.f32.mrf.mxu0  ;;  %v11878_v0 = vld [vmem:[#allocation8_spill] sm:$0xff] }
 0x530   :  { %v9637_v42 = vadd.f32 %v9619_v49, %v2092_v10  ;;  %v9640_v31 = vadd.f32 %v9602_v22, %v2162_v33  ;;  %v2032_v10 = vpack.c.bf16 %v431_v50, %v431_v50  ;;  %v1635_v33 = vpop.xlane.xlu1 %1634  ;;  %v11879_v50 = vld [vmem:[#allocation18_spill] sm:$0xff] }
 0x531   :  { %v1838_v45 = vpack.c.b16 %v1837_v15, %v1836_v37  ;;  %v428_v15 = vadd.f32 %v11878_v0, %v9515_v55  ;;  %7973 = vrcp.f32 %v1635_v33  ;;  %v11881_v33 = vld [vmem:[#allocation16_spill] sm:$0xff] }
 0x532   :  { %v2248_v58 = vsel %vm618_vm1, %v9637_v42, -inf  ;;  %v2263_v57 = vsel %vm618_vm1, %v9640_v31, -inf  ;;  %v2494_v36 = vunpack.c.l.b16 %v2032_v10 }
 0x533   :  { %7104 = vmatmul.msk.bf16.vlgmr.msra.gmra.mxu2 %vm618_vm1, %v1838_v45  ;;  %2249 = vmax.xlane.f32.xlu2 %v2248_v58  ;;  %v2033_v58 = vpack.c.bf16 %v433_v29, %v433_v29  ;;  %v451_v29 = vadd.f32 %v11879_v50, %v9515_v55 }
 0x534   :  { %2208 = vmatpush.bf16.xpose.msra.mxu2 %v2199_v43  ;;  %2264 = vmax.xlane.f32.xlu1 %v2263_v57  ;;  %v2030_v57 = vpack.c.bf16 %v426_v56, %v426_v56  ;;  %v2031_v43 = vpack.c.bf16 %v428_v15, %v428_v15  ;;  %v11880_v56 = vld [vmem:[#allocation19_spill] sm:$0xff] }
 0x535   :  { %v2495_v11 = vunpack.c.l.b16 %v2033_v58  ;;  %v453_v15 = vadd.f32 %v11880_v56, %v9515_v55  ;;  %v2040_v10 = vpack.c.bf16 %v451_v29, %v451_v29 }
 0x536   :  { %v2466_v3 = vunpack.c.l.b16 %v2030_v57  ;;  %v2467_v14 = vunpack.c.l.b16 %v2031_v43 }
 0x537   :  { %v2164_v37 = vpop.f32.mrf.mxu0  ;;  %v9662_v25 = vpack.c.b16 %v2495_v11, %v2494_v36 }
 0x538   :  { %v9658_v27 = vadd.f32 %v9619_v49, %v2164_v37  ;;  %v9664_v4 = vpack.c.b16 %v2467_v14, %v2466_v3  ;;  %v2041_v3 = vpack.c.bf16 %v453_v15, %v453_v15  ;;  %v446_v14 = vadd.f32 %v11881_v33, %v9515_v55 }
 0x53a   :  { %v2266_v45 = vsel %vm618_vm1, %v9658_v27, -inf  ;;  %v2607_v57 = vunpack.c.l.b16 %v2041_v3  ;;  %v2038_v56 = vpack.c.bf16 %v446_v14, %v446_v14 }
 0x53b   :  { %2267 = vmax.xlane.f32.xlu0 %v2266_v45  ;;  %v2606_v45 = vunpack.c.l.b16 %v2040_v10 }
 0x53d   :  { %v9678_v36 = vpack.c.b16 %v2607_v57, %v2606_v45  ;;  %v2223_v45 = vsel %vm618_vm1, %v9502_v41, 0 }
 0x542   :  { %v2170_v0 = vpop.permute.xlu1 %2169 }
 0x543   :  { %v2175_v37 = vsel %vm618_vm1, %v2170_v0, 0  ;;  %7126 = vmatmul.msk.bf16.vlgmr.msrb.gmra.mxu2 %vm618_vm1, %v9448_v51  ;;  %v7974_v51 = vpop.eup %7973  ;;  %v11882_v0 = vld [vmem:[#allocation17_spill] sm:$0xff] }
 0x544   :  { %2508 = vmatpush.bf16.msrb.mxu2 %v9662_v25  ;;  %2184 = vmatpush.bf16.xpose.msrb.mxu1 %v2175_v37  ;;  %v1667_v43 = vmul.f32 %v7974_v51, %v9568_v12  ;;  %v448_v37 = vadd.f32 %v11882_v0, %v9515_v55 }
 0x546   :  { %v1683_v50 = vpack.c.bf16 %v1667_v43, %v1667_v43  ;;  %v2039_v15 = vpack.c.bf16 %v448_v37, %v448_v37  ;;  %v11884_v43 = vld [vmem:[#allocation12_spill] sm:$0xff] }
 0x548   :  { %v1862_v10 = vunpack.c.l.b16 %v1683_v50  ;;  %v2579_v51 = vunpack.c.l.b16 %v2039_v15  ;;  %v11886_v15 = vld [vmem:[#allocation21_spill] sm:$0xff] }
 0x54c   :  { %2480 = vmatpush.bf16.msra.mxu1 %v9664_v4 }
 0x54d   :  { %2738 = vrot.lane.b32.xlu1 %v8701_v7, %s8398_s17  ;;  %v1632_v58 = vpop.xlane.xlu0 %1631 }
 0x54e   :  { %7975 = vrcp.f32 %v1632_v58  ;;  %v2578_v58 = vunpack.c.l.b16 %v2038_v56 }
 0x550   :  { %v9699_v33 = vpack.c.b16 %v2579_v51, %v2578_v58 }
 0x553   :  { %7130 = vmatmul.msk.bf16.vlgmr.msra.gmra.mxu2 %vm618_vm1, %v9489_v2 }
 0x554   :  { %v7976_v11 = vpop.eup %7975  ;;  %2620 = vmatpush.bf16.msra.mxu2 %v9678_v36 }
 0x555   :  { %v1666_v29 = vmul.f32 %v7976_v11, %v9577_v35  ;;  %2716 = vrot.lane.b32.xlu1 %v8679_v32, %s8398_s17  ;;  %v11883_v35 = vld [vmem:[#allocation11_spill] sm:$0xff]  ;;  %v438_v11 = vadd.f32 %v11884_v43, %v9515_v55 }
 0x556   :  { %v436_v57 = vadd.f32 %v11883_v35, %v9515_v55  ;;  %v2216_v35 = vpop.permute.xlu2 %2215 }
 0x557   :  { %v1682_v12 = vpack.c.bf16 %v1666_v29, %v1666_v29  ;;  %v2035_v0 = vpack.c.bf16 %v438_v11, %v438_v11 }
 0x558   :  { %v2034_v41 = vpack.c.bf16 %v436_v57, %v436_v57 }
 0x559   :  { %v1861_v2 = vunpack.c.l.b16 %v1682_v12  ;;  %v2523_v50 = vunpack.c.l.b16 %v2035_v0  ;;  %v11885_v12 = vld [vmem:[#allocation20_spill] sm:$0xff] }
 0x55a   :  { %v2522_v37 = vunpack.c.l.b16 %v2034_v41  ;;  %v456_v56 = vadd.f32 %v11885_v12, %v9515_v55 }
 0x55b   :  { %v1863_v3 = vpack.c.b16 %v1862_v10, %v1861_v2  ;;  %v458_v10 = vadd.f32 %v11886_v15, %v9515_v55 }
 0x55c   :  { %v9703_v29 = vpack.c.b16 %v2523_v50, %v2522_v37  ;;  %v2042_v2 = vpack.c.bf16 %v456_v56, %v456_v56 }
 0x55d   :  { %2834 = vrot.lane.b32.xlu1 %v8830_v23, %s8398_s17  ;;  %7105 = vmatmul.msk.bf16.vlgmr.msra.gmra.mxu3 %vm618_vm1, %v1863_v3  ;;  %v2043_v3 = vpack.c.bf16 %v458_v10, %v458_v10 }
 0x55e   :  { %2232 = vmatpush.bf16.xpose.msra.mxu3 %v2223_v45  ;;  %v2634_v58 = vunpack.c.l.b16 %v2042_v2 }
 0x55f   :  { %v2635_v51 = vunpack.c.l.b16 %v2043_v3 }
 0x560   :  { %v2168_v14 = vpop.permute.xlu0 %2167 }
 0x561   :  { %7129 = vmatmul.msk.bf16.vlgmr.msrb.gmra.mxu1 %vm618_vm1, %v2168_v14  ;;  %v9712_v45 = vpack.c.b16 %v2635_v51, %v2634_v58 }
 0x562   :  { %2592 = vmatpush.bf16.msrb.mxu1 %v9699_v33 }
 0x56d   :  { %7127 = vmatmul.msk.bf16.vlgmr.msrb.gmra.mxu3 %vm618_vm1, %v9499_v63 }
 0x56e   :  { %2536 = vmatpush.bf16.msrb.mxu3 %v9703_v29 }
 0x57d   :  { %7131 = vmatmul.msk.bf16.vlgmr.msra.gmra.mxu3 %vm618_vm1, %v2216_v35 }
 0x57e   :  { %2648 = vmatpush.bf16.msra.mxu3 %v9712_v45 }
 0x596   :  { %v2241_v3 = vpop.xlane.xlu0 %2240 }
 0x597   :  { %v2287_v51 = vsub.f32 %v9608_v52, %v2241_v3 }
 0x59e   :  { %v2244_v63 = vpop.xlane.xlu2 %2243 }
 0x59f   :  { %v2288_v57 = vsub.f32 %v9622_v40, %v2244_v63  ;;  %v2303_v63 = vmul.f32 1.442695, %v2287_v51 }
 0x5a1   :  { %v2305_v43 = vmul.f32 1.442695, %v2288_v57  ;;  %v2247_v57 = vpop.xlane.xlu0 %2246 }
 0x5a3   :  { %7977 = vpow2.f32 %v2305_v43 }
 0x5a5   :  { %v9746_v43 = vpop.f32.mrf.mxu2 }
 0x5a6   :  { %v2250_v11 = vpop.xlane.xlu2 %2249  ;;  %11887 = vst [vmem:[#allocation9_spill] sm:$0xff] %v9746_v43 }
 0x5a7   :  { %v2290_v14 = vsub.f32 %v9637_v42, %v2250_v11  ;;  %v2265_v2 = vpop.xlane.xlu1 %2264  ;;  %v2289_v11 = vsub.f32 %v9625_v24, %v2247_v57 }
 0x5a8   :  { %v2295_v58 = vsub.f32 %v9640_v31, %v2265_v2 }
 0x5a9   :  { %v9718_v55 = vpop.eup %7977  ;;  %v2309_v41 = vmul.f32 1.442695, %v2290_v14 }
 0x5aa   :  { %v2338_v0 = vsel %vm618_vm1, %v9718_v55, 0.0  ;;  %v2319_v35 = vmul.f32 1.442695, %v2295_v58 }
 0x5ab   :  { %7979 = vpow2.f32 %v2309_v41  ;;  %2339 = vadd.xlane.f32.xlu1 %v2338_v0  ;;  %v2307_v41 = vmul.f32 1.442695, %v2289_v11 }
 0x5ac   :  { %7981 = vpow2.f32 %v2319_v35 }
 0x5ad   :  { %7983 = vpow2.f32 %v2303_v63 }
 0x5ae   :  { %v2268_v0 = vpop.xlane.xlu0 %2267  ;;  %7985 = vpow2.f32 %v2307_v41 }
 0x5af   :  { %v2296_v52 = vsub.f32 %v9658_v27, %v2268_v0 }
 0x5b1   :  { %v9722_v37 = vpop.eup %7979  ;;  %v2321_v24 = vmul.f32 1.442695, %v2296_v52 }
 0x5b2   :  { %v2344_v50 = vsel %vm618_vm1, %v9722_v37, 0.0  ;;  %v9749_v14 = vpop.eup %7981 }
 0x5b3   :  { %2345 = vadd.xlane.f32.xlu1 %v2344_v50  ;;  %v9751_v50 = vpop.eup %7983  ;;  %v2359_v31 = vsel %vm618_vm1, %v9749_v14, 0.0  ;;  %7987 = vpow2.f32 %v2321_v24 }
 0x5de   :  { %v2186_v40 = vpop.f32.mrf.mxu1 }
 0x5df   :  { %v2187_v12 = vadd.f32 %v9602_v22, %v2186_v40  ;;  %v9755_v40 = vpop.f32.mrf.mxu2 }
 0x5e0   :  { %11888 = vst [vmem:[#allocation10_spill] sm:$0xff] %v9755_v40 }
 0x5e1   :  { %v2269_v56 = vsel %vm618_vm1, %v2187_v12, -inf }
 0x5e2   :  { %2270 = vmax.xlane.f32.xlu0 %v2269_v56  ;;  %v2335_v56 = vsel %vm618_vm1, %v9751_v50, 0.0 }
 0x5e6   :  { %v2188_v42 = vpop.f32.mrf.mxu1 }
 0x5e7   :  { %v2189_v15 = vadd.f32 %v9619_v49, %v2188_v42  ;;  %v9760_v42 = vpop.f32.mrf.mxu3  ;;  %v9764_v2 = vpop.f32.mrf.mxu2 }
 0x5e8   :  { %11889 = vst [vmem:[#allocation7_spill] sm:$0xff] %v9760_v42 }
 0x5e9   :  { %v2272_v10 = vsel %vm618_vm1, %v2189_v15, -inf  ;;  %11890 = vst [vmem:[#allocation8_spill] sm:$0xff] %v9764_v2 }
 0x5ea   :  { %2273 = vmax.xlane.f32.xlu2 %v2272_v10  ;;  %v9762_v10 = vpop.eup %7985 }
 0x5eb   :  { %v2341_v3 = vsel %vm618_vm1, %v9762_v10, 0.0  ;;  %v9768_v58 = vpop.eup %7987 }
 0x5ec   :  { %v2362_v27 = vsel %vm618_vm1, %v9768_v58, 0.0 }
 0x5ef   :  { %v9770_v51 = vpop.f32.mrf.mxu3  ;;  %v9774_v35 = vpop.f32.mrf.mxu2 }
 0x5f0   :  { %11891 = vst [vmem:[#allocation18_spill] sm:$0xff] %v9770_v51 }
 0x5f1   :  { %11892 = vst [vmem:[#allocation19_spill] sm:$0xff] %v9774_v35 }
 0x5f6   :  { %2740 = vrot.lane.b32.xlu0 %v8699_v6, %s8398_s17 }
 0x5f7   :  { %v9778_v63 = vpop.f32.mrf.mxu3  ;;  %v2114_v11 = vpop.f32.mrf.mxu2 }
 0x5f8   :  { %11893 = vst [vmem:[#allocation16_spill] sm:$0xff] %v9778_v63  ;;  %v9787_v63 = vadd.f32 %v9602_v22, %v2114_v11 }
 0x5fe   :  { %2690 = vrot.lane.b32.xlu0 %v8668_v19, %s8398_s17 }
 0x602   :  { %2692 = vrot.lane.b32.xlu2 %v8657_v9, %s8398_s17 }
 0x606   :  { %2836 = vrot.lane.b32.xlu0 %v8814_v39, %s8398_s17 }
 0x60a   :  { %2764 = vrot.lane.b32.xlu2 %v8723_v34, %s8398_s17 }
 0x60e   :  { %2762 = vrot.lane.b32.xlu0 %v8730_v46, %s8398_s17 }
 0x612   :  { %2788 = vrot.lane.b32.xlu2 %v8741_v13, %s8398_s17 }
 0x638   :  { %2360 = vadd.xlane.f32.xlu0 %v2359_v31  ;;  %v9780_v31 = vpop.f32.mrf.mxu3 }
 0x639   :  { %11894 = vst [vmem:[#allocation17_spill] sm:$0xff] %v9780_v31 }
 0x63b   :  { %2336 = vadd.xlane.f32.xlu2 %v2335_v56 }
 0x640   :  { %v2138_v35 = vpop.f32.mrf.mxu3 }
 0x643   :  { %2342 = vadd.xlane.f32.xlu2 %v2341_v3  ;;  %v2116_v3 = vpop.f32.mrf.mxu2 }
 0x64b   :  { %2363 = vadd.xlane.f32.xlu2 %v2362_v27 }
 0x64c   :  { %2786 = vrot.lane.b32.xlu0 %v8748_v26, %s8398_s17 }
 0x655   :  { %v2271_v57 = vpop.xlane.xlu0 %2270 }
 0x656   :  { %v2297_v41 = vsub.f32 %v2187_v12, %v2271_v57 }
 0x658   :  { %v2323_v0 = vmul.f32 1.442695, %v2297_v41  ;;  %v2210_v41 = vpop.f32.mrf.mxu2 }
 0x65a   :  { %7989 = vpow2.f32 %v2323_v0  ;;  %v9796_v0 = vadd.f32 %v9619_v49, %v2116_v3 }
 0x65d   :  { %v2274_v52 = vpop.xlane.xlu2 %2273 }
 0x65e   :  { %v2298_v56 = vsub.f32 %v2189_v15, %v2274_v52  ;;  %v2251_v15 = vsel %vm618_vm1, %v9787_v63, -inf  ;;  %v2140_v52 = vpop.f32.mrf.mxu3 }
 0x65f   :  { %v9802_v11 = vadd.f32 %v9619_v49, %v2140_v52 }
 0x660   :  { %v9782_v24 = vpop.eup %7989  ;;  %v2325_v27 = vmul.f32 1.442695, %v2298_v56  ;;  %v2254_v56 = vsel %vm618_vm1, %v9796_v0, -inf  ;;  %v2212_v8 = vpop.f32.mrf.mxu2 }
 0x661   :  { %v2365_v2 = vsel %vm618_vm1, %v9782_v24, 0.0  ;;  %v2260_v3 = vsel %vm618_vm1, %v9802_v11, -inf  ;;  %v9841_v17 = vadd.f32 %v9619_v49, %v2212_v8 }
 0x662   :  { %7991 = vpow2.f32 %v2325_v27  ;;  %2366 = vadd.xlane.f32.xlu2 %v2365_v2  ;;  %v9799_v2 = vadd.f32 %v9602_v22, %v2210_v41  ;;  %v9815_v41 = vpop.permute.xlu1 %2738 }
 0x664   :  { %v2275_v27 = vsel %vm618_vm1, %v9799_v2, -inf }
 0x666   :  { %v2234_v43 = vpop.f32.mrf.mxu3 }
 0x667   :  { %v9832_v1 = vadd.f32 %v9602_v22, %v2234_v43 }
 0x668   :  { %v9789_v12 = vpop.eup %7991  ;;  %v9819_v52 = vpop.permute.xlu0 %2740 }
 0x669   :  { %v2368_v57 = vsel %vm618_vm1, %v9789_v12, 0.0  ;;  %v2281_v54 = vsel %vm618_vm1, %v9832_v1, -inf }
 0x66a   :  { %2369 = vadd.xlane.f32.xlu1 %v2368_v57  ;;  %2252 = vmax.xlane.f32.xlu2 %v2251_v15  ;;  %v9809_v57 = vadd.f32 %v9602_v22, %v2138_v35 }
 0x66c   :  { %v2257_v15 = vsel %vm618_vm1, %v9809_v57, -inf }
 0x66e   :  { %v2236_v28 = vpop.f32.mrf.mxu3 }
 0x670   :  { %v9823_v35 = vpop.permute.xlu0 %2690 }
 0x672   :  { %2255 = vmax.xlane.f32.xlu1 %v2254_v56  ;;  %2276 = vmax.xlane.f32.xlu2 %v2275_v27  ;;  %v2717_v56 = vpop.permute.xlu1 %2716  ;;  %v2693_v27 = vpop.permute.xlu2 %2692 }
 0x676   :  { %2261 = vmax.xlane.f32.xlu0 %v2260_v3 }
 0x67a   :  { %2258 = vmax.xlane.f32.xlu1 %v2257_v15  ;;  %v9825_v31 = vpop.permute.xlu1 %2834  ;;  %v9827_v3 = vpop.permute.xlu2 %2764 }
 0x67b   :  { %v9829_v15 = vpop.permute.xlu0 %2836 }
 0x682   :  { %v2340_v42 = vpop.xlane.xlu1 %2339  ;;  %v2789_v51 = vpop.permute.xlu2 %2788 }
 0x683   :  { %7993 = vrcp.f32 %v2340_v42  ;;  %v9834_v53 = vpop.permute.xlu0 %2762 }
 0x689   :  { %v7994_v5 = vpop.eup %7993 }
 0x68a   :  { %2714 = vrot.lane.b32.xlu2 %v8689_v44, %s8398_s17  ;;  %v2346_v40 = vpop.xlane.xlu1 %2345  ;;  %v2400_v59 = vmul.f32 %v7994_v5, %v9718_v55 }
 0x68c   :  { %v2416_v42 = vpack.c.bf16 %v2400_v59, %v2400_v59 }
 0x693   :  { %2860 = vrot.lane.b32.xlu1 %v8850_v61, %s8398_s17 }
 0x6ab   :  { %v2361_v38 = vpop.xlane.xlu0 %2360 }
 0x6ae   :  { %v2337_v60 = vpop.xlane.xlu2 %2336 }
 0x6af   :  { %7995 = vrcp.f32 %v2337_v60 }
 0x6b0   :  { %7997 = vrcp.f32 %v2346_v40  ;;  %v2434_v40 = vunpack.c.l.b16 %v2416_v42 }
 0x6b3   :  { %2282 = vmax.xlane.f32.xlu2 %v2281_v54  ;;  %v2278_v54 = vsel %vm618_vm1, %v9841_v17, -inf }
 0x6b5   :  { %v7996_v30 = vpop.eup %7995 }
 0x6b6   :  { %v2399_v20 = vmul.f32 %v7996_v30, %v9751_v50  ;;  %v2343_v22 = vpop.xlane.xlu2 %2342  ;;  %v7998_v43 = vpop.eup %7997  ;;  %v2698_v50 = vsel %vm618_vm1, %v2693_v27, 0 }
 0x6b7   :  { %7999 = vrcp.f32 %v2343_v22  ;;  %v2402_v5 = vmul.f32 %v7998_v43, %v9722_v37 }
 0x6b8   :  { %v2415_v60 = vpack.c.bf16 %v2399_v20, %v2399_v20  ;;  %8001 = vrcp.f32 %v2361_v38  ;;  %v9850_v20 = vadd.f32 %v9619_v49, %v2236_v28 }
 0x6b9   :  { %v2418_v30 = vpack.c.bf16 %v2402_v5, %v2402_v5 }
 0x6ba   :  { %v2433_v55 = vunpack.c.l.b16 %v2415_v60  ;;  %v2284_v27 = vsel %vm618_vm1, %v9850_v20, -inf }
 0x6bb   :  { %v2462_v42 = vunpack.c.l.b16 %v2418_v30 }
 0x6bc   :  { %v2435_v26 = vpack.c.b16 %v2434_v40, %v2433_v55 }
 0x6bd   :  { %v8000_v59 = vpop.eup %7999  ;;  %2279 = vmax.xlane.f32.xlu1 %v2278_v54 }
 0x6be   :  { %v2401_v22 = vmul.f32 %v8000_v59, %v9762_v10  ;;  %7132 = vmatmul.msk.bf16.vlgmr.msra.gmra.mxu0 %vm618_vm1, %v2435_v26  ;;  %v2364_v8 = vpop.xlane.xlu2 %2363  ;;  %v8002_v38 = vpop.eup %8001  ;;  %v2722_v26 = vsel %vm618_vm1, %v2717_v56, 0 }
 0x6bf   :  { %2707 = vmatpush.bf16.xpose.msra.mxu0 %v2698_v50  ;;  %8003 = vrcp.f32 %v2364_v8  ;;  %v2407_v43 = vmul.f32 %v8002_v38, %v9749_v14  ;;  %v2794_v14 = vsel %vm618_vm1, %v2789_v51, 0  ;;  %v2787_v38 = vpop.permute.xlu0 %2786 }
 0x6c0   :  { %v2417_v37 = vpack.c.bf16 %v2401_v22, %v2401_v22 }
 0x6c1   :  { %v2423_v10 = vpack.c.bf16 %v2407_v43, %v2407_v43 }
 0x6c2   :  { %v2461_v60 = vunpack.c.l.b16 %v2417_v37 }
 0x6c3   :  { %v2545_v49 = vunpack.c.l.b16 %v2423_v10 }
 0x6c4   :  { %v2463_v40 = vpack.c.b16 %v2462_v42, %v2461_v60 }
 0x6c5   :  { %v8004_v5 = vpop.eup %8003  ;;  %2285 = vmax.xlane.f32.xlu1 %v2284_v27 }
 0x6c6   :  { %v2408_v55 = vmul.f32 %v8004_v5, %v9768_v58  ;;  %7133 = vmatmul.msk.bf16.vlgmr.msra.gmra.mxu1 %vm618_vm1, %v2463_v40 }
 0x6c7   :  { %2731 = vmatpush.bf16.xpose.msra.mxu1 %v2722_v26 }
 0x6c8   :  { %v2424_v28 = vpack.c.bf16 %v2408_v55, %v2408_v55 }
 0x6ca   :  { %v2546_v54 = vunpack.c.l.b16 %v2424_v28 }
 0x6cc   :  { %v2547_v59 = vpack.c.b16 %v2546_v54, %v2545_v49 }
 0x6ce   :  { %7136 = vmatmul.msk.bf16.vlgmr.msrb.gmra.mxu0 %vm618_vm1, %v2547_v59 }
 0x6cf   :  { %2803 = vmatpush.bf16.xpose.msrb.mxu0 %v2794_v14 }
 0x6d5   :  { %v2367_v30 = vpop.xlane.xlu2 %2366 }
 0x6d6   :  { %8005 = vrcp.f32 %v2367_v30 }
 0x6dc   :  { %v8006_v56 = vpop.eup %8005 }
 0x6dd   :  { %v2370_v50 = vpop.xlane.xlu1 %2369  ;;  %v2253_v22 = vpop.xlane.xlu2 %2252  ;;  %v2409_v37 = vmul.f32 %v8006_v56, %v9782_v24 }
 0x6de   :  { %8007 = vrcp.f32 %v2370_v50  ;;  %v2291_v58 = vsub.f32 %v9787_v63, %v2253_v22  ;;  %7158 = vmatmul.msk.bf16.vlgmr.msra.gmra.mxu0 %vm618_vm1, %v9823_v35 }
 0x6df   :  { %v2425_v42 = vpack.c.bf16 %v2409_v37, %v2409_v37 }
 0x6e0   :  { %v2311_v8 = vmul.f32 1.442695, %v2291_v58 }
 0x6e1   :  { %v2573_v55 = vunpack.c.l.b16 %v2425_v42 }
 0x6e2   :  { %8009 = vpow2.f32 %v2311_v8 }
 0x6e4   :  { %v8008_v51 = vpop.eup %8007 }
 0x6e5   :  { %v2410_v43 = vmul.f32 %v8008_v51, %v9789_v12  ;;  %v2256_v60 = vpop.xlane.xlu1 %2255  ;;  %v2277_v40 = vpop.xlane.xlu2 %2276 }
 0x6e6   :  { %v2292_v27 = vsub.f32 %v9796_v0, %v2256_v60  ;;  %v2299_v5 = vsub.f32 %v9799_v2, %v2277_v40 }
 0x6e7   :  { %v2426_v26 = vpack.c.bf16 %v2410_v43, %v2410_v43 }
 0x6e8   :  { %v9867_v63 = vpop.eup %8009  ;;  %v2313_v10 = vmul.f32 1.442695, %v2292_v27  ;;  %v2327_v35 = vmul.f32 1.442695, %v2299_v5 }
 0x6e9   :  { %v2574_v28 = vunpack.c.l.b16 %v2426_v26  ;;  %v2262_v49 = vpop.xlane.xlu0 %2261  ;;  %v2347_v24 = vsel %vm618_vm1, %v9867_v63, 0.0 }
 0x6ea   :  { %8011 = vpow2.f32 %v2313_v10  ;;  %v2294_v12 = vsub.f32 %v9802_v11, %v2262_v49  ;;  %2348 = vadd.xlane.f32.xlu1 %v2347_v24 }
 0x6eb   :  { %v2575_v54 = vpack.c.b16 %v2574_v28, %v2573_v55  ;;  %8013 = vpow2.f32 %v2327_v35 }
 0x6ec   :  { %v2317_v0 = vmul.f32 1.442695, %v2294_v12 }
 0x6ed   :  { %v2259_v59 = vpop.xlane.xlu1 %2258  ;;  %7137 = vmatmul.msk.bf16.vlgmr.msrb.gmra.mxu1 %vm618_vm1, %v2575_v54 }
 0x6ee   :  { %8015 = vpow2.f32 %v2317_v0  ;;  %v2293_v2 = vsub.f32 %v9809_v57, %v2259_v59  ;;  %7162 = vmatmul.msk.bf16.vlgmr.msrb.gmra.mxu0 %vm618_vm1, %v2787_v38  ;;  %v2715_v38 = vpop.permute.xlu2 %2714  ;;  %v9928_v59 = vld [vmem:[%s11795_s3 + $0x30] sm:$0xff] }
 0x6f0   :  { %v9875_v14 = vpop.eup %8011  ;;  %v2315_v30 = vmul.f32 1.442695, %v2293_v2 }
 0x6f1   :  { %v9877_v50 = vpop.eup %8013  ;;  %v2350_v11 = vsel %vm618_vm1, %v9875_v14, 0.0 }
 0x6f2   :  { %8017 = vpow2.f32 %v2315_v30  ;;  %2351 = vadd.xlane.f32.xlu0 %v2350_v11  ;;  %v2371_v22 = vsel %vm618_vm1, %v9877_v50, 0.0 }
 0x6f3   :  { %2372 = vadd.xlane.f32.xlu1 %v2371_v22 }
 0x6f4   :  { %v9883_v56 = vpop.eup %8015 }
 0x6f5   :  { %v2356_v57 = vsel %vm618_vm1, %v9883_v56, 0.0 }
 0x6f6   :  { %2357 = vadd.xlane.f32.xlu2 %v2356_v57 }
 0x6f8   :  { %v9887_v58 = vpop.eup %8017 }
 0x6f9   :  { %v2353_v8 = vsel %vm618_vm1, %v9887_v58, 0.0 }
 0x6fa   :  { %2354 = vadd.xlane.f32.xlu0 %v2353_v8 }
 0x6fd   :  { %7159 = vmatmul.msk.bf16.vlgmr.msra.gmra.mxu1 %vm618_vm1, %v2715_v38 }
 0x705   :  { %v9895_v42 = vpop.permute.xlu1 %2860 }
 0x70e   :  { %2812 = vrot.lane.b32.xlu2 %v8777_v18, %s8398_s17 }
 0x726   :  { %v2283_v37 = vpop.xlane.xlu2 %2282 }
 0x727   :  { %v2301_v51 = vsub.f32 %v9832_v1, %v2283_v37 }
 0x729   :  { %v2331_v43 = vmul.f32 1.442695, %v2301_v51 }
 0x72b   :  { %8019 = vpow2.f32 %v2331_v43 }
 0x730   :  { %v2280_v60 = vpop.xlane.xlu1 %2279 }
 0x731   :  { %v9897_v40 = vpop.eup %8019  ;;  %v2300_v27 = vsub.f32 %v9841_v17, %v2280_v60 }
 0x732   :  { %v2377_v5 = vsel %vm618_vm1, %v9897_v40, 0.0 }
 0x733   :  { %v2329_v26 = vmul.f32 1.442695, %v2300_v27  ;;  %2378 = vadd.xlane.f32.xlu1 %v2377_v5 }
 0x735   :  { %8021 = vpow2.f32 %v2329_v26 }
 0x738   :  { %v2286_v10 = vpop.xlane.xlu1 %2285 }
 0x739   :  { %v2302_v35 = vsub.f32 %v9850_v20, %v2286_v10 }
 0x73b   :  { %v9903_v55 = vpop.eup %8021  ;;  %v2333_v1 = vmul.f32 1.442695, %v2302_v35  ;;  %v9905_v28 = vpop.f32.mrf.mxu0 }
 0x73c   :  { %11895 = vst [vmem:[#allocation11_spill] sm:$0xff] %v9905_v28  ;;  %v2374_v49 = vsel %vm618_vm1, %v9903_v55, 0.0 }
 0x73d   :  { %8023 = vpow2.f32 %v2333_v1  ;;  %2375 = vadd.xlane.f32.xlu0 %v2374_v49 }
 0x743   :  { %v9909_v17 = vpop.eup %8023  ;;  %v9911_v24 = vpop.f32.mrf.mxu0 }
 0x744   :  { %11896 = vst [vmem:[#allocation12_spill] sm:$0xff] %v9911_v24  ;;  %v2380_v12 = vsel %vm618_vm1, %v9909_v17, 0.0  ;;  %v9921_v0 = vpop.f32.mrf.mxu1 }
 0x745   :  { %2381 = vadd.xlane.f32.xlu0 %v2380_v12  ;;  %11899 = vst [vmem:[#allocation74_spill] sm:$0xff] %v9921_v0 }
 0x74b   :  { %v9915_v54 = vpop.f32.mrf.mxu0 }
 0x74c   :  { %11897 = vst [vmem:[#allocation20_spill] sm:$0xff] %v9915_v54  ;;  %2810 = vrot.lane.b32.xlu1 %v8797_v48, %s8398_s17  ;;  %v9935_v57 = vpop.f32.mrf.mxu1 }
 0x74d   :  { %11900 = vst [vmem:[#allocation75_spill] sm:$0xff] %v9935_v57 }
 0x753   :  { %v9919_v20 = vpop.f32.mrf.mxu0 }
 0x754   :  { %11898 = vst [vmem:[#allocation21_spill] sm:$0xff] %v9919_v20 }
 0x759   :  { %2858 = vrot.lane.b32.xlu0 %v8860_v47, %s8398_s17 }
 0x75b   :  { %v2709_v2 = vpop.f32.mrf.mxu0 }
 0x75c   :  { %v9931_v30 = vadd.f32 %v9928_v59, %v2709_v2 }
 0x75d   :  { %v2349_v11 = vpop.xlane.xlu1 %2348 }
 0x75e   :  { %v2882_v22 = vsel %vm618_vm1, %v9931_v30, -inf  ;;  %8025 = vrcp.f32 %v2349_v11 }
 0x75f   :  { %2883 = vmax.xlane.f32.xlu2 %v2882_v22 }
 0x763   :  { %v2711_v8 = vpop.f32.mrf.mxu0 }
 0x764   :  { %v8026_v37 = vpop.eup %8025 }
 0x765   :  { %v2352_v38 = vpop.xlane.xlu0 %2351  ;;  %v2403_v51 = vmul.f32 %v8026_v37, %v9867_v63 }
 0x766   :  { %8027 = vrcp.f32 %v2352_v38 }
 0x767   :  { %v2419_v10 = vpack.c.bf16 %v2403_v51, %v2403_v51 }
 0x769   :  { %v2358_v43 = vpop.xlane.xlu2 %2357  ;;  %v2489_v2 = vunpack.c.l.b16 %v2419_v10 }
 0x76a   :  { %8029 = vrcp.f32 %v2358_v43  ;;  %v9938_v60 = vpop.f32.mrf.mxu1 }
 0x76b   :  { %11901 = vst [vmem:[#allocation76_spill] sm:$0xff] %v9938_v60  ;;  %v2805_v27 = vpop.f32.mrf.mxu0 }
 0x76c   :  { %v8028_v5 = vpop.eup %8027  ;;  %v9941_v26 = vadd.f32 %v9928_v59, %v2805_v27  ;;  %v2746_v27 = vsel %vm618_vm1, %v9819_v52, 0 }
 0x76d   :  { %v2404_v35 = vmul.f32 %v8028_v5, %v9875_v14  ;;  %v2355_v1 = vpop.xlane.xlu0 %2354 }
 0x76e   :  { %8031 = vrcp.f32 %v2355_v1  ;;  %v2906_v49 = vsel %vm618_vm1, %v9941_v26, -inf }
 0x76f   :  { %v2420_v12 = vpack.c.bf16 %v2404_v35, %v2404_v35  ;;  %2907 = vmax.xlane.f32.xlu2 %v2906_v49 }
 0x770   :  { %v8030_v63 = vpop.eup %8029 }
 0x771   :  { %v2490_v11 = vunpack.c.l.b16 %v2420_v12  ;;  %v2406_v22 = vmul.f32 %v8030_v63, %v9883_v56  ;;  %v2813_v38 = vpop.permute.xlu2 %2812  ;;  %v9957_v12 = vld [vmem:[%s11795_s3 + $0x38] sm:$0xff] }
 0x772   :  { %v2818_v37 = vsel %vm618_vm1, %v2813_v38, 0  ;;  %v9948_v43 = vpop.f32.mrf.mxu1  ;;  %v2712_v52 = vadd.f32 %v9957_v12, %v2711_v8 }
 0x773   :  { %11902 = vst [vmem:[#allocation77_spill] sm:$0xff] %v9948_v43  ;;  %v2491_v51 = vpack.c.b16 %v2490_v11, %v2489_v2  ;;  %2827 = vmatpush.bf16.xpose.msrb.mxu1 %v2818_v37  ;;  %v2422_v5 = vpack.c.bf16 %v2406_v22, %v2406_v22  ;;  %v2770_v2 = vsel %vm618_vm1, %v9827_v3, 0 }
 0x774   :  { %v8032_v14 = vpop.eup %8031  ;;  %v2885_v11 = vsel %vm618_vm1, %v2712_v52, -inf }
 0x775   :  { %v2405_v35 = vmul.f32 %v8032_v14, %v9887_v58  ;;  %7134 = vmatmul.msk.bf16.vlgmr.msrb.gmra.mxu2 %vm618_vm1, %v2491_v51  ;;  %v2518_v1 = vunpack.c.l.b16 %v2422_v5  ;;  %v2807_v51 = vpop.f32.mrf.mxu0 }
 0x776   :  { %2755 = vmatpush.bf16.xpose.msrb.mxu2 %v2746_v27  ;;  %v9975_v8 = vadd.f32 %v9957_v12, %v2807_v51  ;;  %v2373_v27 = vpop.xlane.xlu1 %2372 }
 0x777   :  { %v2421_v10 = vpack.c.bf16 %v2405_v35, %v2405_v35  ;;  %8033 = vrcp.f32 %v2373_v27 }
 0x778   :  { %v2909_v14 = vsel %vm618_vm1, %v9975_v8, -inf }
 0x779   :  { %v2517_v56 = vunpack.c.l.b16 %v2421_v10 }
 0x77a   :  { %v2733_v49 = vpop.f32.mrf.mxu1 }
 0x77b   :  { %v2519_v63 = vpack.c.b16 %v2518_v1, %v2517_v56  ;;  %v9970_v37 = vadd.f32 %v9928_v59, %v2733_v49 }
 0x77d   :  { %7135 = vmatmul.msk.bf16.vlgmr.msrb.gmra.mxu3 %vm618_vm1, %v2519_v63  ;;  %v2888_v3 = vsel %vm618_vm1, %v9970_v37, -inf  ;;  %v8034_v10 = vpop.eup %8033 }
 0x77e   :  { %2779 = vmatpush.bf16.xpose.msrb.mxu3 %v2770_v2  ;;  %v2411_v1 = vmul.f32 %v8034_v10, %v9877_v50  ;;  %v2842_v50 = vsel %vm618_vm1, %v9829_v15, 0  ;;  %v2866_v10 = vsel %vm618_vm1, %v9895_v42, 0 }
 0x782   :  { %v2735_v58 = vpop.f32.mrf.mxu1 }
 0x783   :  { %v9965_v22 = vadd.f32 %v9957_v12, %v2735_v58  ;;  %2886 = vmax.xlane.f32.xlu0 %v2885_v11 }
 0x785   :  { %v2891_v38 = vsel %vm618_vm1, %v9965_v22, -inf }
 0x786   :  { %2892 = vmax.xlane.f32.xlu1 %v2891_v38 }
 0x78b   :  { %2889 = vmax.xlane.f32.xlu0 %v2888_v3 }
 0x793   :  { %2910 = vmax.xlane.f32.xlu0 %v2909_v14 }
 0x79f   :  { %3079 = vrot.lane.b32.xlu1 %v9540_v62, %s8396_s9  ;;  %v2427_v62 = vpack.c.bf16 %v2411_v1, %v2411_v1 }
 0x7a1   :  { %v2601_v58 = vunpack.c.l.b16 %v2427_v62 }
 0x7a6   :  { %v2379_v5 = vpop.xlane.xlu1 %2378 }
 0x7a7   :  { %3154 = vrot.lane.b32.xlu1 %v9703_v29, %s8396_s9 }
 0x7af   :  { %3204 = vrot.lane.b32.xlu1 %v9699_v33, %s8396_s9 }
 0x7b0   :  { %v2376_v35 = vpop.xlane.xlu0 %2375 }
 0x7b1   :  { %8035 = vrcp.f32 %v2376_v35 }
 0x7b2   :  { %8037 = vrcp.f32 %v2379_v5 }
 0x7b7   :  { %v8036_v56 = vpop.eup %8035  ;;  %3463 = vrot.lane.b32.xlu1 %v8679_v32, %s8396_s9 }
 0x7b8   :  { %v2412_v49 = vmul.f32 %v8036_v56, %v9903_v55  ;;  %v2382_v29 = vpop.xlane.xlu0 %2381  ;;  %v8038_v63 = vpop.eup %8037 }
 0x7b9   :  { %8039 = vrcp.f32 %v2382_v29  ;;  %v2413_v33 = vmul.f32 %v8038_v63, %v9897_v40 }
 0x7ba   :  { %v2428_v2 = vpack.c.bf16 %v2412_v49, %v2412_v49 }
 0x7bb   :  { %v2429_v55 = vpack.c.bf16 %v2413_v33, %v2413_v33 }
 0x7bc   :  { %v2602_v11 = vunpack.c.l.b16 %v2428_v2 }
 0x7bd   :  { %v2629_v40 = vunpack.c.l.b16 %v2429_v55 }
 0x7be   :  { %v2603_v38 = vpack.c.b16 %v2602_v11, %v2601_v58  ;;  %v2811_v3 = vpop.permute.xlu1 %2810 }
 0x7bf   :  { %v8040_v51 = vpop.eup %8039  ;;  %3583 = vrot.lane.b32.xlu1 %v8814_v39, %s8396_s9  ;;  %7163 = vmatmul.msk.bf16.vlgmr.msrb.gmra.mxu1 %vm618_vm1, %v2811_v3 }
 0x7c0   :  { %v2414_v14 = vmul.f32 %v8040_v51, %v9909_v17  ;;  %7138 = vmatmul.msk.bf16.vlgmr.msra.gmra.mxu2 %vm618_vm1, %v2603_v38 }
 0x7c1   :  { %2851 = vmatpush.bf16.xpose.msra.mxu2 %v2842_v50 }
 0x7c2   :  { %v2430_v27 = vpack.c.bf16 %v2414_v14, %v2414_v14 }
 0x7c4   :  { %v2630_v5 = vunpack.c.l.b16 %v2430_v27 }
 0x7c6   :  { %v2631_v35 = vpack.c.b16 %v2630_v5, %v2629_v40 }
 0x7c8   :  { %7139 = vmatmul.msk.bf16.vlgmr.msra.gmra.mxu3 %vm618_vm1, %v2631_v35 }
 0x7c9   :  { %2875 = vmatpush.bf16.xpose.msra.mxu3 %v2866_v10 }
 0x7cb   :  { %v2859_v15 = vpop.permute.xlu0 %2858 }
 0x7d0   :  { %7160 = vmatmul.msk.bf16.vlgmr.msrb.gmra.mxu2 %vm618_vm1, %v9815_v41 }
 0x7d8   :  { %7161 = vmatmul.msk.bf16.vlgmr.msrb.gmra.mxu3 %vm618_vm1, %v9834_v53 }
 0x7e0   :  { %7164 = vmatmul.msk.bf16.vlgmr.msra.gmra.mxu2 %vm618_vm1, %v9825_v31 }
 0x7e8   :  { %7165 = vmatmul.msk.bf16.vlgmr.msra.gmra.mxu3 %vm618_vm1, %v2859_v15 }
 0x7f6   :  { %v2887_v17 = vpop.xlane.xlu0 %2886 }
 0x7f7   :  { %v2931_v1 = vsub.f32 %v2712_v52, %v2887_v17 }
 0x7f8   :  { %v10013_v31 = vpop.f32.mrf.mxu2 }
 0x7f9   :  { %v2948_v56 = vmul.f32 1.442695, %v2931_v1  ;;  %v10011_v41 = vpop.xlane.xlu1 %2892  ;;  %11903 = vst [vmem:[#allocation78_spill] sm:$0xff] %v10013_v31 }
 0x7fb   :  { %8041 = vpow2.f32 %v2948_v56 }
 0x800   :  { %v10015_v29 = vpop.f32.mrf.mxu3  ;;  %v10017_v63 = vpop.f32.mrf.mxu2 }
 0x801   :  { %v10007_v42 = vpop.eup %8041  ;;  %11904 = vst [vmem:[#allocation79_spill] sm:$0xff] %v10015_v29 }
 0x802   :  { %v2981_v62 = vsel %vm618_vm1, %v10007_v42, 0.0  ;;  %11905 = vst [vmem:[#allocation80_spill] sm:$0xff] %v10017_v63 }
 0x803   :  { %2982 = vadd.xlane.f32.xlu1 %v2981_v62 }
 0x808   :  { %v10024_v33 = vpop.f32.mrf.mxu3 }
 0x809   :  { %11906 = vst [vmem:[#allocation81_spill] sm:$0xff] %v10024_v33 }
 0x811   :  { %v3080_v49 = vpop.permute.xlu1 %3079 }
 0x812   :  { %3092 = vmatpush.bf16.msra.mxu0 %v3080_v49 }
 0x819   :  { %v3155_v53 = vpop.permute.xlu1 %3154 }
 0x81a   :  { %3167 = vmatpush.bf16.msrb.mxu3 %v3155_v53  ;;  %v2890_v53 = vpop.xlane.xlu0 %2889 }
 0x83c   :  { %v2829_v52 = vpop.f32.mrf.mxu1 }
 0x83d   :  { %v10020_v2 = vadd.f32 %v9928_v59, %v2829_v52  ;;  %v2911_v52 = vpop.xlane.xlu0 %2910 }
 0x83f   :  { %v2912_v58 = vsel %vm618_vm1, %v10020_v2, -inf }
 0x840   :  { %2913 = vmax.xlane.f32.xlu2 %v2912_v58  ;;  %v2884_v58 = vpop.xlane.xlu2 %2883 }
 0x843   :  { %v10026_v11 = vpop.f32.mrf.mxu2 }
 0x844   :  { %11907 = vst [vmem:[#allocation82_spill] sm:$0xff] %v10026_v11  ;;  %v2831_v38 = vpop.f32.mrf.mxu1 }
 0x845   :  { %v10029_v3 = vadd.f32 %v9957_v12, %v2831_v38 }
 0x847   :  { %v2915_v51 = vsel %vm618_vm1, %v10029_v3, -inf }
 0x848   :  { %2916 = vmax.xlane.f32.xlu0 %v2915_v51  ;;  %v2930_v51 = vsub.f32 %v9931_v30, %v2884_v58  ;;  %v2933_v58 = vsub.f32 %v9965_v22, %v10011_v41 }
 0x84b   :  { %v10033_v50 = vpop.f32.mrf.mxu2  ;;  %v10035_v55 = vpop.f32.mrf.mxu3 }
 0x84c   :  { %11908 = vst [vmem:[#allocation83_spill] sm:$0xff] %v10033_v50 }
 0x84d   :  { %11909 = vst [vmem:[#allocation84_spill] sm:$0xff] %v10035_v55 }
 0x853   :  { %v10037_v14 = vpop.f32.mrf.mxu3  ;;  %v2757_v27 = vpop.f32.mrf.mxu2 }
 0x854   :  { %11910 = vst [vmem:[#allocation85_spill] sm:$0xff] %v10037_v14  ;;  %v10040_v40 = vadd.f32 %v9928_v59, %v2757_v27  ;;  %v2946_v27 = vmul.f32 1.442695, %v2930_v51 }
 0x856   :  { %v2894_v5 = vsel %vm618_vm1, %v10040_v40, -inf }
 0x857   :  { %2895 = vmax.xlane.f32.xlu1 %v2894_v5  ;;  %v2932_v5 = vsub.f32 %v9970_v37, %v2890_v53 }
 0x858   :  { %3129 = vrot.lane.b32.xlu2 %v9662_v25, %s8396_s9 }
 0x85b   :  { %v10046_v35 = vpop.f32.mrf.mxu2  ;;  %v2781_v10 = vpop.f32.mrf.mxu3 }
 0x85c   :  { %v10049_v15 = vadd.f32 %v9928_v59, %v2781_v10  ;;  %3104 = vrot.lane.b32.xlu0 %v9664_v4, %s8396_s9 }
 0x85e   :  { %v2900_v17 = vsel %vm618_vm1, %v10049_v15, -inf }
 0x85f   :  { %2901 = vmax.xlane.f32.xlu1 %v2900_v17  ;;  %v3205_v17 = vpop.permute.xlu1 %3204 }
 0x860   :  { %3179 = vrot.lane.b32.xlu2 %v9564_v21, %s8396_s9 }
 0x863   :  { %v10057_v1 = vpop.f32.mrf.mxu2  ;;  %v10061_v25 = vpop.f32.mrf.mxu3 }
 0x864   :  { %3229 = vrot.lane.b32.xlu0 %v9678_v36, %s8396_s9 }
 0x867   :  { %v10101_v37 = vpop.permute.xlu1 %3463 }
 0x868   :  { %3487 = vrot.lane.b32.xlu2 %v8699_v6, %s8396_s9 }
 0x86b   :  { %v2855_v56 = vpop.f32.mrf.mxu2  ;;  %v2877_v62 = vpop.f32.mrf.mxu3 }
 0x86c   :  { %v10066_v4 = vadd.f32 %v9957_v12, %v2855_v56  ;;  %3439 = vrot.lane.b32.xlu0 %v8657_v9, %s8396_s9  ;;  %v10075_v36 = vadd.f32 %v9928_v59, %v2877_v62  ;;  %v2950_v56 = vmul.f32 1.442695, %v2932_v5  ;;  %v2908_v62 = vpop.xlane.xlu2 %2907 }
 0x86e   :  { %v2921_v21 = vsel %vm618_vm1, %v10066_v4, -inf  ;;  %v2924_v49 = vsel %vm618_vm1, %v10075_v36, -inf }
 0x86f   :  { %2922 = vmax.xlane.f32.xlu1 %v2921_v21 }
 0x870   :  { %3437 = vrot.lane.b32.xlu2 %v8668_v19, %s8396_s9 }
 0x874   :  { %3254 = vrot.lane.b32.xlu0 %v9712_v45, %s8396_s9  ;;  %v2939_v45 = vsub.f32 %v9975_v8, %v2911_v52  ;;  %v2938_v8 = vsub.f32 %v9941_v26, %v2908_v62  ;;  %v2952_v26 = vmul.f32 1.442695, %v2933_v58 }
 0x876   :  { %v2964_v38 = vmul.f32 1.442695, %v2939_v45  ;;  %v2962_v52 = vmul.f32 1.442695, %v2938_v8 }
 0x877   :  { %2925 = vmax.xlane.f32.xlu1 %v2924_v49 }
 0x878   :  { %3535 = vrot.lane.b32.xlu2 %v8741_v13, %s8396_s9  ;;  %8043 = vpow2.f32 %v2964_v38 }
 0x879   :  { %8045 = vpow2.f32 %v2946_v27  ;;  %v10111_v27 = vpop.permute.xlu1 %3583 }
 0x87a   :  { %8047 = vpow2.f32 %v2950_v56 }
 0x87b   :  { %8049 = vpow2.f32 %v2962_v52 }
 0x87c   :  { %3485 = vrot.lane.b32.xlu0 %v8701_v7, %s8396_s9  ;;  %8051 = vpow2.f32 %v2952_v26 }
 0x87e   :  { %v10092_v10 = vpop.eup %8043 }
 0x87f   :  { %v3005_v21 = vsel %vm618_vm1, %v10092_v10, 0.0  ;;  %v10096_v49 = vpop.eup %8045 }
 0x880   :  { %3461 = vrot.lane.b32.xlu2 %v8689_v44, %s8396_s9  ;;  %v2978_v30 = vsel %vm618_vm1, %v10096_v49, 0.0  ;;  %v10103_v53 = vpop.eup %8047 }
 0x881   :  { %v2984_v38 = vsel %vm618_vm1, %v10103_v53, 0.0  ;;  %v10109_v51 = vpop.eup %8049  ;;  %v2983_v52 = vpop.xlane.xlu1 %2982 }
 0x882   :  { %v3002_v22 = vsel %vm618_vm1, %v10109_v51, 0.0 }
 0x884   :  { %3511 = vrot.lane.b32.xlu0 %v8723_v34, %s8396_s9 }
 0x8a9   :  { %3006 = vadd.xlane.f32.xlu2 %v3005_v21 }
 0x8ae   :  { %2979 = vadd.xlane.f32.xlu0 %v2978_v30  ;;  %v10117_v30 = vpop.eup %8051 }
 0x8b3   :  { %v2914_v45 = vpop.xlane.xlu2 %2913 }
 0x8b4   :  { %v2940_v21 = vsub.f32 %v10020_v2, %v2914_v45 }
 0x8b6   :  { %2985 = vadd.xlane.f32.xlu0 %v2984_v38  ;;  %v2966_v8 = vmul.f32 1.442695, %v2940_v21  ;;  %v2987_v38 = vsel %vm618_vm1, %v10117_v30, 0.0 }
 0x8bb   :  { %v3130_v5 = vpop.permute.xlu2 %3129  ;;  %v2917_v56 = vpop.xlane.xlu0 %2916 }
 0x8bc   :  { %v2941_v62 = vsub.f32 %v10029_v3, %v2917_v56  ;;  %3142 = vmatpush.bf16.msrb.mxu2 %v3130_v5  ;;  %v10129_v5 = vadd.f32 %v9957_v12, %v10046_v35  ;;  %v10141_v35 = vadd.f32 %v9957_v12, %v10061_v25 }
 0x8be   :  { %v2968_v41 = vmul.f32 1.442695, %v2941_v62  ;;  %3003 = vadd.xlane.f32.xlu0 %v3002_v22  ;;  %v2897_v62 = vsel %vm618_vm1, %v10129_v5, -inf  ;;  %v10137_v22 = vadd.f32 %v9928_v59, %v10057_v1  ;;  %v2903_v59 = vsel %vm618_vm1, %v10141_v35, -inf  ;;  %v2879_v1 = vpop.f32.mrf.mxu3 }
 0x8bf   :  { %v10150_v25 = vadd.f32 %v9957_v12, %v2879_v1 }
 0x8c0   :  { %8053 = vpow2.f32 %v2968_v41 }
 0x8c1   :  { %8055 = vpow2.f32 %v2966_v8 }
 0x8c3   :  { %v3180_v58 = vpop.permute.xlu2 %3179 }
 0x8c4   :  { %3192 = vmatpush.bf16.msrb.mxu0 %v3180_v58 }
 0x8c6   :  { %v10121_v2 = vpop.eup %8053  ;;  %2988 = vadd.xlane.f32.xlu0 %v2987_v38  ;;  %v2918_v38 = vsel %vm618_vm1, %v10137_v22, -inf }
 0x8c7   :  { %v3011_v3 = vsel %vm618_vm1, %v10121_v2, 0.0  ;;  %v10125_v45 = vpop.eup %8055 }
 0x8c8   :  { %3012 = vadd.xlane.f32.xlu2 %v3011_v3  ;;  %v3008_v56 = vsel %vm618_vm1, %v10125_v45, 0.0 }
 0x8ca   :  { %v2896_v26 = vpop.xlane.xlu1 %2895 }
 0x8cb   :  { %v2934_v3 = vsub.f32 %v10040_v40, %v2896_v26  ;;  %v2927_v26 = vsel %vm618_vm1, %v10150_v25, -inf }
 0x8ce   :  { %3009 = vadd.xlane.f32.xlu0 %v3008_v56  ;;  %v3105_v21 = vpop.permute.xlu0 %3104 }
 0x8cf   :  { %3117 = vmatpush.bf16.msra.mxu1 %v3105_v21 }
 0x8d0   :  { %2898 = vmax.xlane.f32.xlu2 %v2897_v62 }
 0x8d2   :  { %v2902_v41 = vpop.xlane.xlu1 %2901 }
 0x8d3   :  { %3217 = vmatpush.bf16.msrb.mxu1 %v3205_v17  ;;  %v2936_v8 = vsub.f32 %v10049_v15, %v2902_v41  ;;  %v2954_v17 = vmul.f32 1.442695, %v2934_v3 }
 0x8d5   :  { %v2958_v58 = vmul.f32 1.442695, %v2936_v8  ;;  %v10166_v8 = vpop.permute.xlu2 %3487 }
 0x8d6   :  { %2919 = vmax.xlane.f32.xlu0 %v2918_v38  ;;  %v3230_v56 = vpop.permute.xlu0 %3229 }
 0x8d7   :  { %8057 = vpow2.f32 %v2958_v58  ;;  %3242 = vmatpush.bf16.msra.mxu2 %v3230_v56 }
 0x8d8   :  { %2904 = vmax.xlane.f32.xlu2 %v2903_v59  ;;  %8059 = vpow2.f32 %v2954_v17 }
 0x8dd   :  { %v10152_v15 = vpop.eup %8057  ;;  %v10172_v38 = vpop.permute.xlu2 %3437 }
 0x8de   :  { %v3440_v21 = vpop.permute.xlu0 %3439  ;;  %v2996_v40 = vsel %vm618_vm1, %v10152_v15, 0.0  ;;  %v10158_v62 = vpop.eup %8059 }
 0x8df   :  { %2997 = vadd.xlane.f32.xlu1 %v2996_v40  ;;  %v2990_v12 = vsel %vm618_vm1, %v10158_v62, 0.0  ;;  %v3445_v60 = vsel %vm618_vm1, %v3440_v21, 0 }
 0x8e0   :  { %2928 = vmax.xlane.f32.xlu2 %v2927_v26 }
 0x8e2   :  { %v10168_v58 = vpop.xlane.xlu1 %2922 }
 0x8e5   :  { %v3536_v17 = vpop.permute.xlu2 %3535 }
 0x8e6   :  { %v3255_v41 = vpop.permute.xlu0 %3254 }
 0x8e7   :  { %3267 = vmatpush.bf16.msra.mxu3 %v3255_v41 }
 0x8e8   :  { %2991 = vadd.xlane.f32.xlu2 %v2990_v12 }
 0x8ea   :  { %v2926_v3 = vpop.xlane.xlu1 %2925 }
 0x8eb   :  { %v2944_v59 = vsub.f32 %v10075_v36, %v2926_v3 }
 0x8ed   :  { %v2974_v1 = vmul.f32 1.442695, %v2944_v59  ;;  %v10181_v41 = vpop.permute.xlu2 %3461 }
 0x8ee   :  { %v10174_v56 = vpop.permute.xlu0 %3485 }
 0x8ef   :  { %8061 = vpow2.f32 %v2974_v1 }
 0x8f0   :  { %8063 = vrcp.f32 %v2983_v52 }
 0x8f5   :  { %v10179_v26 = vpop.eup %8061 }
 0x8f6   :  { %v10177_v40 = vpop.permute.xlu0 %3511  ;;  %v3020_v14 = vsel %vm618_vm1, %v10179_v26, 0.0  ;;  %v8064_v55 = vpop.eup %8063 }
 0x8f7   :  { %v3043_v50 = vmul.f32 %v8064_v55, %v10007_v42 }
 0x8f8   :  { %3509 = vrot.lane.b32.xlu1 %v8730_v46, %s8396_s9 }
 0x8f9   :  { %v3059_v3 = vpack.c.bf16 %v3043_v50, %v3043_v50 }
 0x8fb   :  { %v3077_v20 = vunpack.c.l.b16 %v3059_v3 }
 0x900   :  { %3581 = vrot.lane.b32.xlu2 %v8830_v23, %s8396_s9 }
 0x908   :  { %3557 = vrot.lane.b32.xlu2 %v8797_v48, %s8396_s9 }
 0x91c   :  { %v3007_v59 = vpop.xlane.xlu2 %3006 }
 0x921   :  { %v2980_v12 = vpop.xlane.xlu0 %2979 }
 0x922   :  { %8065 = vrcp.f32 %v2980_v12  ;;  %3021 = vadd.xlane.f32.xlu1 %v3020_v14 }
 0x923   :  { %8067 = vrcp.f32 %v3007_v59 }
 0x928   :  { %v8066_v36 = vpop.eup %8065 }
 0x929   :  { %v3042_v1 = vmul.f32 %v8066_v36, %v10096_v49  ;;  %v2986_v11 = vpop.xlane.xlu0 %2985  ;;  %v8068_v12 = vpop.eup %8067 }
 0x92a   :  { %v3051_v42 = vmul.f32 %v8068_v12, %v10092_v10  ;;  %v8367_v10 = vld [vmem:[%s11794_s2] sm:$0x3f] }
 0x92b   :  { %v3058_v52 = vpack.c.bf16 %v3042_v1, %v3042_v1  ;;  %v10197_v21 = vperm.slane %v8367_v10, 4 }
 0x92c   :  { %v3067_v55 = vpack.c.bf16 %v3051_v42, %v3051_v42 }
 0x92d   :  { %v3076_v54 = vunpack.c.l.b16 %v3058_v52  ;;  %v470_v42 = vadd.f32 %v9168_v16, %v10197_v21 }
 0x92f   :  { %v3078_v43 = vpack.c.b16 %v3077_v20, %v3076_v54  ;;  %v3177_v20 = vunpack.c.l.b16 %v3067_v55 }
 0x931   :  { %7166 = vmatmul.msk.bf16.vlgmr.msra.gmra.mxu0 %vm618_vm1, %v3078_v43  ;;  %v3004_v63 = vpop.xlane.xlu0 %3003 }
 0x932   :  { %3454 = vmatpush.bf16.xpose.msra.mxu0 %v3445_v60  ;;  %8069 = vrcp.f32 %v3004_v63 }
 0x933   :  { %8071 = vrcp.f32 %v2986_v11 }
 0x938   :  { %v8070_v50 = vpop.eup %8069 }
 0x939   :  { %v3050_v14 = vmul.f32 %v8070_v50, %v10109_v51  ;;  %v2989_v49 = vpop.xlane.xlu0 %2988  ;;  %v8072_v36 = vpop.eup %8071  ;;  %v3541_v51 = vsel %vm618_vm1, %v3536_v17, 0  ;;  %v11911_v50 = vld [vmem:[#allocation22_spill] sm:$0xff] }
 0x93a   :  { %8073 = vrcp.f32 %v2989_v49  ;;  %v3044_v43 = vmul.f32 %v8072_v36, %v10103_v53  ;;  %v472_v55 = vadd.f32 %v11911_v50, %v10197_v21 }
 0x93b   :  { %v3066_v3 = vpack.c.bf16 %v3050_v14, %v3050_v14  ;;  %3607 = vrot.lane.b32.xlu1 %v8850_v61, %s8396_s9  ;;  %v3013_v54 = vpop.xlane.xlu2 %3012 }
 0x93c   :  { %v3060_v59 = vpack.c.bf16 %v3044_v43, %v3044_v43  ;;  %v3419_v43 = vpack.c.bf16 %v472_v55, %v472_v55 }
 0x93d   :  { %v3176_v60 = vunpack.c.l.b16 %v3066_v3 }
 0x93e   :  { %v3101_v17 = vunpack.c.l.b16 %v3060_v59 }
 0x93f   :  { %v3178_v63 = vpack.c.b16 %v3177_v20, %v3176_v60  ;;  %v3418_v20 = vpack.c.bf16 %v470_v42, %v470_v42  ;;  %v3469_v60 = vsel %vm618_vm1, %v10101_v37, 0 }
 0x940   :  { %v8074_v11 = vpop.eup %8073 }
 0x941   :  { %v3045_v1 = vmul.f32 %v8074_v11, %v10117_v30  ;;  %7170 = vmatmul.msk.bf16.vlgmr.msrb.gmra.mxu0 %vm618_vm1, %v3178_v63  ;;  %v3010_v52 = vpop.xlane.xlu0 %3009  ;;  %v3828_v10 = vunpack.c.l.b16 %v3418_v20 }
 0x942   :  { %3550 = vmatpush.bf16.xpose.msrb.mxu0 %v3541_v51  ;;  %8075 = vrcp.f32 %v3010_v52  ;;  %v3829_v51 = vunpack.c.l.b16 %v3419_v43 }
 0x943   :  { %v3061_v53 = vpack.c.bf16 %v3045_v1, %v3045_v1  ;;  %v2899_v12 = vpop.xlane.xlu2 %2898  ;;  %8077 = vrcp.f32 %v3013_v54 }
 0x944   :  { %v2935_v14 = vsub.f32 %v10129_v5, %v2899_v12  ;;  %v10215_v42 = vpack.c.b16 %v3829_v51, %v3828_v10 }
 0x945   :  { %v3102_v49 = vunpack.c.l.b16 %v3061_v53 }
 0x946   :  { %v2956_v36 = vmul.f32 1.442695, %v2935_v14 }
 0x947   :  { %v3103_v30 = vpack.c.b16 %v3102_v49, %v3101_v17 }
 0x948   :  { %v8076_v3 = vpop.eup %8075  ;;  %8079 = vpow2.f32 %v2956_v36 }
 0x949   :  { %7167 = vmatmul.msk.bf16.vlgmr.msra.gmra.mxu1 %vm618_vm1, %v3103_v30  ;;  %v2920_v16 = vpop.xlane.xlu0 %2919  ;;  %v8078_v63 = vpop.eup %8077  ;;  %v3052_v5 = vmul.f32 %v8076_v3, %v10125_v45 }
 0x94a   :  { %3478 = vmatpush.bf16.xpose.msra.mxu1 %v3469_v60  ;;  %v2942_v54 = vsub.f32 %v10137_v22, %v2920_v16  ;;  %v3053_v1 = vmul.f32 %v8078_v63, %v10121_v2 }
 0x94b   :  { %v2905_v11 = vpop.xlane.xlu2 %2904  ;;  %v3068_v37 = vpack.c.bf16 %v3052_v5, %v3052_v5 }
 0x94c   :  { %v2970_v59 = vmul.f32 1.442695, %v2942_v54  ;;  %v2937_v53 = vsub.f32 %v10141_v35, %v2905_v11  ;;  %v3069_v50 = vpack.c.bf16 %v3053_v1, %v3053_v1  ;;  %v2943_v35 = vsub.f32 %v10066_v4, %v10168_v58  ;;  %v11912_v4 = vld [vmem:[#allocation13_spill] sm:$0xff] }
 0x94d   :  { %v3201_v22 = vunpack.c.l.b16 %v3068_v37 }
 0x94e   :  { %v8080_v52 = vpop.eup %8079  ;;  %8081 = vpow2.f32 %v2970_v59  ;;  %v2960_v45 = vmul.f32 1.442695, %v2937_v53  ;;  %v3202_v2 = vunpack.c.l.b16 %v3069_v50  ;;  %v2972_v49 = vmul.f32 1.442695, %v2943_v35 }
 0x94f   :  { %v2993_v12 = vsel %vm618_vm1, %v8080_v52, 0.0 }
 0x950   :  { %2994 = vadd.xlane.f32.xlu0 %v2993_v12  ;;  %8083 = vpow2.f32 %v2960_v45  ;;  %v3203_v14 = vpack.c.b16 %v3202_v2, %v3201_v22  ;;  %v10259_v45 = vld [vmem:[%s11795_s3 + $0x40] sm:$0xff] }
 0x951   :  { %7192 = vmatmul.msk.bf16.vlgmr.msra.gmra.mxu0 %vm618_vm1, %v10172_v38  ;;  %8085 = vpow2.f32 %v2972_v49 }
 0x952   :  { %3842 = vmatpush.bf16.msra.mxu0 %v10215_v42  ;;  %v2998_v53 = vpop.xlane.xlu1 %2997 }
 0x953   :  { %v2929_v58 = vpop.xlane.xlu2 %2928 }
 0x954   :  { %v10220_v55 = vpop.eup %8081  ;;  %v2945_v20 = vsub.f32 %v10150_v25, %v2929_v58 }
 0x955   :  { %v3014_v17 = vsel %vm618_vm1, %v10220_v55, 0.0 }
 0x956   :  { %v8084_v38 = vpop.eup %8083  ;;  %v2976_v43 = vmul.f32 1.442695, %v2945_v20  ;;  %v10274_v20 = vld [vmem:[%s11795_s3 + $0x48] sm:$0xff] }
 0x957   :  { %v2999_v36 = vsel %vm618_vm1, %v8084_v38, 0.0  ;;  %v10228_v30 = vpop.eup %8085 }
 0x958   :  { %3015 = vadd.xlane.f32.xlu0 %v3014_v17  ;;  %v3017_v3 = vsel %vm618_vm1, %v10228_v30, 0.0  ;;  %8087 = vpow2.f32 %v2976_v43 }
 0x959   :  { %7171 = vmatmul.msk.bf16.vlgmr.msrb.gmra.mxu1 %vm618_vm1, %v3203_v14 }
 0x95e   :  { %v10237_v60 = vpop.eup %8087 }
 0x95f   :  { %v3023_v16 = vsel %vm618_vm1, %v10237_v60, 0.0 }
 0x960   :  { %3000 = vadd.xlane.f32.xlu0 %v2999_v36  ;;  %v3493_v36 = vsel %vm618_vm1, %v10166_v8, 0 }
 0x968   :  { %3018 = vadd.xlane.f32.xlu0 %v3017_v3 }
 0x969   :  { %7193 = vmatmul.msk.bf16.vlgmr.msra.gmra.mxu1 %vm618_vm1, %v10181_v41  ;;  %v2992_v41 = vpop.xlane.xlu2 %2991 }
 0x96a   :  { %8089 = vrcp.f32 %v2992_v41 }
 0x970   :  { %v8090_v11 = vpop.eup %8089 }
 0x971   :  { %v3046_v59 = vmul.f32 %v8090_v11, %v10158_v62 }
 0x973   :  { %v3062_v37 = vpack.c.bf16 %v3046_v59, %v3046_v59 }
 0x975   :  { %v3126_v14 = vunpack.c.l.b16 %v3062_v37 }
 0x97c   :  { %3533 = vrot.lane.b32.xlu0 %v11912_v4, %s8396_s9 }
 0x9a6   :  { %3024 = vadd.xlane.f32.xlu0 %v3023_v16 }
 0x9ae   :  { %v10241_v63 = vpop.f32.mrf.mxu0 }
 0x9af   :  { %11913 = vst [vmem:[#allocation22_spill] sm:$0xff] %v10241_v63 }
 0x9b6   :  { %v10243_v54 = vpop.f32.mrf.mxu0 }
 0x9ba   :  { %3559 = vrot.lane.b32.xlu0 %v8777_v18, %s8396_s9 }
 0x9be   :  { %v10247_v5 = vpop.f32.mrf.mxu0 }
 0x9bf   :  { %11914 = vst [vmem:[#allocation13_spill] sm:$0xff] %v10247_v5 }
 0x9c2   :  { %3605 = vrot.lane.b32.xlu0 %v8860_v47, %s8396_s9 }
 0x9c3   :  { %v2995_v25 = vpop.xlane.xlu0 %2994 }
 0x9c4   :  { %8091 = vrcp.f32 %v2995_v25 }
 0x9c5   :  { %8093 = vrcp.f32 %v2998_v53 }
 0x9c6   :  { %v10251_v10 = vpop.f32.mrf.mxu1  ;;  %v10253_v51 = vpop.f32.mrf.mxu0 }
 0x9c7   :  { %11915 = vst [vmem:[#allocation86_spill] sm:$0xff] %v10251_v10 }
 0x9c8   :  { %11916 = vst [vmem:[#allocation87_spill] sm:$0xff] %v10253_v51 }
 0x9ca   :  { %v8092_v1 = vpop.eup %8091 }
 0x9cb   :  { %v3047_v12 = vmul.f32 %v8092_v1, %v8080_v52  ;;  %v3016_v50 = vpop.xlane.xlu0 %3015  ;;  %v8094_v58 = vpop.eup %8093 }
 0x9cc   :  { %v3048_v41 = vmul.f32 %v8094_v58, %v10152_v15 }
 0x9cd   :  { %v3063_v22 = vpack.c.bf16 %v3047_v12, %v3047_v12 }
 0x9ce   :  { %v10261_v2 = vpop.f32.mrf.mxu1  ;;  %v3456_v35 = vpop.f32.mrf.mxu0  ;;  %v3064_v59 = vpack.c.bf16 %v3048_v41, %v3048_v41 }
 0x9cf   :  { %11917 = vst [vmem:[#allocation88_spill] sm:$0xff] %v10261_v2  ;;  %v3127_v17 = vunpack.c.l.b16 %v3063_v22  ;;  %v10264_v49 = vadd.f32 %v10259_v45, %v3456_v35 }
 0x9d0   :  { %v3151_v22 = vunpack.c.l.b16 %v3064_v59 }
 0x9d1   :  { %v3128_v62 = vpack.c.b16 %v3127_v17, %v3126_v14  ;;  %v3629_v52 = vsel %vm618_vm1, %v10264_v49, -inf }
 0x9d2   :  { %3630 = vmax.xlane.f32.xlu1 %v3629_v52 }
 0x9d3   :  { %7168 = vmatmul.msk.bf16.vlgmr.msrb.gmra.mxu2 %vm618_vm1, %v3128_v62  ;;  %v3001_v3 = vpop.xlane.xlu0 %3000  ;;  %v11920_v62 = vld [vmem:[#allocation36_spill] sm:$0xff] }
 0x9d4   :  { %3502 = vmatpush.bf16.xpose.msrb.mxu2 %v3493_v36  ;;  %8095 = vrcp.f32 %v3001_v3  ;;  %v490_v52 = vadd.f32 %v11920_v62, %v10197_v21  ;;  %v11921_v36 = vld [vmem:[#allocation38_spill] sm:$0xff] }
 0x9d5   :  { %8097 = vrcp.f32 %v3016_v50  ;;  %v492_v3 = vadd.f32 %v11921_v36, %v10197_v21 }
 0x9d6   :  { %v10276_v43 = vpop.f32.mrf.mxu1  ;;  %v3458_v16 = vpop.f32.mrf.mxu0 }
 0x9d7   :  { %11918 = vst [vmem:[#allocation89_spill] sm:$0xff] %v10276_v43  ;;  %v10280_v25 = vadd.f32 %v10274_v20, %v3458_v16 }
 0x9d9   :  { %v3632_v8 = vsel %vm618_vm1, %v10280_v25, -inf }
 0x9da   :  { %v8096_v11 = vpop.eup %8095  ;;  %3633 = vmax.xlane.f32.xlu2 %v3632_v8  ;;  %v3427_v8 = vpack.c.bf16 %v492_v3, %v492_v3 }
 0x9db   :  { %v3049_v1 = vmul.f32 %v8096_v11, %v8084_v38  ;;  %v3019_v53 = vpop.xlane.xlu0 %3018  ;;  %v8098_v37 = vpop.eup %8097  ;;  %v3517_v38 = vsel %vm618_vm1, %v10177_v40, 0 }
 0x9dc   :  { %8099 = vrcp.f32 %v3019_v53  ;;  %v3054_v35 = vmul.f32 %v8098_v37, %v10220_v55  ;;  %v3426_v55 = vpack.c.bf16 %v490_v52, %v490_v52 }
 0x9dd   :  { %v3065_v12 = vpack.c.bf16 %v3049_v1, %v3049_v1 }
 0x9de   :  { %v10284_v50 = vpop.f32.mrf.mxu1  ;;  %v3070_v58 = vpack.c.bf16 %v3054_v35, %v3054_v35  ;;  %v3940_v40 = vunpack.c.l.b16 %v3426_v55  ;;  %v11922_v35 = vld [vmem:[#allocation28_spill] sm:$0xff] }
 0x9df   :  { %11919 = vst [vmem:[#allocation90_spill] sm:$0xff] %v10284_v50  ;;  %v3152_v15 = vunpack.c.l.b16 %v3065_v12 }
 0x9e0   :  { %v3226_v59 = vunpack.c.l.b16 %v3070_v58 }
 0x9e1   :  { %v3153_v14 = vpack.c.b16 %v3152_v15, %v3151_v22  ;;  %v3941_v22 = vunpack.c.l.b16 %v3427_v8  ;;  %v480_v15 = vadd.f32 %v11922_v35, %v10197_v21  ;;  %v11924_v8 = vld [vmem:[#allocation44_spill] sm:$0xff] }
 0x9e2   :  { %v8100_v17 = vpop.eup %8099 }
 0x9e3   :  { %v3055_v16 = vmul.f32 %v8100_v17, %v10228_v30  ;;  %7169 = vmatmul.msk.bf16.vlgmr.msrb.gmra.mxu3 %vm618_vm1, %v3153_v14  ;;  %v3589_v30 = vsel %vm618_vm1, %v10111_v27, 0  ;;  %v11923_v14 = vld [vmem:[#allocation30_spill] sm:$0xff]  ;;  %v10307_v62 = vpack.c.b16 %v3941_v22, %v3940_v40 }
 0x9e4   :  { %3526 = vmatpush.bf16.xpose.msrb.mxu3 %v3517_v38  ;;  %v482_v17 = vadd.f32 %v11923_v14, %v10197_v21  ;;  %v3422_v38 = vpack.c.bf16 %v480_v15, %v480_v15 }
 0x9e5   :  { %v3071_v41 = vpack.c.bf16 %v3055_v16, %v3055_v16 }
 0x9e6   :  { %v3480_v11 = vpop.f32.mrf.mxu1  ;;  %v3423_v58 = vpack.c.bf16 %v482_v17, %v482_v17  ;;  %v3884_v16 = vunpack.c.l.b16 %v3422_v38 }
 0x9e7   :  { %v3227_v1 = vunpack.c.l.b16 %v3071_v41  ;;  %v10296_v53 = vadd.f32 %v10259_v45, %v3480_v11  ;;  %v500_v11 = vadd.f32 %v11924_v8, %v10197_v21 }
 0x9e8   :  { %v3885_v41 = vunpack.c.l.b16 %v3423_v58  ;;  %v11927_v58 = vld [vmem:[#allocation26_spill] sm:$0xff] }
 0x9e9   :  { %v3228_v37 = vpack.c.b16 %v3227_v1, %v3226_v59  ;;  %v3635_v12 = vsel %vm618_vm1, %v10296_v53, -inf  ;;  %v11925_v59 = vld [vmem:[#allocation46_spill] sm:$0xff] }
 0x9ea   :  { %3636 = vmax.xlane.f32.xlu2 %v3635_v12  ;;  %v10316_v55 = vpack.c.b16 %v3885_v41, %v3884_v16  ;;  %v502_v1 = vadd.f32 %v11925_v59, %v10197_v21  ;;  %v477_v16 = vadd.f32 %v11927_v58, %v10197_v21 }
 0x9eb   :  { %7172 = vmatmul.msk.bf16.vlgmr.msra.gmra.mxu2 %vm618_vm1, %v3228_v37  ;;  %v3430_v37 = vpack.c.bf16 %v500_v11, %v500_v11 }
 0x9ec   :  { %3598 = vmatpush.bf16.xpose.msra.mxu2 %v3589_v30  ;;  %v3431_v12 = vpack.c.bf16 %v502_v1, %v502_v1  ;;  %v3510_v30 = vpop.permute.xlu1 %3509  ;;  %v3421_v1 = vpack.c.bf16 %v477_v16, %v477_v16 }
 0x9ed   :  { %v3996_v40 = vunpack.c.l.b16 %v3430_v37 }
 0x9ee   :  { %v3482_v52 = vpop.f32.mrf.mxu1  ;;  %v3534_v36 = vpop.permute.xlu0 %3533  ;;  %v3997_v22 = vunpack.c.l.b16 %v3431_v12 }
 0x9ef   :  { %v10310_v3 = vadd.f32 %v10274_v20, %v3482_v52  ;;  %7196 = vmatmul.msk.bf16.vlgmr.msrb.gmra.mxu0 %vm618_vm1, %v3534_v36 }
 0x9f0   :  { %3954 = vmatpush.bf16.msrb.mxu0 %v10307_v62  ;;  %v10327_v35 = vpack.c.b16 %v3997_v22, %v3996_v40 }
 0x9f1   :  { %v3638_v27 = vsel %vm618_vm1, %v10310_v3, -inf }
 0x9f2   :  { %3639 = vmax.xlane.f32.xlu0 %v3638_v27  ;;  %v11926_v27 = vld [vmem:[#allocation24_spill] sm:$0xff] }
 0x9f3   :  { %v475_v38 = vadd.f32 %v11926_v27, %v10197_v21  ;;  %v3857_v27 = vunpack.c.l.b16 %v3421_v1 }
 0x9f4   :  { %v3022_v15 = vpop.xlane.xlu1 %3021 }
 0x9f5   :  { %8101 = vrcp.f32 %v3022_v15  ;;  %v3420_v59 = vpack.c.bf16 %v475_v38, %v475_v38  ;;  %v11929_v15 = vld [vmem:[#allocation42_spill] sm:$0xff] }
 0x9fb   :  { %7194 = vmatmul.msk.bf16.vlgmr.msrb.gmra.mxu2 %vm618_vm1, %v10174_v56  ;;  %v3582_v56 = vpop.permute.xlu2 %3581  ;;  %v8102_v17 = vpop.eup %8101 }
 0x9fc   :  { %3898 = vmatpush.bf16.msrb.mxu2 %v10316_v55  ;;  %v3056_v52 = vmul.f32 %v8102_v17, %v10179_v26  ;;  %v3608_v40 = vpop.permute.xlu1 %3607  ;;  %v3856_v17 = vunpack.c.l.b16 %v3420_v59 }
 0x9fd   :  { %v3613_v58 = vsel %vm618_vm1, %v3608_v40, 0 }
 0x9fe   :  { %v3072_v41 = vpack.c.bf16 %v3056_v52, %v3056_v52 }
 0xa00   :  { %v3251_v37 = vunpack.c.l.b16 %v3072_v41 }
 0xa06   :  { %4082 = vrot.lane.b32.xlu0 %v8657_v9, %s8399_s27 }
 0xa0b   :  { %7198 = vmatmul.msk.bf16.vlgmr.msra.gmra.mxu2 %vm618_vm1, %v3582_v56  ;;  %v11928_v56 = vld [vmem:[#allocation40_spill] sm:$0xff] }
 0xa0c   :  { %4010 = vmatpush.bf16.msra.mxu2 %v10327_v35  ;;  %v495_v26 = vadd.f32 %v11928_v56, %v10197_v21 }
 0xa0e   :  { %4106 = vrot.lane.b32.xlu0 %v8679_v32, %s8399_s27  ;;  %v3428_v16 = vpack.c.bf16 %v495_v26, %v495_v26 }
 0xa19   :  { %v3025_v14 = vpop.xlane.xlu0 %3024 }
 0xa1a   :  { %8103 = vrcp.f32 %v3025_v14  ;;  %v497_v14 = vadd.f32 %v11929_v15, %v10197_v21 }
 0xa1c   :  { %v3429_v41 = vpack.c.bf16 %v497_v14, %v497_v14  ;;  %v11932_v14 = vld [vmem:[#allocation48_spill] sm:$0xff] }
 0xa1e   :  { %v3969_v40 = vunpack.c.l.b16 %v3429_v41 }
 0xa20   :  { %v8104_v36 = vpop.eup %8103 }
 0xa21   :  { %v3057_v8 = vmul.f32 %v8104_v36, %v10237_v60  ;;  %v11930_v60 = vld [vmem:[#allocation32_spill] sm:$0xff]  ;;  %v11931_v36 = vld [vmem:[#allocation34_spill] sm:$0xff] }
 0xa22   :  { %v485_v52 = vadd.f32 %v11930_v60, %v10197_v21  ;;  %v487_v38 = vadd.f32 %v11931_v36, %v10197_v21 }
 0xa23   :  { %v3073_v11 = vpack.c.bf16 %v3057_v8, %v3057_v8 }
 0xa24   :  { %v3424_v59 = vpack.c.bf16 %v485_v52, %v485_v52  ;;  %v3425_v1 = vpack.c.bf16 %v487_v38, %v487_v38 }
 0xa25   :  { %v3252_v12 = vunpack.c.l.b16 %v3073_v11  ;;  %v10349_v11 = vpack.c.b16 %v3857_v27, %v3856_v17  ;;  %v505_v17 = vadd.f32 %v11932_v14, %v10197_v21  ;;  %v11933_v27 = vld [vmem:[#allocation50_spill] sm:$0xff] }
 0xa26   :  { %v3913_v56 = vunpack.c.l.b16 %v3425_v1  ;;  %v507_v60 = vadd.f32 %v11933_v27, %v10197_v21 }
 0xa27   :  { %v3253_v22 = vpack.c.b16 %v3252_v12, %v3251_v37  ;;  %v3968_v12 = vunpack.c.l.b16 %v3428_v16  ;;  %v3432_v52 = vpack.c.bf16 %v505_v17, %v505_v17 }
 0xa28   :  { %v3433_v36 = vpack.c.bf16 %v507_v60, %v507_v60 }
 0xa29   :  { %7173 = vmatmul.msk.bf16.vlgmr.msra.gmra.mxu3 %vm618_vm1, %v3253_v22  ;;  %v3912_v22 = vunpack.c.l.b16 %v3424_v59  ;;  %v10353_v15 = vpack.c.b16 %v3969_v40, %v3968_v12  ;;  %v4024_v38 = vunpack.c.l.b16 %v3432_v52 }
 0xa2a   :  { %3622 = vmatpush.bf16.xpose.msra.mxu3 %v3613_v58  ;;  %v3558_v58 = vpop.permute.xlu2 %3557  ;;  %v4025_v16 = vunpack.c.l.b16 %v3433_v36 }
 0xa2b   :  { %v10357_v26 = vpack.c.b16 %v3913_v56, %v3912_v22 }
 0xa2c   :  { %v3560_v8 = vpop.permute.xlu0 %3559  ;;  %v10365_v41 = vpack.c.b16 %v4025_v16, %v4024_v38 }
 0xa2d   :  { %v3565_v37 = vsel %vm618_vm1, %v3560_v8, 0 }
 0xa2e   :  { %3574 = vmatpush.bf16.xpose.msrb.mxu1 %v3565_v37 }
 0xa34   :  { %v3606_v8 = vpop.permute.xlu0 %3605 }
 0xa35   :  { %7197 = vmatmul.msk.bf16.vlgmr.msrb.gmra.mxu1 %vm618_vm1, %v3558_v58 }
 0xa36   :  { %3870 = vmatpush.bf16.msra.mxu1 %v10349_v11 }
 0xa39   :  { %7195 = vmatmul.msk.bf16.vlgmr.msrb.gmra.mxu3 %vm618_vm1, %v3510_v30 }
 0xa3a   :  { %3982 = vmatpush.bf16.msrb.mxu1 %v10353_v15  ;;  %3926 = vmatpush.bf16.msrb.mxu3 %v10357_v26 }
 0xa49   :  { %7199 = vmatmul.msk.bf16.vlgmr.msra.gmra.mxu3 %vm618_vm1, %v3606_v8 }
 0xa4a   :  { %4038 = vmatpush.bf16.msra.mxu3 %v10365_v41 }
 0xa4d   :  { %v3634_v30 = vpop.xlane.xlu2 %3633 }
 0xa4e   :  { %v3678_v37 = vsub.f32 %v10280_v25, %v3634_v30 }
 0xa50   :  { %v3695_v59 = vmul.f32 1.442695, %v3678_v37 }
 0xa52   :  { %8105 = vpow2.f32 %v3695_v59 }
 0xa56   :  { %v10389_v37 = vpop.f32.mrf.mxu2 }
 0xa57   :  { %11934 = vst [vmem:[#allocation36_spill] sm:$0xff] %v10389_v37 }
 0xa58   :  { %v10370_v1 = vpop.eup %8105 }
 0xa59   :  { %v3728_v21 = vsel %vm618_vm1, %v10370_v1, 0.0 }
 0xa5a   :  { %3729 = vadd.xlane.f32.xlu0 %v3728_v21 }
 0xa5d   :  { %v3637_v12 = vpop.xlane.xlu2 %3636 }
 0xa5e   :  { %v3679_v40 = vsub.f32 %v10296_v53, %v3637_v12  ;;  %v10397_v21 = vpop.f32.mrf.mxu2 }
 0xa5f   :  { %11936 = vst [vmem:[#allocation28_spill] sm:$0xff] %v10397_v21 }
 0xa60   :  { %v3697_v22 = vmul.f32 1.442695, %v3679_v40 }
 0xa62   :  { %8107 = vpow2.f32 %v3697_v22 }
 0xa66   :  { %v10395_v59 = vpop.f32.mrf.mxu3 }
 0xa67   :  { %11935 = vst [vmem:[#allocation38_spill] sm:$0xff] %v10395_v59 }
 0xa68   :  { %v10375_v56 = vpop.eup %8107 }
 0xa69   :  { %v3731_v58 = vsel %vm618_vm1, %v10375_v56, 0.0 }
 0xa6a   :  { %3732 = vadd.xlane.f32.xlu0 %v3731_v58 }
 0xa6c   :  { %v3552_v25 = vpop.f32.mrf.mxu0 }
 0xa6d   :  { %v3553_v14 = vadd.f32 %v10259_v45, %v3552_v25  ;;  %v3640_v25 = vpop.xlane.xlu0 %3639 }
 0xa6e   :  { %v10401_v12 = vpop.f32.mrf.mxu3  ;;  %v10403_v40 = vpop.f32.mrf.mxu2 }
 0xa6f   :  { %v3653_v17 = vsel %vm618_vm1, %v3553_v14, -inf  ;;  %11937 = vst [vmem:[#allocation30_spill] sm:$0xff] %v10401_v12 }
 0xa70   :  { %3654 = vmax.xlane.f32.xlu1 %v3653_v17  ;;  %11938 = vst [vmem:[#allocation44_spill] sm:$0xff] %v10403_v40 }
 0xa74   :  { %v3554_v27 = vpop.f32.mrf.mxu0 }
 0xa75   :  { %v3555_v60 = vadd.f32 %v10274_v20, %v3554_v27 }
 0xa76   :  { %v10407_v27 = vpop.f32.mrf.mxu2 }
 0xa77   :  { %v3656_v52 = vsel %vm618_vm1, %v3555_v60, -inf  ;;  %11940 = vst [vmem:[#allocation24_spill] sm:$0xff] %v10407_v27 }
 0xa78   :  { %3657 = vmax.xlane.f32.xlu2 %v3656_v52 }
 0xa7e   :  { %v3504_v40 = vpop.f32.mrf.mxu2 }
 0xaac   :  { %v10405_v22 = vpop.f32.mrf.mxu3 }
 0xaad   :  { %11939 = vst [vmem:[#allocation46_spill] sm:$0xff] %v10405_v22 }
 0xab2   :  { %v3576_v53 = vpop.f32.mrf.mxu1 }
 0xab3   :  { %v3577_v36 = vadd.f32 %v10259_v45, %v3576_v53  ;;  %v3680_v53 = vsub.f32 %v10310_v3, %v3640_v25 }
 0xab4   :  { %v10411_v43 = vpop.f32.mrf.mxu3 }
 0xab5   :  { %v3659_v38 = vsel %vm618_vm1, %v3577_v36, -inf  ;;  %11941 = vst [vmem:[#allocation26_spill] sm:$0xff] %v10411_v43 }
 0xab6   :  { %3660 = vmax.xlane.f32.xlu1 %v3659_v38  ;;  %v3631_v38 = vpop.xlane.xlu1 %3630 }
 0xaba   :  { %v3578_v16 = vpop.f32.mrf.mxu1 }
 0xabb   :  { %v3579_v8 = vadd.f32 %v10274_v20, %v3578_v16  ;;  %v3699_v16 = vmul.f32 1.442695, %v3680_v53 }
 0xabc   :  { %v3528_v25 = vpop.f32.mrf.mxu3 }
 0xabd   :  { %v3662_v30 = vsel %vm618_vm1, %v3579_v8, -inf }
 0xabe   :  { %3663 = vmax.xlane.f32.xlu2 %v3662_v30  ;;  %v3677_v30 = vsub.f32 %v10264_v49, %v3631_v38 }
 0xacf   :  { %4080 = vrot.lane.b32.xlu1 %v8668_v19, %s8399_s27 }
 0xad6   :  { %4130 = vrot.lane.b32.xlu2 %v8699_v6, %s8399_s27 }
 0xad7   :  { %4128 = vrot.lane.b32.xlu1 %v8701_v7, %s8399_s27 }
 0xade   :  { %4178 = vrot.lane.b32.xlu2 %v8741_v13, %s8399_s27 }
 0xaeb   :  { %v3658_v58 = vpop.xlane.xlu2 %3657 }
 0xaec   :  { %v3686_v17 = vsub.f32 %v3555_v60, %v3658_v58  ;;  %v3693_v60 = vmul.f32 1.442695, %v3677_v30  ;;  %v3655_v58 = vpop.xlane.xlu1 %3654  ;;  %v3530_v30 = vpop.f32.mrf.mxu3 }
 0xaed   :  { %v3685_v3 = vsub.f32 %v3553_v14, %v3655_v58  ;;  %v10433_v58 = vadd.f32 %v10274_v20, %v3530_v30 }
 0xaee   :  { %v3711_v52 = vmul.f32 1.442695, %v3686_v17 }
 0xaef   :  { %v3709_v53 = vmul.f32 1.442695, %v3685_v3 }
 0xaf0   :  { %8109 = vpow2.f32 %v3711_v52  ;;  %v3506_v52 = vpop.f32.mrf.mxu2 }
 0xaf1   :  { %8111 = vpow2.f32 %v3699_v16  ;;  %v10424_v16 = vadd.f32 %v10274_v20, %v3506_v52 }
 0xaf2   :  { %8113 = vpow2.f32 %v3693_v60 }
 0xaf3   :  { %8115 = vpow2.f32 %v3709_v53  ;;  %v3644_v14 = vsel %vm618_vm1, %v10424_v16, -inf }
 0xaf6   :  { %v10413_v50 = vpop.eup %8109 }
 0xaf7   :  { %v3752_v22 = vsel %vm618_vm1, %v10413_v50, 0.0  ;;  %v10417_v17 = vpop.eup %8111 }
 0xaf8   :  { %3753 = vadd.xlane.f32.xlu0 %v3752_v22  ;;  %v3734_v49 = vsel %vm618_vm1, %v10417_v17, 0.0  ;;  %v10421_v38 = vpop.eup %8113 }
 0xaf9   :  { %v3725_v22 = vsel %vm618_vm1, %v10421_v38, 0.0  ;;  %v10430_v60 = vpop.eup %8115 }
 0xafa   :  { %v3749_v3 = vsel %vm618_vm1, %v10430_v60, 0.0 }
 0xb01   :  { %3735 = vadd.xlane.f32.xlu1 %v3734_v49  ;;  %v3650_v49 = vsel %vm618_vm1, %v10433_v58, -inf }
 0xb07   :  { %3726 = vadd.xlane.f32.xlu2 %v3725_v22 }
 0xb09   :  { %3645 = vmax.xlane.f32.xlu1 %v3644_v14 }
 0xb0f   :  { %3750 = vadd.xlane.f32.xlu2 %v3749_v3  ;;  %v3600_v3 = vpop.f32.mrf.mxu2 }
 0xb11   :  { %3651 = vmax.xlane.f32.xlu1 %v3650_v49  ;;  %v10446_v49 = vadd.f32 %v10259_v45, %v3600_v3 }
 0xb17   :  { %v3602_v3 = vpop.f32.mrf.mxu2 }
 0xb29   :  { %v3661_v52 = vpop.xlane.xlu1 %3660 }
 0xb2a   :  { %v3687_v53 = vsub.f32 %v3577_v36, %v3661_v52  ;;  %4154 = vrot.lane.b32.xlu1 %v8723_v34, %s8399_s27 }
 0xb2c   :  { %v3713_v22 = vmul.f32 1.442695, %v3687_v53  ;;  %v3624_v53 = vpop.f32.mrf.mxu3 }
 0xb2e   :  { %8117 = vpow2.f32 %v3713_v22  ;;  %v10460_v22 = vadd.f32 %v10259_v45, %v3528_v25 }
 0xb31   :  { %v3664_v14 = vpop.xlane.xlu2 %3663 }
 0xb32   :  { %v3688_v43 = vsub.f32 %v3579_v8, %v3664_v14  ;;  %v3665_v8 = vsel %vm618_vm1, %v10446_v49, -inf }
 0xb34   :  { %v10441_v27 = vpop.eup %8117  ;;  %v3715_v30 = vmul.f32 1.442695, %v3688_v43  ;;  %v10455_v43 = vadd.f32 %v10259_v45, %v3504_v40  ;;  %v3626_v14 = vpop.f32.mrf.mxu3  ;;  %v10468_v40 = vadd.f32 %v10274_v20, %v3602_v3 }
 0xb35   :  { %v3755_v5 = vsel %vm618_vm1, %v10441_v27, 0.0 }
 0xb36   :  { %8119 = vpow2.f32 %v3715_v30  ;;  %3756 = vadd.xlane.f32.xlu2 %v3755_v5  ;;  %v3641_v5 = vsel %vm618_vm1, %v10455_v43, -inf  ;;  %v3647_v30 = vsel %vm618_vm1, %v10460_v22, -inf  ;;  %v3668_v25 = vsel %vm618_vm1, %v10468_v40, -inf }
 0xb39   :  { %v10483_v31 = vpop.permute.xlu2 %4130 }
 0xb3c   :  { %v10448_v36 = vpop.eup %8119 }
 0xb3d   :  { %v3758_v52 = vsel %vm618_vm1, %v10448_v36, 0.0 }
 0xb3e   :  { %3759 = vadd.xlane.f32.xlu0 %v3758_v52  ;;  %3666 = vmax.xlane.f32.xlu2 %v3665_v8  ;;  %v10465_v52 = vadd.f32 %v10274_v20, %v3626_v14  ;;  %v4083_v8 = vpop.permute.xlu0 %4082 }
 0xb40   :  { %v3674_v51 = vsel %vm618_vm1, %v10465_v52, -inf }
 0xb46   :  { %3642 = vmax.xlane.f32.xlu0 %v3641_v5  ;;  %v10477_v5 = vadd.f32 %v10259_v45, %v3624_v53  ;;  %v4107_v14 = vpop.permute.xlu0 %4106 }
 0xb48   :  { %v3671_v20 = vsel %vm618_vm1, %v10477_v5, -inf }
 0xb4e   :  { %3648 = vmax.xlane.f32.xlu0 %v3647_v30  ;;  %v10481_v30 = vpop.permute.xlu1 %4080  ;;  %v3730_v3 = vpop.xlane.xlu0 %3729 }
 0xb54   :  { %3675 = vmax.xlane.f32.xlu1 %v3674_v51 }
 0xb56   :  { %3669 = vmax.xlane.f32.xlu0 %v3668_v25  ;;  %4176 = vrot.lane.b32.xlu2 %v11912_v4, %s8399_s27  ;;  %v3733_v51 = vpop.xlane.xlu0 %3732  ;;  %v10485_v57 = vpop.permute.xlu1 %4128 }
 0xb57   :  { %8121 = vrcp.f32 %v3733_v51  ;;  %v4179_v25 = vpop.permute.xlu2 %4178 }
 0xb58   :  { %8123 = vrcp.f32 %v3730_v3 }
 0xb5d   :  { %v8122_v53 = vpop.eup %8121 }
 0xb5e   :  { %3672 = vmax.xlane.f32.xlu0 %v3671_v20  ;;  %v3791_v0 = vmul.f32 %v8122_v53, %v10375_v56  ;;  %v8124_v20 = vpop.eup %8123 }
 0xb5f   :  { %v3790_v21 = vmul.f32 %v8124_v20, %v10370_v1 }
 0xb60   :  { %v3807_v24 = vpack.c.bf16 %v3791_v0, %v3791_v0  ;;  %v4112_v0 = vsel %vm618_vm1, %v4107_v14, 0 }
 0xb62   :  { %v3851_v3 = vunpack.c.l.b16 %v3807_v24 }
 0xb6b   :  { %v3754_v56 = vpop.xlane.xlu0 %3753 }
 0xb72   :  { %4104 = vrot.lane.b32.xlu0 %v8689_v44, %s8399_s27 }
 0xb74   :  { %v3736_v45 = vpop.xlane.xlu1 %3735 }
 0xb75   :  { %8125 = vrcp.f32 %v3736_v45  ;;  %v3806_v45 = vpack.c.bf16 %v3790_v21, %v3790_v21 }
 0xb77   :  { %v3824_v24 = vunpack.c.l.b16 %v3806_v45 }
 0xb7a   :  { %v3727_v33 = vpop.xlane.xlu2 %3726 }
 0xb7b   :  { %v8126_v29 = vpop.eup %8125  ;;  %8127 = vrcp.f32 %v3727_v33 }
 0xb7c   :  { %v3792_v28 = vmul.f32 %v8126_v29, %v10417_v17  ;;  %v3646_v37 = vpop.xlane.xlu1 %3645 }
 0xb7d   :  { %v3682_v51 = vsub.f32 %v10424_v16, %v3646_v37 }
 0xb7e   :  { %v3808_v10 = vpack.c.bf16 %v3792_v28, %v3792_v28 }
 0xb7f   :  { %v3703_v2 = vmul.f32 1.442695, %v3682_v51 }
 0xb80   :  { %v3852_v59 = vunpack.c.l.b16 %v3808_v10 }
 0xb81   :  { %v8128_v12 = vpop.eup %8127  ;;  %8129 = vpow2.f32 %v3703_v2 }
 0xb82   :  { %v3853_v53 = vpack.c.b16 %v3852_v59, %v3851_v3  ;;  %v3789_v63 = vmul.f32 %v8128_v12, %v10421_v38  ;;  %v3751_v33 = vpop.xlane.xlu2 %3750 }
 0xb83   :  { %8131 = vrcp.f32 %v3751_v33 }
 0xb84   :  { %v3805_v29 = vpack.c.bf16 %v3789_v63, %v3789_v63  ;;  %v3652_v17 = vpop.xlane.xlu1 %3651  ;;  %7201 = vmatmul.msk.bf16.vlgmr.msra.gmra.mxu1 %vm618_vm1, %v3853_v53  ;;  %8133 = vrcp.f32 %v3754_v56  ;;  %v4088_v63 = vsel %vm618_vm1, %v4083_v8, 0  ;;  %v4184_v8 = vsel %vm618_vm1, %v4179_v25, 0 }
 0xb85   :  { %v3684_v28 = vsub.f32 %v10433_v58, %v3652_v17  ;;  %4121 = vmatpush.bf16.xpose.msra.mxu1 %v4112_v0 }
 0xb86   :  { %v3823_v10 = vunpack.c.l.b16 %v3805_v29 }
 0xb87   :  { %v10497_v2 = vpop.eup %8129  ;;  %v3707_v1 = vmul.f32 1.442695, %v3684_v28 }
 0xb88   :  { %v3825_v37 = vpack.c.b16 %v3824_v24, %v3823_v10  ;;  %v3740_v59 = vsel %vm618_vm1, %v10497_v2, 0.0 }
 0xb89   :  { %v8132_v21 = vpop.eup %8131  ;;  %8135 = vpow2.f32 %v3707_v1  ;;  %3741 = vadd.xlane.f32.xlu2 %v3740_v59 }
 0xb8a   :  { %7200 = vmatmul.msk.bf16.vlgmr.msra.gmra.mxu0 %vm618_vm1, %v3825_v37  ;;  %v8134_v12 = vpop.eup %8133  ;;  %v3797_v38 = vmul.f32 %v8132_v21, %v10430_v60 }
 0xb8b   :  { %4097 = vmatpush.bf16.xpose.msra.mxu0 %v4088_v63  ;;  %v3798_v16 = vmul.f32 %v8134_v12, %v10413_v50 }
 0xb8c   :  { %v3813_v14 = vpack.c.bf16 %v3797_v38, %v3797_v38 }
 0xb8d   :  { %v3814_v51 = vpack.c.bf16 %v3798_v16, %v3798_v16 }
 0xb8e   :  { %v3935_v3 = vunpack.c.l.b16 %v3813_v14 }
 0xb8f   :  { %v10505_v58 = vpop.eup %8135  ;;  %v3936_v45 = vunpack.c.l.b16 %v3814_v51 }
 0xb90   :  { %v3746_v20 = vsel %vm618_vm1, %v10505_v58, 0.0 }
 0xb91   :  { %3747 = vadd.xlane.f32.xlu2 %v3746_v20  ;;  %v3937_v56 = vpack.c.b16 %v3936_v45, %v3935_v3 }
 0xb9a   :  { %7204 = vmatmul.msk.bf16.vlgmr.msrb.gmra.mxu0 %vm618_vm1, %v3937_v56 }
 0xb9b   :  { %4193 = vmatpush.bf16.xpose.msrb.mxu0 %v4184_v8 }
 0xb9c   :  { %v10524_v12 = vpop.permute.xlu1 %4154 }
 0xba9   :  { %v3757_v53 = vpop.xlane.xlu2 %3756  ;;  %4202 = vrot.lane.b32.xlu2 %v8777_v18, %s8399_s27 }
 0xbaa   :  { %7226 = vmatmul.msk.bf16.vlgmr.msra.gmra.mxu0 %vm618_vm1, %v10481_v30  ;;  %8137 = vrcp.f32 %v3757_v53 }
 0xbb0   :  { %v8138_v33 = vpop.eup %8137 }
 0xbb1   :  { %v3667_v50 = vpop.xlane.xlu2 %3666  ;;  %v3760_v60 = vpop.xlane.xlu0 %3759  ;;  %v3799_v25 = vmul.f32 %v8138_v33, %v10441_v27 }
 0xbb2   :  { %v3689_v0 = vsub.f32 %v10446_v49, %v3667_v50  ;;  %8139 = vrcp.f32 %v3760_v60 }
 0xbb3   :  { %v3815_v28 = vpack.c.bf16 %v3799_v25, %v3799_v25 }
 0xbb4   :  { %v3717_v29 = vmul.f32 1.442695, %v3689_v0 }
 0xbb5   :  { %v3963_v49 = vunpack.c.l.b16 %v3815_v28 }
 0xbb6   :  { %8141 = vpow2.f32 %v3717_v29 }
 0xbb8   :  { %v8140_v17 = vpop.eup %8139 }
 0xbb9   :  { %v3800_v24 = vmul.f32 %v8140_v17, %v10448_v36  ;;  %v4177_v10 = vpop.permute.xlu2 %4176  ;;  %v3643_v1 = vpop.xlane.xlu0 %3642 }
 0xbba   :  { %v3681_v37 = vsub.f32 %v10455_v43, %v3643_v1  ;;  %7230 = vmatmul.msk.bf16.vlgmr.msrb.gmra.mxu0 %vm618_vm1, %v4177_v10 }
 0xbbb   :  { %v3816_v30 = vpack.c.bf16 %v3800_v24, %v3800_v24 }
 0xbbc   :  { %v10520_v59 = vpop.eup %8141  ;;  %v3701_v21 = vmul.f32 1.442695, %v3681_v37 }
 0xbbd   :  { %v3964_v63 = vunpack.c.l.b16 %v3816_v30  ;;  %v3761_v27 = vsel %vm618_vm1, %v10520_v59, 0.0 }
 0xbbe   :  { %8143 = vpow2.f32 %v3701_v21  ;;  %3762 = vadd.xlane.f32.xlu0 %v3761_v27 }
 0xbbf   :  { %v3965_v36 = vpack.c.b16 %v3964_v63, %v3963_v49 }
 0xbc1   :  { %7205 = vmatmul.msk.bf16.vlgmr.msrb.gmra.mxu1 %vm618_vm1, %v3965_v36  ;;  %v3649_v38 = vpop.xlane.xlu0 %3648  ;;  %v10571_v36 = vld [vmem:[%s11795_s3 + $0x58] sm:$0xff] }
 0xbc2   :  { %v3683_v43 = vsub.f32 %v10460_v22, %v3649_v38 }
 0xbc4   :  { %v8144_v16 = vpop.eup %8143  ;;  %v3705_v14 = vmul.f32 1.442695, %v3683_v43 }
 0xbc5   :  { %v3737_v20 = vsel %vm618_vm1, %v8144_v16, 0.0 }
 0xbc6   :  { %8145 = vpow2.f32 %v3705_v14  ;;  %3738 = vadd.xlane.f32.xlu1 %v3737_v20 }
 0xbc7   :  { %v3676_v51 = vpop.xlane.xlu1 %3675 }
 0xbc8   :  { %v3692_v3 = vsub.f32 %v10465_v52, %v3676_v51 }
 0xbc9   :  { %v3670_v45 = vpop.xlane.xlu0 %3669 }
 0xbca   :  { %v3723_v56 = vmul.f32 1.442695, %v3692_v3  ;;  %v3690_v8 = vsub.f32 %v10468_v40, %v3670_v45 }
 0xbcc   :  { %v10531_v53 = vpop.eup %8145  ;;  %8147 = vpow2.f32 %v3723_v56  ;;  %v3719_v50 = vmul.f32 1.442695, %v3690_v8 }
 0xbcd   :  { %v3743_v22 = vsel %vm618_vm1, %v10531_v53, 0.0 }
 0xbce   :  { %8149 = vpow2.f32 %v3719_v50  ;;  %3744 = vadd.xlane.f32.xlu1 %v3743_v22 }
 0xbd1   :  { %v3673_v0 = vpop.xlane.xlu0 %3672 }
 0xbd2   :  { %v10535_v60 = vpop.eup %8147  ;;  %4226 = vrot.lane.b32.xlu0 %v8814_v39, %s8399_s27  ;;  %v3691_v28 = vsub.f32 %v10477_v5, %v3673_v0 }
 0xbd3   :  { %v3770_v52 = vsel %vm618_vm1, %v10535_v60, 0.0 }
 0xbd4   :  { %v10541_v33 = vpop.eup %8149  ;;  %3771 = vadd.xlane.f32.xlu2 %v3770_v52  ;;  %v3721_v10 = vmul.f32 1.442695, %v3691_v28 }
 0xbd5   :  { %v3764_v40 = vsel %vm618_vm1, %v10541_v33, 0.0 }
 0xbd6   :  { %3765 = vadd.xlane.f32.xlu1 %v3764_v40  ;;  %8151 = vpow2.f32 %v3721_v10 }
 0xbda   :  { %4224 = vrot.lane.b32.xlu0 %v8830_v23, %s8399_s27 }
 0xbdc   :  { %v10560_v21 = vpop.eup %8151 }
 0xbdd   :  { %v3767_v63 = vsel %vm618_vm1, %v10560_v21, 0.0 }
 0xbe2   :  { %4248 = vrot.lane.b32.xlu0 %v8860_v47, %s8399_s27 }
 0xbe4   :  { %v4105_v29 = vpop.permute.xlu0 %4104 }
 0xbe5   :  { %7227 = vmatmul.msk.bf16.vlgmr.msra.gmra.mxu1 %vm618_vm1, %v4105_v29 }
 0xbec   :  { %4250 = vrot.lane.b32.xlu2 %v8850_v61, %s8399_s27 }
 0xbef   :  { %4152 = vrot.lane.b32.xlu1 %v8730_v46, %s8399_s27 }
 0xbfc   :  { %v3742_v25 = vpop.xlane.xlu2 %3741 }
 0xbfd   :  { %8153 = vrcp.f32 %v3742_v25 }
 0xc01   :  { %v10581_v45 = vpop.f32.mrf.mxu1 }
 0xc02   :  { %11944 = vst [vmem:[#allocation32_spill] sm:$0xff] %v10581_v45 }
 0xc03   :  { %v8154_v51 = vpop.eup %8153 }
 0xc04   :  { %v3748_v17 = vpop.xlane.xlu2 %3747  ;;  %v3794_v3 = vmul.f32 %v8154_v51, %v10497_v2  ;;  %v4136_v2 = vsel %vm618_vm1, %v10483_v31, 0  ;;  %v4160_v31 = vsel %vm618_vm1, %v10524_v12, 0 }
 0xc06   :  { %v3810_v8 = vpack.c.bf16 %v3794_v3, %v3794_v3 }
 0xc07   :  { %v10555_v24 = vpop.f32.mrf.mxu0 }
 0xc08   :  { %v3880_v29 = vunpack.c.l.b16 %v3810_v8 }
 0xc0c   :  { %v4203_v1 = vpop.permute.xlu2 %4202 }
 0xc0d   :  { %v4208_v37 = vsel %vm618_vm1, %v4203_v1, 0 }
 0xc0e   :  { %4217 = vmatpush.bf16.xpose.msrb.mxu1 %v4208_v37 }
 0xc0f   :  { %v10558_v30 = vpop.f32.mrf.mxu0 }
 0xc17   :  { %v10562_v49 = vpop.f32.mrf.mxu0 }
 0xc18   :  { %11942 = vst [vmem:[#allocation40_spill] sm:$0xff] %v10562_v49 }
 0xc19   :  { %3768 = vadd.xlane.f32.xlu1 %v3767_v63 }
 0xc1f   :  { %v10566_v27 = vpop.f32.mrf.mxu0 }
 0xc20   :  { %11943 = vst [vmem:[#allocation42_spill] sm:$0xff] %v10566_v27 }
 0xc27   :  { %v4099_v5 = vpop.f32.mrf.mxu0 }
 0xc2f   :  { %v4101_v38 = vpop.f32.mrf.mxu0 }
 0xc30   :  { %v10574_v43 = vadd.f32 %v10571_v36, %v4101_v38 }
 0xc31   :  { %v3763_v50 = vpop.xlane.xlu0 %3762 }
 0xc32   :  { %4200 = vrot.lane.b32.xlu1 %v8797_v48, %s8399_s27  ;;  %v4275_v14 = vsel %vm618_vm1, %v10574_v43, -inf }
 0xc33   :  { %4276 = vmax.xlane.f32.xlu2 %v4275_v14 }
 0xc39   :  { %v3739_v20 = vpop.xlane.xlu1 %3738 }
 0xc3a   :  { %8155 = vrcp.f32 %v3739_v20 }
 0xc3b   :  { %8157 = vrcp.f32 %v3748_v17  ;;  %v10584_v17 = vpop.f32.mrf.mxu1 }
 0xc3c   :  { %11945 = vst [vmem:[#allocation34_spill] sm:$0xff] %v10584_v17 }
 0xc40   :  { %v8156_v56 = vpop.eup %8155 }
 0xc41   :  { %v3793_v22 = vmul.f32 %v8156_v56, %v8144_v16  ;;  %v3745_v52 = vpop.xlane.xlu1 %3744  ;;  %v8158_v40 = vpop.eup %8157 }
 0xc42   :  { %8159 = vrcp.f32 %v3745_v52  ;;  %v3796_v25 = vmul.f32 %v8158_v40, %v10505_v58  ;;  %v10600_v52 = vld [vmem:[%s11795_s3 + $0x50] sm:$0xff] }
 0xc43   :  { %v3809_v0 = vpack.c.bf16 %v3793_v22, %v3793_v22  ;;  %8161 = vrcp.f32 %v3763_v50  ;;  %v10591_v8 = vpop.f32.mrf.mxu1 }
 0xc44   :  { %v3812_v37 = vpack.c.bf16 %v3796_v25, %v3796_v25  ;;  %11946 = vst [vmem:[#allocation48_spill] sm:$0xff] %v10591_v8 }
 0xc45   :  { %v3879_v28 = vunpack.c.l.b16 %v3809_v0  ;;  %v4227_v0 = vpop.permute.xlu0 %4226 }
 0xc46   :  { %v3908_v20 = vunpack.c.l.b16 %v3812_v37  ;;  %v4232_v12 = vsel %vm618_vm1, %v4227_v0, 0 }
 0xc47   :  { %v3881_v10 = vpack.c.b16 %v3880_v29, %v3879_v28  ;;  %v10603_v29 = vadd.f32 %v10600_v52, %v4099_v5 }
 0xc48   :  { %v8160_v1 = vpop.eup %8159 }
 0xc49   :  { %v3795_v63 = vmul.f32 %v8160_v1, %v10531_v53  ;;  %7202 = vmatmul.msk.bf16.vlgmr.msrb.gmra.mxu2 %vm618_vm1, %v3881_v10  ;;  %v3766_v16 = vpop.xlane.xlu1 %3765  ;;  %v8162_v38 = vpop.eup %8161  ;;  %v4272_v28 = vsel %vm618_vm1, %v10603_v29, -inf }
 0xc4a   :  { %4145 = vmatpush.bf16.xpose.msrb.mxu2 %v4136_v2  ;;  %8163 = vrcp.f32 %v3766_v16  ;;  %v3801_v58 = vmul.f32 %v8162_v38, %v10520_v59  ;;  %v4195_v10 = vpop.f32.mrf.mxu0 }
 0xc4b   :  { %v3811_v14 = vpack.c.bf16 %v3795_v63, %v3795_v63  ;;  %v10612_v1 = vadd.f32 %v10600_v52, %v4195_v10 }
 0xc4c   :  { %v3817_v50 = vpack.c.bf16 %v3801_v58, %v3801_v58 }
 0xc4d   :  { %v3907_v51 = vunpack.c.l.b16 %v3811_v14  ;;  %v4296_v37 = vsel %vm618_vm1, %v10612_v1, -inf }
 0xc4e   :  { %v3991_v59 = vunpack.c.l.b16 %v3817_v50 }
 0xc4f   :  { %v3909_v3 = vpack.c.b16 %v3908_v20, %v3907_v51 }
 0xc50   :  { %v8164_v56 = vpop.eup %8163 }
 0xc51   :  { %v3802_v53 = vmul.f32 %v8164_v56, %v10541_v33  ;;  %7203 = vmatmul.msk.bf16.vlgmr.msrb.gmra.mxu3 %vm618_vm1, %v3909_v3  ;;  %v10607_v33 = vpop.f32.mrf.mxu1  ;;  %v4225_v3 = vpop.permute.xlu0 %4224 }
 0xc52   :  { %4169 = vmatpush.bf16.xpose.msrb.mxu3 %v4160_v31  ;;  %11947 = vst [vmem:[#allocation50_spill] sm:$0xff] %v10607_v33  ;;  %v4197_v16 = vpop.f32.mrf.mxu0  ;;  %v3772_v56 = vpop.xlane.xlu2 %3771 }
 0xc53   :  { %v3818_v22 = vpack.c.bf16 %v3802_v53, %v3802_v53  ;;  %v4198_v38 = vadd.f32 %v10571_v36, %v4197_v16  ;;  %8165 = vrcp.f32 %v3772_v56 }
 0xc55   :  { %v3992_v40 = vunpack.c.l.b16 %v3818_v22  ;;  %v4299_v51 = vsel %vm618_vm1, %v4198_v38, -inf }
 0xc57   :  { %v3993_v25 = vpack.c.b16 %v3992_v40, %v3991_v59 }
 0xc59   :  { %7206 = vmatmul.msk.bf16.vlgmr.msra.gmra.mxu2 %vm618_vm1, %v3993_v25  ;;  %v8166_v50 = vpop.eup %8165 }
 0xc5a   :  { %4241 = vmatpush.bf16.xpose.msra.mxu2 %v4232_v12  ;;  %v3804_v53 = vmul.f32 %v8166_v50, %v10535_v60  ;;  %v4251_v12 = vpop.permute.xlu2 %4250 }
 0xc5c   :  { %4273 = vmax.xlane.f32.xlu1 %v4272_v28  ;;  %v3820_v59 = vpack.c.bf16 %v3804_v53, %v3804_v53 }
 0xc5e   :  { %v4020_v0 = vunpack.c.l.b16 %v3820_v59 }
 0xc61   :  { %v4153_v31 = vpop.permute.xlu1 %4152 }
 0xc62   :  { %v4123_v2 = vpop.f32.mrf.mxu1 }
 0xc63   :  { %v10615_v5 = vadd.f32 %v10600_v52, %v4123_v2 }
 0xc64   :  { %4297 = vmax.xlane.f32.xlu1 %v4296_v37 }
 0xc65   :  { %v4278_v63 = vsel %vm618_vm1, %v10615_v5, -inf }
 0xc66   :  { %4279 = vmax.xlane.f32.xlu2 %v4278_v63  ;;  %v4249_v63 = vpop.permute.xlu0 %4248 }
 0xc69   :  { %7228 = vmatmul.msk.bf16.vlgmr.msrb.gmra.mxu2 %vm618_vm1, %v10485_v57 }
 0xc6a   :  { %v4125_v14 = vpop.f32.mrf.mxu1 }
 0xc6b   :  { %v4126_v20 = vadd.f32 %v10571_v36, %v4125_v14 }
 0xc6d   :  { %v4281_v58 = vsel %vm618_vm1, %v4126_v20, -inf }
 0xc6e   :  { %4282 = vmax.xlane.f32.xlu0 %v4281_v58  ;;  %4300 = vmax.xlane.f32.xlu2 %v4299_v51 }
 0xc79   :  { %7232 = vmatmul.msk.bf16.vlgmr.msra.gmra.mxu2 %vm618_vm1, %v4225_v3 }
 0xc82   :  { %4569 = vrot.lane.b32.xlu0 %v10307_v62, %s8396_s9 }
 0xc8a   :  { %4619 = vrot.lane.b32.xlu0 %v10327_v35, %s8396_s9  ;;  %v4256_v35 = vsel %vm618_vm1, %v4251_v12, 0 }
 0xc8c   :  { %v3769_v57 = vpop.xlane.xlu1 %3768 }
 0xc8d   :  { %8167 = vrcp.f32 %v3769_v57 }
 0xc92   :  { %4875 = vrot.lane.b32.xlu0 %v8701_v7, %s8400_s30 }
 0xc93   :  { %v8168_v22 = vpop.eup %8167 }
 0xc94   :  { %v3803_v40 = vmul.f32 %v8168_v22, %v10560_v21 }
 0xc96   :  { %v3819_v62 = vpack.c.bf16 %v3803_v40, %v3803_v40 }
 0xc98   :  { %v4019_v25 = vunpack.c.l.b16 %v3819_v62 }
 0xc9a   :  { %v4021_v28 = vpack.c.b16 %v4020_v0, %v4019_v25 }
 0xc9c   :  { %7207 = vmatmul.msk.bf16.vlgmr.msra.gmra.mxu3 %vm618_vm1, %v4021_v28 }
 0xc9d   :  { %4265 = vmatpush.bf16.xpose.msra.mxu3 %v4256_v35 }
 0xca4   :  { %v4201_v10 = vpop.permute.xlu1 %4200 }
 0xca5   :  { %7231 = vmatmul.msk.bf16.vlgmr.msrb.gmra.mxu1 %vm618_vm1, %v4201_v10 }
 0xca6   :  { %v4277_v60 = vpop.xlane.xlu2 %4276 }
 0xca7   :  { %v4321_v2 = vsub.f32 %v10574_v43, %v4277_v60 }
 0xca9   :  { %v4338_v37 = vmul.f32 1.442695, %v4321_v2 }
 0xcab   :  { %8169 = vpow2.f32 %v4338_v37 }
 0xcac   :  { %7229 = vmatmul.msk.bf16.vlgmr.msrb.gmra.mxu3 %vm618_vm1, %v4153_v31 }
 0xcb1   :  { %v10641_v21 = vpop.eup %8169 }
 0xcb2   :  { %v4371_v16 = vsel %vm618_vm1, %v10641_v21, 0.0 }
 0xcbc   :  { %4372 = vadd.xlane.f32.xlu0 %v4371_v16  ;;  %7233 = vmatmul.msk.bf16.vlgmr.msra.gmra.mxu3 %vm618_vm1, %v4249_v63 }
 0xccf   :  { %v4274_v25 = vpop.xlane.xlu1 %4273 }
 0xcd7   :  { %v4298_v35 = vpop.xlane.xlu1 %4297 }
 0xcd9   :  { %v10646_v14 = vpop.xlane.xlu2 %4279 }
 0xce1   :  { %v4283_v58 = vpop.xlane.xlu0 %4282  ;;  %v4301_v51 = vpop.xlane.xlu2 %4300 }
 0xce2   :  { %v4323_v3 = vsub.f32 %v4126_v20, %v4283_v58  ;;  %v4329_v43 = vsub.f32 %v4198_v38, %v4301_v51 }
 0xce4   :  { %v4342_v56 = vmul.f32 1.442695, %v4323_v3  ;;  %v4354_v31 = vmul.f32 1.442695, %v4329_v43 }
 0xce6   :  { %8171 = vpow2.f32 %v4342_v56 }
 0xce7   :  { %8173 = vpow2.f32 %v4354_v31 }
 0xcec   :  { %v10648_v57 = vpop.eup %8171 }
 0xced   :  { %v4377_v50 = vsel %vm618_vm1, %v10648_v57, 0.0  ;;  %v10652_v53 = vpop.eup %8173 }
 0xcee   :  { %4378 = vadd.xlane.f32.xlu0 %v4377_v50  ;;  %v4395_v22 = vsel %vm618_vm1, %v10652_v53, 0.0 }
 0xcf4   :  { %v4570_v58 = vpop.permute.xlu0 %4569 }
 0xcf6   :  { %4396 = vadd.xlane.f32.xlu0 %v4395_v22  ;;  %v4322_v22 = vsub.f32 %v10615_v5, %v10646_v14  ;;  %v4328_v5 = vsub.f32 %v10612_v1, %v4298_v35 }
 0xd22   :  { %v4219_v59 = vpop.f32.mrf.mxu1 }
 0xd23   :  { %v4220_v20 = vadd.f32 %v10600_v52, %v4219_v59 }
 0xd25   :  { %v4302_v38 = vsel %vm618_vm1, %v4220_v20, -inf }
 0xd26   :  { %4303 = vmax.xlane.f32.xlu1 %v4302_v38 }
 0xd2a   :  { %v4221_v40 = vpop.f32.mrf.mxu1 }
 0xd2b   :  { %v4222_v62 = vadd.f32 %v10571_v36, %v4221_v40 }
 0xd2d   :  { %v4305_v0 = vsel %vm618_vm1, %v4222_v62, -inf }
 0xd2e   :  { %4306 = vmax.xlane.f32.xlu2 %v4305_v0  ;;  %v4620_v0 = vpop.permute.xlu0 %4619 }
 0xd3f   :  { %4469 = vrot.lane.b32.xlu1 %v10215_v42, %s8396_s9  ;;  %v10680_v42 = vpop.f32.mrf.mxu3 }
 0xd46   :  { %4519 = vrot.lane.b32.xlu2 %v10316_v55, %s8396_s9  ;;  %v10682_v55 = vpop.f32.mrf.mxu2 }
 0xd47   :  { %4494 = vrot.lane.b32.xlu1 %v10349_v11, %s8396_s9  ;;  %11948 = vst [vmem:[#allocation91_spill] sm:$0xff] %v10682_v55  ;;  %v10686_v11 = vpop.f32.mrf.mxu3 }
 0xd48   :  { %11949 = vst [vmem:[#allocation92_spill] sm:$0xff] %v10686_v11 }
 0xd4e   :  { %4829 = vrot.lane.b32.xlu2 %v8657_v9, %s8400_s30 }
 0xd4f   :  { %4544 = vrot.lane.b32.xlu1 %v10357_v26, %s8396_s9  ;;  %v10692_v26 = vpop.f32.mrf.mxu3 }
 0xd50   :  { %11951 = vst [vmem:[#allocation94_spill] sm:$0xff] %v10692_v26 }
 0xd56   :  { %4594 = vrot.lane.b32.xlu2 %v10353_v15, %s8396_s9  ;;  %v10688_v15 = vpop.f32.mrf.mxu2 }
 0xd57   :  { %4851 = vrot.lane.b32.xlu1 %v8689_v44, %s8400_s30  ;;  %11950 = vst [vmem:[#allocation93_spill] sm:$0xff] %v10688_v15  ;;  %v10698_v28 = vpop.f32.mrf.mxu3 }
 0xd58   :  { %11953 = vst [vmem:[#allocation96_spill] sm:$0xff] %v10698_v28 }
 0xd5e   :  { %4827 = vrot.lane.b32.xlu2 %v8668_v19, %s8400_s30  ;;  %v10696_v12 = vpop.f32.mrf.mxu2 }
 0xd5f   :  { %11952 = vst [vmem:[#allocation95_spill] sm:$0xff] %v10696_v12  ;;  %v4171_v60 = vpop.f32.mrf.mxu3 }
 0xd66   :  { %4877 = vrot.lane.b32.xlu2 %v8699_v6, %s8400_s30  ;;  %v10700_v10 = vpop.f32.mrf.mxu2 }
 0xd67   :  { %11954 = vst [vmem:[#allocation97_spill] sm:$0xff] %v10700_v10  ;;  %v4173_v56 = vpop.f32.mrf.mxu3 }
 0xd6e   :  { %4853 = vrot.lane.b32.xlu2 %v8679_v32, %s8400_s30  ;;  %v4147_v63 = vpop.f32.mrf.mxu2 }
 0xd76   :  { %4925 = vrot.lane.b32.xlu2 %v8741_v13, %s8400_s30 }
 0xd7e   :  { %4644 = vrot.lane.b32.xlu2 %v10365_v41, %s8396_s9  ;;  %v4320_v41 = vsub.f32 %v10603_v29, %v4274_v25  ;;  %v4340_v29 = vmul.f32 1.442695, %v4322_v22 }
 0xd80   :  { %v4336_v51 = vmul.f32 1.442695, %v4320_v41  ;;  %v4352_v41 = vmul.f32 1.442695, %v4328_v5 }
 0xd86   :  { %4923 = vrot.lane.b32.xlu2 %v11912_v4, %s8400_s30 }
 0xd99   :  { %v4304_v2 = vpop.xlane.xlu1 %4303 }
 0xd9a   :  { %v4330_v37 = vsub.f32 %v4220_v20, %v4304_v2  ;;  %v4149_v20 = vpop.f32.mrf.mxu2  ;;  %v4267_v2 = vpop.f32.mrf.mxu3 }
 0xd9b   :  { %v10710_v38 = vadd.f32 %v10571_v36, %v4149_v20  ;;  %v10740_v20 = vadd.f32 %v10600_v52, %v4171_v60 }
 0xd9c   :  { %v4356_v16 = vmul.f32 1.442695, %v4330_v37 }
 0xd9d   :  { %v4287_v14 = vsel %vm618_vm1, %v10710_v38, -inf }
 0xd9e   :  { %8175 = vpow2.f32 %v4356_v16 }
 0xd9f   :  { %8177 = vpow2.f32 %v4336_v51  ;;  %v10724_v51 = vadd.f32 %v10600_v52, %v4147_v63 }
 0xda1   :  { %v4307_v3 = vpop.xlane.xlu2 %4306 }
 0xda2   :  { %v4331_v43 = vsub.f32 %v4222_v62, %v4307_v3  ;;  %v10727_v3 = vadd.f32 %v10571_v36, %v4173_v56  ;;  %v4269_v63 = vpop.f32.mrf.mxu3 }
 0xda4   :  { %v10703_v31 = vpop.eup %8175  ;;  %v4358_v50 = vmul.f32 1.442695, %v4331_v43  ;;  %v4293_v22 = vsel %vm618_vm1, %v10727_v3, -inf }
 0xda5   :  { %v4398_v59 = vsel %vm618_vm1, %v10703_v31, 0.0  ;;  %v10712_v62 = vpop.eup %8177 }
 0xda6   :  { %8179 = vpow2.f32 %v4358_v50  ;;  %4399 = vadd.xlane.f32.xlu1 %v4398_v59  ;;  %v4368_v16 = vsel %vm618_vm1, %v10712_v62, 0.0  ;;  %v4243_v50 = vpop.f32.mrf.mxu2  ;;  %v4284_v59 = vsel %vm618_vm1, %v10724_v51, -inf }
 0xda7   :  { %8181 = vpow2.f32 %v4340_v29 }
 0xda8   :  { %8183 = vpow2.f32 %v4352_v41 }
 0xda9   :  { %v4520_v40 = vpop.permute.xlu2 %4519 }
 0xdaa   :  { %4532 = vmatpush.bf16.msrb.mxu2 %v4520_v40 }
 0xdac   :  { %v10714_v25 = vpop.eup %8179 }
 0xdad   :  { %v4401_v37 = vsel %vm618_vm1, %v10714_v25, 0.0  ;;  %v10731_v43 = vpop.eup %8181 }
 0xdae   :  { %4632 = vmatpush.bf16.msra.mxu2 %v4620_v0  ;;  %4288 = vmax.xlane.f32.xlu1 %v4287_v14  ;;  %v4374_v56 = vsel %vm618_vm1, %v10731_v43, 0.0  ;;  %v10745_v0 = vpop.eup %8183  ;;  %v4290_v14 = vsel %vm618_vm1, %v10740_v20, -inf }
 0xdaf   :  { %4402 = vadd.xlane.f32.xlu0 %v4401_v37  ;;  %4369 = vadd.xlane.f32.xlu2 %v4368_v16  ;;  %v4245_v37 = vpop.f32.mrf.mxu2  ;;  %v4392_v60 = vsel %vm618_vm1, %v10745_v0, 0.0 }
 0xdb0   :  { %v10754_v16 = vadd.f32 %v10571_v36, %v4245_v37 }
 0xdb1   :  { %v4470_v1 = vpop.permute.xlu1 %4469  ;;  %v10729_v35 = vpop.permute.xlu2 %4829 }
 0xdb2   :  { %4482 = vmatpush.bf16.msra.mxu0 %v4470_v1 }
 0xdb6   :  { %4582 = vmatpush.bf16.msrb.mxu0 %v4570_v58  ;;  %4294 = vmax.xlane.f32.xlu1 %v4293_v22  ;;  %v10743_v58 = vadd.f32 %v10571_v36, %v4269_v63  ;;  %v10759_v22 = vadd.f32 %v10600_v52, %v4243_v50 }
 0xdb7   :  { %4285 = vmax.xlane.f32.xlu0 %v4284_v59  ;;  %4375 = vadd.xlane.f32.xlu2 %v4374_v56  ;;  %v4311_v59 = vsel %vm618_vm1, %v10754_v16, -inf  ;;  %v10766_v56 = vadd.f32 %v10600_v52, %v4267_v2 }
 0xdb8   :  { %v4317_v5 = vsel %vm618_vm1, %v10743_v58, -inf  ;;  %v4308_v63 = vsel %vm618_vm1, %v10759_v22, -inf }
 0xdb9   :  { %v4495_v29 = vpop.permute.xlu1 %4494  ;;  %v4595_v40 = vpop.permute.xlu2 %4594 }
 0xdba   :  { %4507 = vmatpush.bf16.msra.mxu1 %v4495_v29  ;;  %v4314_v29 = vsel %vm618_vm1, %v10766_v56, -inf }
 0xdbe   :  { %4607 = vmatpush.bf16.msrb.mxu1 %v4595_v40  ;;  %4318 = vmax.xlane.f32.xlu1 %v4317_v5 }
 0xdbf   :  { %4291 = vmax.xlane.f32.xlu0 %v4290_v14  ;;  %4393 = vadd.xlane.f32.xlu2 %v4392_v60  ;;  %v10776_v14 = vpop.permute.xlu0 %4875 }
 0xdc1   :  { %v4545_v41 = vpop.permute.xlu1 %4544  ;;  %v10756_v1 = vpop.permute.xlu2 %4827 }
 0xdc2   :  { %4557 = vmatpush.bf16.msrb.mxu3 %v4545_v41 }
 0xdc7   :  { %4312 = vmax.xlane.f32.xlu0 %v4311_v59  ;;  %4309 = vmax.xlane.f32.xlu2 %v4308_v63  ;;  %v4373_v37 = vpop.xlane.xlu0 %4372 }
 0xdc8   :  { %8185 = vrcp.f32 %v4373_v37 }
 0xdc9   :  { %v10768_v36 = vpop.permute.xlu2 %4877  ;;  %v10778_v41 = vpop.permute.xlu1 %4851 }
 0xdce   :  { %v8186_v10 = vpop.eup %8185 }
 0xdcf   :  { %4315 = vmax.xlane.f32.xlu0 %v4314_v29  ;;  %v4379_v60 = vpop.xlane.xlu0 %4378  ;;  %v4433_v12 = vmul.f32 %v8186_v10, %v10641_v21 }
 0xdd1   :  { %v10772_v50 = vpop.permute.xlu2 %4853  ;;  %v4449_v8 = vpack.c.bf16 %v4433_v12, %v4433_v12 }
 0xdd3   :  { %v4467_v10 = vunpack.c.l.b16 %v4449_v8 }
 0xdd7   :  { %v4397_v52 = vpop.xlane.xlu0 %4396 }
 0xdd9   :  { %v10774_v40 = vpop.permute.xlu2 %4925 }
 0xde1   :  { %v4645_v5 = vpop.permute.xlu2 %4644 }
 0xde2   :  { %4657 = vmatpush.bf16.msra.mxu3 %v4645_v5 }
 0xde9   :  { %v10780_v59 = vpop.permute.xlu2 %4923 }
 0xe19   :  { %v4400_v2 = vpop.xlane.xlu1 %4399 }
 0xe21   :  { %v4289_v63 = vpop.xlane.xlu1 %4288 }
 0xe22   :  { %v4403_v28 = vpop.xlane.xlu0 %4402  ;;  %v4325_v29 = vsub.f32 %v10710_v38, %v4289_v63  ;;  %v4370_v26 = vpop.xlane.xlu2 %4369 }
 0xe23   :  { %8187 = vrcp.f32 %v4370_v26 }
 0xe24   :  { %8189 = vrcp.f32 %v4379_v60  ;;  %v4346_v5 = vmul.f32 1.442695, %v4325_v29 }
 0xe26   :  { %8191 = vpow2.f32 %v4346_v5 }
 0xe29   :  { %v8188_v27 = vpop.eup %8187 }
 0xe2a   :  { %v4286_v49 = vpop.xlane.xlu0 %4285  ;;  %v8190_v33 = vpop.eup %8189  ;;  %v4432_v15 = vmul.f32 %v8188_v27, %v10712_v62 }
 0xe2b   :  { %v4324_v37 = vsub.f32 %v10724_v51, %v4286_v49  ;;  %v4376_v55 = vpop.xlane.xlu2 %4375  ;;  %v4435_v60 = vmul.f32 %v8190_v33, %v10648_v57 }
 0xe2c   :  { %8193 = vrcp.f32 %v4376_v55  ;;  %v10786_v17 = vpop.eup %8191  ;;  %v4448_v38 = vpack.c.bf16 %v4432_v15, %v4432_v15  ;;  %v4835_v55 = vsel %vm618_vm1, %v10729_v35, 0 }
 0xe2d   :  { %8195 = vrcp.f32 %v4397_v52  ;;  %v4344_v26 = vmul.f32 1.442695, %v4324_v37  ;;  %v4383_v21 = vsel %vm618_vm1, %v10786_v17, 0.0  ;;  %v4451_v62 = vpack.c.bf16 %v4435_v60, %v4435_v60 }
 0xe2e   :  { %v4466_v63 = vunpack.c.l.b16 %v4448_v38  ;;  %4384 = vadd.xlane.f32.xlu0 %v4383_v21  ;;  %v4859_v21 = vsel %vm618_vm1, %v10772_v50, 0 }
 0xe2f   :  { %8197 = vpow2.f32 %v4344_v26  ;;  %v4492_v37 = vunpack.c.l.b16 %v4451_v62 }
 0xe30   :  { %v4468_v12 = vpack.c.b16 %v4467_v10, %v4466_v63  ;;  %8199 = vrcp.f32 %v4403_v28 }
 0xe32   :  { %v8194_v27 = vpop.eup %8193  ;;  %v4292_v49 = vpop.xlane.xlu0 %4291  ;;  %7234 = vmatmul.msk.bf16.vlgmr.msra.gmra.mxu0 %vm618_vm1, %v4468_v12 }
 0xe33   :  { %v8196_v51 = vpop.eup %8195  ;;  %v4434_v15 = vmul.f32 %v8194_v27, %v10731_v43  ;;  %v4326_v33 = vsub.f32 %v10740_v20, %v4292_v49  ;;  %v4394_v57 = vpop.xlane.xlu2 %4393  ;;  %4844 = vmatpush.bf16.xpose.msra.mxu0 %v4835_v55 }
 0xe34   :  { %8201 = vrcp.f32 %v4394_v57  ;;  %v4441_v5 = vmul.f32 %v8196_v51, %v10652_v53 }
 0xe35   :  { %v4450_v8 = vpack.c.bf16 %v4434_v15, %v4434_v15  ;;  %v4348_v52 = vmul.f32 1.442695, %v4326_v33  ;;  %v10796_v29 = vpop.eup %8197  ;;  %8203 = vrcp.f32 %v4400_v2  ;;  %v8368_v15 = vld [vmem:[%s11794_s2] sm:$0x3f]  ;;  %v4931_v33 = vsel %vm618_vm1, %v10774_v40, 0 }
 0xe36   :  { %v4380_v28 = vsel %vm618_vm1, %v10796_v29, 0.0  ;;  %v8200_v35 = vpop.eup %8199  ;;  %v4457_v26 = vpack.c.bf16 %v4441_v5, %v4441_v5 }
 0xe37   :  { %v4491_v38 = vunpack.c.l.b16 %v4450_v8  ;;  %8205 = vpow2.f32 %v4348_v52  ;;  %4381 = vadd.xlane.f32.xlu2 %v4380_v28  ;;  %v4443_v63 = vmul.f32 %v8200_v35, %v10714_v25  ;;  %v10815_v25 = vperm.slane %v8368_v15, 5  ;;  %v11955_v52 = vld [vmem:[#allocation23_spill] sm:$0xff] }
 0xe38   :  { %v4567_v49 = vunpack.c.l.b16 %v4457_v26 }
 0xe39   :  { %v4493_v43 = vpack.c.b16 %v4492_v37, %v4491_v38  ;;  %v519_v5 = vadd.f32 %v11955_v52, %v10815_v25  ;;  %v11956_v37 = vld [vmem:[#allocation25_spill] sm:$0xff] }
 0xe3a   :  { %v8202_v20 = vpop.eup %8201  ;;  %v4313_v60 = vpop.xlane.xlu0 %4312  ;;  %v521_v38 = vadd.f32 %v11956_v37, %v10815_v25 }
 0xe3b   :  { %v4440_v10 = vmul.f32 %v8202_v20, %v10745_v0  ;;  %v4333_v53 = vsub.f32 %v10754_v16, %v4313_v60  ;;  %7235 = vmatmul.msk.bf16.vlgmr.msra.gmra.mxu1 %vm618_vm1, %v4493_v43  ;;  %v8204_v2 = vpop.eup %8203  ;;  %v4459_v16 = vpack.c.bf16 %v4443_v63, %v4443_v63  ;;  %v4808_v43 = vpack.c.bf16 %v519_v5, %v519_v5 }
 0xe3c   :  { %4868 = vmatpush.bf16.xpose.msra.mxu1 %v4859_v21  ;;  %v4442_v51 = vmul.f32 %v8204_v2, %v10703_v31  ;;  %v4809_v20 = vpack.c.bf16 %v521_v38, %v521_v38  ;;  %v11958_v2 = vld [vmem:[#allocation41_spill] sm:$0xff] }
 0xe3d   :  { %v4456_v12 = vpack.c.bf16 %v4440_v10, %v4440_v10  ;;  %v4362_v27 = vmul.f32 1.442695, %v4333_v53  ;;  %v10807_v62 = vpop.eup %8205  ;;  %v4592_v8 = vunpack.c.l.b16 %v4459_v16  ;;  %v5218_v26 = vunpack.c.l.b16 %v4808_v43  ;;  %v11957_v10 = vld [vmem:[#allocation39_spill] sm:$0xff] }
 0xe3e   :  { %v4386_v0 = vsel %vm618_vm1, %v10807_v62, 0.0  ;;  %v4458_v57 = vpack.c.bf16 %v4442_v51, %v4442_v51  ;;  %v5219_v60 = vunpack.c.l.b16 %v4809_v20  ;;  %v539_v53 = vadd.f32 %v11957_v10, %v10815_v25  ;;  %v11959_v43 = vld [vmem:[#allocation27_spill] sm:$0xff] }
 0xe3f   :  { %v4566_v55 = vunpack.c.l.b16 %v4456_v12  ;;  %8207 = vpow2.f32 %v4362_v27  ;;  %4387 = vadd.xlane.f32.xlu1 %v4386_v0  ;;  %v541_v63 = vadd.f32 %v11958_v2, %v10815_v25  ;;  %v4295_v12 = vpop.xlane.xlu1 %4294  ;;  %v524_v20 = vadd.f32 %v11959_v43, %v10815_v25 }
 0xe40   :  { %v4591_v40 = vunpack.c.l.b16 %v4458_v57  ;;  %v10833_v21 = vpack.c.b16 %v5219_v60, %v5218_v26  ;;  %v4816_v27 = vpack.c.bf16 %v539_v53, %v539_v53  ;;  %v4327_v51 = vsub.f32 %v10727_v3, %v4295_v12  ;;  %v11960_v26 = vld [vmem:[#allocation29_spill] sm:$0xff] }
 0xe41   :  { %v4568_v50 = vpack.c.b16 %v4567_v49, %v4566_v55  ;;  %v4817_v49 = vpack.c.bf16 %v541_v63, %v541_v63  ;;  %v526_v60 = vadd.f32 %v11960_v26, %v10815_v25  ;;  %v4810_v2 = vpack.c.bf16 %v524_v20, %v524_v20  ;;  %v10923_v26 = vld [vmem:[%s11795_s3 + $0x68] sm:$0xff] }
 0xe42   :  { %4949 = vrot.lane.b32.xlu0 %v8777_v18, %s8400_s30  ;;  %v4593_v35 = vpack.c.b16 %v4592_v8, %v4591_v40  ;;  %v5330_v55 = vunpack.c.l.b16 %v4816_v27  ;;  %v4350_v16 = vmul.f32 1.442695, %v4327_v51 }
 0xe43   :  { %7238 = vmatmul.msk.bf16.vlgmr.msrb.gmra.mxu0 %vm618_vm1, %v4568_v50  ;;  %v5331_v0 = vunpack.c.l.b16 %v4817_v49  ;;  %v4811_v63 = vpack.c.bf16 %v526_v60, %v526_v60  ;;  %v5246_v51 = vunpack.c.l.b16 %v4810_v2 }
 0xe44   :  { %4940 = vmatpush.bf16.xpose.msrb.mxu0 %v4931_v33  ;;  %8209 = vpow2.f32 %v4350_v16  ;;  %v4310_v33 = vpop.xlane.xlu2 %4309 }
 0xe45   :  { %v10822_v31 = vpop.eup %8207  ;;  %v10847_v50 = vpack.c.b16 %v5331_v0, %v5330_v55  ;;  %v4332_v3 = vsub.f32 %v10759_v22, %v4310_v33  ;;  %v5247_v55 = vunpack.c.l.b16 %v4811_v63 }
 0xe46   :  { %v4407_v28 = vsel %vm618_vm1, %v10822_v31, 0.0 }
 0xe47   :  { %4408 = vadd.xlane.f32.xlu1 %v4407_v28  ;;  %v4360_v8 = vmul.f32 1.442695, %v4332_v3  ;;  %v4319_v37 = vpop.xlane.xlu1 %4318  ;;  %v10889_v33 = vpack.c.b16 %v5247_v55, %v5246_v51 }
 0xe48   :  { %v4335_v38 = vsub.f32 %v10743_v58, %v4319_v37  ;;  %v4883_v37 = vsel %vm618_vm1, %v10768_v36, 0 }
 0xe4a   :  { %v10854_v57 = vpop.eup %8209  ;;  %v4366_v28 = vmul.f32 1.442695, %v4335_v38 }
 0xe4b   :  { %7239 = vmatmul.msk.bf16.vlgmr.msrb.gmra.mxu1 %vm618_vm1, %v4593_v35  ;;  %v4389_v52 = vsel %vm618_vm1, %v10854_v57, 0.0 }
 0xe4f   :  { %4901 = vrot.lane.b32.xlu2 %v8723_v34, %s8400_s30 }
 0xe53   :  { %7260 = vmatmul.msk.bf16.vlgmr.msra.gmra.mxu0 %vm618_vm1, %v10756_v1  ;;  %v4316_v1 = vpop.xlane.xlu0 %4315 }
 0xe54   :  { %5232 = vmatpush.bf16.msra.mxu0 %v10833_v21  ;;  %v4334_v15 = vsub.f32 %v10766_v56, %v4316_v1 }
 0xe5b   :  { %7261 = vmatmul.msk.bf16.vlgmr.msra.gmra.mxu1 %vm618_vm1, %v10778_v41  ;;  %v4364_v41 = vmul.f32 1.442695, %v4334_v15 }
 0xe5d   :  { %8211 = vpow2.f32 %v4364_v41 }
 0xe5e   :  { %8213 = vpow2.f32 %v4360_v8 }
 0xe5f   :  { %8215 = vpow2.f32 %v4366_v28 }
 0xe60   :  { %4899 = vrot.lane.b32.xlu1 %v8730_v46, %s8400_s30 }
 0xe63   :  { %7264 = vmatmul.msk.bf16.vlgmr.msrb.gmra.mxu0 %vm618_vm1, %v10780_v59  ;;  %v10858_v5 = vpop.eup %8211 }
 0xe64   :  { %5344 = vmatpush.bf16.msrb.mxu0 %v10847_v50  ;;  %v4410_v56 = vsel %vm618_vm1, %v10858_v5, 0.0  ;;  %v10862_v59 = vpop.eup %8213 }
 0xe65   :  { %v4404_v22 = vsel %vm618_vm1, %v10862_v59, 0.0  ;;  %v10867_v40 = vpop.eup %8215 }
 0xe66   :  { %v4413_v35 = vsel %vm618_vm1, %v10867_v40, 0.0 }
 0xe6c   :  { %4390 = vadd.xlane.f32.xlu0 %v4389_v52 }
 0xe74   :  { %4411 = vadd.xlane.f32.xlu0 %v4410_v56 }
 0xe78   :  { %4405 = vadd.xlane.f32.xlu2 %v4404_v22 }
 0xe88   :  { %4947 = vrot.lane.b32.xlu0 %v8797_v48, %s8400_s30 }
 0xe8a   :  { %4414 = vadd.xlane.f32.xlu1 %v4413_v35  ;;  %v10911_v35 = vld [vmem:[%s11795_s3 + $0x60] sm:$0xff] }
 0xe90   :  { %4973 = vrot.lane.b32.xlu2 %v8814_v39, %s8400_s30 }
 0xe98   :  { %4971 = vrot.lane.b32.xlu2 %v8830_v23, %s8400_s30 }
 0xea0   :  { %4995 = vrot.lane.b32.xlu2 %v8860_v47, %s8400_s30 }
 0xea1   :  { %v4385_v58 = vpop.xlane.xlu0 %4384 }
 0xea2   :  { %8217 = vrcp.f32 %v4385_v58 }
 0xea3   :  { %4997 = vrot.lane.b32.xlu1 %v8850_v61, %s8400_s30  ;;  %s8404_s30 = smov 8  }
 0xea8   :  { %v8218_v53 = vpop.eup %8217 }
 0xea9   :  { %v4437_v12 = vmul.f32 %v8218_v53, %v10786_v17 }
 0xeaa   :  { %v4382_v10 = vpop.xlane.xlu2 %4381 }
 0xeab   :  { %8219 = vrcp.f32 %v4382_v10  ;;  %v4453_v0 = vpack.c.bf16 %v4437_v12, %v4437_v12 }
 0xead   :  { %v4517_v41 = vunpack.c.l.b16 %v4453_v0 }
 0xeaf   :  { %v10886_v27 = vpop.f32.mrf.mxu0 }
 0xeb1   :  { %v8220_v49 = vpop.eup %8219 }
 0xeb2   :  { %v4436_v16 = vmul.f32 %v8220_v49, %v10796_v29  ;;  %v4388_v53 = vpop.xlane.xlu1 %4387 }
 0xeb3   :  { %8221 = vrcp.f32 %v4388_v53 }
 0xeb4   :  { %v4452_v1 = vpack.c.bf16 %v4436_v16, %v4436_v16  ;;  %v4950_v15 = vpop.permute.xlu0 %4949 }
 0xeb5   :  { %v4955_v3 = vsel %vm618_vm1, %v4950_v15, 0 }
 0xeb6   :  { %v4516_v8 = vunpack.c.l.b16 %v4452_v1  ;;  %4964 = vmatpush.bf16.xpose.msrb.mxu1 %v4955_v3 }
 0xeb7   :  { %v10892_v52 = vpop.f32.mrf.mxu0 }
 0xeb8   :  { %v10894_v17 = vpop.f32.mrf.mxu1  ;;  %v4518_v56 = vpack.c.b16 %v4517_v41, %v4516_v8  ;;  %v4902_v8 = vpop.permute.xlu2 %4901 }
 0xeb9   :  { %v8222_v15 = vpop.eup %8221 }
 0xeba   :  { %7236 = vmatmul.msk.bf16.vlgmr.msrb.gmra.mxu2 %vm618_vm1, %v4518_v56  ;;  %v4409_v56 = vpop.xlane.xlu1 %4408 }
 0xebb   :  { %4892 = vmatpush.bf16.xpose.msrb.mxu2 %v4883_v37  ;;  %v4438_v37 = vmul.f32 %v8222_v15, %v10807_v62  ;;  %v11965_v62 = vld [vmem:[#allocation43_spill] sm:$0xff] }
 0xebc   :  { %v544_v15 = vadd.f32 %v11965_v62, %v10815_v25 }
 0xebe   :  { %5260 = vmatpush.bf16.msra.mxu1 %v10889_v33 }
 0xec0   :  { %v10900_v29 = vpop.f32.mrf.mxu1  ;;  %v10902_v22 = vpop.f32.mrf.mxu0 }
 0xec1   :  { %11961 = vst [vmem:[#allocation23_spill] sm:$0xff] %v10902_v22 }
 0xec8   :  { %v10904_v38 = vpop.f32.mrf.mxu0  ;;  %v10906_v28 = vpop.f32.mrf.mxu1 }
 0xec9   :  { %11962 = vst [vmem:[#allocation25_spill] sm:$0xff] %v10904_v38 }
 0xeca   :  { %11963 = vst [vmem:[#allocation39_spill] sm:$0xff] %v10906_v28 }
 0xed0   :  { %v10913_v58 = vpop.f32.mrf.mxu1  ;;  %v4846_v43 = vpop.f32.mrf.mxu0 }
 0xed1   :  { %11964 = vst [vmem:[#allocation41_spill] sm:$0xff] %v10913_v58  ;;  %v10916_v36 = vadd.f32 %v10911_v35, %v4846_v43 }
 0xed2   :  { %v4900_v28 = vpop.permute.xlu1 %4899 }
 0xed3   :  { %v5019_v20 = vsel %vm618_vm1, %v10916_v36, -inf }
 0xed4   :  { %5020 = vmax.xlane.f32.xlu0 %v5019_v20 }
 0xed8   :  { %v4848_v60 = vpop.f32.mrf.mxu0  ;;  %v4870_v10 = vpop.f32.mrf.mxu1 }
 0xed9   :  { %v10926_v2 = vadd.f32 %v10923_v26, %v4848_v60  ;;  %v10929_v63 = vadd.f32 %v10911_v35, %v4870_v10  ;;  %v4454_v60 = vpack.c.bf16 %v4438_v37, %v4438_v37 }
 0xedb   :  { %v5025_v12 = vsel %vm618_vm1, %v10929_v63, -inf  ;;  %v5022_v49 = vsel %vm618_vm1, %v10926_v2, -inf }
 0xedc   :  { %5026 = vmax.xlane.f32.xlu2 %v5025_v12  ;;  %5023 = vmax.xlane.f32.xlu1 %v5022_v49 }
 0xedf   :  { %v4391_v1 = vpop.xlane.xlu0 %4390 }
 0xee0   :  { %v4872_v51 = vpop.f32.mrf.mxu1  ;;  %v4942_v55 = vpop.f32.mrf.mxu0  ;;  %8223 = vrcp.f32 %v4391_v1  ;;  %v4541_v1 = vunpack.c.l.b16 %v4454_v60 }
 0xee1   :  { %v10936_v0 = vadd.f32 %v10923_v26, %v4872_v51  ;;  %v10939_v16 = vadd.f32 %v10911_v35, %v4942_v55  ;;  %8225 = vrcp.f32 %v4409_v56 }
 0xee3   :  { %v5043_v3 = vsel %vm618_vm1, %v10939_v16, -inf  ;;  %v5028_v41 = vsel %vm618_vm1, %v10936_v0, -inf }
 0xee4   :  { %5044 = vmax.xlane.f32.xlu1 %v5043_v3  ;;  %5029 = vmax.xlane.f32.xlu0 %v5028_v41  ;;  %v11966_v41 = vld [vmem:[#allocation45_spill] sm:$0xff] }
 0xee5   :  { %v546_v56 = vadd.f32 %v11966_v41, %v10815_v25 }
 0xee6   :  { %v8224_v43 = vpop.eup %8223 }
 0xee7   :  { %v4439_v10 = vmul.f32 %v8224_v43, %v10854_v57  ;;  %v8226_v55 = vpop.eup %8225  ;;  %v4907_v43 = vsel %vm618_vm1, %v4902_v8, 0  ;;  %v4412_v60 = vpop.xlane.xlu0 %4411 }
 0xee8   :  { %v4944_v20 = vpop.f32.mrf.mxu0  ;;  %v4445_v37 = vmul.f32 %v8226_v55, %v10822_v31 }
 0xee9   :  { %v10948_v53 = vadd.f32 %v10923_v26, %v4944_v20  ;;  %v4455_v12 = vpack.c.bf16 %v4439_v10, %v4439_v10  ;;  %v4818_v10 = vpack.c.bf16 %v544_v15, %v544_v15 }
 0xeeb   :  { %v5046_v49 = vsel %vm618_vm1, %v10948_v53, -inf  ;;  %v4406_v51 = vpop.xlane.xlu2 %4405  ;;  %v4542_v3 = vunpack.c.l.b16 %v4455_v12  ;;  %v4461_v12 = vpack.c.bf16 %v4445_v37, %v4445_v37  ;;  %v5358_v58 = vunpack.c.l.b16 %v4818_v10 }
 0xeec   :  { %5047 = vmax.xlane.f32.xlu2 %v5046_v49  ;;  %8227 = vrcp.f32 %v4406_v51  ;;  %v4819_v49 = vpack.c.bf16 %v546_v56, %v546_v56  ;;  %v11967_v56 = vld [vmem:[#allocation31_spill] sm:$0xff] }
 0xeed   :  { %v4543_v57 = vpack.c.b16 %v4542_v3, %v4541_v1  ;;  %v4617_v41 = vunpack.c.l.b16 %v4461_v12  ;;  %8229 = vrcp.f32 %v4412_v60  ;;  %v529_v37 = vadd.f32 %v11967_v56, %v10815_v25 }
 0xeee   :  { %v5359_v22 = vunpack.c.l.b16 %v4819_v49 }
 0xeef   :  { %7237 = vmatmul.msk.bf16.vlgmr.msrb.gmra.mxu3 %vm618_vm1, %v4543_v57 }
 0xef0   :  { %4916 = vmatpush.bf16.xpose.msrb.mxu3 %v4907_v43  ;;  %v10960_v8 = vpack.c.b16 %v5359_v22, %v5358_v58  ;;  %v11968_v43 = vld [vmem:[#allocation33_spill] sm:$0xff]  ;;  %v4812_v58 = vpack.c.bf16 %v529_v37, %v529_v37 }
 0xef1   :  { %v11972_v37 = vld [vmem:[#allocation37_spill] sm:$0xff] }
 0xef2   :  { %v8228_v20 = vpop.eup %8227 }
 0xef3   :  { %v4444_v51 = vmul.f32 %v8228_v20, %v10862_v59  ;;  %v4974_v31 = vpop.permute.xlu2 %4973  ;;  %v8230_v15 = vpop.eup %8229  ;;  %v531_v20 = vadd.f32 %v11968_v43, %v10815_v25  ;;  %v536_v43 = vadd.f32 %v11972_v37, %v10815_v25 }
 0xef4   :  { %v4979_v57 = vsel %vm618_vm1, %v4974_v31, 0  ;;  %v4446_v22 = vmul.f32 %v8230_v15, %v10858_v5  ;;  %v11969_v5 = vld [vmem:[#allocation47_spill] sm:$0xff] }
 0xef5   :  { %v4460_v62 = vpack.c.bf16 %v4444_v51, %v4444_v51  ;;  %v4813_v10 = vpack.c.bf16 %v531_v20, %v531_v20  ;;  %v5274_v51 = vunpack.c.l.b16 %v4812_v58  ;;  %v11971_v15 = vld [vmem:[#allocation35_spill] sm:$0xff] }
 0xef6   :  { %v4462_v60 = vpack.c.bf16 %v4446_v22, %v4446_v22  ;;  %v534_v56 = vadd.f32 %v11971_v15, %v10815_v25 }
 0xef7   :  { %v4616_v1 = vunpack.c.l.b16 %v4460_v62  ;;  %v5275_v62 = vunpack.c.l.b16 %v4813_v10 }
 0xef8   :  { %v4814_v58 = vpack.c.bf16 %v534_v56, %v534_v56 }
 0xef9   :  { %v4618_v55 = vpack.c.b16 %v4617_v41, %v4616_v1  ;;  %v4641_v1 = vunpack.c.l.b16 %v4462_v60 }
 0xefa   :  { %v4948_v3 = vpop.permute.xlu0 %4947 }
 0xefb   :  { %7240 = vmatmul.msk.bf16.vlgmr.msra.gmra.mxu2 %vm618_vm1, %v4618_v55  ;;  %7265 = vmatmul.msk.bf16.vlgmr.msrb.gmra.mxu1 %vm618_vm1, %v4948_v3  ;;  %v10972_v55 = vpack.c.b16 %v5275_v62, %v5274_v51  ;;  %v5302_v51 = vunpack.c.l.b16 %v4814_v58 }
 0xefc   :  { %4988 = vmatpush.bf16.xpose.msra.mxu2 %v4979_v57  ;;  %5372 = vmatpush.bf16.msrb.mxu1 %v10960_v8  ;;  %v549_v57 = vadd.f32 %v11969_v5, %v10815_v25 }
 0xefd   :  { %v4415_v59 = vpop.xlane.xlu1 %4414 }
 0xefe   :  { %8231 = vrcp.f32 %v4415_v59  ;;  %v4820_v20 = vpack.c.bf16 %v549_v57, %v549_v57  ;;  %v11974_v57 = vld [vmem:[#allocation52_spill] sm:$0xff] }
 0xf04   :  { %v8232_v49 = vpop.eup %8231 }
 0xf05   :  { %v4447_v12 = vmul.f32 %v8232_v49, %v10867_v40  ;;  %v11970_v40 = vld [vmem:[#allocation49_spill] sm:$0xff]  ;;  %v5386_v49 = vunpack.c.l.b16 %v4820_v20 }
 0xf06   :  { %v551_v59 = vadd.f32 %v11970_v40, %v10815_v25  ;;  %v556_v40 = vadd.f32 %v11974_v57, %v10815_v25 }
 0xf07   :  { %v4463_v41 = vpack.c.bf16 %v4447_v12, %v4447_v12 }
 0xf08   :  { %v4821_v22 = vpack.c.bf16 %v551_v59, %v551_v59  ;;  %v4823_v15 = vpack.c.bf16 %v556_v40, %v556_v40 }
 0xf09   :  { %v4642_v31 = vunpack.c.l.b16 %v4463_v41 }
 0xf0a   :  { %v5387_v60 = vunpack.c.l.b16 %v4821_v22  ;;  %v5415_v37 = vunpack.c.l.b16 %v4823_v15 }
 0xf0b   :  { %v4643_v3 = vpack.c.b16 %v4642_v31, %v4641_v1  ;;  %7262 = vmatmul.msk.bf16.vlgmr.msrb.gmra.mxu2 %vm618_vm1, %v10776_v14  ;;  %v4815_v14 = vpack.c.bf16 %v536_v43, %v536_v43  ;;  %v4972_v1 = vpop.permute.xlu2 %4971 }
 0xf0c   :  { %5288 = vmatpush.bf16.msrb.mxu2 %v10972_v55  ;;  %v10987_v41 = vpack.c.b16 %v5387_v60, %v5386_v49 }
 0xf0d   :  { %7241 = vmatmul.msk.bf16.vlgmr.msra.gmra.mxu3 %vm618_vm1, %v4643_v3  ;;  %v5303_v62 = vunpack.c.l.b16 %v4815_v14  ;;  %v11973_v3 = vld [vmem:[#allocation51_spill] sm:$0xff] }
 0xf0e   :  { %v554_v5 = vadd.f32 %v11973_v3, %v10815_v25 }
 0xf0f   :  { %v10990_v31 = vpack.c.b16 %v5303_v62, %v5302_v51 }
 0xf10   :  { %v4822_v59 = vpack.c.bf16 %v554_v5, %v554_v5 }
 0xf12   :  { %v5414_v56 = vunpack.c.l.b16 %v4822_v59 }
 0xf13   :  { %v4996_v20 = vpop.permute.xlu2 %4995 }
 0xf14   :  { %v10999_v43 = vpack.c.b16 %v5415_v37, %v5414_v56 }
 0xf15   :  { %v4998_v10 = vpop.permute.xlu1 %4997 }
 0xf16   :  { %v5003_v12 = vsel %vm618_vm1, %v4998_v10, 0 }
 0xf17   :  { %5012 = vmatpush.bf16.xpose.msra.mxu3 %v5003_v12 }
 0xf1b   :  { %7266 = vmatmul.msk.bf16.vlgmr.msra.gmra.mxu2 %vm618_vm1, %v4972_v1 }
 0xf1c   :  { %5400 = vmatpush.bf16.msra.mxu2 %v10987_v41 }
 0xf1d   :  { %7263 = vmatmul.msk.bf16.vlgmr.msrb.gmra.mxu3 %vm618_vm1, %v4900_v28 }
 0xf1f   :  { %5316 = vmatpush.bf16.msrb.mxu3 %v10990_v31 }
 0xf2d   :  { %7267 = vmatmul.msk.bf16.vlgmr.msra.gmra.mxu3 %vm618_vm1, %v4996_v20 }
 0xf2e   :  { %5428 = vmatpush.bf16.msra.mxu3 %v10999_v43 }
 0xf47   :  { %v5021_v28 = vpop.xlane.xlu0 %5020 }
 0xf48   :  { %v5067_v22 = vsub.f32 %v10916_v36, %v5021_v28 }
 0xf4a   :  { %v5083_v58 = vmul.f32 1.442695, %v5067_v22 }
 0xf4c   :  { %8233 = vpow2.f32 %v5083_v58 }
 0xf4f   :  { %v5024_v36 = vpop.xlane.xlu1 %5023 }
 0xf50   :  { %v5068_v62 = vsub.f32 %v10926_v2, %v5024_v36 }
 0xf52   :  { %v11004_v14 = vpop.eup %8233  ;;  %v5085_v1 = vmul.f32 1.442695, %v5068_v62  ;;  %v5027_v62 = vpop.xlane.xlu2 %5026 }
 0xf53   :  { %v5115_v25 = vsel %vm618_vm1, %v11004_v14, 0.0 }
 0xf54   :  { %5116 = vadd.xlane.f32.xlu1 %v5115_v25 }
 0xf57   :  { %v5030_v10 = vpop.xlane.xlu0 %5029  ;;  %v5045_v3 = vpop.xlane.xlu1 %5044 }
 0xf58   :  { %v5070_v49 = vsub.f32 %v10936_v0, %v5030_v10  ;;  %v5075_v40 = vsub.f32 %v10939_v16, %v5045_v3 }
 0xf5a   :  { %v5089_v60 = vmul.f32 1.442695, %v5070_v49  ;;  %v5099_v59 = vmul.f32 1.442695, %v5075_v40 }
 0xf5c   :  { %8235 = vpow2.f32 %v5089_v60 }
 0xf5d   :  { %8237 = vpow2.f32 %v5085_v1  ;;  %v5069_v1 = vsub.f32 %v10929_v63, %v5027_v62 }
 0xf5e   :  { %8239 = vpow2.f32 %v5099_v59 }
 0xf5f   :  { %v5087_v40 = vmul.f32 1.442695, %v5069_v1 }
 0xf61   :  { %8241 = vpow2.f32 %v5087_v40 }
 0xf62   :  { %v11009_v12 = vpop.eup %8235 }
 0xf63   :  { %v5124_v51 = vsel %vm618_vm1, %v11009_v12, 0.0  ;;  %v11019_v56 = vpop.eup %8237 }
 0xf64   :  { %5125 = vadd.xlane.f32.xlu1 %v5124_v51  ;;  %v5118_v28 = vsel %vm618_vm1, %v11019_v56, 0.0  ;;  %v11025_v16 = vpop.eup %8239 }
 0xf65   :  { %v5139_v58 = vsel %vm618_vm1, %v11025_v16, 0.0 }
 0xf72   :  { %v11017_v15 = vpop.f32.mrf.mxu3 }
 0xf78   :  { %v4966_v5 = vpop.f32.mrf.mxu1 }
 0xf79   :  { %v4967_v57 = vadd.f32 %v10911_v35, %v4966_v5 }
 0xf7a   :  { %v11027_v22 = vpop.f32.mrf.mxu3 }
 0xf7b   :  { %v5049_v0 = vsel %vm618_vm1, %v4967_v57, -inf }
 0xf7c   :  { %5050 = vmax.xlane.f32.xlu2 %v5049_v0  ;;  %v5048_v0 = vpop.xlane.xlu2 %5047 }
 0xf7d   :  { %v5076_v59 = vsub.f32 %v10948_v53, %v5048_v0 }
 0xf80   :  { %v4968_v37 = vpop.f32.mrf.mxu1 }
 0xf81   :  { %v4969_v20 = vadd.f32 %v10923_v26, %v4968_v37  ;;  %v5101_v37 = vmul.f32 1.442695, %v5076_v59 }
 0xf83   :  { %v5052_v2 = vsel %vm618_vm1, %v4969_v20, -inf  ;;  %8243 = vpow2.f32 %v5101_v37 }
 0xf84   :  { %5053 = vmax.xlane.f32.xlu0 %v5052_v2  ;;  %5119 = vadd.xlane.f32.xlu2 %v5118_v28  ;;  %v11051_v2 = vpop.eup %8241 }
 0xf85   :  { %v5121_v63 = vsel %vm618_vm1, %v11051_v2, 0.0 }
 0xf89   :  { %v11055_v28 = vpop.eup %8243 }
 0xf8c   :  { %5140 = vadd.xlane.f32.xlu2 %v5139_v58  ;;  %v5142_v58 = vsel %vm618_vm1, %v11055_v28, 0.0 }
 0xf90   :  { %v11031_v25 = vpop.f32.mrf.mxu3 }
 0xf91   :  { %11975 = vst [vmem:[#allocation27_spill] sm:$0xff] %v11031_v25 }
 0xf98   :  { %v11033_v10 = vpop.f32.mrf.mxu3  ;;  %5472 = vrot.lane.b32.xlu0 %v8657_v9, %s8401_s14 }
 0xf99   :  { %11976 = vst [vmem:[#allocation29_spill] sm:$0xff] %v11033_v10 }
 0xfa0   :  { %v11037_v49 = vpop.f32.mrf.mxu3 }
 0xfa8   :  { %v4920_v60 = vpop.f32.mrf.mxu3 }
 0xfa9   :  { %v11040_v51 = vadd.f32 %v10923_v26, %v4920_v60  ;;  %v11059_v60 = vpop.f32.mrf.mxu2 }
 0xfab   :  { %v5040_v36 = vsel %vm618_vm1, %v11040_v51, -inf }
 0xfac   :  { %5041 = vmax.xlane.f32.xlu2 %v5040_v36 }
 0xfb0   :  { %v5014_v3 = vpop.f32.mrf.mxu3 }
 0xfb1   :  { %v11046_v5 = vadd.f32 %v10911_v35, %v5014_v3  ;;  %v11061_v36 = vpop.f32.mrf.mxu2 }
 0xfb3   :  { %v5061_v9 = vsel %vm618_vm1, %v11046_v5, -inf }
 0xfb4   :  { %5062 = vmax.xlane.f32.xlu2 %v5061_v9 }
 0xfb9   :  { %v11063_v62 = vpop.f32.mrf.mxu2 }
 0xfba   :  { %11977 = vst [vmem:[#allocation43_spill] sm:$0xff] %v11063_v62 }
 0xfc1   :  { %v11065_v53 = vpop.f32.mrf.mxu2 }
 0xfc2   :  { %5122 = vadd.xlane.f32.xlu0 %v5121_v63  ;;  %11978 = vst [vmem:[#allocation45_spill] sm:$0xff] %v11065_v53 }
 0xfc7   :  { %v5117_v1 = vpop.xlane.xlu1 %5116 }
 0xfc8   :  { %8245 = vrcp.f32 %v5117_v1 }
 0xfc9   :  { %v4894_v9 = vpop.f32.mrf.mxu2 }
 0xfca   :  { %5143 = vadd.xlane.f32.xlu0 %v5142_v58  ;;  %v11073_v1 = vadd.f32 %v10911_v35, %v4894_v9 }
 0xfce   :  { %v8246_v63 = vpop.eup %8245 }
 0xfcf   :  { %v5179_v62 = vmul.f32 %v8246_v63, %v11004_v14  ;;  %v5031_v14 = vsel %vm618_vm1, %v11073_v1, -inf }
 0xfd1   :  { %v4896_v58 = vpop.f32.mrf.mxu2 }
 0xfd2   :  { %v11083_v9 = vadd.f32 %v10923_v26, %v4896_v58  ;;  %v11096_v58 = vadd.f32 %v10911_v35, %v11037_v49 }
 0xfef   :  { %v5051_v3 = vpop.xlane.xlu2 %5050 }
 0xff0   :  { %v5077_v40 = vsub.f32 %v4967_v57, %v5051_v3  ;;  %v5195_v3 = vpack.c.bf16 %v5179_v62, %v5179_v62 }
 0xff2   :  { %v5103_v0 = vmul.f32 1.442695, %v5077_v40 }
 0xff4   :  { %8247 = vpow2.f32 %v5103_v0 }
 0xff7   :  { %v5120_v59 = vpop.xlane.xlu2 %5119  ;;  %v5054_v37 = vpop.xlane.xlu0 %5053 }
 0xff8   :  { %8249 = vrcp.f32 %v5120_v59  ;;  %v5078_v25 = vsub.f32 %v4969_v20, %v5054_v37  ;;  %v5213_v59 = vunpack.c.l.b16 %v5195_v3  ;;  %v5034_v3 = vsel %vm618_vm1, %v11083_v9, -inf }
 0xffa   :  { %v11067_v10 = vpop.eup %8247  ;;  %v5105_v38 = vmul.f32 1.442695, %v5078_v25 }
 0xffb   :  { %v5145_v53 = vsel %vm618_vm1, %v11067_v10, 0.0 }
 0xffc   :  { %8251 = vpow2.f32 %v5105_v38  ;;  %5146 = vadd.xlane.f32.xlu0 %v5145_v53  ;;  %v4990_v38 = vpop.f32.mrf.mxu2 }
 0xffe   :  { %v8250_v57 = vpop.eup %8249 }
 0xfff   :  { %v5180_v40 = vmul.f32 %v8250_v57, %v11019_v56  ;;  %v11086_v56 = vadd.f32 %v10911_v35, %v4990_v38  ;;  %v5126_v35 = vpop.xlane.xlu1 %5125  ;;  %v5141_v49 = vpop.xlane.xlu2 %5140 }
0x1000   :  { %8253 = vrcp.f32 %v5126_v35 }
0x1001   :  { %v5196_v0 = vpack.c.bf16 %v5180_v40, %v5180_v40  ;;  %v5055_v57 = vsel %vm618_vm1, %v11086_v56, -inf  ;;  %v5016_v40 = vpop.f32.mrf.mxu3 }
0x1002   :  { %v11076_v20 = vpop.eup %8251 }
0x1003   :  { %v5214_v37 = vunpack.c.l.b16 %v5196_v0  ;;  %v5148_v25 = vsel %vm618_vm1, %v11076_v20, 0.0  ;;  %v11099_v0 = vadd.f32 %v10923_v26, %v5016_v40 }
0x1004   :  { %5032 = vmax.xlane.f32.xlu0 %v5031_v14  ;;  %5149 = vadd.xlane.f32.xlu1 %v5148_v25  ;;  %v4992_v14 = vpop.f32.mrf.mxu2 }
0x1005   :  { %v5215_v53 = vpack.c.b16 %v5214_v37, %v5213_v59  ;;  %v5064_v59 = vsel %vm618_vm1, %v11099_v0, -inf  ;;  %v5037_v37 = vsel %vm618_vm1, %v11096_v58, -inf  ;;  %v11106_v25 = vadd.f32 %v10923_v26, %v4992_v14 }
0x1007   :  { %7268 = vmatmul.msk.bf16.vlgmr.msra.gmra.mxu0 %vm618_vm1, %v5215_v53  ;;  %v5058_v38 = vsel %vm618_vm1, %v11106_v25, -inf }
0x100a   :  { %v5473_v62 = vpop.permute.xlu0 %5472 }
0x100b   :  { %v5478_v63 = vsel %vm618_vm1, %v5473_v62, 0  ;;  %v8254_v62 = vpop.eup %8253 }
0x100c   :  { %5056 = vmax.xlane.f32.xlu0 %v5055_v57  ;;  %5035 = vmax.xlane.f32.xlu1 %v5034_v3  ;;  %v5182_v26 = vmul.f32 %v8254_v62, %v11009_v12 }
0x100d   :  { %5487 = vmatpush.bf16.xpose.msra.mxu0 %v5478_v63 }
0x100e   :  { %v5198_v57 = vpack.c.bf16 %v5182_v26, %v5182_v26 }
0x1014   :  { %5065 = vmax.xlane.f32.xlu0 %v5064_v59  ;;  %5038 = vmax.xlane.f32.xlu1 %v5037_v37 }
0x101c   :  { %5059 = vmax.xlane.f32.xlu1 %v5058_v38  ;;  %v5242_v38 = vunpack.c.l.b16 %v5198_v57 }
0x101f   :  { %v5042_v3 = vpop.xlane.xlu2 %5041 }
0x1020   :  { %v5074_v14 = vsub.f32 %v11040_v51, %v5042_v3 }
0x1028   :  { %5496 = vrot.lane.b32.xlu0 %v8679_v32, %s8401_s14 }
0x1035   :  { %5470 = vrot.lane.b32.xlu1 %v8668_v19, %s8401_s14  ;;  %v5123_v53 = vpop.xlane.xlu0 %5122 }
0x1036   :  { %8255 = vrcp.f32 %v5123_v53 }
0x1037   :  { %8257 = vrcp.f32 %v5141_v49  ;;  %v5097_v49 = vmul.f32 1.442695, %v5074_v14 }
0x103c   :  { %v8256_v63 = vpop.eup %8255 }
0x103d   :  { %v5181_v40 = vmul.f32 %v8256_v63, %v11051_v2  ;;  %v5144_v59 = vpop.xlane.xlu0 %5143  ;;  %v8258_v37 = vpop.eup %8257 }
0x103e   :  { %8259 = vrcp.f32 %v5144_v59  ;;  %v5187_v19 = vmul.f32 %v8258_v37, %v11025_v16 }
0x103f   :  { %v5197_v32 = vpack.c.bf16 %v5181_v40, %v5181_v40  ;;  %8261 = vpow2.f32 %v5097_v49 }
0x1040   :  { %v5203_v11 = vpack.c.bf16 %v5187_v19, %v5187_v19 }
0x1041   :  { %v5241_v35 = vunpack.c.l.b16 %v5197_v32 }
0x1042   :  { %v5325_v2 = vunpack.c.l.b16 %v5203_v11 }
0x1043   :  { %v5243_v45 = vpack.c.b16 %v5242_v38, %v5241_v35 }
0x1044   :  { %v8260_v53 = vpop.eup %8259 }
0x1045   :  { %v5188_v12 = vmul.f32 %v8260_v53, %v11055_v28  ;;  %7269 = vmatmul.msk.bf16.vlgmr.msra.gmra.mxu1 %vm618_vm1, %v5243_v45  ;;  %v11121_v51 = vpop.eup %8261 }
0x1046   :  { %v5136_v16 = vsel %vm618_vm1, %v11121_v51, 0.0 }
0x1047   :  { %v5204_v62 = vpack.c.bf16 %v5188_v12, %v5188_v12 }
0x1049   :  { %v5326_v26 = vunpack.c.l.b16 %v5204_v62 }
0x104b   :  { %v5327_v63 = vpack.c.b16 %v5326_v26, %v5325_v2 }
0x104d   :  { %7272 = vmatmul.msk.bf16.vlgmr.msrb.gmra.mxu0 %vm618_vm1, %v5327_v63 }
0x1052   :  { %5137 = vadd.xlane.f32.xlu0 %v5136_v16  ;;  %v5063_v16 = vpop.xlane.xlu2 %5062 }
0x1066   :  { %5494 = vrot.lane.b32.xlu0 %v8689_v44, %s8401_s14 }
0x106e   :  { %5544 = vrot.lane.b32.xlu0 %v8723_v34, %s8401_s14 }
0x106f   :  { %v5147_v45 = vpop.xlane.xlu0 %5146 }
0x1070   :  { %8263 = vrcp.f32 %v5147_v45 }
0x1076   :  { %5568 = vrot.lane.b32.xlu0 %v8741_v13, %s8401_s14  ;;  %v8264_v57 = vpop.eup %8263 }
0x1077   :  { %v5150_v11 = vpop.xlane.xlu1 %5149  ;;  %v5033_v28 = vpop.xlane.xlu0 %5032  ;;  %v5189_v59 = vmul.f32 %v8264_v57, %v11067_v10 }
0x1078   :  { %8265 = vrcp.f32 %v5150_v11  ;;  %v5071_v3 = vsub.f32 %v11073_v1, %v5033_v28 }
0x1079   :  { %v5205_v44 = vpack.c.bf16 %v5189_v59, %v5189_v59 }
0x107a   :  { %v5091_v40 = vmul.f32 1.442695, %v5071_v3 }
0x107b   :  { %v5353_v10 = vunpack.c.l.b16 %v5205_v44 }
0x107c   :  { %8267 = vpow2.f32 %v5091_v40 }
0x107e   :  { %v8266_v37 = vpop.eup %8265  ;;  %5616 = vrot.lane.b32.xlu0 %v8814_v39, %s8401_s14 }
0x107f   :  { %v5190_v34 = vmul.f32 %v8266_v37, %v11076_v20  ;;  %v5036_v32 = vpop.xlane.xlu1 %5035  ;;  %v5057_v14 = vpop.xlane.xlu0 %5056 }
0x1080   :  { %v5072_v13 = vsub.f32 %v11083_v9, %v5036_v32  ;;  %v5079_v38 = vsub.f32 %v11086_v56, %v5057_v14 }
0x1081   :  { %v5206_v19 = vpack.c.bf16 %v5190_v34, %v5190_v34 }
0x1082   :  { %v11138_v35 = vpop.eup %8267  ;;  %v5093_v1 = vmul.f32 1.442695, %v5072_v13  ;;  %v5107_v53 = vmul.f32 1.442695, %v5079_v38 }
0x1083   :  { %v5354_v49 = vunpack.c.l.b16 %v5206_v19  ;;  %v5127_v12 = vsel %vm618_vm1, %v11138_v35, 0.0 }
0x1084   :  { %8269 = vpow2.f32 %v5093_v1  ;;  %5128 = vadd.xlane.f32.xlu1 %v5127_v12 }
0x1085   :  { %v5355_v39 = vpack.c.b16 %v5354_v49, %v5353_v10  ;;  %8271 = vpow2.f32 %v5107_v53 }
0x1086   :  { %5640 = vrot.lane.b32.xlu0 %v8850_v61, %s8401_s14 }
0x1087   :  { %v5039_v20 = vpop.xlane.xlu1 %5038  ;;  %7273 = vmatmul.msk.bf16.vlgmr.msrb.gmra.mxu1 %vm618_vm1, %v5355_v39  ;;  %v5066_v28 = vpop.xlane.xlu0 %5065 }
0x1088   :  { %v5073_v9 = vsub.f32 %v11096_v58, %v5039_v20  ;;  %v5081_v58 = vsub.f32 %v11046_v5, %v5063_v16  ;;  %v5082_v37 = vsub.f32 %v11099_v0, %v5066_v28 }
0x108a   :  { %v8270_v56 = vpop.eup %8269  ;;  %v5095_v62 = vmul.f32 1.442695, %v5073_v9  ;;  %v5111_v40 = vmul.f32 1.442695, %v5081_v58  ;;  %v5113_v5 = vmul.f32 1.442695, %v5082_v37 }
0x108b   :  { %v11146_v2 = vpop.eup %8271  ;;  %v5130_v26 = vsel %vm618_vm1, %v8270_v56, 0.0 }
0x108c   :  { %8273 = vpow2.f32 %v5095_v62  ;;  %5131 = vadd.xlane.f32.xlu2 %v5130_v26  ;;  %v5151_v63 = vsel %vm618_vm1, %v11146_v2, 0.0 }
0x108d   :  { %5152 = vadd.xlane.f32.xlu1 %v5151_v63 }
0x108f   :  { %v5060_v45 = vpop.xlane.xlu1 %5059 }
0x1090   :  { %v5080_v61 = vsub.f32 %v11106_v25, %v5060_v45 }
0x1092   :  { %v11152_v11 = vpop.eup %8273  ;;  %v5109_v57 = vmul.f32 1.442695, %v5080_v61 }
0x1093   :  { %v5133_v3 = vsel %vm618_vm1, %v11152_v11, 0.0 }
0x1094   :  { %8275 = vpow2.f32 %v5109_v57  ;;  %5134 = vadd.xlane.f32.xlu2 %v5133_v3 }
0x1095   :  { %8277 = vpow2.f32 %v5111_v40 }
0x1096   :  { %8279 = vpow2.f32 %v5113_v5 }
0x109a   :  { %v11157_v59 = vpop.eup %8275  ;;  %v5497_v44 = vpop.permute.xlu0 %5496 }
0x109b   :  { %v5502_v25 = vsel %vm618_vm1, %v5497_v44, 0  ;;  %v5154_v34 = vsel %vm618_vm1, %v11157_v59, 0.0  ;;  %v11163_v32 = vpop.eup %8277 }
0x109c   :  { %5155 = vadd.xlane.f32.xlu2 %v5154_v34  ;;  %5511 = vmatpush.bf16.xpose.msra.mxu1 %v5502_v25  ;;  %v5157_v14 = vsel %vm618_vm1, %v11163_v32, 0.0  ;;  %v11169_v13 = vpop.eup %8279 }
0x109d   :  { %v5160_v38 = vsel %vm618_vm1, %v11169_v13, 0.0 }
0x10a4   :  { %5158 = vadd.xlane.f32.xlu2 %v5157_v14 }
0x10a6   :  { %5518 = vrot.lane.b32.xlu1 %v8701_v7, %s8401_s14 }
0x10a7   :  { %v5471_v0 = vpop.permute.xlu1 %5470 }
0x10a8   :  { %7294 = vmatmul.msk.bf16.vlgmr.msra.gmra.mxu0 %vm618_vm1, %v5471_v0 }
0x10ac   :  { %5161 = vadd.xlane.f32.xlu2 %v5160_v38 }
0x10ae   :  { %5542 = vrot.lane.b32.xlu1 %v8730_v46, %s8401_s14 }
0x10b6   :  { %5566 = vrot.lane.b32.xlu1 %v11912_v4, %s8401_s14 }
0x10be   :  { %5590 = vrot.lane.b32.xlu1 %v8797_v48, %s8401_s14 }
0x10c4   :  { %5520 = vrot.lane.b32.xlu2 %v8699_v6, %s8401_s14 }
0x10c5   :  { %v5138_v7 = vpop.xlane.xlu0 %5137 }
0x10c6   :  { %5638 = vrot.lane.b32.xlu1 %v8860_v47, %s8401_s14  ;;  %v11190_v47 = vpop.f32.mrf.mxu0 }
0x10cc   :  { %5592 = vrot.lane.b32.xlu2 %v8777_v18, %s8401_s14 }
0x10ce   :  { %v11193_v62 = vpop.f32.mrf.mxu0 }
0x10d4   :  { %5614 = vrot.lane.b32.xlu2 %v8830_v23, %s8401_s14 }
0x10d6   :  { %v11198_v40 = vpop.f32.mrf.mxu0 }
0x10d8   :  { %v5495_v46 = vpop.permute.xlu0 %5494 }
0x10d9   :  { %7295 = vmatmul.msk.bf16.vlgmr.msra.gmra.mxu1 %vm618_vm1, %v5495_v46 }
0x10e0   :  { %v5545_v4 = vpop.permute.xlu0 %5544 }
0x10e1   :  { %v5550_v34 = vsel %vm618_vm1, %v5545_v4, 0 }
0x10e8   :  { %v5569_v19 = vpop.permute.xlu0 %5568 }
0x10e9   :  { %v5574_v48 = vsel %vm618_vm1, %v5569_v19, 0  ;;  %v11204_v19 = vpop.f32.mrf.mxu0 }
0x10ea   :  { %5583 = vmatpush.bf16.xpose.msrb.mxu0 %v5574_v48 }
0x10f7   :  { %v5129_v1 = vpop.xlane.xlu1 %5128 }
0x10f8   :  { %8281 = vrcp.f32 %v5129_v1 }
0x10fe   :  { %v8282_v53 = vpop.eup %8281 }
0x10ff   :  { %v5132_v6 = vpop.xlane.xlu2 %5131  ;;  %v5183_v18 = vmul.f32 %v8282_v53, %v11138_v35  ;;  %v11211_v53 = vld [vmem:[%s11795_s3 + $0x70] sm:$0xff] }
0x1100   :  { %8283 = vrcp.f32 %v5132_v6  ;;  %v5153_v12 = vpop.xlane.xlu1 %5152  ;;  %v5617_v6 = vpop.permute.xlu0 %5616 }
0x1101   :  { %8285 = vrcp.f32 %v5138_v7  ;;  %v5199_v23 = vpack.c.bf16 %v5183_v18, %v5183_v18 }
0x1103   :  { %v5269_v63 = vunpack.c.l.b16 %v5199_v23 }
0x1106   :  { %v8284_v10 = vpop.eup %8283 }
0x1107   :  { %v5184_v49 = vmul.f32 %v8284_v10, %v8270_v56  ;;  %v5135_v39 = vpop.xlane.xlu2 %5134  ;;  %v8286_v20 = vpop.eup %8285 }
0x1108   :  { %8287 = vrcp.f32 %v5135_v39  ;;  %v5186_v26 = vmul.f32 %v8286_v20, %v11121_v51 }
0x1109   :  { %v5200_v9 = vpack.c.bf16 %v5184_v49, %v5184_v49  ;;  %8289 = vrcp.f32 %v5153_v12 }
0x110a   :  { %v5202_v58 = vpack.c.bf16 %v5186_v26, %v5186_v26 }
0x110b   :  { %v5270_v16 = vunpack.c.l.b16 %v5200_v9 }
0x110c   :  { %v5298_v3 = vunpack.c.l.b16 %v5202_v58 }
0x110d   :  { %v5271_v45 = vpack.c.b16 %v5270_v16, %v5269_v63  ;;  %v5622_v63 = vsel %vm618_vm1, %v5617_v6, 0 }
0x110e   :  { %v8288_v61 = vpop.eup %8287 }
0x110f   :  { %v5185_v35 = vmul.f32 %v8288_v61, %v11152_v11  ;;  %v5156_v28 = vpop.xlane.xlu2 %5155  ;;  %7270 = vmatmul.msk.bf16.vlgmr.msrb.gmra.mxu2 %vm618_vm1, %v5271_v45  ;;  %v8290_v56 = vpop.eup %8289 }
0x1110   :  { %8291 = vrcp.f32 %v5156_v28  ;;  %v5191_v37 = vmul.f32 %v8290_v56, %v11146_v2  ;;  %v5641_v61 = vpop.permute.xlu0 %5640 }
0x1111   :  { %v5201_v57 = vpack.c.bf16 %v5185_v35, %v5185_v35  ;;  %v5646_v56 = vsel %vm618_vm1, %v5641_v61, 0 }
0x1112   :  { %v5207_v5 = vpack.c.bf16 %v5191_v37, %v5191_v37 }
0x1113   :  { %v5297_v44 = vunpack.c.l.b16 %v5201_v57 }
0x1114   :  { %v5381_v7 = vunpack.c.l.b16 %v5207_v5 }
0x1115   :  { %v5299_v51 = vpack.c.b16 %v5298_v3, %v5297_v44  ;;  %v11233_v44 = vpop.f32.mrf.mxu1 }
0x1116   :  { %v8292_v25 = vpop.eup %8291 }
0x1117   :  { %v5192_v14 = vmul.f32 %v8292_v25, %v11157_v59  ;;  %v5159_v11 = vpop.xlane.xlu2 %5158  ;;  %7271 = vmatmul.msk.bf16.vlgmr.msrb.gmra.mxu3 %vm618_vm1, %v5299_v51 }
0x1118   :  { %v5519_v0 = vpop.permute.xlu1 %5518  ;;  %5559 = vmatpush.bf16.xpose.msrb.mxu3 %v5550_v34  ;;  %8293 = vrcp.f32 %v5159_v11 }
0x1119   :  { %v5208_v38 = vpack.c.bf16 %v5192_v14, %v5192_v14 }
0x111b   :  { %v5382_v46 = vunpack.c.l.b16 %v5208_v38 }
0x111d   :  { %v5383_v2 = vpack.c.b16 %v5382_v46, %v5381_v7  ;;  %v11236_v25 = vpop.f32.mrf.mxu1 }
0x111e   :  { %v8294_v1 = vpop.eup %8293 }
0x111f   :  { %7274 = vmatmul.msk.bf16.vlgmr.msra.gmra.mxu2 %vm618_vm1, %v5383_v2  ;;  %v5162_v48 = vpop.xlane.xlu2 %5161  ;;  %v5193_v59 = vmul.f32 %v8294_v1, %v11163_v32 }
0x1120   :  { %v5543_v4 = vpop.permute.xlu1 %5542  ;;  %8295 = vrcp.f32 %v5162_v48 }
0x1121   :  { %v5209_v49 = vpack.c.bf16 %v5193_v59, %v5193_v59 }
0x1123   :  { %v5409_v16 = vunpack.c.l.b16 %v5209_v49 }
0x1125   :  { %v5489_v18 = vpop.f32.mrf.mxu0  ;;  %v11240_v5 = vpop.f32.mrf.mxu1 }
0x1126   :  { %v8296_v10 = vpop.eup %8295  ;;  %v11214_v23 = vadd.f32 %v11211_v53, %v5489_v18 }
0x1127   :  { %v5194_v12 = vmul.f32 %v8296_v10, %v11169_v13  ;;  %v5521_v39 = vpop.permute.xlu2 %5520  ;;  %v11225_v13 = vld [vmem:[%s11795_s3 + $0x78] sm:$0xff] }
0x1128   :  { %v5567_v20 = vpop.permute.xlu1 %5566  ;;  %v5526_v9 = vsel %vm618_vm1, %v5521_v39, 0  ;;  %v5662_v32 = vsel %vm618_vm1, %v11214_v23, -inf }
0x1129   :  { %v5210_v26 = vpack.c.bf16 %v5194_v12, %v5194_v12  ;;  %7298 = vmatmul.msk.bf16.vlgmr.msrb.gmra.mxu0 %vm618_vm1, %v5567_v20  ;;  %5663 = vmax.xlane.f32.xlu2 %v5662_v32 }
0x112a   :  { %5535 = vmatpush.bf16.xpose.msrb.mxu2 %v5526_v9 }
0x112b   :  { %v5410_v45 = vunpack.c.l.b16 %v5210_v26 }
0x112d   :  { %v5411_v58 = vpack.c.b16 %v5410_v45, %v5409_v16  ;;  %v5491_v35 = vpop.f32.mrf.mxu0  ;;  %v11242_v14 = vpop.f32.mrf.mxu1 }
0x112e   :  { %v5492_v28 = vadd.f32 %v11225_v13, %v5491_v35  ;;  %11979 = vst [vmem:[#allocation31_spill] sm:$0xff] %v11242_v14 }
0x112f   :  { %v5593_v57 = vpop.permute.xlu2 %5592  ;;  %7275 = vmatmul.msk.bf16.vlgmr.msra.gmra.mxu3 %vm618_vm1, %v5411_v58 }
0x1130   :  { %v5598_v3 = vsel %vm618_vm1, %v5593_v57, 0  ;;  %5655 = vmatpush.bf16.xpose.msra.mxu3 %v5646_v56  ;;  %v5665_v37 = vsel %vm618_vm1, %v5492_v28, -inf  ;;  %v5591_v51 = vpop.permute.xlu1 %5590 }
0x1131   :  { %7296 = vmatmul.msk.bf16.vlgmr.msrb.gmra.mxu2 %vm618_vm1, %v5519_v0  ;;  %5666 = vmax.xlane.f32.xlu0 %v5665_v37 }
0x1132   :  { %5631 = vmatpush.bf16.xpose.msra.mxu2 %v5622_v63  ;;  %5607 = vmatpush.bf16.xpose.msrb.mxu1 %v5598_v3 }
0x1137   :  { %v5615_v34 = vpop.permute.xlu2 %5614 }
0x1138   :  { %v5639_v11 = vpop.permute.xlu1 %5638 }
0x1139   :  { %7299 = vmatmul.msk.bf16.vlgmr.msrb.gmra.mxu1 %vm618_vm1, %v5591_v51 }
0x113f   :  { %7297 = vmatmul.msk.bf16.vlgmr.msrb.gmra.mxu3 %vm618_vm1, %v5543_v4 }
0x1141   :  { %7300 = vmatmul.msk.bf16.vlgmr.msra.gmra.mxu2 %vm618_vm1, %v5615_v34 }
0x114f   :  { %7301 = vmatmul.msk.bf16.vlgmr.msra.gmra.mxu3 %vm618_vm1, %v5639_v11 }
0x1156   :  { %v5513_v0 = vpop.f32.mrf.mxu1 }
0x1157   :  { %v5514_v38 = vadd.f32 %v11211_v53, %v5513_v0 }
0x1159   :  { %v5668_v7 = vsel %vm618_vm1, %v5514_v38, -inf }
0x115a   :  { %5669 = vmax.xlane.f32.xlu1 %v5668_v7 }
0x115e   :  { %v5515_v46 = vpop.f32.mrf.mxu1 }
0x115f   :  { %v5516_v2 = vadd.f32 %v11225_v13, %v5515_v46 }
0x1161   :  { %v5671_v48 = vsel %vm618_vm1, %v5516_v2, -inf }
0x1162   :  { %5672 = vmax.xlane.f32.xlu2 %v5671_v48 }
0x1173   :  { %5859 = vrot.lane.b32.xlu1 %v10833_v21, %s8396_s9 }
0x117b   :  { %5884 = vrot.lane.b32.xlu1 %v10889_v33, %s8396_s9 }
0x1192   :  { %v11255_v4 = vpop.f32.mrf.mxu2 }
0x119a   :  { %v11253_v1 = vpop.f32.mrf.mxu3  ;;  %v11264_v21 = vpop.f32.mrf.mxu2 }
0x119c   :  { %v5664_v16 = vpop.xlane.xlu2 %5663 }
0x119d   :  { %v5710_v58 = vsub.f32 %v11214_v23, %v5664_v16 }
0x119f   :  { %v5726_v57 = vmul.f32 1.442695, %v5710_v58 }
0x11a2   :  { %v11262_v39 = vpop.f32.mrf.mxu3  ;;  %v11281_v35 = vpop.f32.mrf.mxu2 }
0x11a4   :  { %v5667_v6 = vpop.xlane.xlu0 %5666 }
0x11a5   :  { %v5711_v59 = vsub.f32 %v5492_v28, %v5667_v6 }
0x11a6   :  { %v5585_v18 = vpop.f32.mrf.mxu0 }
0x11a7   :  { %v5728_v10 = vmul.f32 1.442695, %v5711_v59  ;;  %v11258_v49 = vadd.f32 %v11211_v53, %v5585_v18 }
0x11a9   :  { %8297 = vpow2.f32 %v5728_v10  ;;  %v5686_v12 = vsel %vm618_vm1, %v11258_v49, -inf }
0x11aa   :  { %5687 = vmax.xlane.f32.xlu0 %v5686_v12  ;;  %8299 = vpow2.f32 %v5726_v57  ;;  %v11292_v34 = vpop.f32.mrf.mxu2 }
0x11ae   :  { %v5587_v33 = vpop.f32.mrf.mxu0 }
0x11af   :  { %v11266_v20 = vpop.eup %8297  ;;  %v11269_v9 = vadd.f32 %v11225_v13, %v5587_v33 }
0x11b0   :  { %v5761_v32 = vsel %vm618_vm1, %v11266_v20, 0.0  ;;  %v11299_v7 = vpop.eup %8299 }
0x11b1   :  { %v5689_v26 = vsel %vm618_vm1, %v11269_v9, -inf  ;;  %5762 = vadd.xlane.f32.xlu1 %v5761_v32  ;;  %v5758_v46 = vsel %vm618_vm1, %v11299_v7, 0.0 }
0x11b2   :  { %5690 = vmax.xlane.f32.xlu2 %v5689_v26  ;;  %v11275_v63 = vpop.f32.mrf.mxu3 }
0x11b3   :  { %11980 = vst [vmem:[#allocation33_spill] sm:$0xff] %v11275_v63 }
0x11b4   :  { %v5537_v48 = vpop.f32.mrf.mxu2 }
0x11b6   :  { %v5609_v45 = vpop.f32.mrf.mxu1 }
0x11b7   :  { %v11278_v61 = vadd.f32 %v11211_v53, %v5609_v45  ;;  %v11308_v45 = vadd.f32 %v11211_v53, %v5537_v48 }
0x11b9   :  { %v5692_v28 = vsel %vm618_vm1, %v11278_v61, -inf  ;;  %v5674_v57 = vsel %vm618_vm1, %v11308_v45, -inf }
0x11ba   :  { %5693 = vmax.xlane.f32.xlu0 %v5692_v28  ;;  %v11285_v56 = vpop.f32.mrf.mxu3 }
0x11bb   :  { %11981 = vst [vmem:[#allocation47_spill] sm:$0xff] %v11285_v56 }
0x11bc   :  { %v5539_v12 = vpop.f32.mrf.mxu2 }
0x11be   :  { %v5611_v3 = vpop.f32.mrf.mxu1 }
0x11bf   :  { %v11288_v37 = vadd.f32 %v11225_v13, %v5611_v3  ;;  %v11319_v3 = vadd.f32 %v11225_v13, %v5539_v12 }
0x11c1   :  { %v5695_v51 = vsel %vm618_vm1, %v11288_v37, -inf }
0x11c2   :  { %5696 = vmax.xlane.f32.xlu2 %v5695_v51  ;;  %v5561_v23 = vpop.f32.mrf.mxu3 }
0x11c3   :  { %v11295_v11 = vadd.f32 %v11211_v53, %v5561_v23 }
0x11c4   :  { %v5633_v28 = vpop.f32.mrf.mxu2 }
0x11c5   :  { %v5680_v0 = vsel %vm618_vm1, %v11295_v11, -inf  ;;  %v11322_v51 = vadd.f32 %v11211_v53, %v5633_v28 }
0x11c6   :  { %5681 = vmax.xlane.f32.xlu1 %v5680_v0  ;;  %v5677_v0 = vsel %vm618_vm1, %v11319_v3, -inf }
0x11ca   :  { %5759 = vadd.xlane.f32.xlu2 %v5758_v46  ;;  %v5563_v58 = vpop.f32.mrf.mxu3  ;;  %v5698_v46 = vsel %vm618_vm1, %v11322_v51, -inf }
0x11cc   :  { %v5635_v48 = vpop.f32.mrf.mxu2 }
0x11cd   :  { %v5670_v6 = vpop.xlane.xlu1 %5669 }
0x11ce   :  { %v5712_v59 = vsub.f32 %v5514_v38, %v5670_v6  ;;  %v11329_v6 = vadd.f32 %v11225_v13, %v5563_v58 }
0x11d0   :  { %v5730_v18 = vmul.f32 1.442695, %v5712_v59  ;;  %v11332_v59 = vadd.f32 %v11225_v13, %v5635_v48  ;;  %v5683_v12 = vsel %vm618_vm1, %v11329_v6, -inf }
0x11d2   :  { %8301 = vpow2.f32 %v5730_v18 }
0x11d5   :  { %v5673_v10 = vpop.xlane.xlu2 %5672 }
0x11d6   :  { %v5713_v33 = vsub.f32 %v5516_v2, %v5673_v10  ;;  %v5701_v10 = vsel %vm618_vm1, %v11332_v59, -inf }
0x11d8   :  { %v11303_v32 = vpop.eup %8301  ;;  %v5732_v26 = vmul.f32 1.442695, %v5713_v33 }
0x11d9   :  { %v5764_v16 = vsel %vm618_vm1, %v11303_v32, 0.0 }
0x11da   :  { %8303 = vpow2.f32 %v5732_v26  ;;  %5765 = vadd.xlane.f32.xlu0 %v5764_v16 }
0x11df   :  { %5909 = vrot.lane.b32.xlu1 %v10972_v55, %s8396_s9  ;;  %v5657_v55 = vpop.f32.mrf.mxu3 }
0x11e0   :  { %v11312_v38 = vpop.eup %8303  ;;  %v11344_v58 = vadd.f32 %v11211_v53, %v5657_v55 }
0x11e1   :  { %v5767_v2 = vsel %vm618_vm1, %v11312_v38, 0.0 }
0x11e2   :  { %5768 = vadd.xlane.f32.xlu2 %v5767_v2  ;;  %5675 = vmax.xlane.f32.xlu0 %v5674_v57  ;;  %v5704_v28 = vsel %vm618_vm1, %v11344_v58, -inf }
0x11e5   :  { %v5860_v23 = vpop.permute.xlu1 %5859 }
0x11e6   :  { %5872 = vmatpush.bf16.msra.mxu0 %v5860_v23 }
0x11e7   :  { %v5659_v33 = vpop.f32.mrf.mxu3 }
0x11e8   :  { %v11339_v26 = vadd.f32 %v11225_v13, %v5659_v33 }
0x11ea   :  { %5678 = vmax.xlane.f32.xlu2 %v5677_v0  ;;  %5699 = vmax.xlane.f32.xlu0 %v5698_v46  ;;  %v5707_v16 = vsel %vm618_vm1, %v11339_v26, -inf }
0x11ed   :  { %v5885_v18 = vpop.permute.xlu1 %5884 }
0x11ee   :  { %5897 = vmatpush.bf16.msra.mxu1 %v5885_v18 }
0x11f2   :  { %5702 = vmax.xlane.f32.xlu2 %v5701_v10  ;;  %5684 = vmax.xlane.f32.xlu0 %v5683_v12 }
0x11fa   :  { %5708 = vmax.xlane.f32.xlu0 %v5707_v16 }
0x1209   :  { %5705 = vmax.xlane.f32.xlu1 %v5704_v28 }
0x121d   :  { %v5688_v13 = vpop.xlane.xlu0 %5687 }
0x1224   :  { %v5763_v23 = vpop.xlane.xlu1 %5762 }
0x1225   :  { %v11348_v2 = vpop.xlane.xlu2 %5690  ;;  %8305 = vrcp.f32 %v5763_v23 }
0x122b   :  { %v8306_v18 = vpop.eup %8305 }
0x122c   :  { %v5823_v55 = vmul.f32 %v8306_v18, %v11266_v20 }
0x122d   :  { %v11356_v33 = vpop.xlane.xlu0 %5693 }
0x122e   :  { %v5839_v16 = vpack.c.bf16 %v5823_v55, %v5823_v55 }
0x1230   :  { %v5857_v23 = vunpack.c.l.b16 %v5839_v16 }
0x1235   :  { %v5697_v57 = vpop.xlane.xlu2 %5696 }
0x1236   :  { %v5721_v0 = vsub.f32 %v11288_v37, %v5697_v57 }
0x1238   :  { %v5748_v46 = vmul.f32 1.442695, %v5721_v0 }
0x1239   :  { %v5682_v57 = vpop.xlane.xlu1 %5681 }
0x123a   :  { %8307 = vpow2.f32 %v5748_v46  ;;  %v5716_v55 = vsub.f32 %v11295_v11, %v5682_v57 }
0x123d   :  { %v5760_v48 = vpop.xlane.xlu2 %5759 }
0x123e   :  { %8309 = vrcp.f32 %v5760_v48 }
0x1240   :  { %v11351_v10 = vpop.eup %8307 }
0x1241   :  { %v5791_v53 = vsel %vm618_vm1, %v11351_v10, 0.0 }
0x1242   :  { %5792 = vadd.xlane.f32.xlu1 %v5791_v53 }
0x1244   :  { %v8310_v12 = vpop.eup %8309 }
0x1245   :  { %v5822_v37 = vmul.f32 %v8310_v12, %v11299_v7 }
0x1247   :  { %v5838_v28 = vpack.c.bf16 %v5822_v37, %v5822_v37  ;;  %v5738_v37 = vmul.f32 1.442695, %v5716_v55 }
0x1249   :  { %v5856_v0 = vunpack.c.l.b16 %v5838_v28 }
0x124b   :  { %v5858_v46 = vpack.c.b16 %v5857_v23, %v5856_v0 }
0x124d   :  { %v5766_v48 = vpop.xlane.xlu0 %5765  ;;  %7302 = vmatmul.msk.bf16.vlgmr.msra.gmra.mxu0 %vm618_vm1, %v5858_v46 }
0x124e   :  { %8311 = vrcp.f32 %v5766_v48 }
0x1251   :  { %v5910_v56 = vpop.permute.xlu1 %5909 }
0x1252   :  { %5922 = vmatpush.bf16.msrb.mxu2 %v5910_v56 }
0x1254   :  { %v8312_v18 = vpop.eup %8311 }
0x1255   :  { %v5769_v63 = vpop.xlane.xlu2 %5768  ;;  %v5676_v20 = vpop.xlane.xlu0 %5675  ;;  %v5824_v12 = vmul.f32 %v8312_v18, %v11303_v32 }
0x1256   :  { %8313 = vrcp.f32 %v5769_v63  ;;  %v5714_v53 = vsub.f32 %v11308_v45, %v5676_v20  ;;  %v5718_v63 = vsub.f32 %v11258_v49, %v5688_v13 }
0x1257   :  { %v5840_v28 = vpack.c.bf16 %v5824_v12, %v5824_v12 }
0x1258   :  { %v5734_v7 = vmul.f32 1.442695, %v5714_v53 }
0x1259   :  { %v5881_v45 = vunpack.c.l.b16 %v5840_v28 }
0x125a   :  { %8315 = vpow2.f32 %v5734_v7  ;;  %v5719_v7 = vsub.f32 %v11269_v9, %v11348_v2 }
0x125b   :  { %8317 = vpow2.f32 %v5738_v37 }
0x125c   :  { %v8314_v16 = vpop.eup %8313 }
0x125d   :  { %v5825_v23 = vmul.f32 %v8314_v16, %v11312_v38  ;;  %v5679_v0 = vpop.xlane.xlu2 %5678  ;;  %v5700_v46 = vpop.xlane.xlu0 %5699  ;;  %v5742_v38 = vmul.f32 1.442695, %v5718_v63 }
0x125e   :  { %v5715_v56 = vsub.f32 %v11319_v3, %v5679_v0 }
0x125f   :  { %v5841_v48 = vpack.c.bf16 %v5825_v23, %v5825_v23 }
0x1260   :  { %v11365_v14 = vpop.eup %8315  ;;  %v5736_v11 = vmul.f32 1.442695, %v5715_v56 }
0x1261   :  { %v5882_v57 = vunpack.c.l.b16 %v5841_v48  ;;  %v5770_v32 = vsel %vm618_vm1, %v11365_v14, 0.0  ;;  %v11371_v53 = vpop.eup %8317 }
0x1262   :  { %8319 = vpow2.f32 %v5736_v11  ;;  %5771 = vadd.xlane.f32.xlu0 %v5770_v32  ;;  %v5776_v28 = vsel %vm618_vm1, %v11371_v53, 0.0 }
0x1263   :  { %v5883_v20 = vpack.c.b16 %v5882_v57, %v5881_v45  ;;  %8321 = vpow2.f32 %v5742_v38  ;;  %v5720_v45 = vsub.f32 %v11278_v61, %v11356_v33 }
0x1265   :  { %v5703_v18 = vpop.xlane.xlu2 %5702  ;;  %7303 = vmatmul.msk.bf16.vlgmr.msra.gmra.mxu1 %vm618_vm1, %v5883_v20  ;;  %v5685_v3 = vpop.xlane.xlu0 %5684  ;;  %v5746_v32 = vmul.f32 1.442695, %v5720_v45  ;;  %v5722_v20 = vsub.f32 %v11322_v51, %v5700_v46 }
0x1266   :  { %v5723_v55 = vsub.f32 %v11332_v59, %v5703_v18  ;;  %v5717_v49 = vsub.f32 %v11329_v6, %v5685_v3  ;;  %v5744_v59 = vmul.f32 1.442695, %v5719_v7 }
0x1267   :  { %v5750_v18 = vmul.f32 1.442695, %v5722_v20 }
0x1268   :  { %v11375_v13 = vpop.eup %8319  ;;  %v5752_v12 = vmul.f32 1.442695, %v5723_v55  ;;  %v5740_v16 = vmul.f32 1.442695, %v5717_v49  ;;  %v11982_v49 = vld [vmem:[#allocation69_spill] sm:$0xff] }
0x1269   :  { %v5773_v37 = vsel %vm618_vm1, %v11375_v13, 0.0  ;;  %v11383_v6 = vpop.eup %8321  ;;  %v7109_v7 = vclamps-f32 %v11982_v49, 1.0 }
0x126a   :  { %8323 = vpow2.f32 %v5752_v12  ;;  %5774 = vadd.xlane.f32.xlu2 %v5773_v37  ;;  %5777 = vadd.xlane.f32.xlu0 %v5776_v28  ;;  %v5782_v2 = vsel %vm618_vm1, %v11383_v6, 0.0  ;;  %v11983_v12 = vld [vmem:[#allocation14_spill] sm:$0xff]  ;;  %v7243_v28 = vclamps-f32 %v10892_v52, 1.0  ;;  %v7175_v52 = vclamps-f32 %v10243_v54, 1.0 }
0x126b   :  { %8325 = vpow2.f32 %v5740_v16  ;;  %v7108_v16 = vclamps-f32 %v11983_v12, 1.0 }
0x126c   :  { %8327 = vpow2.f32 %v5744_v59  ;;  %v7242_v59 = vclamps-f32 %v10886_v27, 1.0  ;;  %v11985_v27 = vld [vmem:[#allocation6_spill] sm:$0xff] }
0x126d   :  { %8329 = vpow2.f32 %v5746_v32  ;;  %v5709_v3 = vpop.xlane.xlu0 %5708  ;;  %v7713_v37 = vpack.i.bf16 %v7109_v7, %v7108_v16  ;;  %v7106_v32 = vclamps-f32 %v11985_v27, 1.0 }
0x1270   :  { %v11385_v23 = vpop.eup %8323 }
0x1271   :  { %v11387_v0 = vpop.eup %8325  ;;  %v5797_v9 = vsel %vm618_vm1, %v11385_v23, 0.0 }
0x1272   :  { %5798 = vadd.xlane.f32.xlu1 %v5797_v9  ;;  %5783 = vadd.xlane.f32.xlu0 %v5782_v2  ;;  %v5779_v56 = vsel %vm618_vm1, %v11387_v0, 0.0  ;;  %v11395_v48 = vpop.eup %8327  ;;  %v7249_v9 = vclamps-f32 %v11027_v22, 1.0  ;;  %v11986_v22 = vld [vmem:[#allocation22_spill] sm:$0xff] }
0x1273   :  { %5780 = vadd.xlane.f32.xlu2 %v5779_v56  ;;  %v5785_v63 = vsel %vm618_vm1, %v11395_v48, 0.0  ;;  %v7688_v56 = vpack.i.bf16 %v7243_v28, %v7242_v59  ;;  %v7174_v20 = vclamps-f32 %v11986_v22, 1.0 }
0x127a   :  { %5786 = vadd.xlane.f32.xlu0 %v5785_v63  ;;  %v7248_v63 = vclamps-f32 %v11017_v15, 1.0 }
0x127c   :  { %v5706_v11 = vpop.xlane.xlu1 %5705 }
0x127d   :  { %v5724_v57 = vsub.f32 %v11344_v58, %v5706_v11  ;;  %v7748_v11 = vpack.i.bf16 %v7249_v9, %v7248_v63 }
0x127f   :  { %v5754_v38 = vmul.f32 1.442695, %v5724_v57 }
0x1281   :  { %8331 = vpow2.f32 %v5754_v38  ;;  %v11987_v38 = vld [vmem:[#allocation30_spill] sm:$0xff] }
0x1282   :  { %8333 = vpow2.f32 %v5750_v18  ;;  %v7181_v18 = vclamps-f32 %v11987_v38, 1.0 }
0x128b   :  { %5934 = vrot.lane.b32.xlu2 %v10990_v31, %s8396_s9  ;;  %5984 = vrot.lane.b32.xlu1 %v10960_v8, %s8396_s9  ;;  %v5725_v8 = vsub.f32 %v11339_v26, %v5709_v3  ;;  %v11410_v31 = vpop.eup %8329  ;;  %v7703_v3 = vpack.i.bf16 %v7175_v52, %v7174_v20 }
0x128c   :  { %v5788_v61 = vsel %vm618_vm1, %v11410_v31, 0.0 }
0x128d   :  { %v5756_v55 = vmul.f32 1.442695, %v5725_v8  ;;  %v11988_v8 = vld [vmem:[#allocation38_spill] sm:$0xff] }
0x128e   :  { %5959 = vrot.lane.b32.xlu0 %v10847_v50, %s8396_s9  ;;  %v11412_v50 = vpop.eup %8331 }
0x128f   :  { %v11416_v58 = vpop.eup %8333  ;;  %v5800_v51 = vsel %vm618_vm1, %v11412_v50, 0.0  ;;  %8335 = vpow2.f32 %v5756_v55 }
0x1290   :  { %v5794_v33 = vsel %vm618_vm1, %v11416_v58, 0.0 }
0x1295   :  { %v11422_v26 = vpop.eup %8335 }
0x1296   :  { %v5803_v46 = vsel %vm618_vm1, %v11422_v26, 0.0 }
0x12b4   :  { %5789 = vadd.xlane.f32.xlu2 %v5788_v61 }
0x12b5   :  { %5801 = vadd.xlane.f32.xlu1 %v5800_v51  ;;  %v5793_v38 = vpop.xlane.xlu1 %5792 }
0x12b8   :  { %5795 = vadd.xlane.f32.xlu0 %v5794_v33 }
0x12c0   :  { %5804 = vadd.xlane.f32.xlu0 %v5803_v46 }
0x12ca   :  { %v5874_v2 = vpop.f32.mrf.mxu0 }
0x12cb   :  { %v7310_v49 = vclamps-f32 %v5874_v2, 1.0  ;;  %v7244_v2 = vclamps-f32 %v10894_v17, 1.0 }
0x12cc   :  { %6009 = vrot.lane.b32.xlu2 %v10987_v41, %s8396_s9  ;;  %v11984_v41 = vld [vmem:[#allocation15_spill] sm:$0xff] }
0x12cd   :  { %v7107_v57 = vclamps-f32 %v11984_v41, 1.0 }
0x12ce   :  { %7714 = vrot.lane.b32.xlu1 %v7713_v37, %s8396_s9 }
0x12cf   :  { %v7693_v15 = vpack.i.bf16 %v7107_v57, %v7106_v32 }
0x12d2   :  { %v5876_v55 = vpop.f32.mrf.mxu0 }
0x12d3   :  { %v7311_v46 = vclamps-f32 %v5876_v55, 1.0 }
0x12d4   :  { %6034 = vrot.lane.b32.xlu2 %v10999_v43, %s8396_s9  ;;  %7689 = vrot.lane.b32.xlu0 %v7688_v56, %s8396_s9  ;;  %v7180_v43 = vclamps-f32 %v11988_v8, 1.0  ;;  %v7245_v56 = vclamps-f32 %v10900_v29, 1.0 }
0x12d5   :  { %v5772_v45 = vpop.xlane.xlu0 %5771  ;;  %v7698_v12 = vpack.i.bf16 %v7311_v46, %v7310_v49  ;;  %v7246_v49 = vclamps-f32 %v11059_v60, 1.0 }
0x12d6   :  { %7749 = vrot.lane.b32.xlu1 %v7748_v11, %s8396_s9  ;;  %8337 = vrcp.f32 %v5772_v45  ;;  %v7763_v61 = vpack.i.bf16 %v7181_v18, %v7180_v43  ;;  %v7708_v57 = vpack.i.bf16 %v7245_v56, %v7244_v2 }
0x12dc   :  { %7694 = vrot.lane.b32.xlu2 %v7693_v15, %s8396_s9  ;;  %7704 = vrot.lane.b32.xlu0 %v7703_v3, %s8396_s9  ;;  %v8338_v33 = vpop.eup %8337  ;;  %v11989_v15 = vld [vmem:[#allocation88_spill] sm:$0xff] }
0x12dd   :  { %v5775_v54 = vpop.xlane.xlu2 %5774  ;;  %v5778_v51 = vpop.xlane.xlu0 %5777  ;;  %v5826_v7 = vmul.f32 %v8338_v33, %v11365_v14  ;;  %v7177_v3 = vclamps-f32 %v11989_v15, 1.0  ;;  %v7649_v15 = vld [vmem:[%s11796_s4 + $0x18] sm:$0xff] }
0x12de   :  { %8339 = vrcp.f32 %v5775_v54  ;;  %7764 = vrot.lane.b32.xlu1 %v7763_v61, %s8396_s9  ;;  %v7247_v54 = vclamps-f32 %v11061_v36, 1.0  ;;  %v11992_v36 = vld [vmem:[#allocation9_spill] sm:$0xff] }
0x12df   :  { %8341 = vrcp.f32 %v5778_v51  ;;  %v5842_v28 = vpack.c.bf16 %v5826_v7, %v5826_v7  ;;  %v7110_v56 = vclamps-f32 %v11992_v36, 1.0 }
0x12e1   :  { %v5906_v41 = vunpack.c.l.b16 %v5842_v28  ;;  %v11991_v28 = vld [vmem:[#allocation10_spill] sm:$0xff] }
0x12e2   :  { %v5899_v16 = vpop.f32.mrf.mxu1 }
0x12e3   :  { %v7312_v22 = vclamps-f32 %v5899_v16, 1.0  ;;  %v7728_v16 = vpack.i.bf16 %v7247_v54, %v7246_v49  ;;  %v7658_v49 = vld [vmem:[%s11796_s4 + $0x60] sm:$0xff] }
0x12e4   :  { %v8340_v37 = vpop.eup %8339  ;;  %7699 = vrot.lane.b32.xlu2 %v7698_v12, %s8396_s9 }
0x12e5   :  { %v5827_v59 = vmul.f32 %v8340_v37, %v11375_v13  ;;  %v5784_v9 = vpop.xlane.xlu0 %5783  ;;  %v8342_v11 = vpop.eup %8341 }
0x12e6   :  { %v5781_v63 = vpop.xlane.xlu2 %5780  ;;  %v5828_v52 = vmul.f32 %v8342_v11, %v11371_v53  ;;  %v11990_v53 = vld [vmem:[#allocation86_spill] sm:$0xff]  ;;  %v5799_v37 = vpop.xlane.xlu1 %5798 }
0x12e7   :  { %v5843_v45 = vpack.c.bf16 %v5827_v59, %v5827_v59  ;;  %8343 = vrcp.f32 %v5781_v63  ;;  %v7176_v55 = vclamps-f32 %v11990_v53, 1.0  ;;  %v7111_v59 = vclamps-f32 %v11991_v28, 1.0  ;;  %v7657_v28 = vld [vmem:[%s11796_s4 + $0x58] sm:$0xff] }
0x12e8   :  { %v5844_v17 = vpack.c.bf16 %v5828_v52, %v5828_v52  ;;  %v11994_v52 = vld [vmem:[#allocation36_spill] sm:$0xff] }
0x12e9   :  { %v5907_v14 = vunpack.c.l.b16 %v5843_v45  ;;  %v7723_v51 = vpack.i.bf16 %v7177_v3, %v7176_v55  ;;  %v7733_v60 = vpack.i.bf16 %v7111_v59, %v7110_v56  ;;  %v7661_v3 = vld [vmem:[%s11796_s4 + $0x78] sm:$0xff]  ;;  %v7647_v55 = vld [vmem:[%s11796_s4 + $0x8] sm:$0xff] }
0x12ea   :  { %v5901_v27 = vpop.f32.mrf.mxu1  ;;  %v5931_v33 = vunpack.c.l.b16 %v5844_v17  ;;  %v7648_v17 = vld [vmem:[%s11796_s4 + $0x10] sm:$0xff] }
0x12eb   :  { %v5908_v32 = vpack.c.b16 %v5907_v14, %v5906_v41  ;;  %v7313_v20 = vclamps-f32 %v5901_v27, 1.0  ;;  %v11993_v41 = vld [vmem:[#allocation28_spill] sm:$0xff] }
0x12ec   :  { %7709 = vrot.lane.b32.xlu2 %v7708_v57, %s8396_s9  ;;  %v7179_v14 = vclamps-f32 %v11993_v41, 1.0 }
0x12ed   :  { %v8344_v13 = vpop.eup %8343  ;;  %v7718_v29 = vpack.i.bf16 %v7313_v20, %v7312_v22  ;;  %7304 = vmatmul.msk.bf16.vlgmr.msrb.gmra.mxu2 %vm618_vm1, %v5908_v32  ;;  %v5787_v18 = vpop.xlane.xlu0 %5786 }
0x12ee   :  { %v5829_v8 = vmul.f32 %v8344_v13, %v11387_v0  ;;  %v5935_v43 = vpop.permute.xlu2 %5934  ;;  %8345 = vrcp.f32 %v5787_v18  ;;  %v7652_v13 = vld [vmem:[%s11796_s4 + $0x30] sm:$0xff]  ;;  %v7650_v18 = vld [vmem:[%s11796_s4 + $0x20] sm:$0xff] }
0x12ef   :  { %8347 = vrcp.f32 %v5784_v9  ;;  %5947 = vmatpush.bf16.msrb.mxu3 %v5935_v43  ;;  %7719 = vrot.lane.b32.xlu0 %v7718_v29, %s8396_s9  ;;  %v7651_v29 = vld [vmem:[%s11796_s4 + $0x28] sm:$0xff] }
0x12f0   :  { %v5845_v61 = vpack.c.bf16 %v5829_v8, %v5829_v8  ;;  %8349 = vrcp.f32 %v5793_v38  ;;  %v7660_v8 = vld [vmem:[%s11796_s4 + $0x70] sm:$0xff]  ;;  %v7659_v38 = vld [vmem:[%s11796_s4 + $0x68] sm:$0xff] }
0x12f1   :  { %8351 = vrcp.f32 %v5799_v37 }
0x12f2   :  { %v5932_v46 = vunpack.c.l.b16 %v5845_v61 }
0x12f4   :  { %v8346_v7 = vpop.eup %8345  ;;  %v5933_v12 = vpack.c.b16 %v5932_v46, %v5931_v33  ;;  %7724 = vrot.lane.b32.xlu2 %v7723_v51, %s8396_s9  ;;  %v7646_v46 = vld [vmem:[%s11796_s4] sm:$0xff] }
0x12f5   :  { %v8348_v0 = vpop.eup %8347  ;;  %v5831_v9 = vmul.f32 %v8346_v7, %v11395_v48  ;;  %v7178_v48 = vclamps-f32 %v11994_v52, 1.0  ;;  %v7669_v7 = vld [vmem:[%s11796_s4 + $0xb8] sm:$0xff] }
0x12f6   :  { %7305 = vmatmul.msk.bf16.vlgmr.msrb.gmra.mxu3 %vm618_vm1, %v5933_v12  ;;  %v5830_v63 = vmul.f32 %v8348_v0, %v11383_v6  ;;  %v7653_v6 = vld [vmem:[%s11796_s4 + $0x38] sm:$0xff]  ;;  %v8350_v53 = vpop.eup %8349 }
0x12f7   :  { %7729 = vrot.lane.b32.xlu0 %v7728_v16, %s8396_s9  ;;  %v5847_v11 = vpack.c.bf16 %v5831_v9, %v5831_v9  ;;  %v7743_v22 = vpack.i.bf16 %v7179_v14, %v7178_v48  ;;  %v5833_v61 = vmul.f32 %v8350_v53, %v11351_v10  ;;  %v8352_v33 = vpop.eup %8351  ;;  %v7668_v9 = vld [vmem:[%s11796_s4 + $0xb0] sm:$0xff]  ;;  %v7677_v14 = vld [vmem:[%s11796_s4 + $0xf8] sm:$0xff] }
0x12f8   :  { %v5846_v45 = vpack.c.bf16 %v5830_v63, %v5830_v63  ;;  %v5835_v0 = vmul.f32 %v8352_v33, %v11385_v23 }
0x12f9   :  { %v5957_v57 = vunpack.c.l.b16 %v5847_v11  ;;  %v5849_v10 = vpack.c.bf16 %v5833_v61, %v5833_v61 }
0x12fa   :  { %v5956_v27 = vunpack.c.l.b16 %v5846_v45  ;;  %v5851_v63 = vpack.c.bf16 %v5835_v0, %v5835_v0  ;;  %v7656_v45 = vld [vmem:[%s11796_s4 + $0x50] sm:$0xff] }
0x12fb   :  { %v5982_v56 = vunpack.c.l.b16 %v5849_v10 }
0x12fc   :  { %7734 = vrot.lane.b32.xlu2 %v7733_v60, %s8396_s9  ;;  %v5958_v20 = vpack.c.b16 %v5957_v57, %v5956_v27  ;;  %v7667_v57 = vld [vmem:[%s11796_s4 + $0xa8] sm:$0xff] }
0x12fd   :  { %v5985_v2 = vpop.permute.xlu1 %5984 }
0x12fe   :  { %5997 = vmatpush.bf16.msrb.mxu1 %v5985_v2 }
0x1300   :  { %v5960_v32 = vpop.permute.xlu0 %5959 }
0x1301   :  { %5972 = vmatpush.bf16.msrb.mxu0 %v5960_v32  ;;  %v7655_v32 = vld [vmem:[%s11796_s4 + $0x48] sm:$0xff] }
0x1302   :  { %6699 = vmatpush.bf16.msra.mxu1 %v7661_v3  ;;  %v7675_v3 = vld [vmem:[%s11796_s4 + $0xe8] sm:$0xff] }
0x1304   :  { %7744 = vrot.lane.b32.xlu2 %v7743_v22, %s8396_s9  ;;  %7306 = vmatmul.msk.bf16.vlgmr.msrb.gmra.mxu0 %vm618_vm1, %v5958_v20  ;;  %v7676_v20 = vld [vmem:[%s11796_s4 + $0xf0] sm:$0xff] }
0x1305   :  { %6650 = vmatpush.bf16.msra.mxu0 %v7653_v6 }
0x1306   :  { %6700 = vmatpush.bf16.msra.mxu1 %v7660_v8  ;;  %v11995_v8 = vld [vmem:[#allocation57_spill] sm:$0xff] }
0x1309   :  { %6651 = vmatpush.bf16.msra.mxu0 %v7652_v13 }
0x130a   :  { %6701 = vmatpush.bf16.msra.mxu1 %v7659_v38  ;;  %v11996_v38 = vld [vmem:[#allocation59_spill] sm:$0xff] }
0x130b   :  { %v7073_v61 = vclamps-f32 %v11996_v38, 1.0 }
0x130d   :  { %6652 = vmatpush.bf16.msra.mxu0 %v7651_v29 }
0x130e   :  { %6702 = vmatpush.bf16.msra.mxu1 %v7658_v49 }
0x1311   :  { %6653 = vmatpush.bf16.msra.mxu0 %v7650_v18  ;;  %v7654_v18 = vld [vmem:[%s11796_s4 + $0x40] sm:$0xff] }
0x1312   :  { %6703 = vmatpush.bf16.msra.mxu1 %v7657_v28  ;;  %v7664_v28 = vld [vmem:[%s11796_s4 + $0x90] sm:$0xff] }
0x1315   :  { %6654 = vmatpush.bf16.msra.mxu0 %v7649_v15 }
0x1316   :  { %6704 = vmatpush.bf16.msra.mxu1 %v7656_v45  ;;  %v7663_v45 = vld [vmem:[%s11796_s4 + $0x88] sm:$0xff] }
0x1319   :  { %6655 = vmatpush.bf16.msra.mxu0 %v7648_v17  ;;  %v7665_v17 = vld [vmem:[%s11796_s4 + $0x98] sm:$0xff] }
0x131a   :  { %6705 = vmatpush.bf16.msra.mxu1 %v7655_v32 }
0x131d   :  { %6656 = vmatpush.bf16.msra.mxu0 %v7647_v55 }
0x131e   :  { %6706 = vmatpush.bf16.msra.mxu1 %v7654_v18  ;;  %v7672_v18 = vld [vmem:[%s11796_s4 + $0xd0] sm:$0xff] }
0x1321   :  { %6657 = vmatpush.bf16.msra.mxu0 %v7646_v46 }
0x1327   :  { %v5790_v43 = vpop.xlane.xlu2 %5789 }
0x1328   :  { %8353 = vrcp.f32 %v5790_v43  ;;  %v5802_v54 = vpop.xlane.xlu1 %5801 }
0x132b   :  { %v5796_v51 = vpop.xlane.xlu0 %5795 }
0x132c   :  { %8355 = vrcp.f32 %v5796_v51 }
0x132d   :  { %8357 = vrcp.f32 %v5802_v54  ;;  %v11997_v54 = vld [vmem:[#allocation53_spill] sm:$0xff] }
0x132e   :  { %v8354_v12 = vpop.eup %8353  ;;  %v7074_v51 = vclamps-f32 %v11997_v54, 1.0 }
0x132f   :  { %v5832_v16 = vmul.f32 %v8354_v12, %v11410_v31  ;;  %v6010_v37 = vpop.permute.xlu2 %6009 }
0x1330   :  { %6022 = vmatpush.bf16.msra.mxu2 %v6010_v37  ;;  %v7674_v37 = vld [vmem:[%s11796_s4 + $0xe0] sm:$0xff] }
0x1331   :  { %v5848_v59 = vpack.c.bf16 %v5832_v16, %v5832_v16 }
0x1332   :  { %v8356_v36 = vpop.eup %8355 }
0x1333   :  { %v5981_v60 = vunpack.c.l.b16 %v5848_v59  ;;  %v5834_v23 = vmul.f32 %v8356_v36, %v11416_v58  ;;  %v5805_v31 = vpop.xlane.xlu0 %5804  ;;  %v8358_v11 = vpop.eup %8357  ;;  %v6007_v58 = vunpack.c.l.b16 %v5851_v63 }
0x1334   :  { %6748 = vmatpush.bf16.msrb.mxu2 %v7669_v7  ;;  %8359 = vrcp.f32 %v5805_v31  ;;  %v5836_v52 = vmul.f32 %v8358_v11, %v11412_v50  ;;  %v7666_v50 = vld [vmem:[%s11796_s4 + $0xa0] sm:$0xff]  ;;  %v7673_v11 = vld [vmem:[%s11796_s4 + $0xd8] sm:$0xff] }
0x1335   :  { %v5983_v2 = vpack.c.b16 %v5982_v56, %v5981_v60  ;;  %v5850_v41 = vpack.c.bf16 %v5834_v23, %v5834_v23  ;;  %v11998_v7 = vld [vmem:[#allocation54_spill] sm:$0xff] }
0x1336   :  { %v5852_v13 = vpack.c.bf16 %v5836_v52, %v5836_v52  ;;  %v7075_v12 = vclamps-f32 %v11998_v7, 1.0 }
0x1337   :  { %v6006_v48 = vunpack.c.l.b16 %v5850_v41  ;;  %7307 = vmatmul.msk.bf16.vlgmr.msrb.gmra.mxu1 %vm618_vm1, %v5983_v2  ;;  %v6035_v27 = vpop.permute.xlu2 %6034  ;;  %v7208_v2 = vclamps-f32 %v10555_v24, 1.0  ;;  %v7209_v41 = vclamps-f32 %v10558_v30, 1.0 }
0x1338   :  { %6749 = vmatpush.bf16.msrb.mxu2 %v7668_v9  ;;  %6047 = vmatpush.bf16.msra.mxu3 %v6035_v27  ;;  %v6031_v43 = vunpack.c.l.b16 %v5852_v13 }
0x1339   :  { %v6008_v22 = vpack.c.b16 %v6007_v58, %v6006_v48  ;;  %v11999_v58 = vld [vmem:[#allocation92_spill] sm:$0xff] }
0x133a   :  { %v8360_v6 = vpop.eup %8359  ;;  %v7215_v52 = vclamps-f32 %v11999_v58, 1.0  ;;  %v7670_v58 = vld [vmem:[%s11796_s4 + $0xc0] sm:$0xff] }
0x133b   :  { %v5837_v29 = vmul.f32 %v8360_v6, %v11422_v26  ;;  %7308 = vmatmul.msk.bf16.vlgmr.msra.gmra.mxu2 %vm618_vm1, %v6008_v22  ;;  %v7072_v26 = vclamps-f32 %v11995_v8, 1.0  ;;  %v7276_v22 = vclamps-f32 %v11190_v47, 1.0  ;;  %v7662_v47 = vld [vmem:[%s11796_s4 + $0x80] sm:$0xff] }
0x133c   :  { %6797 = vmatpush.bf16.msrb.mxu3 %v7677_v14  ;;  %6750 = vmatpush.bf16.msrb.mxu2 %v7667_v57  ;;  %v7214_v57 = vclamps-f32 %v10680_v42, 1.0 }
0x133d   :  { %v5853_v15 = vpack.c.bf16 %v5837_v29, %v5837_v29 }
0x133f   :  { %v6032_v53 = vunpack.c.l.b16 %v5853_v15  ;;  %v7695_v55 = vpop.permute.xlu2 %7694 }
0x1340   :  { %6798 = vmatpush.bf16.msrb.mxu3 %v7676_v20  ;;  %6751 = vmatpush.bf16.msrb.mxu2 %v7666_v50  ;;  %v7697_v33 = vunpack.i.h.bf16 %v7695_v55  ;;  %v7696_v46 = vunpack.i.l.bf16 %v7695_v55  ;;  %v7715_v49 = vpop.permute.xlu1 %7714  ;;  %v7277_v20 = vclamps-f32 %v11193_v62, 1.0 }
0x1341   :  { %v6033_v10 = vpack.c.b16 %v6032_v53, %v6031_v43  ;;  %v7717_v0 = vunpack.i.h.bf16 %v7715_v49  ;;  %v7716_v16 = vunpack.i.l.bf16 %v7715_v49  ;;  %v12001_v49 = vld [vmem:[#allocation12_spill] sm:$0xff] }
0x1342   :  { %v1981_v59 = vsel %vm239_vm0, %v7073_v61, %v7697_v33  ;;  %v1980_v9 = vsel %vm239_vm0, %v7072_v26, %v7696_v46  ;;  %v12000_v33 = vld [vmem:[#allocation11_spill] sm:$0xff]  ;;  %v7141_v7 = vclamps-f32 %v12001_v49, 1.0 }
0x1343   :  { %v1997_v36 = vpack.c.bf16 %v1981_v59, %v1981_v59  ;;  %v1996_v56 = vpack.c.bf16 %v1980_v9, %v1980_v9  ;;  %v1983_v63 = vsel %vm239_vm0, %v7075_v12, %v7717_v0  ;;  %v1982_v60 = vsel %vm239_vm0, %v7074_v51, %v7716_v16  ;;  %7309 = vmatmul.msk.bf16.vlgmr.msra.gmra.mxu3 %vm618_vm1, %v6033_v10  ;;  %v7671_v51 = vld [vmem:[%s11796_s4 + $0xc8] sm:$0xff] }
0x1344   :  { %6799 = vmatpush.bf16.msrb.mxu3 %v7675_v3  ;;  %6752 = vmatpush.bf16.msrb.mxu2 %v7665_v17  ;;  %v1999_v23 = vpack.c.bf16 %v1983_v63, %v1983_v63  ;;  %v1998_v31 = vpack.c.bf16 %v1982_v60, %v1982_v60  ;;  %v7140_v46 = vclamps-f32 %v12000_v33, 1.0  ;;  %v12002_v0 = vld [vmem:[#allocation79_spill] sm:$0xff]  ;;  %v12005_v60 = vld [vmem:[#allocation34_spill] sm:$0xff] }
0x1345   :  { %2013 = vst [vmem:[#allocation2 + $0x10] sm:$0xf] %v1997_v36  ;;  %v7146_v16 = vclamps-f32 %v12002_v0, 1.0  ;;  %v12008_v0 = vld [vmem:[#allocation61_spill] sm:$0xff] }
0x1346   :  { %2012 = vst [vmem:[#allocation2] sm:$0xf] %v1996_v56  ;;  %v7690_v14 = vpop.permute.xlu0 %7689  ;;  %v12004_v56 = vld [vmem:[#allocation32_spill] sm:$0xff] }
0x1347   :  { %2015 = vst [vmem:[#allocation2 + $0x30] sm:$0xf] %v1999_v23  ;;  %v7700_v48 = vpop.permute.xlu2 %7699  ;;  %v7692_v27 = vunpack.i.h.bf16 %v7690_v14  ;;  %v7691_v32 = vunpack.i.l.bf16 %v7690_v14  ;;  %v7210_v63 = vclamps-f32 %v12004_v56, 1.0  ;;  %v7211_v23 = vclamps-f32 %v12005_v60, 1.0 }
0x1348   :  { %6800 = vmatpush.bf16.msrb.mxu3 %v7674_v37  ;;  %6753 = vmatpush.bf16.msrb.mxu2 %v7664_v28  ;;  %2014 = vst [vmem:[#allocation2 + $0x20] sm:$0xf] %v1998_v31  ;;  %v7702_v50 = vunpack.i.h.bf16 %v7700_v48  ;;  %v7701_v6 = vunpack.i.l.bf16 %v7700_v48  ;;  %v7750_v24 = vpop.permute.xlu1 %7749  ;;  %v12003_v37 = vld [vmem:[#allocation81_spill] sm:$0xff]  ;;  %v7279_v56 = vclamps-f32 %v11236_v25, 1.0 }
0x1349   :  { %v4761_v30 = vsel %vm239_vm0, %v7209_v41, %v7692_v27  ;;  %v4760_v13 = vsel %vm239_vm0, %v7208_v2, %v7691_v32  ;;  %v7752_v29 = vunpack.i.h.bf16 %v7750_v24  ;;  %v7751_v42 = vunpack.i.l.bf16 %v7750_v24 }
0x134a   :  { %v6151_v62 = vsel %vm239_vm0, %v7277_v20, %v7702_v50  ;;  %v6150_v15 = vsel %vm239_vm0, %v7276_v22, %v7701_v6  ;;  %v4777_v3 = vpack.c.bf16 %v4761_v30, %v4761_v30  ;;  %v4776_v17 = vpack.c.bf16 %v4760_v13, %v4760_v13 }
0x134b   :  { %v6167_v8 = vpack.c.bf16 %v6151_v62, %v6151_v62  ;;  %v6166_v26 = vpack.c.bf16 %v6150_v15, %v6150_v15  ;;  %v4767_v43 = vsel %vm239_vm0, %v7215_v52, %v7752_v29  ;;  %v4766_v53 = vsel %vm239_vm0, %v7214_v57, %v7751_v42 }
0x134c   :  { %6801 = vmatpush.bf16.msrb.mxu3 %v7673_v11  ;;  %6754 = vmatpush.bf16.msrb.mxu2 %v7663_v45  ;;  %4793 = vst [vmem:[#allocation2 + $0x18] sm:$0xf] %v4777_v3  ;;  %v4783_v55 = vpack.c.bf16 %v4767_v43, %v4767_v43  ;;  %v7616_v38 = vld [vmem:[#allocation2 + $0xc] sm:$0xf0]  ;;  %v4782_v61 = vpack.c.bf16 %v4766_v53, %v4766_v53  ;;  %v7147_v28 = vclamps-f32 %v12003_v37, 1.0  ;;  %v12006_v3 = vld [vmem:[#allocation74_spill] sm:$0xff] }
0x134d   :  { %6183 = vst [vmem:[#allocation2 + $0x1c] sm:$0xf] %v6167_v8  ;;  %v7328_v54 = vld [vmem:[#allocation2] sm:$0xf]  ;;  %v12007_v8 = vld [vmem:[#allocation75_spill] sm:$0xff] }
0x134e   :  { %6182 = vst [vmem:[#allocation2 + $0xc] sm:$0xf] %v6166_v26  ;;  %v7329_v12 = vor.u32 %v7616_v38, %v7328_v54  ;;  %v7705_v10 = vpop.permute.xlu0 %7704  ;;  %v7143_v26 = vclamps-f32 %v12007_v8, 1.0  ;;  %v7620_v33 = vld [vmem:[#allocation2 + $0x2c] sm:$0xf0]  ;;  %v12009_v37 = vld [vmem:[#allocation63_spill] sm:$0xff] }
0x134f   :  { %4792 = vst [vmem:[#allocation2 + $0x8] sm:$0xf] %v4776_v17  ;;  %v7710_v59 = vpop.permute.xlu2 %7709  ;;  %v7707_v9 = vunpack.i.h.bf16 %v7705_v10  ;;  %v7706_v36 = vunpack.i.l.bf16 %v7705_v10  ;;  %v7142_v17 = vclamps-f32 %v12006_v3, 1.0 }
0x1350   :  { %6802 = vmatpush.bf16.msrb.mxu3 %v7672_v18  ;;  %6755 = vmatpush.bf16.msrb.mxu2 %v7662_v47  ;;  %4799 = vst [vmem:[#allocation2 + $0x78] sm:$0xf] %v4783_v55  ;;  %v7712_v31 = vunpack.i.h.bf16 %v7710_v59  ;;  %v7711_v11 = vunpack.i.l.bf16 %v7710_v59  ;;  %v7765_v45 = vpop.permute.xlu1 %7764 }
0x1351   :  { %6658 = vmatmul.bf16.vlgmr.msra.gmra.mxu0 %v7329_v12  ;;  %4798 = vst [vmem:[#allocation2 + $0x68] sm:$0xf] %v4782_v61  ;;  %v3371_v2 = vsel %vm239_vm0, %v7141_v7, %v7707_v9  ;;  %v3370_v41 = vsel %vm239_vm0, %v7140_v46, %v7706_v36  ;;  %v7767_v14 = vunpack.i.h.bf16 %v7765_v45  ;;  %v7766_v57 = vunpack.i.l.bf16 %v7765_v45 }
0x1352   :  { %v4763_v52 = vsel %vm239_vm0, %v7211_v23, %v7712_v31  ;;  %v4762_v48 = vsel %vm239_vm0, %v7210_v63, %v7711_v11  ;;  %v3387_v27 = vpack.c.bf16 %v3371_v2, %v3371_v2  ;;  %v3386_v32 = vpack.c.bf16 %v3370_v41, %v3370_v41 }
0x1353   :  { %v4779_v22 = vpack.c.bf16 %v4763_v52, %v4763_v52  ;;  %v4778_v20 = vpack.c.bf16 %v4762_v48, %v4762_v48  ;;  %v3377_v50 = vsel %vm239_vm0, %v7147_v28, %v7767_v14  ;;  %v3376_v6 = vsel %vm239_vm0, %v7146_v16, %v7766_v57  ;;  %v7617_v30 = vld [vmem:[#allocation2 + $0x14] sm:$0xf0] }
0x1354   :  { %6803 = vmatpush.bf16.msrb.mxu3 %v7671_v51  ;;  %3403 = vst [vmem:[#allocation2 + $0x14] sm:$0xf] %v3387_v27  ;;  %v3393_v24 = vpack.c.bf16 %v3377_v50, %v3377_v50  ;;  %v7338_v13 = vld [vmem:[#allocation2 + $0x18] sm:$0xf0]  ;;  %v3392_v29 = vpack.c.bf16 %v3376_v6, %v3376_v6  ;;  %v7344_v51 = vld [vmem:[#allocation2 + $0x20] sm:$0xf] }
0x1355   :  { %4795 = vst [vmem:[#allocation2 + $0x38] sm:$0xf] %v4779_v22  ;;  %v7615_v42 = vld [vmem:[#allocation2 + $0xc] sm:$0xf]  ;;  %v7345_v49 = vor.u32 %v7620_v33, %v7344_v51  ;;  %v7076_v16 = vclamps-f32 %v12008_v0, 1.0  ;;  %v7077_v28 = vclamps-f32 %v12009_v37, 1.0 }
0x1356   :  { %4794 = vst [vmem:[#allocation2 + $0x28] sm:$0xf] %v4778_v20  ;;  %v7336_v18 = vld [vmem:[#allocation2 + $0x8] sm:$0xf]  ;;  %v7341_v47 = vor.u32 %v7615_v42, %v7338_v13  ;;  %v7278_v36 = vclamps-f32 %v11233_v44, 1.0  ;;  %v12010_v27 = vld [vmem:[#allocation78_spill] sm:$0xff] }
0x1357   :  { %3402 = vst [vmem:[#allocation2 + $0x4] sm:$0xf] %v3386_v32  ;;  %v7725_v62 = vpop.permute.xlu2 %7724  ;;  %v7337_v15 = vor.u32 %v7617_v30, %v7336_v18  ;;  %v7144_v32 = vclamps-f32 %v12010_v27, 1.0  ;;  %v12011_v22 = vld [vmem:[#allocation80_spill] sm:$0xff]  ;;  %v12013_v13 = vld [vmem:[#allocation93_spill] sm:$0xff] }
0x1358   :  { %6804 = vmatpush.bf16.msrb.mxu3 %v7670_v58  ;;  %3409 = vst [vmem:[#allocation2 + $0x74] sm:$0xf] %v3393_v24  ;;  %v7727_v43 = vunpack.i.h.bf16 %v7725_v62  ;;  %v7726_v53 = vunpack.i.l.bf16 %v7725_v62  ;;  %v7145_v20 = vclamps-f32 %v12011_v22, 1.0  ;;  %v12012_v24 = vld [vmem:[#allocation91_spill] sm:$0xff] }
0x1359   :  { %3408 = vst [vmem:[#allocation2 + $0x64] sm:$0xf] %v3392_v29  ;;  %6756 = vmatmul.bf16.vlgmr.msrb.gmra.mxu2 %v7337_v15  ;;  %v7212_v30 = vclamps-f32 %v12012_v24, 1.0  ;;  %v7213_v29 = vclamps-f32 %v12013_v13, 1.0 }
0x135a   :  { %v3373_v55 = vsel %vm239_vm0, %v7143_v26, %v7727_v43  ;;  %v3372_v38 = vsel %vm239_vm0, %v7142_v17, %v7726_v53 }
0x135b   :  { %6805 = vmatmul.bf16.vlgmr.msrb.gmra.mxu3 %v7341_v47  ;;  %v3389_v61 = vpack.c.bf16 %v3373_v55, %v3373_v55  ;;  %v3388_v54 = vpack.c.bf16 %v3372_v38, %v3372_v38  ;;  %v7330_v46 = vld [vmem:[#allocation2 + $0x10] sm:$0xf0] }
0x135c   :  { %v7621_v58 = vld [vmem:[#allocation2 + $0x34] sm:$0xf0] }
0x135d   :  { %3405 = vst [vmem:[#allocation2 + $0x34] sm:$0xf] %v3389_v61  ;;  %v7352_v57 = vld [vmem:[#allocation2 + $0x28] sm:$0xf] }
0x135e   :  { %3404 = vst [vmem:[#allocation2 + $0x24] sm:$0xf] %v3388_v54  ;;  %v7614_v7 = vld [vmem:[#allocation2 + $0x4] sm:$0xf]  ;;  %v7353_v48 = vor.u32 %v7621_v58, %v7352_v57 }
0x135f   :  { %v7735_v12 = vpop.permute.xlu2 %7734  ;;  %v7333_v10 = vor.u32 %v7614_v7, %v7330_v46 }
0x1360   :  { %v7737_v59 = vunpack.i.h.bf16 %v7735_v12  ;;  %v7736_v9 = vunpack.i.l.bf16 %v7735_v12 }
0x1361   :  { %6663 = vmatmul.bf16.gmra.mxu0 %v7345_v49  ;;  %6707 = vmatmul.bf16.vlgmr.msra.gmra.mxu1 %v7333_v10  ;;  %v7720_v63 = vpop.permute.xlu0 %7719 }
0x1362   :  { %v1985_v60 = vsel %vm239_vm0, %v7077_v28, %v7737_v59  ;;  %v1984_v23 = vsel %vm239_vm0, %v7076_v16, %v7736_v9  ;;  %v7722_v31 = vunpack.i.h.bf16 %v7720_v63  ;;  %v7721_v11 = vunpack.i.l.bf16 %v7720_v63 }
0x1363   :  { %v2001_v45 = vpack.c.bf16 %v1985_v60, %v1985_v60  ;;  %v2000_v2 = vpack.c.bf16 %v1984_v23, %v1984_v23  ;;  %v12014_v60 = vld [vmem:[#allocation18_spill] sm:$0xff] }
0x1364   :  { %v6153_v41 = vsel %vm239_vm0, %v7279_v56, %v7722_v31  ;;  %v6152_v14 = vsel %vm239_vm0, %v7278_v36, %v7721_v11  ;;  %v7346_v55 = vld [vmem:[#allocation2 + $0x30] sm:$0xf0]  ;;  %v7113_v23 = vclamps-f32 %v12014_v60, 1.0  ;;  %v12015_v11 = vld [vmem:[#allocation7_spill] sm:$0xff] }
0x1365   :  { %2017 = vst [vmem:[#allocation2 + $0x50] sm:$0xf] %v2001_v45  ;;  %v6169_v44 = vpack.c.bf16 %v6153_v41, %v6153_v41  ;;  %v6168_v52 = vpack.c.bf16 %v6152_v14, %v6152_v14  ;;  %v7618_v53 = vld [vmem:[#allocation2 + $0x24] sm:$0xf]  ;;  %v7112_v45 = vclamps-f32 %v12015_v11, 1.0  ;;  %v12031_v11 = vld [vmem:[#allocation44_spill] sm:$0xff] }
0x1366   :  { %2016 = vst [vmem:[#allocation2 + $0x40] sm:$0xf] %v2000_v2  ;;  %v7349_v46 = vor.u32 %v7618_v53, %v7346_v55  ;;  %v12022_v55 = vld [vmem:[#allocation41_spill] sm:$0xff] }
0x1367   :  { %6185 = vst [vmem:[#allocation2 + $0x3c] sm:$0xf] %v6169_v44  ;;  %v7745_v25 = vpop.permute.xlu2 %7744  ;;  %v7753_v58 = vpack.i.bf16 %v7113_v23, %v7112_v45  ;;  %v12030_v23 = vld [vmem:[#allocation24_spill] sm:$0xff]  ;;  %v7186_v45 = vclamps-f32 %v12031_v11, 1.0 }
0x1368   :  { %6184 = vst [vmem:[#allocation2 + $0x2c] sm:$0xf] %v6168_v52  ;;  %v7747_v50 = vunpack.i.h.bf16 %v7745_v25  ;;  %v7746_v6 = vunpack.i.l.bf16 %v7745_v25  ;;  %v7384_v52 = vld [vmem:[#allocation2 + $0x68] sm:$0xf]  ;;  %v7629_v25 = vld [vmem:[#allocation2 + $0x74] sm:$0xf0] }
0x1369   :  { %6761 = vmatmul.bf16.gmra.mxu2 %v7353_v48  ;;  %v7730_v42 = vpop.permute.xlu0 %7729  ;;  %v12016_v48 = vld [vmem:[#allocation25_spill] sm:$0xff] }
0x136a   :  { %v3375_v18 = vsel %vm239_vm0, %v7145_v20, %v7747_v50  ;;  %v3374_v47 = vsel %vm239_vm0, %v7144_v32, %v7746_v6  ;;  %v7732_v62 = vunpack.i.h.bf16 %v7730_v42  ;;  %v7731_v15 = vunpack.i.l.bf16 %v7730_v42  ;;  %v12017_v32 = vld [vmem:[#allocation71_spill] sm:$0xff] }
0x136b   :  { %v3391_v3 = vpack.c.bf16 %v3375_v18, %v3375_v18  ;;  %v3390_v17 = vpack.c.bf16 %v3374_v47, %v3374_v47  ;;  %v7251_v27 = vclamps-f32 %v12016_v48, 1.0  ;;  %v7115_v22 = vclamps-f32 %v12017_v32, 1.0  ;;  %v12018_v50 = vld [vmem:[#allocation23_spill] sm:$0xff] }
0x136c   :  { %v4765_v8 = vsel %vm239_vm0, %v7213_v29, %v7732_v62  ;;  %v4764_v26 = vsel %vm239_vm0, %v7212_v30, %v7731_v15  ;;  %v7624_v43 = vld [vmem:[#allocation2 + $0x4c] sm:$0xf0]  ;;  %v7385_v20 = vor.u32 %v7629_v25, %v7384_v52  ;;  %v7250_v6 = vclamps-f32 %v12018_v50, 1.0  ;;  %v12019_v30 = vld [vmem:[#allocation70_spill] sm:$0xff]  ;;  %v12032_v25 = vld [vmem:[#allocation19_spill] sm:$0xff] }
0x136d   :  { %3407 = vst [vmem:[#allocation2 + $0x54] sm:$0xf] %v3391_v3  ;;  %v4781_v38 = vpack.c.bf16 %v4765_v8, %v4765_v8  ;;  %v4780_v61 = vpack.c.bf16 %v4764_v26, %v4764_v26  ;;  %v7360_v54 = vld [vmem:[#allocation2 + $0x40] sm:$0xf]  ;;  %v7114_v13 = vclamps-f32 %v12019_v30, 1.0  ;;  %v7119_v48 = vclamps-f32 %v12032_v25, 1.0 }
0x136e   :  { %3406 = vst [vmem:[#allocation2 + $0x44] sm:$0xf] %v3390_v17  ;;  %v7361_v51 = vor.u32 %v7624_v43, %v7360_v54  ;;  %v7354_v33 = vld [vmem:[#allocation2 + $0x38] sm:$0xf0]  ;;  %v7768_v18 = vpack.i.bf16 %v7251_v27, %v7250_v6  ;;  %v7626_v15 = vld [vmem:[#allocation2 + $0x64] sm:$0xf] }
0x136f   :  { %4797 = vst [vmem:[#allocation2 + $0x58] sm:$0xf] %v4781_v38  ;;  %v7619_v49 = vld [vmem:[#allocation2 + $0x2c] sm:$0xf]  ;;  %v7773_v47 = vpack.i.bf16 %v7115_v22, %v7114_v13  ;;  %v7378_v3 = vld [vmem:[#allocation2 + $0x70] sm:$0xf0] }
0x1370   :  { %4796 = vst [vmem:[#allocation2 + $0x48] sm:$0xf] %v4780_v61  ;;  %v5924_v7 = vpop.f32.mrf.mxu2  ;;  %v7357_v12 = vor.u32 %v7619_v49, %v7354_v33  ;;  %v12020_v17 = vld [vmem:[#allocation87_spill] sm:$0xff]  ;;  %v7381_v26 = vor.u32 %v7626_v15, %v7378_v3  ;;  %v12021_v43 = vld [vmem:[#allocation73_spill] sm:$0xff]  ;;  %v7253_v38 = vclamps-f32 %v12022_v55, 1.0  ;;  %v12033_v27 = vld [vmem:[#allocation8_spill] sm:$0xff] }
0x1371   :  { %6668 = vmatmul.bf16.gmra.mxu0 %v7361_v51  ;;  %6712 = vmatmul.bf16.gmra.mxu1 %v7349_v46  ;;  %v7314_v28 = vclamps-f32 %v5924_v7, 1.0  ;;  %v7183_v8 = vclamps-f32 %v12020_v17, 1.0  ;;  %v7117_v53 = vclamps-f32 %v12021_v43, 1.0  ;;  %v12023_v61 = vld [vmem:[#allocation13_spill] sm:$0xff]  ;;  %v12024_v51 = vld [vmem:[#allocation72_spill] sm:$0xff]  ;;  %v12025_v46 = vld [vmem:[#allocation39_spill] sm:$0xff] }
0x1372   :  { %6810 = vmatmul.bf16.gmra.mxu3 %v7357_v12  ;;  %v7182_v54 = vclamps-f32 %v12023_v61, 1.0  ;;  %v7116_v33 = vclamps-f32 %v12024_v51, 1.0  ;;  %v7252_v49 = vclamps-f32 %v12025_v46, 1.0  ;;  %v7118_v32 = vclamps-f32 %v12033_v27, 1.0  ;;  %v12034_v13 = vld [vmem:[#allocation29_spill] sm:$0xff]  ;;  %v12037_v3 = vld [vmem:[#allocation16_spill] sm:$0xff] }
0x1373   :  { %v7120_v17 = vclamps-f32 %v12037_v3, 1.0 }
0x1374   :  { %v7362_v63 = vld [vmem:[#allocation2 + $0x50] sm:$0xf0]  ;;  %v7783_v7 = vpack.i.bf16 %v7183_v8, %v7182_v54  ;;  %v7793_v12 = vpack.i.bf16 %v7117_v53, %v7116_v33  ;;  %v7813_v50 = vpack.i.bf16 %v7119_v48, %v7118_v32  ;;  %v12039_v54 = vld [vmem:[#allocation46_spill] sm:$0xff] }
0x1375   :  { %v7622_v56 = vld [vmem:[#allocation2 + $0x44] sm:$0xf]  ;;  %v7188_v51 = vclamps-f32 %v12039_v54, 1.0 }
0x1376   :  { %v7625_v10 = vld [vmem:[#allocation2 + $0x54] sm:$0xf0]  ;;  %v7365_v31 = vor.u32 %v7622_v56, %v7362_v63 }
0x1377   :  { %v7368_v0 = vld [vmem:[#allocation2 + $0x48] sm:$0xf] }
0x1378   :  { %v5926_v16 = vpop.f32.mrf.mxu2  ;;  %v7369_v37 = vor.u32 %v7625_v10, %v7368_v0  ;;  %v7788_v10 = vpack.i.bf16 %v7253_v38, %v7252_v49  ;;  %v12026_v0 = vld [vmem:[#allocation90_spill] sm:$0xff] }
0x1379   :  { %v7315_v59 = vclamps-f32 %v5926_v16, 1.0  ;;  %v5949_v9 = vpop.f32.mrf.mxu3  ;;  %v7185_v16 = vclamps-f32 %v12026_v0, 1.0  ;;  %v12038_v38 = vld [vmem:[#allocation26_spill] sm:$0xff] }
0x137a   :  { %6766 = vmatmul.bf16.gmra.mxu2 %v7369_v37  ;;  %v7316_v14 = vclamps-f32 %v5949_v9, 1.0  ;;  %v12027_v37 = vld [vmem:[#allocation45_spill] sm:$0xff]  ;;  %v7189_v61 = vclamps-f32 %v12038_v38, 1.0  ;;  %v11678_v49 = vld [vmem:[%s11797_s5] ss:$0 sm:$0xff]  ;;  %s8402_s5 = smov [#allocation3]  }
0x137b   :  { %v7738_v36 = vpack.i.bf16 %v7315_v59, %v7314_v28  ;;  %v7255_v28 = vclamps-f32 %v12027_v37, 1.0  ;;  %v12028_v59 = vld [vmem:[#allocation89_spill] sm:$0xff]  ;;  %v7282_v37 = vclamps-f32 %v11253_v1, 1.0 }
0x137c   :  { %v7184_v9 = vclamps-f32 %v12028_v59, 1.0  ;;  %v7843_v46 = vpack.i.bf16 %v7189_v61, %v7188_v51 }
0x137d   :  { %7739 = vrot.lane.b32.xlu0 %v7738_v36, %s8396_s9  ;;  %v12029_v36 = vld [vmem:[#allocation43_spill] sm:$0xff] }
0x137e   :  { %v7254_v56 = vclamps-f32 %v12029_v36, 1.0  ;;  %v7803_v63 = vpack.i.bf16 %v7185_v16, %v7184_v9  ;;  %v7283_v9 = vclamps-f32 %v11262_v39, 1.0  ;;  %v12040_v39 = vld [vmem:[#allocation65_spill] sm:$0xff] }
0x1380   :  { %v7808_v60 = vpack.i.bf16 %v7255_v28, %v7254_v56 }
0x1381   :  { %6717 = vmatmul.bf16.gmra.mxu1 %v7365_v31  ;;  %v5951_v2 = vpop.f32.mrf.mxu3  ;;  %v5974_v41 = vpop.f32.mrf.mxu0  ;;  %v7187_v31 = vclamps-f32 %v12030_v23, 1.0 }
0x1382   :  { %v7317_v57 = vclamps-f32 %v5951_v2, 1.0  ;;  %v7318_v29 = vclamps-f32 %v5974_v41, 1.0 }
0x1383   :  { %v7823_v2 = vpack.i.bf16 %v7187_v31, %v7186_v45 }
0x1384   :  { %v7758_v44 = vpack.i.bf16 %v7317_v57, %v7316_v14 }
0x1385   :  { %7754 = vrot.lane.b32.xlu0 %v7753_v58, %s8396_s9 }
0x1386   :  { %7759 = vrot.lane.b32.xlu2 %v7758_v44, %s8396_s9 }
0x1389   :  { %v5976_v24 = vpop.f32.mrf.mxu0 }
0x138a   :  { %v7319_v42 = vclamps-f32 %v5976_v24, 1.0  ;;  %6771 = vmatmul.bf16.gmra.mxu2 %v7385_v20 }
0x138c   :  { %v7778_v62 = vpack.i.bf16 %v7319_v42, %v7318_v29  ;;  %v7257_v29 = vclamps-f32 %v12034_v13, 1.0  ;;  %v12035_v42 = vld [vmem:[#allocation17_spill] sm:$0xff] }
0x138d   :  { %7769 = vrot.lane.b32.xlu0 %v7768_v18, %s8396_s9  ;;  %v7121_v18 = vclamps-f32 %v12035_v42, 1.0  ;;  %v7280_v42 = vclamps-f32 %v11255_v4, 1.0 }
0x138e   :  { %7774 = vrot.lane.b32.xlu2 %v7773_v47, %s8396_s9  ;;  %7779 = vrot.lane.b32.xlu1 %v7778_v62, %s8396_s9  ;;  %v12036_v47 = vld [vmem:[#allocation27_spill] sm:$0xff] }
0x138f   :  { %v7256_v62 = vclamps-f32 %v12036_v47, 1.0  ;;  %v7833_v53 = vpack.i.bf16 %v7121_v18, %v7120_v17  ;;  %v7281_v47 = vclamps-f32 %v11264_v21, 1.0 }
0x1391   :  { %6722 = vmatmul.bf16.gmra.mxu1 %v7381_v26  ;;  %v7828_v8 = vpack.i.bf16 %v7257_v29, %v7256_v62 }
0x1395   :  { %7784 = vrot.lane.b32.xlu0 %v7783_v7, %s8396_s9 }
0x1396   :  { %7789 = vrot.lane.b32.xlu2 %v7788_v10, %s8396_s9  ;;  %7794 = vrot.lane.b32.xlu1 %v7793_v12, %s8396_s9 }
0x139e   :  { %7804 = vrot.lane.b32.xlu2 %v7803_v63, %s8396_s9  ;;  %7809 = vrot.lane.b32.xlu1 %v7808_v60, %s8396_s9 }
0x13a6   :  { %7824 = vrot.lane.b32.xlu1 %v7823_v2, %s8396_s9 }
0x13b4   :  { %v5999_v41 = vpop.f32.mrf.mxu1 }
0x13b5   :  { %v7320_v57 = vclamps-f32 %v5999_v41, 1.0 }
0x13bc   :  { %v6001_v14 = vpop.f32.mrf.mxu1 }
0x13bd   :  { %v7321_v58 = vclamps-f32 %v6001_v14, 1.0 }
0x13be   :  { %v6024_v44 = vpop.f32.mrf.mxu2 }
0x13bf   :  { %v7798_v52 = vpack.i.bf16 %v7321_v58, %v7320_v57  ;;  %v7322_v6 = vclamps-f32 %v6024_v44, 1.0  ;;  %v7080_v57 = vclamps-f32 %v12040_v39, 1.0  ;;  %v12041_v44 = vld [vmem:[#allocation66_spill] sm:$0xff] }
0x13c1   :  { %7799 = vrot.lane.b32.xlu0 %v7798_v52, %s8396_s9  ;;  %v7081_v52 = vclamps-f32 %v12041_v44, 1.0 }
0x13c6   :  { %v6026_v22 = vpop.f32.mrf.mxu2  ;;  %v6049_v20 = vpop.f32.mrf.mxu3 }
0x13c7   :  { %v7323_v24 = vclamps-f32 %v6026_v22, 1.0  ;;  %v7324_v26 = vclamps-f32 %v6049_v20, 1.0 }
0x13c9   :  { %v7818_v30 = vpack.i.bf16 %v7323_v24, %v7322_v6  ;;  %7814 = vrot.lane.b32.xlu0 %v7813_v50, %s8396_s9 }
0x13cb   :  { %7819 = vrot.lane.b32.xlu2 %v7818_v30, %s8396_s9 }
0x13ce   :  { %v6051_v15 = vpop.f32.mrf.mxu3  ;;  %v6659_v33 = vpop.f32.mrf.mxu0 }
0x13cf   :  { %v7325_v43 = vclamps-f32 %v6051_v15, 1.0  ;;  %v6660_v7 = vadd.f32 %v11678_v49, %v6659_v33 }
0x13d1   :  { %v7838_v55 = vpack.i.bf16 %v7325_v43, %v7324_v26  ;;  %7829 = vrot.lane.b32.xlu0 %v7828_v8, %s8396_s9  ;;  %v12042_v8 = vld [vmem:[#allocation48_spill] sm:$0xff]  ;;  %v12043_v43 = vld [vmem:[#allocation50_spill] sm:$0xff] }
0x13d2   :  { %v7218_v26 = vclamps-f32 %v12042_v8, 1.0 }
0x13d3   :  { %7834 = vrot.lane.b32.xlu2 %v7833_v53, %s8396_s9  ;;  %7839 = vrot.lane.b32.xlu1 %v7838_v55, %s8396_s9  ;;  %v7219_v53 = vclamps-f32 %v12043_v43, 1.0  ;;  %v7285_v43 = vclamps-f32 %v11204_v19, 1.0  ;;  %v12050_v19 = vld [vmem:[#allocation20_spill] sm:$0xff] }
0x13d6   :  { %v6661_v0 = vpop.f32.mrf.mxu0 }
0x13d7   :  { %v6662_v2 = vadd.f32 %v11678_v49, %v6661_v0 }
0x13d9   :  { %7844 = vrot.lane.b32.xlu0 %v7843_v46, %s8396_s9  ;;  %s6866_s9 = sshll.u32 %s8402_s5, 4  ;;  %s6867_s9 = int_to_ptr.vmem [resolvable:$true] %s6866_s9 }
0x13dc   :  { %v6757_v12 = vpop.f32.mrf.mxu2 }
0x13de   :  { %v6708_v10 = vpop.f32.mrf.mxu1  ;;  %v6806_v28 = vpop.f32.mrf.mxu3 }
0x13df   :  { %v6709_v16 = vadd.f32 %v6708_v10, %v6660_v7  ;;  %v6664_v25 = vpop.f32.mrf.mxu0 }
0x13e0   :  { %v7760_v59 = vpop.permute.xlu2 %7759  ;;  %v6665_v13 = vadd.f32 %v11678_v49, %v6664_v25 }
0x13e1   :  { %v6758_v36 = vadd.f32 %v6757_v12, %v6709_v16  ;;  %v7762_v56 = vunpack.i.h.bf16 %v7760_v59  ;;  %v7761_v63 = vunpack.i.l.bf16 %v7760_v59 }
0x13e3   :  { %v6807_v60 = vadd.f32 %v6806_v28, %v6758_v36  ;;  %v6157_v23 = vsel %vm239_vm0, %v7283_v9, %v7762_v56  ;;  %v6156_v31 = vsel %vm239_vm0, %v7282_v37, %v7761_v63  ;;  %v12044_v9 = vld [vmem:[#allocation55_spill] sm:$0xff]  ;;  %v12045_v63 = vld [vmem:[#allocation56_spill] sm:$0xff] }
0x13e4   :  { %v6173_v11 = vpack.c.bf16 %v6157_v23, %v6157_v23  ;;  %v6172_v45 = vpack.c.bf16 %v6156_v31, %v6156_v31  ;;  %v6759_v41 = vpop.f32.mrf.mxu2  ;;  %v7078_v36 = vclamps-f32 %v12044_v9, 1.0 }
0x13e5   :  { %6846 = vst.msk [vmem:[#allocation3] sm:$0xff] %vm239_vm0, %v6807_v60  ;;  %v7079_v60 = vclamps-f32 %v12045_v63, 1.0  ;;  %v12053_v63 = vld [vmem:[#allocation60_spill] sm:$0xff] }
0x13e6   :  { %6189 = vst [vmem:[#allocation2 + $0x7c] sm:$0xf] %v6173_v11  ;;  %v6710_v1 = vpop.f32.mrf.mxu1  ;;  %v6808_v22 = vpop.f32.mrf.mxu3 }
0x13e7   :  { %6188 = vst [vmem:[#allocation2 + $0x6c] sm:$0xf] %v6172_v45  ;;  %v6711_v14 = vadd.f32 %v6710_v1, %v6662_v2  ;;  %v6666_v4 = vpop.f32.mrf.mxu0  ;;  %v12046_v2 = vld [vmem:[#allocation76_spill] sm:$0xff] }
0x13e8   :  { %v7775_v58 = vpop.permute.xlu2 %7774  ;;  %v6667_v37 = vadd.f32 %v11678_v49, %v6666_v4  ;;  %v7150_v1 = vclamps-f32 %v12046_v2, 1.0 }
0x13e9   :  { %v6760_v48 = vadd.f32 %v6759_v41, %v6711_v14  ;;  %v7777_v27 = vunpack.i.h.bf16 %v7775_v58  ;;  %v7776_v32 = vunpack.i.l.bf16 %v7775_v58  ;;  %v12047_v41 = vld [vmem:[#allocation77_spill] sm:$0xff] }
0x13ea   :  { %v7151_v14 = vclamps-f32 %v12047_v41, 1.0 }
0x13eb   :  { %v6809_v20 = vadd.f32 %v6808_v22, %v6760_v48  ;;  %v1989_v50 = vsel %vm239_vm0, %v7081_v52, %v7777_v27  ;;  %v1988_v6 = vsel %vm239_vm0, %v7080_v57, %v7776_v32 }
0x13ec   :  { %v2005_v24 = vpack.c.bf16 %v1989_v50, %v1989_v50  ;;  %v2004_v30 = vpack.c.bf16 %v1988_v6, %v1988_v6  ;;  %v6762_v55 = vpop.f32.mrf.mxu2 }
0x13ed   :  { %6847 = vst.msk [vmem:[#allocation3 + $0x8] sm:$0xff] %vm239_vm0, %v6809_v20 }
0x13ee   :  { %2021 = vst [vmem:[#allocation2 + $0x90] sm:$0xf] %v2005_v24  ;;  %v6713_v29 = vpop.f32.mrf.mxu1 }
0x13ef   :  { %2020 = vst [vmem:[#allocation2 + $0x80] sm:$0xf] %v2004_v30  ;;  %v7740_v18 = vpop.permute.xlu0 %7739  ;;  %v6714_v62 = vadd.f32 %v6713_v29, %v6665_v13  ;;  %v12048_v13 = vld [vmem:[#allocation40_spill] sm:$0xff] }
0x13f0   :  { %v7790_v15 = vpop.permute.xlu2 %7789  ;;  %v7742_v3 = vunpack.i.h.bf16 %v7740_v18  ;;  %v7741_v17 = vunpack.i.l.bf16 %v7740_v18  ;;  %v7216_v29 = vclamps-f32 %v12048_v13, 1.0 }
0x13f1   :  { %v7792_v38 = vunpack.i.h.bf16 %v7790_v15  ;;  %v7791_v61 = vunpack.i.l.bf16 %v7790_v15  ;;  %v6763_v0 = vadd.f32 %v6762_v55, %v6714_v62 }
0x13f2   :  { %v6155_v54 = vsel %vm239_vm0, %v7281_v47, %v7742_v3  ;;  %v6154_v51 = vsel %vm239_vm0, %v7280_v42, %v7741_v17  ;;  %v12049_v47 = vld [vmem:[#allocation42_spill] sm:$0xff] }
0x13f3   :  { %v4771_v33 = vsel %vm239_vm0, %v7219_v53, %v7792_v38  ;;  %v4770_v21 = vsel %vm239_vm0, %v7218_v26, %v7791_v61  ;;  %v6171_v46 = vpack.c.bf16 %v6155_v54, %v6155_v54  ;;  %v6170_v10 = vpack.c.bf16 %v6154_v51, %v6154_v51 }
0x13f4   :  { %v4787_v7 = vpack.c.bf16 %v4771_v33, %v4771_v33  ;;  %v4786_v12 = vpack.c.bf16 %v4770_v21, %v4770_v21  ;;  %v6764_v52 = vpop.f32.mrf.mxu2  ;;  %v7217_v62 = vclamps-f32 %v12049_v47, 1.0  ;;  %v7284_v26 = vclamps-f32 %v11198_v40, 1.0 }
0x13f5   :  { %6187 = vst [vmem:[#allocation2 + $0x5c] sm:$0xf] %v6171_v46  ;;  %v6811_v16 = vpop.f32.mrf.mxu3 }
0x13f6   :  { %4803 = vst [vmem:[#allocation2 + $0xb8] sm:$0xf] %v4787_v7  ;;  %v6715_v28 = vpop.f32.mrf.mxu1  ;;  %v6812_v59 = vadd.f32 %v6811_v16, %v6763_v0  ;;  %v7148_v7 = vclamps-f32 %v12050_v19, 1.0  ;;  %v12051_v0 = vld [vmem:[#allocation21_spill] sm:$0xff] }
0x13f7   :  { %4802 = vst [vmem:[#allocation2 + $0xa8] sm:$0xf] %v4786_v12  ;;  %v7755_v56 = vpop.permute.xlu0 %7754  ;;  %v6716_v23 = vadd.f32 %v6715_v28, %v6667_v37  ;;  %v7149_v16 = vclamps-f32 %v12051_v0, 1.0 }
0x13f8   :  { %6186 = vst [vmem:[#allocation2 + $0x4c] sm:$0xf] %v6170_v10  ;;  %v7805_v31 = vpop.permute.xlu2 %7804  ;;  %v7757_v11 = vunpack.i.h.bf16 %v7755_v56  ;;  %v7756_v45 = vunpack.i.l.bf16 %v7755_v56 }
0x13f9   :  { %6848 = vst.msk [vmem:[#allocation3 + $0x10] sm:$0xff] %vm239_vm0, %v6812_v59  ;;  %v7807_v39 = vunpack.i.h.bf16 %v7805_v31  ;;  %v7806_v57 = vunpack.i.l.bf16 %v7805_v31  ;;  %v6765_v50 = vadd.f32 %v6764_v52, %v6716_v23 }
0x13fa   :  { %v1987_v58 = vsel %vm239_vm0, %v7079_v60, %v7757_v11  ;;  %v1986_v44 = vsel %vm239_vm0, %v7078_v36, %v7756_v45  ;;  %v12052_v36 = vld [vmem:[#allocation58_spill] sm:$0xff]  ;;  %v7083_v60 = vclamps-f32 %v12053_v63, 1.0 }
0x13fb   :  { %v3381_v25 = vsel %vm239_vm0, %v7151_v14, %v7807_v39  ;;  %v3380_v48 = vsel %vm239_vm0, %v7150_v1, %v7806_v57  ;;  %v2003_v27 = vpack.c.bf16 %v1987_v58, %v1987_v58  ;;  %v2002_v20 = vpack.c.bf16 %v1986_v44, %v1986_v44  ;;  %v7386_v44 = vld [vmem:[#allocation2 + $0x78] sm:$0xf0] }
0x13fc   :  { %v3397_v32 = vpack.c.bf16 %v3381_v25, %v3381_v25  ;;  %v3396_v22 = vpack.c.bf16 %v3380_v48, %v3380_v48  ;;  %v7370_v24 = vld [vmem:[#allocation2 + $0x58] sm:$0xf0]  ;;  %v7082_v56 = vclamps-f32 %v12052_v36, 1.0  ;;  %v7627_v25 = vld [vmem:[#allocation2 + $0x6c] sm:$0xf]  ;;  %v7289_v36 = vclamps-f32 %v11292_v34, 1.0 }
0x13fd   :  { %2019 = vst [vmem:[#allocation2 + $0x70] sm:$0xf] %v2003_v27  ;;  %v6813_v6 = vpop.f32.mrf.mxu3  ;;  %v7389_v27 = vor.u32 %v7627_v25, %v7386_v44  ;;  %v12059_v34 = vld [vmem:[#allocation64_spill] sm:$0xff] }
0x13fe   :  { %3413 = vst [vmem:[#allocation2 + $0xb4] sm:$0xf] %v3397_v32  ;;  %v6814_v30 = vadd.f32 %v6813_v6, %v6765_v50  ;;  %v12055_v50 = vld [vmem:[#allocation97_spill] sm:$0xff] }
0x13ff   :  { %3412 = vst [vmem:[#allocation2 + $0xa4] sm:$0xf] %v3396_v22  ;;  %v7770_v42 = vpop.permute.xlu0 %7769  ;;  %v7623_v18 = vld [vmem:[#allocation2 + $0x4c] sm:$0xf]  ;;  %v7221_v6 = vclamps-f32 %v12055_v50, 1.0 }
0x1400   :  { %2018 = vst [vmem:[#allocation2 + $0x60] sm:$0xf] %v2002_v20  ;;  %v7772_v15 = vunpack.i.h.bf16 %v7770_v42  ;;  %v7771_v3 = vunpack.i.l.bf16 %v7770_v42  ;;  %v7373_v17 = vor.u32 %v7623_v18, %v7370_v24  ;;  %v7780_v8 = vpop.permute.xlu1 %7779  ;;  %v12054_v22 = vld [vmem:[#allocation95_spill] sm:$0xff] }
0x1401   :  { %6849 = vst.msk [vmem:[#allocation3 + $0x18] sm:$0xff] %vm239_vm0, %v6814_v30  ;;  %v7782_v53 = vunpack.i.h.bf16 %v7780_v8  ;;  %v7781_v55 = vunpack.i.l.bf16 %v7780_v8  ;;  %v7220_v20 = vclamps-f32 %v12054_v22, 1.0 }
0x1402   :  { %v4769_v38 = vsel %vm239_vm0, %v7217_v62, %v7772_v15  ;;  %v4768_v61 = vsel %vm239_vm0, %v7216_v29, %v7771_v3  ;;  %6815 = vmatmul.bf16.gmra.mxu3 %v7373_v17  ;;  %v7392_v62 = vld [vmem:[#allocation2 + $0x80] sm:$0xf]  ;;  %v7632_v15 = vld [vmem:[#allocation2 + $0x8c] sm:$0xf0] }
0x1403   :  { %v4785_v54 = vpack.c.bf16 %v4769_v38, %v4769_v38  ;;  %v4784_v51 = vpack.c.bf16 %v4768_v61, %v4768_v61  ;;  %v6159_v4 = vsel %vm239_vm0, %v7285_v43, %v7782_v53  ;;  %v6158_v33 = vsel %vm239_vm0, %v7284_v26, %v7781_v55  ;;  %v12056_v43 = vld [vmem:[#allocation82_spill] sm:$0xff]  ;;  %v12057_v55 = vld [vmem:[#allocation83_spill] sm:$0xff] }
0x1404   :  { %v6175_v21 = vpack.c.bf16 %v6159_v4, %v6159_v4  ;;  %v6174_v46 = vpack.c.bf16 %v6158_v33, %v6158_v33  ;;  %v7628_v40 = vld [vmem:[#allocation2 + $0x6c] sm:$0xf0]  ;;  %v7393_v8 = vor.u32 %v7632_v15, %v7392_v62  ;;  %v7152_v53 = vclamps-f32 %v12056_v43, 1.0  ;;  %v7416_v33 = vld [vmem:[#allocation2 + $0xa8] sm:$0xf] }
0x1405   :  { %4801 = vst [vmem:[#allocation2 + $0x98] sm:$0xf] %v4785_v54  ;;  %v7153_v38 = vclamps-f32 %v12057_v55, 1.0 }
0x1406   :  { %4800 = vst [vmem:[#allocation2 + $0x88] sm:$0xf] %v4784_v51  ;;  %v7634_v0 = vld [vmem:[#allocation2 + $0xa4] sm:$0xf] }
0x1407   :  { %6191 = vst [vmem:[#allocation2 + $0x9c] sm:$0xf] %v6175_v21  ;;  %v7785_v12 = vpop.permute.xlu0 %7784  ;;  %v7376_v10 = vld [vmem:[#allocation2 + $0x60] sm:$0xf]  ;;  %v7637_v21 = vld [vmem:[#allocation2 + $0xb4] sm:$0xf0] }
0x1408   :  { %6190 = vst [vmem:[#allocation2 + $0x8c] sm:$0xf] %v6174_v46  ;;  %v7787_v37 = vunpack.i.h.bf16 %v7785_v12  ;;  %v7786_v28 = vunpack.i.l.bf16 %v7785_v12  ;;  %v7377_v59 = vor.u32 %v7628_v40, %v7376_v10  ;;  %v7795_v9 = vpop.permute.xlu1 %7794  ;;  %v7417_v12 = vor.u32 %v7637_v21, %v7416_v33 }
0x1409   :  { %v7797_v23 = vunpack.i.h.bf16 %v7795_v9  ;;  %v7796_v31 = vunpack.i.l.bf16 %v7795_v9 }
0x140a   :  { %v3379_v11 = vsel %vm239_vm0, %v7149_v16, %v7787_v37  ;;  %v3378_v45 = vsel %vm239_vm0, %v7148_v7, %v7786_v28  ;;  %6673 = vmatmul.bf16.gmra.mxu0 %v7377_v59  ;;  %v7410_v16 = vld [vmem:[#allocation2 + $0xb0] sm:$0xf0]  ;;  %v7288_v37 = vclamps-f32 %v11281_v35, 1.0 }
0x140b   :  { %v3395_v2 = vpack.c.bf16 %v3379_v11, %v3379_v11  ;;  %v3394_v1 = vpack.c.bf16 %v3378_v45, %v3378_v45  ;;  %v1991_v41 = vsel %vm239_vm0, %v7083_v60, %v7797_v23  ;;  %v1990_v14 = vsel %vm239_vm0, %v7082_v56, %v7796_v31 }
0x140c   :  { %v2007_v39 = vpack.c.bf16 %v1991_v41, %v1991_v41  ;;  %v2006_v57 = vpack.c.bf16 %v1990_v14, %v1990_v14  ;;  %v7633_v58 = vld [vmem:[#allocation2 + $0x94] sm:$0xf0]  ;;  %v7413_v60 = vor.u32 %v7634_v0, %v7410_v16  ;;  %v12058_v41 = vld [vmem:[#allocation62_spill] sm:$0xff] }
0x140d   :  { %3411 = vst [vmem:[#allocation2 + $0x94] sm:$0xf] %v3395_v2  ;;  %v7400_v52 = vld [vmem:[#allocation2 + $0x88] sm:$0xf]  ;;  %v7086_v14 = vclamps-f32 %v12058_v41, 1.0  ;;  %v12065_v0 = vld [vmem:[#allocation33_spill] sm:$0xff] }
0x140e   :  { %3410 = vst [vmem:[#allocation2 + $0x84] sm:$0xf] %v3394_v1  ;;  %v7401_v48 = vor.u32 %v7633_v58, %v7400_v52  ;;  %v7402_v7 = vld [vmem:[#allocation2 + $0x98] sm:$0xf0]  ;;  %v7290_v16 = vclamps-f32 %v12065_v0, 1.0 }
0x140f   :  { %2023 = vst [vmem:[#allocation2 + $0xb0] sm:$0xf] %v2007_v39  ;;  %v7631_v19 = vld [vmem:[#allocation2 + $0x8c] sm:$0xf] }
0x1410   :  { %2022 = vst [vmem:[#allocation2 + $0xa0] sm:$0xf] %v2006_v57  ;;  %6776 = vmatmul.bf16.gmra.mxu2 %v7401_v48  ;;  %v7810_v32 = vpop.permute.xlu1 %7809  ;;  %v7405_v10 = vor.u32 %v7631_v19, %v7402_v7  ;;  %v7087_v57 = vclamps-f32 %v12059_v34, 1.0  ;;  %v12064_v19 = vld [vmem:[#allocation96_spill] sm:$0xff] }
0x1411   :  { %v7812_v24 = vunpack.i.h.bf16 %v7810_v32  ;;  %v7811_v30 = vunpack.i.l.bf16 %v7810_v32  ;;  %v7223_v7 = vclamps-f32 %v12064_v19, 1.0 }
0x1412   :  { %6820 = vmatmul.bf16.gmra.mxu3 %v7389_v27 }
0x1413   :  { %v4773_v13 = vsel %vm239_vm0, %v7221_v6, %v7812_v24  ;;  %v4772_v29 = vsel %vm239_vm0, %v7220_v20, %v7811_v30  ;;  %v7286_v6 = vclamps-f32 %v11240_v5, 1.0  ;;  %v12060_v24 = vld [vmem:[#allocation31_spill] sm:$0xff] }
0x1414   :  { %v4789_v42 = vpack.c.bf16 %v4773_v13, %v4773_v13  ;;  %v4788_v18 = vpack.c.bf16 %v4772_v29, %v4772_v29  ;;  %v7394_v47 = vld [vmem:[#allocation2 + $0x90] sm:$0xf0]  ;;  %v7287_v30 = vclamps-f32 %v12060_v24, 1.0 }
0x1415   :  { %v7630_v3 = vld [vmem:[#allocation2 + $0x84] sm:$0xf] }
0x1416   :  { %4805 = vst [vmem:[#allocation2 + $0xd8] sm:$0xf] %v4789_v42  ;;  %v7397_v17 = vor.u32 %v7630_v3, %v7394_v47  ;;  %v7636_v9 = vld [vmem:[#allocation2 + $0xac] sm:$0xf0] }
0x1417   :  { %4804 = vst [vmem:[#allocation2 + $0xc8] sm:$0xf] %v4788_v18  ;;  %v7408_v59 = vld [vmem:[#allocation2 + $0xa0] sm:$0xf] }
0x1418   :  { %6727 = vmatmul.bf16.gmra.mxu1 %v7397_v17  ;;  %v7825_v26 = vpop.permute.xlu1 %7824  ;;  %v7409_v11 = vor.u32 %v7636_v9, %v7408_v59  ;;  %v12061_v17 = vld [vmem:[#allocation67_spill] sm:$0xff] }
0x1419   :  { %v7827_v61 = vunpack.i.h.bf16 %v7825_v26  ;;  %v7826_v54 = vunpack.i.l.bf16 %v7825_v26  ;;  %v12062_v26 = vld [vmem:[#allocation68_spill] sm:$0xff] }
0x141a   :  { %6678 = vmatmul.bf16.gmra.mxu0 %v7393_v8  ;;  %v7084_v8 = vclamps-f32 %v12061_v17, 1.0  ;;  %v7085_v5 = vclamps-f32 %v12062_v26, 1.0  ;;  %v6718_v26 = vpop.f32.mrf.mxu1 }
0x141b   :  { %v3383_v51 = vsel %vm239_vm0, %v7153_v38, %v7827_v61  ;;  %v3382_v4 = vsel %vm239_vm0, %v7152_v53, %v7826_v54 }
0x141c   :  { %v3399_v46 = vpack.c.bf16 %v3383_v51, %v3383_v51  ;;  %v3398_v40 = vpack.c.bf16 %v3382_v4, %v3382_v4 }
0x141d   :  { %v7641_v35 = vld [vmem:[#allocation2 + $0xd4] sm:$0xf0] }
0x141e   :  { %3415 = vst [vmem:[#allocation2 + $0xd4] sm:$0xf] %v3399_v46  ;;  %v7432_v1 = vld [vmem:[#allocation2 + $0xc8] sm:$0xf]  ;;  %v12063_v46 = vld [vmem:[#allocation94_spill] sm:$0xff] }
0x141f   :  { %3414 = vst [vmem:[#allocation2 + $0xc4] sm:$0xf] %v3398_v40  ;;  %v7433_v52 = vor.u32 %v7641_v35, %v7432_v1  ;;  %v7222_v40 = vclamps-f32 %v12063_v46, 1.0 }
0x1420   :  { %6781 = vmatmul.bf16.gmra.mxu2 %v7417_v12 }
0x1422   :  { %6825 = vmatmul.bf16.gmra.mxu3 %v7405_v10 }
0x1425   :  { %v7820_v28 = vpop.permute.xlu2 %7819  ;;  %v7426_v50 = vld [vmem:[#allocation2 + $0xd0] sm:$0xf0] }
0x1426   :  { %v7822_v56 = vunpack.i.h.bf16 %v7820_v28  ;;  %v7821_v63 = vunpack.i.l.bf16 %v7820_v28  ;;  %v7638_v20 = vld [vmem:[#allocation2 + $0xc4] sm:$0xf] }
0x1427   :  { %v7429_v47 = vor.u32 %v7638_v20, %v7426_v50 }
0x1428   :  { %v6163_v23 = vsel %vm239_vm0, %v7289_v36, %v7822_v56  ;;  %v6162_v31 = vsel %vm239_vm0, %v7288_v37, %v7821_v63  ;;  %6732 = vmatmul.bf16.gmra.mxu1 %v7413_v60  ;;  %v12066_v37 = vld [vmem:[#allocation47_spill] sm:$0xff] }
0x1429   :  { %v6179_v45 = vpack.c.bf16 %v6163_v23, %v6163_v23  ;;  %v6178_v2 = vpack.c.bf16 %v6162_v31, %v6162_v31  ;;  %v7291_v28 = vclamps-f32 %v12066_v37, 1.0 }
0x142a   :  { %6683 = vmatmul.bf16.gmra.mxu0 %v7409_v11 }
0x142b   :  { %6195 = vst [vmem:[#allocation2 + $0xdc] sm:$0xf] %v6179_v45 }
0x142c   :  { %6194 = vst [vmem:[#allocation2 + $0xcc] sm:$0xf] %v6178_v2 }
0x142d   :  { %v7835_v39 = vpop.permute.xlu2 %7834 }
0x142e   :  { %v7837_v58 = vunpack.i.h.bf16 %v7835_v39  ;;  %v7836_v44 = vunpack.i.l.bf16 %v7835_v39  ;;  %v12067_v39 = vld [vmem:[#allocation84_spill] sm:$0xff] }
0x142f   :  { %v7154_v34 = vclamps-f32 %v12067_v39, 1.0 }
0x1430   :  { %v1995_v25 = vsel %vm239_vm0, %v7087_v57, %v7837_v58  ;;  %v1994_v48 = vsel %vm239_vm0, %v7086_v14, %v7836_v44  ;;  %6786 = vmatmul.bf16.gmra.mxu2 %v7433_v52  ;;  %v12068_v57 = vld [vmem:[#allocation85_spill] sm:$0xff] }
0x1431   :  { %v2011_v27 = vpack.c.bf16 %v1995_v25, %v1995_v25  ;;  %v2010_v32 = vpack.c.bf16 %v1994_v48, %v1994_v48  ;;  %v7155_v58 = vclamps-f32 %v12068_v57, 1.0 }
0x1432   :  { %v7434_v20 = vld [vmem:[#allocation2 + $0xd8] sm:$0xf0] }
0x1433   :  { %2027 = vst [vmem:[#allocation2 + $0xf0] sm:$0xf] %v2011_v27  ;;  %v7800_v22 = vpop.permute.xlu0 %7799 }
0x1434   :  { %2026 = vst [vmem:[#allocation2 + $0xe0] sm:$0xf] %v2010_v32  ;;  %v7802_v13 = vunpack.i.h.bf16 %v7800_v22  ;;  %v7801_v29 = vunpack.i.l.bf16 %v7800_v22  ;;  %v7639_v22 = vld [vmem:[#allocation2 + $0xcc] sm:$0xf] }
0x1436   :  { %v6161_v42 = vsel %vm239_vm0, %v7287_v30, %v7802_v13  ;;  %v6160_v18 = vsel %vm239_vm0, %v7286_v6, %v7801_v29  ;;  %v7437_v30 = vor.u32 %v7639_v22, %v7434_v20 }
0x1437   :  { %v6177_v62 = vpack.c.bf16 %v6161_v42, %v6161_v42  ;;  %v6176_v15 = vpack.c.bf16 %v6160_v18, %v6160_v18 }
0x1438   :  { %6737 = vmatmul.bf16.gmra.mxu1 %v7429_v47 }
0x1439   :  { %6193 = vst [vmem:[#allocation2 + $0xbc] sm:$0xf] %v6177_v62 }
0x143a   :  { %6192 = vst [vmem:[#allocation2 + $0xac] sm:$0xf] %v6176_v15  ;;  %v7644_v29 = vld [vmem:[#allocation2 + $0xec] sm:$0xf0] }
0x143b   :  { %v7815_v3 = vpop.permute.xlu0 %7814  ;;  %v7440_v13 = vld [vmem:[#allocation2 + $0xe0] sm:$0xf] }
0x143c   :  { %v7817_v43 = vunpack.i.h.bf16 %v7815_v3  ;;  %v7816_v53 = vunpack.i.l.bf16 %v7815_v3  ;;  %v7441_v47 = vor.u32 %v7644_v29, %v7440_v13 }
0x143e   :  { %v1993_v55 = vsel %vm239_vm0, %v7085_v5, %v7817_v43  ;;  %v1992_v38 = vsel %vm239_vm0, %v7084_v8, %v7816_v53  ;;  %v6669_v8 = vpop.f32.mrf.mxu0  ;;  %v6767_v5 = vpop.f32.mrf.mxu2 }
0x143f   :  { %v2009_v61 = vpack.c.bf16 %v1993_v55, %v1993_v55  ;;  %v2008_v54 = vpack.c.bf16 %v1992_v38, %v1992_v38  ;;  %v6670_v43 = vadd.f32 %v11678_v49, %v6669_v8  ;;  %v6720_v38 = vpop.f32.mrf.mxu1 }
0x1440   :  { %v7418_v51 = vld [vmem:[#allocation2 + $0xb8] sm:$0xf0] }
0x1441   :  { %2025 = vst [vmem:[#allocation2 + $0xd0] sm:$0xf] %v2009_v61  ;;  %v7635_v4 = vld [vmem:[#allocation2 + $0xac] sm:$0xf]  ;;  %v6719_v55 = vadd.f32 %v6718_v26, %v6670_v43 }
0x1442   :  { %2024 = vst [vmem:[#allocation2 + $0xc0] sm:$0xf] %v2008_v54  ;;  %v7421_v33 = vor.u32 %v7635_v4, %v7418_v51 }
0x1443   :  { %v7830_v21 = vpop.permute.xlu0 %7829  ;;  %v6768_v61 = vadd.f32 %v6767_v5, %v6719_v55 }
0x1444   :  { %v7832_v12 = vunpack.i.h.bf16 %v7830_v21  ;;  %v7831_v10 = vunpack.i.l.bf16 %v7830_v21  ;;  %6830 = vmatmul.bf16.gmra.mxu3 %v7421_v33 }
0x1445   :  { %v7840_v59 = vpop.permute.xlu1 %7839 }
0x1446   :  { %v4775_v9 = vsel %vm239_vm0, %v7223_v7, %v7832_v12  ;;  %v4774_v36 = vsel %vm239_vm0, %v7222_v40, %v7831_v10  ;;  %v7842_v56 = vunpack.i.h.bf16 %v7840_v59  ;;  %v7841_v63 = vunpack.i.l.bf16 %v7840_v59  ;;  %v6671_v53 = vpop.f32.mrf.mxu0  ;;  %v6769_v54 = vpop.f32.mrf.mxu2 }
0x1447   :  { %v4791_v60 = vpack.c.bf16 %v4775_v9, %v4775_v9  ;;  %v4790_v23 = vpack.c.bf16 %v4774_v36, %v4774_v36  ;;  %v6672_v4 = vadd.f32 %v11678_v49, %v6671_v53  ;;  %v6723_v40 = vpop.f32.mrf.mxu1 }
0x1448   :  { %v6165_v31 = vsel %vm239_vm0, %v7291_v28, %v7842_v56  ;;  %v6164_v11 = vsel %vm239_vm0, %v7290_v16, %v7841_v63  ;;  %v7640_v45 = vld [vmem:[#allocation2 + $0xcc] sm:$0xf0] }
0x1449   :  { %4807 = vst [vmem:[#allocation2 + $0xf8] sm:$0xf] %v4791_v60  ;;  %v6181_v2 = vpack.c.bf16 %v6165_v31, %v6165_v31  ;;  %v6180_v1 = vpack.c.bf16 %v6164_v11, %v6164_v11  ;;  %v7424_v35 = vld [vmem:[#allocation2 + $0xc0] sm:$0xf]  ;;  %v6721_v46 = vadd.f32 %v6720_v38, %v6672_v4 }
0x144a   :  { %4806 = vst [vmem:[#allocation2 + $0xe8] sm:$0xf] %v4790_v23  ;;  %v7425_v41 = vor.u32 %v7640_v45, %v7424_v35 }
0x144b   :  { %6197 = vst [vmem:[#allocation2 + $0xfc] sm:$0xf] %v6181_v2  ;;  %v7845_v14 = vpop.permute.xlu0 %7844  ;;  %v6770_v19 = vadd.f32 %v6769_v54, %v6721_v46 }
0x144c   :  { %6196 = vst [vmem:[#allocation2 + $0xec] sm:$0xf] %v6180_v1  ;;  %v7847_v44 = vunpack.i.h.bf16 %v7845_v14  ;;  %v7846_v52 = vunpack.i.l.bf16 %v7845_v14  ;;  %6688 = vmatmul.bf16.gmra.mxu0 %v7425_v41 }
0x144e   :  { %v3385_v25 = vsel %vm239_vm0, %v7155_v58, %v7847_v44  ;;  %v3384_v48 = vsel %vm239_vm0, %v7154_v34, %v7846_v52  ;;  %v6772_v0 = vpop.f32.mrf.mxu2 }
0x144f   :  { %v3401_v27 = vpack.c.bf16 %v3385_v25, %v3385_v25  ;;  %v3400_v32 = vpack.c.bf16 %v3384_v48, %v3384_v48  ;;  %v6725_v9 = vpop.f32.mrf.mxu1 }
0x1450   :  { %v7645_v50 = vld [vmem:[#allocation2 + $0xf4] sm:$0xf0] }
0x1451   :  { %3417 = vst [vmem:[#allocation2 + $0xf4] sm:$0xf] %v3401_v27  ;;  %v7448_v6 = vld [vmem:[#allocation2 + $0xe8] sm:$0xf] }
0x1452   :  { %3416 = vst [vmem:[#allocation2 + $0xe4] sm:$0xf] %v3400_v32  ;;  %v7449_v24 = vor.u32 %v7645_v50, %v7448_v6  ;;  %v7450_v3 = vld [vmem:[#allocation2 + $0xf8] sm:$0xf0] }
0x1453   :  { %v7643_v15 = vld [vmem:[#allocation2 + $0xec] sm:$0xf] }
0x1454   :  { %6791 = vmatmul.bf16.gmra.mxu2 %v7449_v24  ;;  %6835 = vmatmul.bf16.gmra.mxu3 %v7437_v30  ;;  %v7453_v17 = vor.u32 %v7643_v15, %v7450_v3 }
0x1456   :  { %v6774_v23 = vpop.f32.mrf.mxu2 }
0x1458   :  { %v7442_v42 = vld [vmem:[#allocation2 + $0xf0] sm:$0xf0] }
0x1459   :  { %v7642_v18 = vld [vmem:[#allocation2 + $0xe4] sm:$0xf] }
0x145a   :  { %v7445_v62 = vor.u32 %v7642_v18, %v7442_v42 }
0x145c   :  { %6693 = vmatmul.bf16.gmra.mxu0 %v7441_v47  ;;  %6742 = vmatmul.bf16.gmra.mxu1 %v7445_v62 }
0x1464   :  { %6840 = vmatmul.bf16.gmra.mxu3 %v7453_v17 }
0x1485   :  { %v6816_v51 = vpop.f32.mrf.mxu3 }
0x1486   :  { %v6817_v33 = vadd.f32 %v6816_v51, %v6768_v61 }
0x1487   :  { %v6674_v21 = vpop.f32.mrf.mxu0 }
0x1488   :  { %6850 = vst.msk [vmem:[#allocation3 + $0x20] sm:$0xff] %vm239_vm0, %v6817_v33  ;;  %v6675_v7 = vadd.f32 %v11678_v49, %v6674_v21 }
0x148a   :  { %v6724_v37 = vadd.f32 %v6723_v40, %v6675_v7 }
0x148c   :  { %v6773_v59 = vadd.f32 %v6772_v0, %v6724_v37 }
0x148d   :  { %v6818_v12 = vpop.f32.mrf.mxu3 }
0x148e   :  { %v6819_v10 = vadd.f32 %v6818_v12, %v6770_v19 }
0x148f   :  { %v6676_v16 = vpop.f32.mrf.mxu0 }
0x1490   :  { %6851 = vst.msk [vmem:[#allocation3 + $0x28] sm:$0xff] %vm239_vm0, %v6819_v10  ;;  %v6677_v28 = vadd.f32 %v11678_v49, %v6676_v16 }
0x1492   :  { %v6726_v60 = vadd.f32 %v6725_v9, %v6677_v28 }
0x1493   :  { %v6777_v41 = vpop.f32.mrf.mxu2 }
0x1494   :  { %v6775_v11 = vadd.f32 %v6774_v23, %v6726_v60 }
0x1495   :  { %v6821_v36 = vpop.f32.mrf.mxu3  ;;  %v6728_v45 = vpop.f32.mrf.mxu1 }
0x1496   :  { %v6822_v56 = vadd.f32 %v6821_v36, %v6773_v59 }
0x1497   :  { %v6679_v63 = vpop.f32.mrf.mxu0 }
0x1498   :  { %6852 = vst.msk [vmem:[#allocation3 + $0x30] sm:$0xff] %vm239_vm0, %v6822_v56  ;;  %v6680_v31 = vadd.f32 %v11678_v49, %v6679_v63 }
0x149a   :  { %v6729_v35 = vadd.f32 %v6728_v45, %v6680_v31 }
0x149b   :  { %v6779_v25 = vpop.f32.mrf.mxu2 }
0x149c   :  { %v6778_v34 = vadd.f32 %v6777_v41, %v6729_v35 }
0x149d   :  { %v6823_v2 = vpop.f32.mrf.mxu3  ;;  %v6730_v44 = vpop.f32.mrf.mxu1 }
0x149e   :  { %v6824_v1 = vadd.f32 %v6823_v2, %v6775_v11 }
0x149f   :  { %v6681_v14 = vpop.f32.mrf.mxu0 }
0x14a0   :  { %6853 = vst.msk [vmem:[#allocation3 + $0x38] sm:$0xff] %vm239_vm0, %v6824_v1  ;;  %v6682_v39 = vadd.f32 %v11678_v49, %v6681_v14 }
0x14a2   :  { %v6731_v52 = vadd.f32 %v6730_v44, %v6682_v39 }
0x14a3   :  { %v6782_v50 = vpop.f32.mrf.mxu2 }
0x14a4   :  { %v6780_v48 = vadd.f32 %v6779_v25, %v6731_v52 }
0x14a5   :  { %v6826_v57 = vpop.f32.mrf.mxu3  ;;  %v6733_v20 = vpop.f32.mrf.mxu1 }
0x14a6   :  { %v6827_v58 = vadd.f32 %v6826_v57, %v6778_v34 }
0x14a7   :  { %v6684_v22 = vpop.f32.mrf.mxu0 }
0x14a8   :  { %6854 = vst.msk [vmem:[#allocation3 + $0x40] sm:$0xff] %vm239_vm0, %v6827_v58  ;;  %v6685_v6 = vadd.f32 %v11678_v49, %v6684_v22 }
0x14aa   :  { %v6734_v30 = vadd.f32 %v6733_v20, %v6685_v6 }
0x14ab   :  { %v6784_v18 = vpop.f32.mrf.mxu2 }
0x14ac   :  { %v6783_v42 = vadd.f32 %v6782_v50, %v6734_v30 }
0x14ad   :  { %v6828_v27 = vpop.f32.mrf.mxu3  ;;  %v6735_v13 = vpop.f32.mrf.mxu1 }
0x14ae   :  { %v6829_v32 = vadd.f32 %v6828_v27, %v6780_v48 }
0x14af   :  { %v6686_v24 = vpop.f32.mrf.mxu0 }
0x14b0   :  { %6855 = vst.msk [vmem:[#allocation3 + $0x48] sm:$0xff] %vm239_vm0, %v6829_v32  ;;  %v6687_v29 = vadd.f32 %v11678_v49, %v6686_v24 }
0x14b2   :  { %v6736_v3 = vadd.f32 %v6735_v13, %v6687_v29 }
0x14b3   :  { %v6787_v53 = vpop.f32.mrf.mxu2 }
0x14b4   :  { %v6785_v26 = vadd.f32 %v6784_v18, %v6736_v3 }
0x14b5   :  { %v6738_v17 = vpop.f32.mrf.mxu1 }
0x14bb   :  { %v6789_v40 = vpop.f32.mrf.mxu2 }
0x14bd   :  { %v6740_v51 = vpop.f32.mrf.mxu1 }
0x14c7   :  { %v6831_v47 = vpop.f32.mrf.mxu3 }
0x14c8   :  { %v6832_v62 = vadd.f32 %v6831_v47, %v6783_v42 }
0x14c9   :  { %v6689_v15 = vpop.f32.mrf.mxu0 }
0x14ca   :  { %6856 = vst.msk [vmem:[#allocation3 + $0x50] sm:$0xff] %vm239_vm0, %v6832_v62  ;;  %v6690_v8 = vadd.f32 %v11678_v49, %v6689_v15 }
0x14cc   :  { %v6739_v38 = vadd.f32 %v6738_v17, %v6690_v8 }
0x14ce   :  { %v6788_v54 = vadd.f32 %v6787_v53, %v6739_v38 }
0x14cf   :  { %v6833_v5 = vpop.f32.mrf.mxu3 }
0x14d0   :  { %v6834_v43 = vadd.f32 %v6833_v5, %v6785_v26 }
0x14d1   :  { %v6691_v55 = vpop.f32.mrf.mxu0 }
0x14d2   :  { %6857 = vst.msk [vmem:[#allocation3 + $0x58] sm:$0xff] %vm239_vm0, %v6834_v43  ;;  %v6692_v61 = vadd.f32 %v11678_v49, %v6691_v55 }
0x14d4   :  { %v6741_v46 = vadd.f32 %v6740_v51, %v6692_v61 }
0x14d6   :  { %v6790_v7 = vadd.f32 %v6789_v40, %v6741_v46 }
0x14d7   :  { %v6836_v4 = vpop.f32.mrf.mxu3  ;;  %v6792_v37 = vpop.f32.mrf.mxu2 }
0x14d8   :  { %v6837_v33 = vadd.f32 %v6836_v4, %v6788_v54 }
0x14d9   :  { %v6694_v21 = vpop.f32.mrf.mxu0  ;;  %v6743_v12 = vpop.f32.mrf.mxu1 }
0x14da   :  { %6858 = vst.msk [vmem:[#allocation3 + $0x60] sm:$0xff] %vm239_vm0, %v6837_v33  ;;  %v6695_v19 = vadd.f32 %v11678_v49, %v6694_v21 }
0x14dc   :  { %v6744_v16 = vadd.f32 %v6743_v12, %v6695_v19 }
0x14de   :  { %v6793_v9 = vadd.f32 %v6792_v37, %v6744_v16 }
0x14df   :  { %v6838_v10 = vpop.f32.mrf.mxu3  ;;  %v6794_v23 = vpop.f32.mrf.mxu2 }
0x14e0   :  { %v6839_v0 = vadd.f32 %v6838_v10, %v6790_v7 }
0x14e1   :  { %v6696_v28 = vpop.f32.mrf.mxu0  ;;  %v6745_v63 = vpop.f32.mrf.mxu1 }
0x14e2   :  { %6859 = vst.msk [vmem:[#allocation3 + $0x68] sm:$0xff] %vm239_vm0, %v6839_v0  ;;  %v6697_v59 = vadd.f32 %v11678_v49, %v6696_v28 }
0x14e4   :  { %v6746_v60 = vadd.f32 %v6745_v63, %v6697_v59 }
0x14e6   :  { %v6795_v31 = vadd.f32 %v6794_v23, %v6746_v60 }
0x14e7   :  { %v6841_v36 = vpop.f32.mrf.mxu3 }
0x14e8   :  { %v6842_v56 = vadd.f32 %v6841_v36, %v6793_v9 }
0x14ea   :  { %6860 = vst.msk [vmem:[#allocation3 + $0x70] sm:$0xff] %vm239_vm0, %v6842_v56 }
0x14ef   :  { %v6843_v11 = vpop.f32.mrf.mxu3 }
0x14f0   :  { %v6844_v45 = vadd.f32 %v6843_v11, %v6795_v31 }
0x14f2   :  { %6861 = vst.msk [vmem:[#allocation3 + $0x78] sm:$0xff] %vm239_vm0, %v6844_v45 }
0x14f3   :  { %6874 = dma.vmem_to_hbm [thread:$0]  %s6867_s9, 2048, %s6869_s0, [#allocation4], %s8403_s7, %s8403_s7, %s8404_s30  }
0x14f4   :  { %8393 = dma.done.wait [#allocation4], 2048  }
0x14f5   :  { %8394 = vsyncadd [#allocation4], 4294965248 }
0x14f6   :  { %6879 = vsyncpa [#allocation4], 1 }

</bundles_post_ra>
